<compile_context>
chip_gen: v7x
topology: tpu7x:2x2x1
jax: 0.10.0
libtpu: 0.0.40
codegen_flags: <defaults>
</compile_context>

<pallas_src>
import jax
import jax.numpy as jnp
from jax import lax
from jax.experimental import pallas as pl
from jax.experimental.pallas import tpu as pltpu

# Shapes fixed by the module definition.
C = 1824            # channels (= groups, depthwise)
H = W = 7           # spatial size of x593
KH = KW = 3         # kernel size
PAD = 1             # spatial padding


def _pick_num_channel_tiles():
    """1 channel tile on single-TensorCore chips (v5e/v6e); 2 equal tiles on
    multi-TensorCore chips (v7x, v4 megacore) so both cores get one step each.
    Falls back to 2 (correct and near-optimal everywhere)."""
    try:
        kind = jax.devices()[0].device_kind.lower()
    except Exception:
        return 2
    return 1 if ("v5" in kind or "v6" in kind) else 2


NUM_CT = _pick_num_channel_tiles()
if NUM_CT == 1:
    CT = C                                               # full-array last dim (legal block)
else:
    CT = ((C + NUM_CT - 1) // NUM_CT + 127) // 128 * 128  # 1024: lane-aligned
GRID_CT = (C + CT - 1) // CT                              # channel tiles in the grid


def dwconv3x3_kernel(x_ref, w_ref, o_ref):
    """Depthwise 3x3 conv, stride 1, one (batch, channel-tile) grid step.

    x_ref: (1, H, W + 2*PAD, CT)  W-padded NHWC input tile, VMEM
    w_ref: (KH*KW, CT)            per-channel taps, VMEM
    o_ref: (1, H, W, CT)          output tile, VMEM
    """
    w = w_ref[...].astype(jnp.float32)                    # (9, CT): one VMEM read

    # Row-wise accumulation: only one (W, CT) accumulator is live at a time.
    for i in range(H):
        acc = jnp.zeros((W, CT), jnp.float32)
        for di in range(KH):
            si = i + di - PAD
            if si < 0 or si >= H:
                continue                                   # zero-padded row: no contribution
            xrow = x_ref[0, si].astype(jnp.float32)        # (W + 2*PAD, CT)
            for dj in range(KW):
                tap = w[di * KW + dj][None, :]              # (1, CT) -> sublane broadcast
                # W-axis shift is a static sublane-offset slice of the padded row.
                acc = acc + xrow[dj:dj + W, :] * tap
        o_ref[0, i] = acc.astype(o_ref.dtype)


@jax.jit
def depthwise_conv2d_3x3(x_nchw, w_oihw):
    """x_nchw: (N, C, H, W) f32; w_oihw: (C, 1, 3, 3) f32 -> (N, C, H, W)."""
    n = x_nchw.shape[0]

    # NCHW -> NHWC (channels on the 128-lane axis). Only the W axis is
    # zero-padded; it rides in the same XLA fusion as the transpose, so the
    # single HBM intermediate is (N, H, W+2, C) — no channel pad, no H pad.
    # TODO(synk): try pltpu.CompilerParams(allow_input_fusion=...) to fuse the
    # transpose producer into the pallas_call and drop this intermediate too.
    x_nhwc = jnp.transpose(x_nchw, (0, 2, 3, 1))                       # (N, H, W, C)
    x_wpad = jnp.pad(x_nhwc, ((0, 0), (0, 0), (PAD, PAD), (0, 0)))     # (N, H, W+2, C)
    w_taps = jnp.transpose(w_oihw[:, 0, :, :], (1, 2, 0)).reshape(KH * KW, C)

    out = pl.pallas_call(
        dwconv3x3_kernel,
        out_shape=jax.ShapeDtypeStruct((n, H, W, C), x_nchw.dtype),
        grid_spec=pltpu.PrefetchScalarGridSpec(
            num_scalar_prefetch=0,
            grid=(n, GRID_CT),
            in_specs=[
                pl.BlockSpec((1, H, W + 2 * PAD, CT), lambda b, c: (b, 0, 0, c)),
                pl.BlockSpec((KH * KW, CT), lambda b, c: (0, c)),
            ],
            out_specs=pl.BlockSpec((1, H, W, CT), lambda b, c: (b, 0, 0, c)),
        ),
        compiler_params=pltpu.CompilerParams(
            dimension_semantics=("parallel", "parallel")),
        cost_estimate=pl.CostEstimate(
            flops=2 * n * H * W * C * KH * KW,
            transcendentals=0,
            bytes_accessed=4 * (n * H * (W + 2 * PAD) * C
                                + KH * KW * C
                                + n * H * W * C)),
    )(x_wpad, w_taps)

    # Back to NCHW (fused under jit); no channel slice needed.
    return jnp.transpose(out, (0, 3, 1, 2))


if __name__ == "__main__":
    key = jax.random.PRNGKey(0)
    kx, kw = jax.random.split(key)

    # x593 analogue: (1, 1824, 7, 7)
    x = jax.random.normal(kx, (1, C, H, W), dtype=jnp.float32)
    # Deterministic depthwise weights: (C, 1, 3, 3)
    w = jax.random.normal(kw, (C, 1, KH, KW), dtype=jnp.float32) * 0.1

    out = depthwise_conv2d_3x3(x, w)
    out = jax.block_until_ready(out)

    # Reference (plain XLA) depthwise conv for validation.
    ref = lax.conv_general_dilated(
        x, w,
        window_strides=(1, 1),
        padding=((PAD, PAD), (PAD, PAD)),
        dimension_numbers=("NCHW", "OIHW", "NCHW"),
        feature_group_count=C,
    )
    ref = jax.block_until_ready(ref)

    assert out.shape == (1, C, H, W), out.shape
    assert jnp.allclose(out, ref, atol=1e-4, rtol=1e-4), float(
        jnp.max(jnp.abs(out - ref)))
    print("KERNEL_OK")
</pallas_src>

<mosaic_0001>
module attributes {stable_mosaic.version = 11 : i64} {
  func.func @dwconv3x3_kernel(%arg0: i32, %arg1: i32, %arg2: memref<1x7x9x1024xf32, #tpu.memory_space<vmem>>, %arg3: memref<9x1024xf32, #tpu.memory_space<vmem>>, %arg4: memref<1x7x7x1024xf32, #tpu.memory_space<vmem>>) attributes {dimension_semantics = [#tpu.dimension_semantics<parallel>, #tpu.dimension_semantics<parallel>], iteration_bounds = array<i64: 1, 2>, scalar_prefetch = 0 : i64, scratch_operands = 0 : i64, tpu.core_type = #tpu.core_type<tc>, window_params = [{transform_indices = @transform_0, window_bounds = array<i64: 1, 7, 9, 1024>}, {transform_indices = @transform_1, window_bounds = array<i64: 9, 1024>}, {transform_indices = @transform_2, window_bounds = array<i64: 1, 7, 7, 1024>}]} {
    %c0 = arith.constant 0 : index
    %c0_0 = arith.constant 0 : index
    %0 = vector.load %arg3[%c0, %c0_0] : memref<9x1024xf32, #tpu.memory_space<vmem>>, vector<9x1024xf32>
    %cst = arith.constant 0.000000e+00 : f32
    %1 = vector.broadcast %cst : f32 to vector<7x1024xf32>
    %c0_1 = arith.constant 0 : index
    %c0_2 = arith.constant 0 : index
    %c0_3 = arith.constant 0 : index
    %c0_4 = arith.constant 0 : index
    %2 = vector.load %arg2[%c0_1, %c0_2, %c0_3, %c0_4] : memref<1x7x9x1024xf32, #tpu.memory_space<vmem>>, vector<1x1x9x1024xf32>
    %3 = vector.shape_cast %2 : vector<1x1x9x1024xf32> to vector<9x1024xf32>
    %4 = vector.extract_strided_slice %0 {offsets = [3, 0], sizes = [1, 1024], strides = [1, 1]} : vector<9x1024xf32> to vector<1x1024xf32>
    %5 = vector.shape_cast %4 : vector<1x1024xf32> to vector<1024xf32>
    %6 = vector.shape_cast %5 : vector<1024xf32> to vector<1x1024xf32>
    %7 = vector.extract_strided_slice %3 {offsets = [0, 0], sizes = [7, 1024], strides = [1, 1]} : vector<9x1024xf32> to vector<7x1024xf32>
    %8 = vector.broadcast %6 : vector<1x1024xf32> to vector<7x1024xf32>
    %9 = arith.mulf %7, %8 : vector<7x1024xf32>
    %10 = arith.addf %1, %9 : vector<7x1024xf32>
    %11 = vector.extract_strided_slice %0 {offsets = [4, 0], sizes = [1, 1024], strides = [1, 1]} : vector<9x1024xf32> to vector<1x1024xf32>
    %12 = vector.shape_cast %11 : vector<1x1024xf32> to vector<1024xf32>
    %13 = vector.shape_cast %12 : vector<1024xf32> to vector<1x1024xf32>
    %14 = vector.extract_strided_slice %3 {offsets = [1, 0], sizes = [7, 1024], strides = [1, 1]} : vector<9x1024xf32> to vector<7x1024xf32>
    %15 = vector.broadcast %13 : vector<1x1024xf32> to vector<7x1024xf32>
    %16 = arith.mulf %14, %15 : vector<7x1024xf32>
    %17 = arith.addf %10, %16 : vector<7x1024xf32>
    %18 = vector.extract_strided_slice %0 {offsets = [5, 0], sizes = [1, 1024], strides = [1, 1]} : vector<9x1024xf32> to vector<1x1024xf32>
    %19 = vector.shape_cast %18 : vector<1x1024xf32> to vector<1024xf32>
    %20 = vector.shape_cast %19 : vector<1024xf32> to vector<1x1024xf32>
    %21 = vector.extract_strided_slice %3 {offsets = [2, 0], sizes = [7, 1024], strides = [1, 1]} : vector<9x1024xf32> to vector<7x1024xf32>
    %22 = vector.broadcast %20 : vector<1x1024xf32> to vector<7x1024xf32>
    %23 = arith.mulf %21, %22 : vector<7x1024xf32>
    %24 = arith.addf %17, %23 : vector<7x1024xf32>
    %c0_5 = arith.constant 0 : index
    %c1 = arith.constant 1 : index
    %c0_6 = arith.constant 0 : index
    %c0_7 = arith.constant 0 : index
    %25 = vector.load %arg2[%c0_5, %c1, %c0_6, %c0_7] : memref<1x7x9x1024xf32, #tpu.memory_space<vmem>>, vector<1x1x9x1024xf32>
    %26 = vector.shape_cast %25 : vector<1x1x9x1024xf32> to vector<9x1024xf32>
    %27 = vector.extract_strided_slice %0 {offsets = [6, 0], sizes = [1, 1024], strides = [1, 1]} : vector<9x1024xf32> to vector<1x1024xf32>
    %28 = vector.shape_cast %27 : vector<1x1024xf32> to vector<1024xf32>
    %29 = vector.shape_cast %28 : vector<1024xf32> to vector<1x1024xf32>
    %30 = vector.extract_strided_slice %26 {offsets = [0, 0], sizes = [7, 1024], strides = [1, 1]} : vector<9x1024xf32> to vector<7x1024xf32>
    %31 = vector.broadcast %29 : vector<1x1024xf32> to vector<7x1024xf32>
    %32 = arith.mulf %30, %31 : vector<7x1024xf32>
    %33 = arith.addf %24, %32 : vector<7x1024xf32>
    %34 = vector.extract_strided_slice %0 {offsets = [7, 0], sizes = [1, 1024], strides = [1, 1]} : vector<9x1024xf32> to vector<1x1024xf32>
    %35 = vector.shape_cast %34 : vector<1x1024xf32> to vector<1024xf32>
    %36 = vector.shape_cast %35 : vector<1024xf32> to vector<1x1024xf32>
    %37 = vector.extract_strided_slice %26 {offsets = [1, 0], sizes = [7, 1024], strides = [1, 1]} : vector<9x1024xf32> to vector<7x1024xf32>
    %38 = vector.broadcast %36 : vector<1x1024xf32> to vector<7x1024xf32>
    %39 = arith.mulf %37, %38 : vector<7x1024xf32>
    %40 = arith.addf %33, %39 : vector<7x1024xf32>
    %41 = vector.extract_strided_slice %0 {offsets = [8, 0], sizes = [1, 1024], strides = [1, 1]} : vector<9x1024xf32> to vector<1x1024xf32>
    %42 = vector.shape_cast %41 : vector<1x1024xf32> to vector<1024xf32>
    %43 = vector.shape_cast %42 : vector<1024xf32> to vector<1x1024xf32>
    %44 = vector.extract_strided_slice %26 {offsets = [2, 0], sizes = [7, 1024], strides = [1, 1]} : vector<9x1024xf32> to vector<7x1024xf32>
    %45 = vector.broadcast %43 : vector<1x1024xf32> to vector<7x1024xf32>
    %46 = arith.mulf %44, %45 : vector<7x1024xf32>
    %47 = arith.addf %40, %46 : vector<7x1024xf32>
    %c0_8 = arith.constant 0 : index
    %c0_9 = arith.constant 0 : index
    %c0_10 = arith.constant 0 : index
    %c0_11 = arith.constant 0 : index
    %48 = vector.load %arg4[%c0_8, %c0_9, %c0_10, %c0_11] : memref<1x7x7x1024xf32, #tpu.memory_space<vmem>>, vector<1x1x7x1024xf32>
    %49 = vector.shape_cast %48 : vector<1x1x7x1024xf32> to vector<7x1024xf32>
    %50 = vector.shape_cast %47 : vector<7x1024xf32> to vector<1x1x7x1024xf32>
    tpu.vector_store %arg4[%c0_8, %c0_9, %c0_10, %c0_11], %50 {strides = array<i32>} : memref<1x7x7x1024xf32, #tpu.memory_space<vmem>>, vector<1x1x7x1024xf32>,
    %cst_12 = arith.constant 0.000000e+00 : f32
    %51 = vector.broadcast %cst_12 : f32 to vector<7x1024xf32>
    %c0_13 = arith.constant 0 : index
    %c0_14 = arith.constant 0 : index
    %c0_15 = arith.constant 0 : index
    %c0_16 = arith.constant 0 : index
    %52 = vector.load %arg2[%c0_13, %c0_14, %c0_15, %c0_16] : memref<1x7x9x1024xf32, #tpu.memory_space<vmem>>, vector<1x1x9x1024xf32>
    %53 = vector.shape_cast %52 : vector<1x1x9x1024xf32> to vector<9x1024xf32>
    %54 = vector.extract_strided_slice %0 {offsets = [0, 0], sizes = [1, 1024], strides = [1, 1]} : vector<9x1024xf32> to vector<1x1024xf32>
    %55 = vector.shape_cast %54 : vector<1x1024xf32> to vector<1024xf32>
    %56 = vector.shape_cast %55 : vector<1024xf32> to vector<1x1024xf32>
    %57 = vector.extract_strided_slice %53 {offsets = [0, 0], sizes = [7, 1024], strides = [1, 1]} : vector<9x1024xf32> to vector<7x1024xf32>
    %58 = vector.broadcast %56 : vector<1x1024xf32> to vector<7x1024xf32>
    %59 = arith.mulf %57, %58 : vector<7x1024xf32>
    %60 = arith.addf %51, %59 : vector<7x1024xf32>
    %61 = vector.extract_strided_slice %0 {offsets = [1, 0], sizes = [1, 1024], strides = [1, 1]} : vector<9x1024xf32> to vector<1x1024xf32>
    %62 = vector.shape_cast %61 : vector<1x1024xf32> to vector<1024xf32>
    %63 = vector.shape_cast %62 : vector<1024xf32> to vector<1x1024xf32>
    %64 = vector.extract_strided_slice %53 {offsets = [1, 0], sizes = [7, 1024], strides = [1, 1]} : vector<9x1024xf32> to vector<7x1024xf32>
    %65 = vector.broadcast %63 : vector<1x1024xf32> to vector<7x1024xf32>
    %66 = arith.mulf %64, %65 : vector<7x1024xf32>
    %67 = arith.addf %60, %66 : vector<7x1024xf32>
    %68 = vector.extract_strided_slice %0 {offsets = [2, 0], sizes = [1, 1024], strides = [1, 1]} : vector<9x1024xf32> to vector<1x1024xf32>
    %69 = vector.shape_cast %68 : vector<1x1024xf32> to vector<1024xf32>
    %70 = vector.shape_cast %69 : vector<1024xf32> to vector<1x1024xf32>
    %71 = vector.extract_strided_slice %53 {offsets = [2, 0], sizes = [7, 1024], strides = [1, 1]} : vector<9x1024xf32> to vector<7x1024xf32>
    %72 = vector.broadcast %70 : vector<1x1024xf32> to vector<7x1024xf32>
    %73 = arith.mulf %71, %72 : vector<7x1024xf32>
    %74 = arith.addf %67, %73 : vector<7x1024xf32>
    %c0_17 = arith.constant 0 : index
    %c1_18 = arith.constant 1 : index
    %c0_19 = arith.constant 0 : index
    %c0_20 = arith.constant 0 : index
    %75 = vector.load %arg2[%c0_17, %c1_18, %c0_19, %c0_20] : memref<1x7x9x1024xf32, #tpu.memory_space<vmem>>, vector<1x1x9x1024xf32>
    %76 = vector.shape_cast %75 : vector<1x1x9x1024xf32> to vector<9x1024xf32>
    %77 = vector.extract_strided_slice %0 {offsets = [3, 0], sizes = [1, 1024], strides = [1, 1]} : vector<9x1024xf32> to vector<1x1024xf32>
    %78 = vector.shape_cast %77 : vector<1x1024xf32> to vector<1024xf32>
    %79 = vector.shape_cast %78 : vector<1024xf32> to vector<1x1024xf32>
    %80 = vector.extract_strided_slice %76 {offsets = [0, 0], sizes = [7, 1024], strides = [1, 1]} : vector<9x1024xf32> to vector<7x1024xf32>
    %81 = vector.broadcast %79 : vector<1x1024xf32> to vector<7x1024xf32>
    %82 = arith.mulf %80, %81 : vector<7x1024xf32>
    %83 = arith.addf %74, %82 : vector<7x1024xf32>
    %84 = vector.extract_strided_slice %0 {offsets = [4, 0], sizes = [1, 1024], strides = [1, 1]} : vector<9x1024xf32> to vector<1x1024xf32>
    %85 = vector.shape_cast %84 : vector<1x1024xf32> to vector<1024xf32>
    %86 = vector.shape_cast %85 : vector<1024xf32> to vector<1x1024xf32>
    %87 = vector.extract_strided_slice %76 {offsets = [1, 0], sizes = [7, 1024], strides = [1, 1]} : vector<9x1024xf32> to vector<7x1024xf32>
    %88 = vector.broadcast %86 : vector<1x1024xf32> to vector<7x1024xf32>
    %89 = arith.mulf %87, %88 : vector<7x1024xf32>
    %90 = arith.addf %83, %89 : vector<7x1024xf32>
    %91 = vector.extract_strided_slice %0 {offsets = [5, 0], sizes = [1, 1024], strides = [1, 1]} : vector<9x1024xf32> to vector<1x1024xf32>
    %92 = vector.shape_cast %91 : vector<1x1024xf32> to vector<1024xf32>
    %93 = vector.shape_cast %92 : vector<1024xf32> to vector<1x1024xf32>
    %94 = vector.extract_strided_slice %76 {offsets = [2, 0], sizes = [7, 1024], strides = [1, 1]} : vector<9x1024xf32> to vector<7x1024xf32>
    %95 = vector.broadcast %93 : vector<1x1024xf32> to vector<7x1024xf32>
    %96 = arith.mulf %94, %95 : vector<7x1024xf32>
    %97 = arith.addf %90, %96 : vector<7x1024xf32>
    %c0_21 = arith.constant 0 : index
    %c2 = arith.constant 2 : index
    %c0_22 = arith.constant 0 : index
    %c0_23 = arith.constant 0 : index
    %98 = vector.load %arg2[%c0_21, %c2, %c0_22, %c0_23] : memref<1x7x9x1024xf32, #tpu.memory_space<vmem>>, vector<1x1x9x1024xf32>
    %99 = vector.shape_cast %98 : vector<1x1x9x1024xf32> to vector<9x1024xf32>
    %100 = vector.extract_strided_slice %0 {offsets = [6, 0], sizes = [1, 1024], strides = [1, 1]} : vector<9x1024xf32> to vector<1x1024xf32>
    %101 = vector.shape_cast %100 : vector<1x1024xf32> to vector<1024xf32>
    %102 = vector.shape_cast %101 : vector<1024xf32> to vector<1x1024xf32>
    %103 = vector.extract_strided_slice %99 {offsets = [0, 0], sizes = [7, 1024], strides = [1, 1]} : vector<9x1024xf32> to vector<7x1024xf32>
    %104 = vector.broadcast %102 : vector<1x1024xf32> to vector<7x1024xf32>
    %105 = arith.mulf %103, %104 : vector<7x1024xf32>
    %106 = arith.addf %97, %105 : vector<7x1024xf32>
    %107 = vector.extract_strided_slice %0 {offsets = [7, 0], sizes = [1, 1024], strides = [1, 1]} : vector<9x1024xf32> to vector<1x1024xf32>
    %108 = vector.shape_cast %107 : vector<1x1024xf32> to vector<1024xf32>
    %109 = vector.shape_cast %108 : vector<1024xf32> to vector<1x1024xf32>
    %110 = vector.extract_strided_slice %99 {offsets = [1, 0], sizes = [7, 1024], strides = [1, 1]} : vector<9x1024xf32> to vector<7x1024xf32>
    %111 = vector.broadcast %109 : vector<1x1024xf32> to vector<7x1024xf32>
    %112 = arith.mulf %110, %111 : vector<7x1024xf32>
    %113 = arith.addf %106, %112 : vector<7x1024xf32>
    %114 = vector.extract_strided_slice %0 {offsets = [8, 0], sizes = [1, 1024], strides = [1, 1]} : vector<9x1024xf32> to vector<1x1024xf32>
    %115 = vector.shape_cast %114 : vector<1x1024xf32> to vector<1024xf32>
    %116 = vector.shape_cast %115 : vector<1024xf32> to vector<1x1024xf32>
    %117 = vector.extract_strided_slice %99 {offsets = [2, 0], sizes = [7, 1024], strides = [1, 1]} : vector<9x1024xf32> to vector<7x1024xf32>
    %118 = vector.broadcast %116 : vector<1x1024xf32> to vector<7x1024xf32>
    %119 = arith.mulf %117, %118 : vector<7x1024xf32>
    %120 = arith.addf %113, %119 : vector<7x1024xf32>
    %c0_24 = arith.constant 0 : index
    %c1_25 = arith.constant 1 : index
    %c0_26 = arith.constant 0 : index
    %c0_27 = arith.constant 0 : index
    %121 = vector.load %arg4[%c0_24, %c1_25, %c0_26, %c0_27] : memref<1x7x7x1024xf32, #tpu.memory_space<vmem>>, vector<1x1x7x1024xf32>
    %122 = vector.shape_cast %121 : vector<1x1x7x1024xf32> to vector<7x1024xf32>
    %123 = vector.shape_cast %120 : vector<7x1024xf32> to vector<1x1x7x1024xf32>
    tpu.vector_store %arg4[%c0_24, %c1_25, %c0_26, %c0_27], %123 {strides = array<i32>} : memref<1x7x7x1024xf32, #tpu.memory_space<vmem>>, vector<1x1x7x1024xf32>,
    %cst_28 = arith.constant 0.000000e+00 : f32
    %124 = vector.broadcast %cst_28 : f32 to vector<7x1024xf32>
    %c0_29 = arith.constant 0 : index
    %c1_30 = arith.constant 1 : index
    %c0_31 = arith.constant 0 : index
    %c0_32 = arith.constant 0 : index
    %125 = vector.load %arg2[%c0_29, %c1_30, %c0_31, %c0_32] : memref<1x7x9x1024xf32, #tpu.memory_space<vmem>>, vector<1x1x9x1024xf32>
    %126 = vector.shape_cast %125 : vector<1x1x9x1024xf32> to vector<9x1024xf32>
    %127 = vector.extract_strided_slice %0 {offsets = [0, 0], sizes = [1, 1024], strides = [1, 1]} : vector<9x1024xf32> to vector<1x1024xf32>
    %128 = vector.shape_cast %127 : vector<1x1024xf32> to vector<1024xf32>
    %129 = vector.shape_cast %128 : vector<1024xf32> to vector<1x1024xf32>
    %130 = vector.extract_strided_slice %126 {offsets = [0, 0], sizes = [7, 1024], strides = [1, 1]} : vector<9x1024xf32> to vector<7x1024xf32>
    %131 = vector.broadcast %129 : vector<1x1024xf32> to vector<7x1024xf32>
    %132 = arith.mulf %130, %131 : vector<7x1024xf32>
    %133 = arith.addf %124, %132 : vector<7x1024xf32>
    %134 = vector.extract_strided_slice %0 {offsets = [1, 0], sizes = [1, 1024], strides = [1, 1]} : vector<9x1024xf32> to vector<1x1024xf32>
    %135 = vector.shape_cast %134 : vector<1x1024xf32> to vector<1024xf32>
    %136 = vector.shape_cast %135 : vector<1024xf32> to vector<1x1024xf32>
    %137 = vector.extract_strided_slice %126 {offsets = [1, 0], sizes = [7, 1024], strides = [1, 1]} : vector<9x1024xf32> to vector<7x1024xf32>
    %138 = vector.broadcast %136 : vector<1x1024xf32> to vector<7x1024xf32>
    %139 = arith.mulf %137, %138 : vector<7x1024xf32>
    %140 = arith.addf %133, %139 : vector<7x1024xf32>
    %141 = vector.extract_strided_slice %0 {offsets = [2, 0], sizes = [1, 1024], strides = [1, 1]} : vector<9x1024xf32> to vector<1x1024xf32>
    %142 = vector.shape_cast %141 : vector<1x1024xf32> to vector<1024xf32>
    %143 = vector.shape_cast %142 : vector<1024xf32> to vector<1x1024xf32>
    %144 = vector.extract_strided_slice %126 {offsets = [2, 0], sizes = [7, 1024], strides = [1, 1]} : vector<9x1024xf32> to vector<7x1024xf32>
    %145 = vector.broadcast %143 : vector<1x1024xf32> to vector<7x1024xf32>
    %146 = arith.mulf %144, %145 : vector<7x1024xf32>
    %147 = arith.addf %140, %146 : vector<7x1024xf32>
    %c0_33 = arith.constant 0 : index
    %c2_34 = arith.constant 2 : index
    %c0_35 = arith.constant 0 : index
    %c0_36 = arith.constant 0 : index
    %148 = vector.load %arg2[%c0_33, %c2_34, %c0_35, %c0_36] : memref<1x7x9x1024xf32, #tpu.memory_space<vmem>>, vector<1x1x9x1024xf32>
    %149 = vector.shape_cast %148 : vector<1x1x9x1024xf32> to vector<9x1024xf32>
    %150 = vector.extract_strided_slice %0 {offsets = [3, 0], sizes = [1, 1024], strides = [1, 1]} : vector<9x1024xf32> to vector<1x1024xf32>
    %151 = vector.shape_cast %150 : vector<1x1024xf32> to vector<1024xf32>
    %152 = vector.shape_cast %151 : vector<1024xf32> to vector<1x1024xf32>
    %153 = vector.extract_strided_slice %149 {offsets = [0, 0], sizes = [7, 1024], strides = [1, 1]} : vector<9x1024xf32> to vector<7x1024xf32>
    %154 = vector.broadcast %152 : vector<1x1024xf32> to vector<7x1024xf32>
    %155 = arith.mulf %153, %154 : vector<7x1024xf32>
    %156 = arith.addf %147, %155 : vector<7x1024xf32>
    %157 = vector.extract_strided_slice %0 {offsets = [4, 0], sizes = [1, 1024], strides = [1, 1]} : vector<9x1024xf32> to vector<1x1024xf32>
    %158 = vector.shape_cast %157 : vector<1x1024xf32> to vector<1024xf32>
    %159 = vector.shape_cast %158 : vector<1024xf32> to vector<1x1024xf32>
    %160 = vector.extract_strided_slice %149 {offsets = [1, 0], sizes = [7, 1024], strides = [1, 1]} : vector<9x1024xf32> to vector<7x1024xf32>
    %161 = vector.broadcast %159 : vector<1x1024xf32> to vector<7x1024xf32>
    %162 = arith.mulf %160, %161 : vector<7x1024xf32>
    %163 = arith.addf %156, %162 : vector<7x1024xf32>
    %164 = vector.extract_strided_slice %0 {offsets = [5, 0], sizes = [1, 1024], strides = [1, 1]} : vector<9x1024xf32> to vector<1x1024xf32>
    %165 = vector.shape_cast %164 : vector<1x1024xf32> to vector<1024xf32>
    %166 = vector.shape_cast %165 : vector<1024xf32> to vector<1x1024xf32>
    %167 = vector.extract_strided_slice %149 {offsets = [2, 0], sizes = [7, 1024], strides = [1, 1]} : vector<9x1024xf32> to vector<7x1024xf32>
    %168 = vector.broadcast %166 : vector<1x1024xf32> to vector<7x1024xf32>
    %169 = arith.mulf %167, %168 : vector<7x1024xf32>
    %170 = arith.addf %163, %169 : vector<7x1024xf32>
    %c0_37 = arith.constant 0 : index
    %c3 = arith.constant 3 : index
    %c0_38 = arith.constant 0 : index
    %c0_39 = arith.constant 0 : index
    %171 = vector.load %arg2[%c0_37, %c3, %c0_38, %c0_39] : memref<1x7x9x1024xf32, #tpu.memory_space<vmem>>, vector<1x1x9x1024xf32>
    %172 = vector.shape_cast %171 : vector<1x1x9x1024xf32> to vector<9x1024xf32>
    %173 = vector.extract_strided_slice %0 {offsets = [6, 0], sizes = [1, 1024], strides = [1, 1]} : vector<9x1024xf32> to vector<1x1024xf32>
    %174 = vector.shape_cast %173 : vector<1x1024xf32> to vector<1024xf32>
    %175 = vector.shape_cast %174 : vector<1024xf32> to vector<1x1024xf32>
    %176 = vector.extract_strided_slice %172 {offsets = [0, 0], sizes = [7, 1024], strides = [1, 1]} : vector<9x1024xf32> to vector<7x1024xf32>
    %177 = vector.broadcast %175 : vector<1x1024xf32> to vector<7x1024xf32>
    %178 = arith.mulf %176, %177 : vector<7x1024xf32>
    %179 = arith.addf %170, %178 : vector<7x1024xf32>
    %180 = vector.extract_strided_slice %0 {offsets = [7, 0], sizes = [1, 1024], strides = [1, 1]} : vector<9x1024xf32> to vector<1x1024xf32>
    %181 = vector.shape_cast %180 : vector<1x1024xf32> to vector<1024xf32>
    %182 = vector.shape_cast %181 : vector<1024xf32> to vector<1x1024xf32>
    %183 = vector.extract_strided_slice %172 {offsets = [1, 0], sizes = [7, 1024], strides = [1, 1]} : vector<9x1024xf32> to vector<7x1024xf32>
    %184 = vector.broadcast %182 : vector<1x1024xf32> to vector<7x1024xf32>
    %185 = arith.mulf %183, %184 : vector<7x1024xf32>
    %186 = arith.addf %179, %185 : vector<7x1024xf32>
    %187 = vector.extract_strided_slice %0 {offsets = [8, 0], sizes = [1, 1024], strides = [1, 1]} : vector<9x1024xf32> to vector<1x1024xf32>
    %188 = vector.shape_cast %187 : vector<1x1024xf32> to vector<1024xf32>
    %189 = vector.shape_cast %188 : vector<1024xf32> to vector<1x1024xf32>
    %190 = vector.extract_strided_slice %172 {offsets = [2, 0], sizes = [7, 1024], strides = [1, 1]} : vector<9x1024xf32> to vector<7x1024xf32>
    %191 = vector.broadcast %189 : vector<1x1024xf32> to vector<7x1024xf32>
    %192 = arith.mulf %190, %191 : vector<7x1024xf32>
    %193 = arith.addf %186, %192 : vector<7x1024xf32>
    %c0_40 = arith.constant 0 : index
    %c2_41 = arith.constant 2 : index
    %c0_42 = arith.constant 0 : index
    %c0_43 = arith.constant 0 : index
    %194 = vector.load %arg4[%c0_40, %c2_41, %c0_42, %c0_43] : memref<1x7x7x1024xf32, #tpu.memory_space<vmem>>, vector<1x1x7x1024xf32>
    %195 = vector.shape_cast %194 : vector<1x1x7x1024xf32> to vector<7x1024xf32>
    %196 = vector.shape_cast %193 : vector<7x1024xf32> to vector<1x1x7x1024xf32>
    tpu.vector_store %arg4[%c0_40, %c2_41, %c0_42, %c0_43], %196 {strides = array<i32>} : memref<1x7x7x1024xf32, #tpu.memory_space<vmem>>, vector<1x1x7x1024xf32>,
    %cst_44 = arith.constant 0.000000e+00 : f32
    %197 = vector.broadcast %cst_44 : f32 to vector<7x1024xf32>
    %c0_45 = arith.constant 0 : index
    %c2_46 = arith.constant 2 : index
    %c0_47 = arith.constant 0 : index
    %c0_48 = arith.constant 0 : index
    %198 = vector.load %arg2[%c0_45, %c2_46, %c0_47, %c0_48] : memref<1x7x9x1024xf32, #tpu.memory_space<vmem>>, vector<1x1x9x1024xf32>
    %199 = vector.shape_cast %198 : vector<1x1x9x1024xf32> to vector<9x1024xf32>
    %200 = vector.extract_strided_slice %0 {offsets = [0, 0], sizes = [1, 1024], strides = [1, 1]} : vector<9x1024xf32> to vector<1x1024xf32>
    %201 = vector.shape_cast %200 : vector<1x1024xf32> to vector<1024xf32>
    %202 = vector.shape_cast %201 : vector<1024xf32> to vector<1x1024xf32>
    %203 = vector.extract_strided_slice %199 {offsets = [0, 0], sizes = [7, 1024], strides = [1, 1]} : vector<9x1024xf32> to vector<7x1024xf32>
    %204 = vector.broadcast %202 : vector<1x1024xf32> to vector<7x1024xf32>
    %205 = arith.mulf %203, %204 : vector<7x1024xf32>
    %206 = arith.addf %197, %205 : vector<7x1024xf32>
    %207 = vector.extract_strided_slice %0 {offsets = [1, 0], sizes = [1, 1024], strides = [1, 1]} : vector<9x1024xf32> to vector<1x1024xf32>
    %208 = vector.shape_cast %207 : vector<1x1024xf32> to vector<1024xf32>
    %209 = vector.shape_cast %208 : vector<1024xf32> to vector<1x1024xf32>
    %210 = vector.extract_strided_slice %199 {offsets = [1, 0], sizes = [7, 1024], strides = [1, 1]} : vector<9x1024xf32> to vector<7x1024xf32>
    %211 = vector.broadcast %209 : vector<1x1024xf32> to vector<7x1024xf32>
    %212 = arith.mulf %210, %211 : vector<7x1024xf32>
    %213 = arith.addf %206, %212 : vector<7x1024xf32>
    %214 = vector.extract_strided_slice %0 {offsets = [2, 0], sizes = [1, 1024], strides = [1, 1]} : vector<9x1024xf32> to vector<1x1024xf32>
    %215 = vector.shape_cast %214 : vector<1x1024xf32> to vector<1024xf32>
    %216 = vector.shape_cast %215 : vector<1024xf32> to vector<1x1024xf32>
    %217 = vector.extract_strided_slice %199 {offsets = [2, 0], sizes = [7, 1024], strides = [1, 1]} : vector<9x1024xf32> to vector<7x1024xf32>
    %218 = vector.broadcast %216 : vector<1x1024xf32> to vector<7x1024xf32>
    %219 = arith.mulf %217, %218 : vector<7x1024xf32>
    %220 = arith.addf %213, %219 : vector<7x1024xf32>
    %c0_49 = arith.constant 0 : index
    %c3_50 = arith.constant 3 : index
    %c0_51 = arith.constant 0 : index
    %c0_52 = arith.constant 0 : index
    %221 = vector.load %arg2[%c0_49, %c3_50, %c0_51, %c0_52] : memref<1x7x9x1024xf32, #tpu.memory_space<vmem>>, vector<1x1x9x1024xf32>
    %222 = vector.shape_cast %221 : vector<1x1x9x1024xf32> to vector<9x1024xf32>
    %223 = vector.extract_strided_slice %0 {offsets = [3, 0], sizes = [1, 1024], strides = [1, 1]} : vector<9x1024xf32> to vector<1x1024xf32>
    %224 = vector.shape_cast %223 : vector<1x1024xf32> to vector<1024xf32>
    %225 = vector.shape_cast %224 : vector<1024xf32> to vector<1x1024xf32>
    %226 = vector.extract_strided_slice %222 {offsets = [0, 0], sizes = [7, 1024], strides = [1, 1]} : vector<9x1024xf32> to vector<7x1024xf32>
    %227 = vector.broadcast %225 : vector<1x1024xf32> to vector<7x1024xf32>
    %228 = arith.mulf %226, %227 : vector<7x1024xf32>
    %229 = arith.addf %220, %228 : vector<7x1024xf32>
    %230 = vector.extract_strided_slice %0 {offsets = [4, 0], sizes = [1, 1024], strides = [1, 1]} : vector<9x1024xf32> to vector<1x1024xf32>
    %231 = vector.shape_cast %230 : vector<1x1024xf32> to vector<1024xf32>
    %232 = vector.shape_cast %231 : vector<1024xf32> to vector<1x1024xf32>
    %233 = vector.extract_strided_slice %222 {offsets = [1, 0], sizes = [7, 1024], strides = [1, 1]} : vector<9x1024xf32> to vector<7x1024xf32>
    %234 = vector.broadcast %232 : vector<1x1024xf32> to vector<7x1024xf32>
    %235 = arith.mulf %233, %234 : vector<7x1024xf32>
    %236 = arith.addf %229, %235 : vector<7x1024xf32>
    %237 = vector.extract_strided_slice %0 {offsets = [5, 0], sizes = [1, 1024], strides = [1, 1]} : vector<9x1024xf32> to vector<1x1024xf32>
    %238 = vector.shape_cast %237 : vector<1x1024xf32> to vector<1024xf32>
    %239 = vector.shape_cast %238 : vector<1024xf32> to vector<1x1024xf32>
    %240 = vector.extract_strided_slice %222 {offsets = [2, 0], sizes = [7, 1024], strides = [1, 1]} : vector<9x1024xf32> to vector<7x1024xf32>
    %241 = vector.broadcast %239 : vector<1x1024xf32> to vector<7x1024xf32>
    %242 = arith.mulf %240, %241 : vector<7x1024xf32>
    %243 = arith.addf %236, %242 : vector<7x1024xf32>
    %c0_53 = arith.constant 0 : index
    %c4 = arith.constant 4 : index
    %c0_54 = arith.constant 0 : index
    %c0_55 = arith.constant 0 : index
    %244 = vector.load %arg2[%c0_53, %c4, %c0_54, %c0_55] : memref<1x7x9x1024xf32, #tpu.memory_space<vmem>>, vector<1x1x9x1024xf32>
    %245 = vector.shape_cast %244 : vector<1x1x9x1024xf32> to vector<9x1024xf32>
    %246 = vector.extract_strided_slice %0 {offsets = [6, 0], sizes = [1, 1024], strides = [1, 1]} : vector<9x1024xf32> to vector<1x1024xf32>
    %247 = vector.shape_cast %246 : vector<1x1024xf32> to vector<1024xf32>
    %248 = vector.shape_cast %247 : vector<1024xf32> to vector<1x1024xf32>
    %249 = vector.extract_strided_slice %245 {offsets = [0, 0], sizes = [7, 1024], strides = [1, 1]} : vector<9x1024xf32> to vector<7x1024xf32>
    %250 = vector.broadcast %248 : vector<1x1024xf32> to vector<7x1024xf32>
    %251 = arith.mulf %249, %250 : vector<7x1024xf32>
    %252 = arith.addf %243, %251 : vector<7x1024xf32>
    %253 = vector.extract_strided_slice %0 {offsets = [7, 0], sizes = [1, 1024], strides = [1, 1]} : vector<9x1024xf32> to vector<1x1024xf32>
    %254 = vector.shape_cast %253 : vector<1x1024xf32> to vector<1024xf32>
    %255 = vector.shape_cast %254 : vector<1024xf32> to vector<1x1024xf32>
    %256 = vector.extract_strided_slice %245 {offsets = [1, 0], sizes = [7, 1024], strides = [1, 1]} : vector<9x1024xf32> to vector<7x1024xf32>
    %257 = vector.broadcast %255 : vector<1x1024xf32> to vector<7x1024xf32>
    %258 = arith.mulf %256, %257 : vector<7x1024xf32>
    %259 = arith.addf %252, %258 : vector<7x1024xf32>
    %260 = vector.extract_strided_slice %0 {offsets = [8, 0], sizes = [1, 1024], strides = [1, 1]} : vector<9x1024xf32> to vector<1x1024xf32>
    %261 = vector.shape_cast %260 : vector<1x1024xf32> to vector<1024xf32>
    %262 = vector.shape_cast %261 : vector<1024xf32> to vector<1x1024xf32>
    %263 = vector.extract_strided_slice %245 {offsets = [2, 0], sizes = [7, 1024], strides = [1, 1]} : vector<9x1024xf32> to vector<7x1024xf32>
    %264 = vector.broadcast %262 : vector<1x1024xf32> to vector<7x1024xf32>
    %265 = arith.mulf %263, %264 : vector<7x1024xf32>
    %266 = arith.addf %259, %265 : vector<7x1024xf32>
    %c0_56 = arith.constant 0 : index
    %c3_57 = arith.constant 3 : index
    %c0_58 = arith.constant 0 : index
    %c0_59 = arith.constant 0 : index
    %267 = vector.load %arg4[%c0_56, %c3_57, %c0_58, %c0_59] : memref<1x7x7x1024xf32, #tpu.memory_space<vmem>>, vector<1x1x7x1024xf32>
    %268 = vector.shape_cast %267 : vector<1x1x7x1024xf32> to vector<7x1024xf32>
    %269 = vector.shape_cast %266 : vector<7x1024xf32> to vector<1x1x7x1024xf32>
    tpu.vector_store %arg4[%c0_56, %c3_57, %c0_58, %c0_59], %269 {strides = array<i32>} : memref<1x7x7x1024xf32, #tpu.memory_space<vmem>>, vector<1x1x7x1024xf32>,
    %cst_60 = arith.constant 0.000000e+00 : f32
    %270 = vector.broadcast %cst_60 : f32 to vector<7x1024xf32>
    %c0_61 = arith.constant 0 : index
    %c3_62 = arith.constant 3 : index
    %c0_63 = arith.constant 0 : index
    %c0_64 = arith.constant 0 : index
    %271 = vector.load %arg2[%c0_61, %c3_62, %c0_63, %c0_64] : memref<1x7x9x1024xf32, #tpu.memory_space<vmem>>, vector<1x1x9x1024xf32>
    %272 = vector.shape_cast %271 : vector<1x1x9x1024xf32> to vector<9x1024xf32>
    %273 = vector.extract_strided_slice %0 {offsets = [0, 0], sizes = [1, 1024], strides = [1, 1]} : vector<9x1024xf32> to vector<1x1024xf32>
    %274 = vector.shape_cast %273 : vector<1x1024xf32> to vector<1024xf32>
    %275 = vector.shape_cast %274 : vector<1024xf32> to vector<1x1024xf32>
    %276 = vector.extract_strided_slice %272 {offsets = [0, 0], sizes = [7, 1024], strides = [1, 1]} : vector<9x1024xf32> to vector<7x1024xf32>
    %277 = vector.broadcast %275 : vector<1x1024xf32> to vector<7x1024xf32>
    %278 = arith.mulf %276, %277 : vector<7x1024xf32>
    %279 = arith.addf %270, %278 : vector<7x1024xf32>
    %280 = vector.extract_strided_slice %0 {offsets = [1, 0], sizes = [1, 1024], strides = [1, 1]} : vector<9x1024xf32> to vector<1x1024xf32>
    %281 = vector.shape_cast %280 : vector<1x1024xf32> to vector<1024xf32>
    %282 = vector.shape_cast %281 : vector<1024xf32> to vector<1x1024xf32>
    %283 = vector.extract_strided_slice %272 {offsets = [1, 0], sizes = [7, 1024], strides = [1, 1]} : vector<9x1024xf32> to vector<7x1024xf32>
    %284 = vector.broadcast %282 : vector<1x1024xf32> to vector<7x1024xf32>
    %285 = arith.mulf %283, %284 : vector<7x1024xf32>
    %286 = arith.addf %279, %285 : vector<7x1024xf32>
    %287 = vector.extract_strided_slice %0 {offsets = [2, 0], sizes = [1, 1024], strides = [1, 1]} : vector<9x1024xf32> to vector<1x1024xf32>
    %288 = vector.shape_cast %287 : vector<1x1024xf32> to vector<1024xf32>
    %289 = vector.shape_cast %288 : vector<1024xf32> to vector<1x1024xf32>
    %290 = vector.extract_strided_slice %272 {offsets = [2, 0], sizes = [7, 1024], strides = [1, 1]} : vector<9x1024xf32> to vector<7x1024xf32>
    %291 = vector.broadcast %289 : vector<1x1024xf32> to vector<7x1024xf32>
    %292 = arith.mulf %290, %291 : vector<7x1024xf32>
    %293 = arith.addf %286, %292 : vector<7x1024xf32>
    %c0_65 = arith.constant 0 : index
    %c4_66 = arith.constant 4 : index
    %c0_67 = arith.constant 0 : index
    %c0_68 = arith.constant 0 : index
    %294 = vector.load %arg2[%c0_65, %c4_66, %c0_67, %c0_68] : memref<1x7x9x1024xf32, #tpu.memory_space<vmem>>, vector<1x1x9x1024xf32>
    %295 = vector.shape_cast %294 : vector<1x1x9x1024xf32> to vector<9x1024xf32>
    %296 = vector.extract_strided_slice %0 {offsets = [3, 0], sizes = [1, 1024], strides = [1, 1]} : vector<9x1024xf32> to vector<1x1024xf32>
    %297 = vector.shape_cast %296 : vector<1x1024xf32> to vector<1024xf32>
    %298 = vector.shape_cast %297 : vector<1024xf32> to vector<1x1024xf32>
    %299 = vector.extract_strided_slice %295 {offsets = [0, 0], sizes = [7, 1024], strides = [1, 1]} : vector<9x1024xf32> to vector<7x1024xf32>
    %300 = vector.broadcast %298 : vector<1x1024xf32> to vector<7x1024xf32>
    %301 = arith.mulf %299, %300 : vector<7x1024xf32>
    %302 = arith.addf %293, %301 : vector<7x1024xf32>
    %303 = vector.extract_strided_slice %0 {offsets = [4, 0], sizes = [1, 1024], strides = [1, 1]} : vector<9x1024xf32> to vector<1x1024xf32>
    %304 = vector.shape_cast %303 : vector<1x1024xf32> to vector<1024xf32>
    %305 = vector.shape_cast %304 : vector<1024xf32> to vector<1x1024xf32>
    %306 = vector.extract_strided_slice %295 {offsets = [1, 0], sizes = [7, 1024], strides = [1, 1]} : vector<9x1024xf32> to vector<7x1024xf32>
    %307 = vector.broadcast %305 : vector<1x1024xf32> to vector<7x1024xf32>
    %308 = arith.mulf %306, %307 : vector<7x1024xf32>
    %309 = arith.addf %302, %308 : vector<7x1024xf32>
    %310 = vector.extract_strided_slice %0 {offsets = [5, 0], sizes = [1, 1024], strides = [1, 1]} : vector<9x1024xf32> to vector<1x1024xf32>
    %311 = vector.shape_cast %310 : vector<1x1024xf32> to vector<1024xf32>
    %312 = vector.shape_cast %311 : vector<1024xf32> to vector<1x1024xf32>
    %313 = vector.extract_strided_slice %295 {offsets = [2, 0], sizes = [7, 1024], strides = [1, 1]} : vector<9x1024xf32> to vector<7x1024xf32>
    %314 = vector.broadcast %312 : vector<1x1024xf32> to vector<7x1024xf32>
    %315 = arith.mulf %313, %314 : vector<7x1024xf32>
    %316 = arith.addf %309, %315 : vector<7x1024xf32>
    %c0_69 = arith.constant 0 : index
    %c5 = arith.constant 5 : index
    %c0_70 = arith.constant 0 : index
    %c0_71 = arith.constant 0 : index
    %317 = vector.load %arg2[%c0_69, %c5, %c0_70, %c0_71] : memref<1x7x9x1024xf32, #tpu.memory_space<vmem>>, vector<1x1x9x1024xf32>
    %318 = vector.shape_cast %317 : vector<1x1x9x1024xf32> to vector<9x1024xf32>
    %319 = vector.extract_strided_slice %0 {offsets = [6, 0], sizes = [1, 1024], strides = [1, 1]} : vector<9x1024xf32> to vector<1x1024xf32>
    %320 = vector.shape_cast %319 : vector<1x1024xf32> to vector<1024xf32>
    %321 = vector.shape_cast %320 : vector<1024xf32> to vector<1x1024xf32>
    %322 = vector.extract_strided_slice %318 {offsets = [0, 0], sizes = [7, 1024], strides = [1, 1]} : vector<9x1024xf32> to vector<7x1024xf32>
    %323 = vector.broadcast %321 : vector<1x1024xf32> to vector<7x1024xf32>
    %324 = arith.mulf %322, %323 : vector<7x1024xf32>
    %325 = arith.addf %316, %324 : vector<7x1024xf32>
    %326 = vector.extract_strided_slice %0 {offsets = [7, 0], sizes = [1, 1024], strides = [1, 1]} : vector<9x1024xf32> to vector<1x1024xf32>
    %327 = vector.shape_cast %326 : vector<1x1024xf32> to vector<1024xf32>
    %328 = vector.shape_cast %327 : vector<1024xf32> to vector<1x1024xf32>
    %329 = vector.extract_strided_slice %318 {offsets = [1, 0], sizes = [7, 1024], strides = [1, 1]} : vector<9x1024xf32> to vector<7x1024xf32>
    %330 = vector.broadcast %328 : vector<1x1024xf32> to vector<7x1024xf32>
    %331 = arith.mulf %329, %330 : vector<7x1024xf32>
    %332 = arith.addf %325, %331 : vector<7x1024xf32>
    %333 = vector.extract_strided_slice %0 {offsets = [8, 0], sizes = [1, 1024], strides = [1, 1]} : vector<9x1024xf32> to vector<1x1024xf32>
    %334 = vector.shape_cast %333 : vector<1x1024xf32> to vector<1024xf32>
    %335 = vector.shape_cast %334 : vector<1024xf32> to vector<1x1024xf32>
    %336 = vector.extract_strided_slice %318 {offsets = [2, 0], sizes = [7, 1024], strides = [1, 1]} : vector<9x1024xf32> to vector<7x1024xf32>
    %337 = vector.broadcast %335 : vector<1x1024xf32> to vector<7x1024xf32>
    %338 = arith.mulf %336, %337 : vector<7x1024xf32>
    %339 = arith.addf %332, %338 : vector<7x1024xf32>
    %c0_72 = arith.constant 0 : index
    %c4_73 = arith.constant 4 : index
    %c0_74 = arith.constant 0 : index
    %c0_75 = arith.constant 0 : index
    %340 = vector.load %arg4[%c0_72, %c4_73, %c0_74, %c0_75] : memref<1x7x7x1024xf32, #tpu.memory_space<vmem>>, vector<1x1x7x1024xf32>
    %341 = vector.shape_cast %340 : vector<1x1x7x1024xf32> to vector<7x1024xf32>
    %342 = vector.shape_cast %339 : vector<7x1024xf32> to vector<1x1x7x1024xf32>
    tpu.vector_store %arg4[%c0_72, %c4_73, %c0_74, %c0_75], %342 {strides = array<i32>} : memref<1x7x7x1024xf32, #tpu.memory_space<vmem>>, vector<1x1x7x1024xf32>,
    %cst_76 = arith.constant 0.000000e+00 : f32
    %343 = vector.broadcast %cst_76 : f32 to vector<7x1024xf32>
    %c0_77 = arith.constant 0 : index
    %c4_78 = arith.constant 4 : index
    %c0_79 = arith.constant 0 : index
    %c0_80 = arith.constant 0 : index
    %344 = vector.load %arg2[%c0_77, %c4_78, %c0_79, %c0_80] : memref<1x7x9x1024xf32, #tpu.memory_space<vmem>>, vector<1x1x9x1024xf32>
    %345 = vector.shape_cast %344 : vector<1x1x9x1024xf32> to vector<9x1024xf32>
    %346 = vector.extract_strided_slice %0 {offsets = [0, 0], sizes = [1, 1024], strides = [1, 1]} : vector<9x1024xf32> to vector<1x1024xf32>
    %347 = vector.shape_cast %346 : vector<1x1024xf32> to vector<1024xf32>
    %348 = vector.shape_cast %347 : vector<1024xf32> to vector<1x1024xf32>
    %349 = vector.extract_strided_slice %345 {offsets = [0, 0], sizes = [7, 1024], strides = [1, 1]} : vector<9x1024xf32> to vector<7x1024xf32>
    %350 = vector.broadcast %348 : vector<1x1024xf32> to vector<7x1024xf32>
    %351 = arith.mulf %349, %350 : vector<7x1024xf32>
    %352 = arith.addf %343, %351 : vector<7x1024xf32>
    %353 = vector.extract_strided_slice %0 {offsets = [1, 0], sizes = [1, 1024], strides = [1, 1]} : vector<9x1024xf32> to vector<1x1024xf32>
    %354 = vector.shape_cast %353 : vector<1x1024xf32> to vector<1024xf32>
    %355 = vector.shape_cast %354 : vector<1024xf32> to vector<1x1024xf32>
    %356 = vector.extract_strided_slice %345 {offsets = [1, 0], sizes = [7, 1024], strides = [1, 1]} : vector<9x1024xf32> to vector<7x1024xf32>
    %357 = vector.broadcast %355 : vector<1x1024xf32> to vector<7x1024xf32>
    %358 = arith.mulf %356, %357 : vector<7x1024xf32>
    %359 = arith.addf %352, %358 : vector<7x1024xf32>
    %360 = vector.extract_strided_slice %0 {offsets = [2, 0], sizes = [1, 1024], strides = [1, 1]} : vector<9x1024xf32> to vector<1x1024xf32>
    %361 = vector.shape_cast %360 : vector<1x1024xf32> to vector<1024xf32>
    %362 = vector.shape_cast %361 : vector<1024xf32> to vector<1x1024xf32>
    %363 = vector.extract_strided_slice %345 {offsets = [2, 0], sizes = [7, 1024], strides = [1, 1]} : vector<9x1024xf32> to vector<7x1024xf32>
    %364 = vector.broadcast %362 : vector<1x1024xf32> to vector<7x1024xf32>
    %365 = arith.mulf %363, %364 : vector<7x1024xf32>
    %366 = arith.addf %359, %365 : vector<7x1024xf32>
    %c0_81 = arith.constant 0 : index
    %c5_82 = arith.constant 5 : index
    %c0_83 = arith.constant 0 : index
    %c0_84 = arith.constant 0 : index
    %367 = vector.load %arg2[%c0_81, %c5_82, %c0_83, %c0_84] : memref<1x7x9x1024xf32, #tpu.memory_space<vmem>>, vector<1x1x9x1024xf32>
    %368 = vector.shape_cast %367 : vector<1x1x9x1024xf32> to vector<9x1024xf32>
    %369 = vector.extract_strided_slice %0 {offsets = [3, 0], sizes = [1, 1024], strides = [1, 1]} : vector<9x1024xf32> to vector<1x1024xf32>
    %370 = vector.shape_cast %369 : vector<1x1024xf32> to vector<1024xf32>
    %371 = vector.shape_cast %370 : vector<1024xf32> to vector<1x1024xf32>
    %372 = vector.extract_strided_slice %368 {offsets = [0, 0], sizes = [7, 1024], strides = [1, 1]} : vector<9x1024xf32> to vector<7x1024xf32>
    %373 = vector.broadcast %371 : vector<1x1024xf32> to vector<7x1024xf32>
    %374 = arith.mulf %372, %373 : vector<7x1024xf32>
    %375 = arith.addf %366, %374 : vector<7x1024xf32>
    %376 = vector.extract_strided_slice %0 {offsets = [4, 0], sizes = [1, 1024], strides = [1, 1]} : vector<9x1024xf32> to vector<1x1024xf32>
    %377 = vector.shape_cast %376 : vector<1x1024xf32> to vector<1024xf32>
    %378 = vector.shape_cast %377 : vector<1024xf32> to vector<1x1024xf32>
    %379 = vector.extract_strided_slice %368 {offsets = [1, 0], sizes = [7, 1024], strides = [1, 1]} : vector<9x1024xf32> to vector<7x1024xf32>
    %380 = vector.broadcast %378 : vector<1x1024xf32> to vector<7x1024xf32>
    %381 = arith.mulf %379, %380 : vector<7x1024xf32>
    %382 = arith.addf %375, %381 : vector<7x1024xf32>
    %383 = vector.extract_strided_slice %0 {offsets = [5, 0], sizes = [1, 1024], strides = [1, 1]} : vector<9x1024xf32> to vector<1x1024xf32>
    %384 = vector.shape_cast %383 : vector<1x1024xf32> to vector<1024xf32>
    %385 = vector.shape_cast %384 : vector<1024xf32> to vector<1x1024xf32>
    %386 = vector.extract_strided_slice %368 {offsets = [2, 0], sizes = [7, 1024], strides = [1, 1]} : vector<9x1024xf32> to vector<7x1024xf32>
    %387 = vector.broadcast %385 : vector<1x1024xf32> to vector<7x1024xf32>
    %388 = arith.mulf %386, %387 : vector<7x1024xf32>
    %389 = arith.addf %382, %388 : vector<7x1024xf32>
    %c0_85 = arith.constant 0 : index
    %c6 = arith.constant 6 : index
    %c0_86 = arith.constant 0 : index
    %c0_87 = arith.constant 0 : index
    %390 = vector.load %arg2[%c0_85, %c6, %c0_86, %c0_87] : memref<1x7x9x1024xf32, #tpu.memory_space<vmem>>, vector<1x1x9x1024xf32>
    %391 = vector.shape_cast %390 : vector<1x1x9x1024xf32> to vector<9x1024xf32>
    %392 = vector.extract_strided_slice %0 {offsets = [6, 0], sizes = [1, 1024], strides = [1, 1]} : vector<9x1024xf32> to vector<1x1024xf32>
    %393 = vector.shape_cast %392 : vector<1x1024xf32> to vector<1024xf32>
    %394 = vector.shape_cast %393 : vector<1024xf32> to vector<1x1024xf32>
    %395 = vector.extract_strided_slice %391 {offsets = [0, 0], sizes = [7, 1024], strides = [1, 1]} : vector<9x1024xf32> to vector<7x1024xf32>
    %396 = vector.broadcast %394 : vector<1x1024xf32> to vector<7x1024xf32>
    %397 = arith.mulf %395, %396 : vector<7x1024xf32>
    %398 = arith.addf %389, %397 : vector<7x1024xf32>
    %399 = vector.extract_strided_slice %0 {offsets = [7, 0], sizes = [1, 1024], strides = [1, 1]} : vector<9x1024xf32> to vector<1x1024xf32>
    %400 = vector.shape_cast %399 : vector<1x1024xf32> to vector<1024xf32>
    %401 = vector.shape_cast %400 : vector<1024xf32> to vector<1x1024xf32>
    %402 = vector.extract_strided_slice %391 {offsets = [1, 0], sizes = [7, 1024], strides = [1, 1]} : vector<9x1024xf32> to vector<7x1024xf32>
    %403 = vector.broadcast %401 : vector<1x1024xf32> to vector<7x1024xf32>
    %404 = arith.mulf %402, %403 : vector<7x1024xf32>
    %405 = arith.addf %398, %404 : vector<7x1024xf32>
    %406 = vector.extract_strided_slice %0 {offsets = [8, 0], sizes = [1, 1024], strides = [1, 1]} : vector<9x1024xf32> to vector<1x1024xf32>
    %407 = vector.shape_cast %406 : vector<1x1024xf32> to vector<1024xf32>
    %408 = vector.shape_cast %407 : vector<1024xf32> to vector<1x1024xf32>
    %409 = vector.extract_strided_slice %391 {offsets = [2, 0], sizes = [7, 1024], strides = [1, 1]} : vector<9x1024xf32> to vector<7x1024xf32>
    %410 = vector.broadcast %408 : vector<1x1024xf32> to vector<7x1024xf32>
    %411 = arith.mulf %409, %410 : vector<7x1024xf32>
    %412 = arith.addf %405, %411 : vector<7x1024xf32>
    %c0_88 = arith.constant 0 : index
    %c5_89 = arith.constant 5 : index
    %c0_90 = arith.constant 0 : index
    %c0_91 = arith.constant 0 : index
    %413 = vector.load %arg4[%c0_88, %c5_89, %c0_90, %c0_91] : memref<1x7x7x1024xf32, #tpu.memory_space<vmem>>, vector<1x1x7x1024xf32>
    %414 = vector.shape_cast %413 : vector<1x1x7x1024xf32> to vector<7x1024xf32>
    %415 = vector.shape_cast %412 : vector<7x1024xf32> to vector<1x1x7x1024xf32>
    tpu.vector_store %arg4[%c0_88, %c5_89, %c0_90, %c0_91], %415 {strides = array<i32>} : memref<1x7x7x1024xf32, #tpu.memory_space<vmem>>, vector<1x1x7x1024xf32>,
    %cst_92 = arith.constant 0.000000e+00 : f32
    %416 = vector.broadcast %cst_92 : f32 to vector<7x1024xf32>
    %c0_93 = arith.constant 0 : index
    %c5_94 = arith.constant 5 : index
    %c0_95 = arith.constant 0 : index
    %c0_96 = arith.constant 0 : index
    %417 = vector.load %arg2[%c0_93, %c5_94, %c0_95, %c0_96] : memref<1x7x9x1024xf32, #tpu.memory_space<vmem>>, vector<1x1x9x1024xf32>
    %418 = vector.shape_cast %417 : vector<1x1x9x1024xf32> to vector<9x1024xf32>
    %419 = vector.extract_strided_slice %0 {offsets = [0, 0], sizes = [1, 1024], strides = [1, 1]} : vector<9x1024xf32> to vector<1x1024xf32>
    %420 = vector.shape_cast %419 : vector<1x1024xf32> to vector<1024xf32>
    %421 = vector.shape_cast %420 : vector<1024xf32> to vector<1x1024xf32>
    %422 = vector.extract_strided_slice %418 {offsets = [0, 0], sizes = [7, 1024], strides = [1, 1]} : vector<9x1024xf32> to vector<7x1024xf32>
    %423 = vector.broadcast %421 : vector<1x1024xf32> to vector<7x1024xf32>
    %424 = arith.mulf %422, %423 : vector<7x1024xf32>
    %425 = arith.addf %416, %424 : vector<7x1024xf32>
    %426 = vector.extract_strided_slice %0 {offsets = [1, 0], sizes = [1, 1024], strides = [1, 1]} : vector<9x1024xf32> to vector<1x1024xf32>
    %427 = vector.shape_cast %426 : vector<1x1024xf32> to vector<1024xf32>
    %428 = vector.shape_cast %427 : vector<1024xf32> to vector<1x1024xf32>
    %429 = vector.extract_strided_slice %418 {offsets = [1, 0], sizes = [7, 1024], strides = [1, 1]} : vector<9x1024xf32> to vector<7x1024xf32>
    %430 = vector.broadcast %428 : vector<1x1024xf32> to vector<7x1024xf32>
    %431 = arith.mulf %429, %430 : vector<7x1024xf32>
    %432 = arith.addf %425, %431 : vector<7x1024xf32>
    %433 = vector.extract_strided_slice %0 {offsets = [2, 0], sizes = [1, 1024], strides = [1, 1]} : vector<9x1024xf32> to vector<1x1024xf32>
    %434 = vector.shape_cast %433 : vector<1x1024xf32> to vector<1024xf32>
    %435 = vector.shape_cast %434 : vector<1024xf32> to vector<1x1024xf32>
    %436 = vector.extract_strided_slice %418 {offsets = [2, 0], sizes = [7, 1024], strides = [1, 1]} : vector<9x1024xf32> to vector<7x1024xf32>
    %437 = vector.broadcast %435 : vector<1x1024xf32> to vector<7x1024xf32>
    %438 = arith.mulf %436, %437 : vector<7x1024xf32>
    %439 = arith.addf %432, %438 : vector<7x1024xf32>
    %c0_97 = arith.constant 0 : index
    %c6_98 = arith.constant 6 : index
    %c0_99 = arith.constant 0 : index
    %c0_100 = arith.constant 0 : index
    %440 = vector.load %arg2[%c0_97, %c6_98, %c0_99, %c0_100] : memref<1x7x9x1024xf32, #tpu.memory_space<vmem>>, vector<1x1x9x1024xf32>
    %441 = vector.shape_cast %440 : vector<1x1x9x1024xf32> to vector<9x1024xf32>
    %442 = vector.extract_strided_slice %0 {offsets = [3, 0], sizes = [1, 1024], strides = [1, 1]} : vector<9x1024xf32> to vector<1x1024xf32>
    %443 = vector.shape_cast %442 : vector<1x1024xf32> to vector<1024xf32>
    %444 = vector.shape_cast %443 : vector<1024xf32> to vector<1x1024xf32>
    %445 = vector.extract_strided_slice %441 {offsets = [0, 0], sizes = [7, 1024], strides = [1, 1]} : vector<9x1024xf32> to vector<7x1024xf32>
    %446 = vector.broadcast %444 : vector<1x1024xf32> to vector<7x1024xf32>
    %447 = arith.mulf %445, %446 : vector<7x1024xf32>
    %448 = arith.addf %439, %447 : vector<7x1024xf32>
    %449 = vector.extract_strided_slice %0 {offsets = [4, 0], sizes = [1, 1024], strides = [1, 1]} : vector<9x1024xf32> to vector<1x1024xf32>
    %450 = vector.shape_cast %449 : vector<1x1024xf32> to vector<1024xf32>
    %451 = vector.shape_cast %450 : vector<1024xf32> to vector<1x1024xf32>
    %452 = vector.extract_strided_slice %441 {offsets = [1, 0], sizes = [7, 1024], strides = [1, 1]} : vector<9x1024xf32> to vector<7x1024xf32>
    %453 = vector.broadcast %451 : vector<1x1024xf32> to vector<7x1024xf32>
    %454 = arith.mulf %452, %453 : vector<7x1024xf32>
    %455 = arith.addf %448, %454 : vector<7x1024xf32>
    %456 = vector.extract_strided_slice %0 {offsets = [5, 0], sizes = [1, 1024], strides = [1, 1]} : vector<9x1024xf32> to vector<1x1024xf32>
    %457 = vector.shape_cast %456 : vector<1x1024xf32> to vector<1024xf32>
    %458 = vector.shape_cast %457 : vector<1024xf32> to vector<1x1024xf32>
    %459 = vector.extract_strided_slice %441 {offsets = [2, 0], sizes = [7, 1024], strides = [1, 1]} : vector<9x1024xf32> to vector<7x1024xf32>
    %460 = vector.broadcast %458 : vector<1x1024xf32> to vector<7x1024xf32>
    %461 = arith.mulf %459, %460 : vector<7x1024xf32>
    %462 = arith.addf %455, %461 : vector<7x1024xf32>
    %c0_101 = arith.constant 0 : index
    %c6_102 = arith.constant 6 : index
    %c0_103 = arith.constant 0 : index
    %c0_104 = arith.constant 0 : index
    %463 = vector.load %arg4[%c0_101, %c6_102, %c0_103, %c0_104] : memref<1x7x7x1024xf32, #tpu.memory_space<vmem>>, vector<1x1x7x1024xf32>
    %464 = vector.shape_cast %463 : vector<1x1x7x1024xf32> to vector<7x1024xf32>
    %465 = vector.shape_cast %462 : vector<7x1024xf32> to vector<1x1x7x1024xf32>
    tpu.vector_store %arg4[%c0_101, %c6_102, %c0_103, %c0_104], %465 {strides = array<i32>} : memref<1x7x7x1024xf32, #tpu.memory_space<vmem>>, vector<1x1x7x1024xf32>,
    return
  }
  func.func @transform_0(%arg0: i32, %arg1: i32) -> (i32, i32, i32, i32) {
    %c0_i32 = arith.constant 0 : i32
    %c0_i32_0 = arith.constant 0 : i32
    %c0_i32_1 = arith.constant 0 : i32
    return %arg0, %c0_i32, %c0_i32_0, %arg1 : i32, i32, i32, i32
  }
  func.func @transform_1(%arg0: i32, %arg1: i32) -> (i32, i32) {
    %c0_i32 = arith.constant 0 : i32
    %c0_i32_0 = arith.constant 0 : i32
    return %c0_i32, %arg1 : i32, i32
  }
  func.func @transform_2(%arg0: i32, %arg1: i32) -> (i32, i32, i32, i32) {
    %c0_i32 = arith.constant 0 : i32
    %c0_i32_0 = arith.constant 0 : i32
    %c0_i32_1 = arith.constant 0 : i32
    return %arg0, %c0_i32, %c0_i32_0, %arg1 : i32, i32, i32, i32
  }
}

</mosaic_0001>

<bundles_post_ra>
// kernel: depthwise_conv2d_3x3.1
= control target key start
LH: loop header
LB: loop body
LE: loop exit
PB: predicated region body
PF: predicated region fallthrough
CT: control target
= control target key end

     0   :  { %s6595_s9 = smov 0   ;;  %s6597_s10 = smov 0   ;;  %s9946_s0 = inlined_call_operand.vmem [shape: f32[1,7,9,1824], index: 0, kind: input, shape index: {}]   ;;  %s9947_s1 = inlined_call_operand.vmem [shape: f32[9,1824], index: 1, kind: input, shape index: {}]   ;;  %s9948_s2 = inlined_call_operand.vmem [shape: f32[1,7,7,1824], index: 2, kind: output, shape index: {}]  }
   0x1   :  { %s6599_s11 = smov 0   ;;  %s6601_s12 = smov 0  }
   0x2   :  { %s6603_s13 = smov 0  }
   0x3 LB: > { %s21_s14 = sadd.s32 1, %s6408_s12  ;;  %s5305_s15 = sadd.s32 4294967295, %s6412_s13   ;;  %s6412_s13 = sphi %s6603_s13, %s12_s13   ;;  %s6408_s12 = sphi %s6601_s12, %s10510_s12   ;;  %s6404_s11 = sphi %s6599_s11, %s10509_s11   ;;  %s6400_s10 = sphi %s6597_s10, %s10508_s10   ;;  %s6396_s9 = sphi %s6595_s9, %s10507_s9  }
   0x4   : > { %p22_p0 = scmp.ge.s32.totalorder %s21_s14, 2  ;;  %p40_p1 = scmp.ne.s32.totalorder %s6400_s10, %s6396_s9 }
   0x5   : > { %p41_p2 = scmp.eq.s32.totalorder %s6412_s13, 0  ;;  %p98_p4 = scmp.eq.s32.totalorder %s5305_s15, 1 }
   0x6   : > { %s10512_s14 = smov (%p22_p0, %s21_s14), 0  ;;  %s33_s18 = sadd.s32 1, %s6400_s10 }
   0x7   : > { %p6627_p3 = por %p41_p2, %p40_p1  ;;  %s29_s17 = ssub.s32 %s6408_s12, %s10512_s14 }
   0x8   : > { %p31_p5 = scmp.eq.s32.totalorder %s29_s17, 0  ;;  %p6634_p6 = por %p98_p4, %p40_p1 }
   0x9   : > { %p5308_p7 = scmp.ge.s32.totalorder %s6412_s13, 2 }
   0xa   : > { %s6639_s20 = scalar_select %p31_p5, %s6400_s10, %s33_s18  }
   0xb   : > { %120 = sbr.rel (%p5308_p7) target bundleno = 345 (0x159), region = 16 }
  0x12   : > { %123 = sbr.rel (!%p6627_p3) target bundleno = 259 (0x103), region = 20  ;;  %s125_s21 = sand.u32 (%p6627_p3), 1, %s6400_s10  }
  0x13   : > { %s5309_s22 = sshll.u32 (%p6627_p3), %s6408_s12, 3  ;;  %s5723_s23 = smul.u32 (%p6627_p3), 896, %s125_s21 }
  0x14   : > { %s129_s24 = ssub.s32 (%p6627_p3), 15, %s5309_s22  ;;  %s5712_s25 = sshll.u32 (%p6627_p3), %s6408_s12, 6 }
  0x15   : > { %p130_p8 = scmp.lt.s32.totalorder (%p6627_p3), %s129_s24, 8  ;;  %s6650_s28 = scalar_lea.vmem (%p6627_p3), %s9946_s0, %s5712_s25  }
  0x16   : > { %s6654_s3 = scalar_lea.vmem (%p6627_p3), [#allocation2], %s5723_s23  }
  0x19   : > { %s10514_s24 = smov (!%p130_p8, %s129_s24), 8 }
  0x1a   : > { %s132_s29 = smul.u32 1792, %s10514_s24  ;;  %s6652_s30 = sshll.u32 %s10514_s24, 3 }
  0x1c   : > { %p5313_p9 = scmp.eq.s32.totalorder %s132_s29, 0 }
  0x1d   : > { %p142_p10 = scmp.lt.u32.totalorder (!%p5313_p9), %s6652_s30, 8 }
  0x1e   : > { %141 = sbr.rel (%p5313_p9) target bundleno = 259 (0x103), region = 24 }
  0x25   : > { %145 = sbr.rel (%p142_p10) target bundleno = 242 (0xf2), region = 28  ;;  %s6658_s4 = sand.u32 (!%p142_p10), 7, %s6652_s30  }
  0x26   : > { %p187_p11 = scmp.eq.s32.totalorder (!%p142_p10), %s6658_s4, 0  ;;  %p5314_p12 = scmp.ne.s32.totalorder (!%p142_p10), %s6658_s4, 0 }
  0x2c   : > { %190 = sbr.rel (%p5314_p12) target bundleno = 135 (0x87), region = 43  ;;  %s191_s5 = sshrl.u32 (!%p5314_p12), %s6652_s30, 3 }
  0x2d   : > { %s6665_s6 = sshrl.u32 (!%p5314_p12), %s191_s5, 3 }
  0x2e   : > { %p5315_p13 = scmp.le.s32.totalorder (!%p5314_p12), %s6665_s6, 0 }
  0x33   : > { %5107 = sbr.rel (%p5315_p13) target bundleno = 115 (0x73), region = 329  ;;  %s10164_s7 = smov (!%p5315_p13), %s6654_s3 }
  0x34   : > { %s10165_s8 = smov (!%p5315_p13), %s6650_s28  ;;  %s6674_s15 = smov (!%p5315_p13), 0  }
  0x35   : > { %s6676_s17 = smov (!%p5315_p13), 0  }
  0x3a LB: >> { %v204_v0 = vld [vmem:[%s6420_s8] sm:$0xff]  ;;  %v206_v1 = vld [vmem:[%s6420_s8 + $0x8] sm:$0xff]  ;;  %v208_v2 = vld [vmem:[%s6420_s8 + $0x10] sm:$0xff]  ;;  %s428_s18 = sadd.s32 1, %s6424_s15  ;;  %s198_s17 = sadd.s32 1, %s6428_s17   ;;  %s6428_s17 = sphi %s6676_s17, %s198_s17   ;;  %s6424_s15 = sphi %s6674_s15, %s10168_s15   ;;  %s6420_s8 = sphi %s10165_s8, %s10167_s8   ;;  %s6416_s7 = sphi %s10164_s7, %s10166_s7  }
  0x3b   : >> { %205 = vst [vmem:[%s6416_s7] sm:$0xff] %v204_v0  ;;  %207 = vst [vmem:[%s6416_s7 + $0x8] sm:$0xff] %v206_v1  ;;  %v210_v3 = vld [vmem:[%s6420_s8 + $0x18] sm:$0xff]  ;;  %v212_v4 = vld [vmem:[%s6420_s8 + $0x20] sm:$0xff]  ;;  %p429_p0 = scmp.ge.s32.totalorder %s428_s18, %s6665_s6  ;;  %p197_p1 = scmp.ge.s32.totalorder %s198_s17, %s6665_s6 }
  0x3c   : >> { %209 = vst [vmem:[%s6416_s7 + $0x10] sm:$0xff] %v208_v2  ;;  %v214_v5 = vld [vmem:[%s6420_s8 + $0x28] sm:$0xff]  ;;  %211 = vst [vmem:[%s6416_s7 + $0x18] sm:$0xff] %v210_v3  ;;  %v216_v6 = vld [vmem:[%s6420_s8 + $0x30] sm:$0xff] }
  0x3d   : >> { %213 = vst [vmem:[%s6416_s7 + $0x20] sm:$0xff] %v212_v4  ;;  %215 = vst [vmem:[%s6416_s7 + $0x28] sm:$0xff] %v214_v5  ;;  %v218_v7 = vld [vmem:[%s6420_s8 + $0x38] sm:$0xff]  ;;  %v222_v9 = vld [vmem:[%s6420_s8 + $0x80] sm:$0xff]  ;;  %s10516_s18 = smov (%p429_p0, %s428_s18), 0 }
  0x3e   : >> { %v220_v8 = vld [vmem:[%s6420_s8 + $0x78] sm:$0xff]  ;;  %217 = vst [vmem:[%s6416_s7 + $0x30] sm:$0xff] %v216_v6  ;;  %219 = vst [vmem:[%s6416_s7 + $0x38] sm:$0xff] %v218_v7  ;;  %v224_v10 = vld [vmem:[%s6420_s8 + $0x88] sm:$0xff]  ;;  %s5316_s21 = sshll.u32 %s10516_s18, 6  ;;  %s10168_s15 = smov %s10516_s18 }
  0x3f   : >> { %221 = vst [vmem:[%s6416_s7 + $0x40] sm:$0xff] %v220_v8  ;;  %v226_v11 = vld [vmem:[%s6420_s8 + $0x90] sm:$0xff]  ;;  %223 = vst [vmem:[%s6416_s7 + $0x48] sm:$0xff] %v222_v9  ;;  %v228_v12 = vld [vmem:[%s6420_s8 + $0x98] sm:$0xff]  ;;  %s6732_s22 = scalar_lea.vmem %s6650_s28, %s5316_s21   ;;  %s6735_s23 = scalar_lea.vmem %s6654_s3, %s5316_s21 [#allocation2]  }
  0x40   : >> { %225 = vst [vmem:[%s6416_s7 + $0x50] sm:$0xff] %v224_v10  ;;  %227 = vst [vmem:[%s6416_s7 + $0x58] sm:$0xff] %v226_v11  ;;  %v230_v13 = vld [vmem:[%s6420_s8 + $0xa0] sm:$0xff]  ;;  %v232_v14 = vld [vmem:[%s6420_s8 + $0xa8] sm:$0xff] }
  0x41   : >> { %229 = vst [vmem:[%s6416_s7 + $0x60] sm:$0xff] %v228_v12  ;;  %231 = vst [vmem:[%s6416_s7 + $0x68] sm:$0xff] %v230_v13  ;;  %v234_v15 = vld [vmem:[%s6420_s8 + $0xb0] sm:$0xff]  ;;  %v238_v17 = vld [vmem:[%s6420_s8 + $0xf8] sm:$0xff] }
  0x42   : >> { %233 = vst [vmem:[%s6416_s7 + $0x70] sm:$0xff] %v232_v14  ;;  %v236_v16 = vld [vmem:[%s6420_s8 + $0xf0] sm:$0xff]  ;;  %235 = vst [vmem:[%s6416_s7 + $0x78] sm:$0xff] %v234_v15  ;;  %v240_v18 = vld [vmem:[%s6420_s8 + $0x100] sm:$0xff] }
  0x43   : >> { %237 = vst [vmem:[%s6416_s7 + $0x80] sm:$0xff] %v236_v16  ;;  %239 = vst [vmem:[%s6416_s7 + $0x88] sm:$0xff] %v238_v17  ;;  %v242_v19 = vld [vmem:[%s6420_s8 + $0x108] sm:$0xff]  ;;  %v244_v20 = vld [vmem:[%s6420_s8 + $0x110] sm:$0xff] }
  0x44   : >> { %241 = vst [vmem:[%s6416_s7 + $0x90] sm:$0xff] %v240_v18  ;;  %243 = vst [vmem:[%s6416_s7 + $0x98] sm:$0xff] %v242_v19  ;;  %v246_v21 = vld [vmem:[%s6420_s8 + $0x118] sm:$0xff]  ;;  %v248_v22 = vld [vmem:[%s6420_s8 + $0x120] sm:$0xff] }
  0x45   : >> { %245 = vst [vmem:[%s6416_s7 + $0xa0] sm:$0xff] %v244_v20  ;;  %v250_v23 = vld [vmem:[%s6420_s8 + $0x128] sm:$0xff]  ;;  %247 = vst [vmem:[%s6416_s7 + $0xa8] sm:$0xff] %v246_v21  ;;  %v254_v25 = vld [vmem:[%s6420_s8 + $0x170] sm:$0xff] }
  0x46   : >> { %249 = vst [vmem:[%s6416_s7 + $0xb0] sm:$0xff] %v248_v22  ;;  %251 = vst [vmem:[%s6416_s7 + $0xb8] sm:$0xff] %v250_v23  ;;  %v252_v24 = vld [vmem:[%s6420_s8 + $0x168] sm:$0xff]  ;;  %v256_v26 = vld [vmem:[%s6420_s8 + $0x178] sm:$0xff] }
  0x47   : >> { %253 = vst [vmem:[%s6416_s7 + $0xc0] sm:$0xff] %v252_v24  ;;  %255 = vst [vmem:[%s6416_s7 + $0xc8] sm:$0xff] %v254_v25  ;;  %v258_v27 = vld [vmem:[%s6420_s8 + $0x180] sm:$0xff]  ;;  %v260_v28 = vld [vmem:[%s6420_s8 + $0x188] sm:$0xff] }
  0x48   : >> { %257 = vst [vmem:[%s6416_s7 + $0xd0] sm:$0xff] %v256_v26  ;;  %v262_v29 = vld [vmem:[%s6420_s8 + $0x190] sm:$0xff]  ;;  %259 = vst [vmem:[%s6416_s7 + $0xd8] sm:$0xff] %v258_v27  ;;  %v264_v30 = vld [vmem:[%s6420_s8 + $0x198] sm:$0xff] }
  0x49   : >> { %261 = vst [vmem:[%s6416_s7 + $0xe0] sm:$0xff] %v260_v28  ;;  %263 = vst [vmem:[%s6416_s7 + $0xe8] sm:$0xff] %v262_v29  ;;  %v266_v31 = vld [vmem:[%s6420_s8 + $0x1a0] sm:$0xff]  ;;  %v270_v33 = vld [vmem:[%s6420_s8 + $0x1e8] sm:$0xff] }
  0x4a   : >> { %v268_v32 = vld [vmem:[%s6420_s8 + $0x1e0] sm:$0xff]  ;;  %265 = vst [vmem:[%s6416_s7 + $0xf0] sm:$0xff] %v264_v30  ;;  %267 = vst [vmem:[%s6416_s7 + $0xf8] sm:$0xff] %v266_v31  ;;  %v272_v34 = vld [vmem:[%s6420_s8 + $0x1f0] sm:$0xff] }
  0x4b   : >> { %269 = vst [vmem:[%s6416_s7 + $0x100] sm:$0xff] %v268_v32  ;;  %v274_v35 = vld [vmem:[%s6420_s8 + $0x1f8] sm:$0xff]  ;;  %271 = vst [vmem:[%s6416_s7 + $0x108] sm:$0xff] %v270_v33  ;;  %v276_v36 = vld [vmem:[%s6420_s8 + $0x200] sm:$0xff] }
  0x4c   : >> { %273 = vst [vmem:[%s6416_s7 + $0x110] sm:$0xff] %v272_v34  ;;  %275 = vst [vmem:[%s6416_s7 + $0x118] sm:$0xff] %v274_v35  ;;  %v278_v37 = vld [vmem:[%s6420_s8 + $0x208] sm:$0xff]  ;;  %v280_v38 = vld [vmem:[%s6420_s8 + $0x210] sm:$0xff] }
  0x4d   : >> { %277 = vst [vmem:[%s6416_s7 + $0x120] sm:$0xff] %v276_v36  ;;  %279 = vst [vmem:[%s6416_s7 + $0x128] sm:$0xff] %v278_v37  ;;  %v282_v39 = vld [vmem:[%s6420_s8 + $0x218] sm:$0xff]  ;;  %v286_v41 = vld [vmem:[%s6420_s8 + $0x260] sm:$0xff] }
  0x4e   : >> { %281 = vst [vmem:[%s6416_s7 + $0x130] sm:$0xff] %v280_v38  ;;  %v284_v40 = vld [vmem:[%s6420_s8 + $0x258] sm:$0xff]  ;;  %283 = vst [vmem:[%s6416_s7 + $0x138] sm:$0xff] %v282_v39  ;;  %v288_v42 = vld [vmem:[%s6420_s8 + $0x268] sm:$0xff] }
  0x4f   : >> { %285 = vst [vmem:[%s6416_s7 + $0x140] sm:$0xff] %v284_v40  ;;  %287 = vst [vmem:[%s6416_s7 + $0x148] sm:$0xff] %v286_v41  ;;  %v290_v43 = vld [vmem:[%s6420_s8 + $0x270] sm:$0xff]  ;;  %v292_v44 = vld [vmem:[%s6420_s8 + $0x278] sm:$0xff] }
  0x50   : >> { %289 = vst [vmem:[%s6416_s7 + $0x150] sm:$0xff] %v288_v42  ;;  %291 = vst [vmem:[%s6416_s7 + $0x158] sm:$0xff] %v290_v43  ;;  %v294_v45 = vld [vmem:[%s6420_s8 + $0x280] sm:$0xff]  ;;  %v296_v46 = vld [vmem:[%s6420_s8 + $0x288] sm:$0xff] }
  0x51   : >> { %293 = vst [vmem:[%s6416_s7 + $0x160] sm:$0xff] %v292_v44  ;;  %v298_v47 = vld [vmem:[%s6420_s8 + $0x290] sm:$0xff]  ;;  %295 = vst [vmem:[%s6416_s7 + $0x168] sm:$0xff] %v294_v45  ;;  %v302_v49 = vld [vmem:[%s6420_s8 + $0x2d8] sm:$0xff] }
  0x52   : >> { %297 = vst [vmem:[%s6416_s7 + $0x170] sm:$0xff] %v296_v46  ;;  %299 = vst [vmem:[%s6416_s7 + $0x178] sm:$0xff] %v298_v47  ;;  %v300_v48 = vld [vmem:[%s6420_s8 + $0x2d0] sm:$0xff]  ;;  %v304_v50 = vld [vmem:[%s6420_s8 + $0x2e0] sm:$0xff] }
  0x53   : >> { %301 = vst [vmem:[%s6416_s7 + $0x180] sm:$0xff] %v300_v48  ;;  %303 = vst [vmem:[%s6416_s7 + $0x188] sm:$0xff] %v302_v49  ;;  %v306_v51 = vld [vmem:[%s6420_s8 + $0x2e8] sm:$0xff]  ;;  %v308_v52 = vld [vmem:[%s6420_s8 + $0x2f0] sm:$0xff] }
  0x54   : >> { %305 = vst [vmem:[%s6416_s7 + $0x190] sm:$0xff] %v304_v50  ;;  %v310_v53 = vld [vmem:[%s6420_s8 + $0x2f8] sm:$0xff]  ;;  %307 = vst [vmem:[%s6416_s7 + $0x198] sm:$0xff] %v306_v51  ;;  %v312_v54 = vld [vmem:[%s6420_s8 + $0x300] sm:$0xff] }
  0x55   : >> { %309 = vst [vmem:[%s6416_s7 + $0x1a0] sm:$0xff] %v308_v52  ;;  %311 = vst [vmem:[%s6416_s7 + $0x1a8] sm:$0xff] %v310_v53  ;;  %v314_v55 = vld [vmem:[%s6420_s8 + $0x308] sm:$0xff]  ;;  %v318_v57 = vld [vmem:[%s6420_s8 + $0x350] sm:$0xff] }
  0x56   : >> { %v316_v56 = vld [vmem:[%s6420_s8 + $0x348] sm:$0xff]  ;;  %313 = vst [vmem:[%s6416_s7 + $0x1b0] sm:$0xff] %v312_v54  ;;  %315 = vst [vmem:[%s6416_s7 + $0x1b8] sm:$0xff] %v314_v55  ;;  %v320_v58 = vld [vmem:[%s6420_s8 + $0x358] sm:$0xff] }
  0x57   : >> { %317 = vst [vmem:[%s6416_s7 + $0x1c0] sm:$0xff] %v316_v56  ;;  %v322_v59 = vld [vmem:[%s6420_s8 + $0x360] sm:$0xff]  ;;  %319 = vst [vmem:[%s6416_s7 + $0x1c8] sm:$0xff] %v318_v57  ;;  %v324_v60 = vld [vmem:[%s6420_s8 + $0x368] sm:$0xff] }
  0x58   : >> { %321 = vst [vmem:[%s6416_s7 + $0x1d0] sm:$0xff] %v320_v58  ;;  %323 = vst [vmem:[%s6416_s7 + $0x1d8] sm:$0xff] %v322_v59  ;;  %v326_v61 = vld [vmem:[%s6420_s8 + $0x370] sm:$0xff]  ;;  %v328_v62 = vld [vmem:[%s6420_s8 + $0x378] sm:$0xff] }
  0x59   : >> { %325 = vst [vmem:[%s6416_s7 + $0x1e0] sm:$0xff] %v324_v60  ;;  %327 = vst [vmem:[%s6416_s7 + $0x1e8] sm:$0xff] %v326_v61  ;;  %v330_v63 = vld [vmem:[%s6420_s8 + $0x380] sm:$0xff]  ;;  %v334_v1 = vld [vmem:[%s6420_s8 + $0x3c8] sm:$0xff] }
  0x5a   : >> { %329 = vst [vmem:[%s6416_s7 + $0x1f0] sm:$0xff] %v328_v62  ;;  %v332_v0 = vld [vmem:[%s6420_s8 + $0x3c0] sm:$0xff]  ;;  %331 = vst [vmem:[%s6416_s7 + $0x1f8] sm:$0xff] %v330_v63  ;;  %v336_v2 = vld [vmem:[%s6420_s8 + $0x3d0] sm:$0xff] }
  0x5b   : >> { %333 = vst [vmem:[%s6416_s7 + $0x200] sm:$0xff] %v332_v0  ;;  %335 = vst [vmem:[%s6416_s7 + $0x208] sm:$0xff] %v334_v1  ;;  %v338_v3 = vld [vmem:[%s6420_s8 + $0x3d8] sm:$0xff]  ;;  %v340_v4 = vld [vmem:[%s6420_s8 + $0x3e0] sm:$0xff] }
  0x5c   : >> { %337 = vst [vmem:[%s6416_s7 + $0x210] sm:$0xff] %v336_v2  ;;  %339 = vst [vmem:[%s6416_s7 + $0x218] sm:$0xff] %v338_v3  ;;  %v342_v5 = vld [vmem:[%s6420_s8 + $0x3e8] sm:$0xff]  ;;  %v344_v6 = vld [vmem:[%s6420_s8 + $0x3f0] sm:$0xff] }
  0x5d   : >> { %341 = vst [vmem:[%s6416_s7 + $0x220] sm:$0xff] %v340_v4  ;;  %v346_v7 = vld [vmem:[%s6420_s8 + $0x3f8] sm:$0xff]  ;;  %343 = vst [vmem:[%s6416_s7 + $0x228] sm:$0xff] %v342_v5  ;;  %v350_v9 = vld [vmem:[%s6420_s8 + $0x440] sm:$0xff] }
  0x5e   : >> { %345 = vst [vmem:[%s6416_s7 + $0x230] sm:$0xff] %v344_v6  ;;  %347 = vst [vmem:[%s6416_s7 + $0x238] sm:$0xff] %v346_v7  ;;  %v348_v8 = vld [vmem:[%s6420_s8 + $0x438] sm:$0xff]  ;;  %v352_v10 = vld [vmem:[%s6420_s8 + $0x448] sm:$0xff] }
  0x5f   : >> { %349 = vst [vmem:[%s6416_s7 + $0x240] sm:$0xff] %v348_v8  ;;  %351 = vst [vmem:[%s6416_s7 + $0x248] sm:$0xff] %v350_v9  ;;  %v354_v11 = vld [vmem:[%s6420_s8 + $0x450] sm:$0xff]  ;;  %v356_v12 = vld [vmem:[%s6420_s8 + $0x458] sm:$0xff] }
  0x60   : >> { %353 = vst [vmem:[%s6416_s7 + $0x250] sm:$0xff] %v352_v10  ;;  %v358_v13 = vld [vmem:[%s6420_s8 + $0x460] sm:$0xff]  ;;  %355 = vst [vmem:[%s6416_s7 + $0x258] sm:$0xff] %v354_v11  ;;  %v360_v14 = vld [vmem:[%s6420_s8 + $0x468] sm:$0xff] }
  0x61   : >> { %357 = vst [vmem:[%s6416_s7 + $0x260] sm:$0xff] %v356_v12  ;;  %359 = vst [vmem:[%s6416_s7 + $0x268] sm:$0xff] %v358_v13  ;;  %v362_v15 = vld [vmem:[%s6420_s8 + $0x470] sm:$0xff]  ;;  %v366_v17 = vld [vmem:[%s6420_s8 + $0x4b8] sm:$0xff] }
  0x62   : >> { %v364_v16 = vld [vmem:[%s6420_s8 + $0x4b0] sm:$0xff]  ;;  %361 = vst [vmem:[%s6416_s7 + $0x270] sm:$0xff] %v360_v14  ;;  %363 = vst [vmem:[%s6416_s7 + $0x278] sm:$0xff] %v362_v15  ;;  %v368_v18 = vld [vmem:[%s6420_s8 + $0x4c0] sm:$0xff] }
  0x63   : >> { %365 = vst [vmem:[%s6416_s7 + $0x280] sm:$0xff] %v364_v16  ;;  %v370_v19 = vld [vmem:[%s6420_s8 + $0x4c8] sm:$0xff]  ;;  %367 = vst [vmem:[%s6416_s7 + $0x288] sm:$0xff] %v366_v17  ;;  %v372_v20 = vld [vmem:[%s6420_s8 + $0x4d0] sm:$0xff] }
  0x64   : >> { %369 = vst [vmem:[%s6416_s7 + $0x290] sm:$0xff] %v368_v18  ;;  %371 = vst [vmem:[%s6416_s7 + $0x298] sm:$0xff] %v370_v19  ;;  %v374_v21 = vld [vmem:[%s6420_s8 + $0x4d8] sm:$0xff]  ;;  %v376_v22 = vld [vmem:[%s6420_s8 + $0x4e0] sm:$0xff] }
  0x65   : >> { %373 = vst [vmem:[%s6416_s7 + $0x2a0] sm:$0xff] %v372_v20  ;;  %375 = vst [vmem:[%s6416_s7 + $0x2a8] sm:$0xff] %v374_v21  ;;  %v378_v23 = vld [vmem:[%s6420_s8 + $0x4e8] sm:$0xff]  ;;  %v382_v25 = vld [vmem:[%s6420_s8 + $0x530] sm:$0xff] }
  0x66   : >> { %377 = vst [vmem:[%s6416_s7 + $0x2b0] sm:$0xff] %v376_v22  ;;  %v380_v24 = vld [vmem:[%s6420_s8 + $0x528] sm:$0xff]  ;;  %379 = vst [vmem:[%s6416_s7 + $0x2b8] sm:$0xff] %v378_v23  ;;  %v384_v26 = vld [vmem:[%s6420_s8 + $0x538] sm:$0xff] }
  0x67   : >> { %381 = vst [vmem:[%s6416_s7 + $0x2c0] sm:$0xff] %v380_v24  ;;  %383 = vst [vmem:[%s6416_s7 + $0x2c8] sm:$0xff] %v382_v25  ;;  %v386_v27 = vld [vmem:[%s6420_s8 + $0x540] sm:$0xff]  ;;  %v388_v28 = vld [vmem:[%s6420_s8 + $0x548] sm:$0xff] }
  0x68   : >> { %385 = vst [vmem:[%s6416_s7 + $0x2d0] sm:$0xff] %v384_v26  ;;  %387 = vst [vmem:[%s6416_s7 + $0x2d8] sm:$0xff] %v386_v27  ;;  %v390_v29 = vld [vmem:[%s6420_s8 + $0x550] sm:$0xff]  ;;  %v392_v30 = vld [vmem:[%s6420_s8 + $0x558] sm:$0xff] }
  0x69   : >> { %389 = vst [vmem:[%s6416_s7 + $0x2e0] sm:$0xff] %v388_v28  ;;  %v394_v31 = vld [vmem:[%s6420_s8 + $0x560] sm:$0xff]  ;;  %391 = vst [vmem:[%s6416_s7 + $0x2e8] sm:$0xff] %v390_v29  ;;  %v398_v33 = vld [vmem:[%s6420_s8 + $0x5a8] sm:$0xff] }
  0x6a   : >> { %393 = vst [vmem:[%s6416_s7 + $0x2f0] sm:$0xff] %v392_v30  ;;  %395 = vst [vmem:[%s6416_s7 + $0x2f8] sm:$0xff] %v394_v31  ;;  %v396_v32 = vld [vmem:[%s6420_s8 + $0x5a0] sm:$0xff]  ;;  %v400_v34 = vld [vmem:[%s6420_s8 + $0x5b0] sm:$0xff] }
  0x6b   : >> { %397 = vst [vmem:[%s6416_s7 + $0x300] sm:$0xff] %v396_v32  ;;  %399 = vst [vmem:[%s6416_s7 + $0x308] sm:$0xff] %v398_v33  ;;  %v402_v35 = vld [vmem:[%s6420_s8 + $0x5b8] sm:$0xff]  ;;  %v404_v36 = vld [vmem:[%s6420_s8 + $0x5c0] sm:$0xff] }
  0x6c   : >> { %401 = vst [vmem:[%s6416_s7 + $0x310] sm:$0xff] %v400_v34  ;;  %v406_v37 = vld [vmem:[%s6420_s8 + $0x5c8] sm:$0xff]  ;;  %403 = vst [vmem:[%s6416_s7 + $0x318] sm:$0xff] %v402_v35  ;;  %v408_v38 = vld [vmem:[%s6420_s8 + $0x5d0] sm:$0xff]  ;;  %200 = sbr.rel (!%p197_p1) target bundleno = 58 (0x3a), region = 335 }
  0x6d   : >> { %405 = vst [vmem:[%s6416_s7 + $0x320] sm:$0xff] %v404_v36  ;;  %407 = vst [vmem:[%s6416_s7 + $0x328] sm:$0xff] %v406_v37  ;;  %v410_v39 = vld [vmem:[%s6420_s8 + $0x5d8] sm:$0xff]  ;;  %v414_v41 = vld [vmem:[%s6420_s8 + $0x620] sm:$0xff] }
  0x6e   : >> { %v412_v40 = vld [vmem:[%s6420_s8 + $0x618] sm:$0xff]  ;;  %409 = vst [vmem:[%s6416_s7 + $0x330] sm:$0xff] %v408_v38  ;;  %411 = vst [vmem:[%s6416_s7 + $0x338] sm:$0xff] %v410_v39  ;;  %v416_v42 = vld [vmem:[%s6420_s8 + $0x628] sm:$0xff] }
  0x6f   : >> { %413 = vst [vmem:[%s6416_s7 + $0x340] sm:$0xff] %v412_v40  ;;  %v418_v43 = vld [vmem:[%s6420_s8 + $0x630] sm:$0xff]  ;;  %415 = vst [vmem:[%s6416_s7 + $0x348] sm:$0xff] %v414_v41  ;;  %v420_v44 = vld [vmem:[%s6420_s8 + $0x638] sm:$0xff] }
  0x70   : >> { %417 = vst [vmem:[%s6416_s7 + $0x350] sm:$0xff] %v416_v42  ;;  %419 = vst [vmem:[%s6416_s7 + $0x358] sm:$0xff] %v418_v43  ;;  %v422_v45 = vld [vmem:[%s6420_s8 + $0x640] sm:$0xff]  ;;  %v424_v46 = vld [vmem:[%s6420_s8 + $0x648] sm:$0xff] }
  0x71   : >> { %421 = vst [vmem:[%s6416_s7 + $0x360] sm:$0xff] %v420_v44  ;;  %423 = vst [vmem:[%s6416_s7 + $0x368] sm:$0xff] %v422_v45  ;;  %v426_v47 = vld [vmem:[%s6420_s8 + $0x650] sm:$0xff]  ;;  %s10167_s8 = smov %s6732_s22 }
  0x72   : >> { %425 = vst [vmem:[%s6416_s7 + $0x370] sm:$0xff] %v424_v46  ;;  %427 = vst [vmem:[%s6416_s7 + $0x378] sm:$0xff] %v426_v47  ;;  %s10166_s7 = smov %s6735_s23 }
  0x73 PF: > { %s6937_s24 = sand.u32 7, %s191_s5   ;;  %s5713_s25 = sshll.u32 %s6665_s6, 10 }
  0x74   : > { %s439_s26 = sshra.s32 %s5713_s25, 4  ;;  %p5321_p2 = scmp.le.s32.totalorder %s6937_s24, 0 }
  0x75   : > { %s6941_s27 = scalar_lea.vmem %s6650_s28, %s439_s26   ;;  %s6944_s29 = scalar_lea.vmem %s6654_s3, %s439_s26 [#allocation2]  }
  0x76   : > { %5121 = sbr.rel (%p5321_p2) target bundleno = 135 (0x87), region = 340  ;;  %s10169_s7 = smov (!%p5321_p2), %s6944_s29 }
  0x77   : > { %s10170_s8 = smov (!%p5321_p2), %s6941_s27  ;;  %s6953_s15 = smov (!%p5321_p2), 0  }
  0x78   : > { %s6955_s17 = smov (!%p5321_p2), 0  }
  0x7d LB: >> { %v455_v48 = vld [vmem:[%s6436_s8] sm:$0xff]  ;;  %v457_v49 = vld [vmem:[%s6436_s8 + $0x78] sm:$0xff]  ;;  %v459_v50 = vld [vmem:[%s6436_s8 + $0xf0] sm:$0xff]  ;;  %s483_s5 = sadd.s32 1, %s6440_s15  ;;  %s449_s17 = sadd.s32 1, %s6444_s17   ;;  %s6444_s17 = sphi %s6955_s17, %s449_s17   ;;  %s6440_s15 = sphi %s6953_s15, %s10171_s15   ;;  %s6436_s8 = sphi %s10170_s8, %s488_s8   ;;  %s6432_s7 = sphi %s10169_s7, %s489_s7  }
  0x7e   : >> { %456 = vst [vmem:[%s6432_s7] sm:$0xff] %v455_v48  ;;  %458 = vst [vmem:[%s6432_s7 + $0x40] sm:$0xff] %v457_v49  ;;  %v461_v51 = vld [vmem:[%s6436_s8 + $0x168] sm:$0xff]  ;;  %v463_v52 = vld [vmem:[%s6436_s8 + $0x1e0] sm:$0xff]  ;;  %p484_p4 = scmp.ge.s32.totalorder %s483_s5, %s6937_s24  ;;  %p448_p5 = scmp.ge.s32.totalorder %s449_s17, %s6937_s24 }
  0x7f   : >> { %460 = vst [vmem:[%s6432_s7 + $0x80] sm:$0xff] %v459_v50  ;;  %v465_v53 = vld [vmem:[%s6436_s8 + $0x258] sm:$0xff]  ;;  %462 = vst [vmem:[%s6432_s7 + $0xc0] sm:$0xff] %v461_v51  ;;  %v467_v54 = vld [vmem:[%s6436_s8 + $0x2d0] sm:$0xff] }
  0x80   : >> { %464 = vst [vmem:[%s6432_s7 + $0x100] sm:$0xff] %v463_v52  ;;  %466 = vst [vmem:[%s6432_s7 + $0x140] sm:$0xff] %v465_v53  ;;  %v469_v55 = vld [vmem:[%s6436_s8 + $0x348] sm:$0xff]  ;;  %v471_v56 = vld [vmem:[%s6436_s8 + $0x3c0] sm:$0xff]  ;;  %s10518_s5 = smov (%p484_p4, %s483_s5), 0  ;;  %451 = sbr.rel (!%p448_p5) target bundleno = 125 (0x7d), region = 346 }
  0x81   : >> { %468 = vst [vmem:[%s6432_s7 + $0x180] sm:$0xff] %v467_v54  ;;  %470 = vst [vmem:[%s6432_s7 + $0x1c0] sm:$0xff] %v469_v55  ;;  %v473_v57 = vld [vmem:[%s6436_s8 + $0x438] sm:$0xff]  ;;  %v475_v58 = vld [vmem:[%s6436_s8 + $0x4b0] sm:$0xff]  ;;  %s5322_s6 = sshll.u32 %s10518_s5, 3  ;;  %s10171_s15 = smov %s10518_s5 }
  0x82   : >> { %472 = vst [vmem:[%s6432_s7 + $0x200] sm:$0xff] %v471_v56  ;;  %v477_v59 = vld [vmem:[%s6436_s8 + $0x528] sm:$0xff]  ;;  %474 = vst [vmem:[%s6432_s7 + $0x240] sm:$0xff] %v473_v57  ;;  %v479_v60 = vld [vmem:[%s6436_s8 + $0x5a0] sm:$0xff] }
  0x83   : >> { %476 = vst [vmem:[%s6432_s7 + $0x280] sm:$0xff] %v475_v58  ;;  %478 = vst [vmem:[%s6432_s7 + $0x2c0] sm:$0xff] %v477_v59  ;;  %v481_v61 = vld [vmem:[%s6436_s8 + $0x618] sm:$0xff]  ;;  %s488_s8 = scalar_lea.vmem %s6941_s27, %s5322_s6  }
  0x84   : >> { %480 = vst [vmem:[%s6432_s7 + $0x300] sm:$0xff] %v479_v60  ;;  %482 = vst [vmem:[%s6432_s7 + $0x340] sm:$0xff] %v481_v61  ;;  %s489_s7 = scalar_lea.vmem %s6944_s29, %s5322_s6 [#allocation2]  }
  0x87 PF: > { %492 = sbr.rel (%p187_p11) target bundleno = 242 (0xf2), region = 61  ;;  %s494_s18 = ssub.s32 (!%p187_p11), %s6652_s30, %s6658_s4 }
  0x88   : > { %s498_s21 = sshrl.u32 (!%p187_p11), %s6652_s30, 3  ;;  %s7014_s22 = scalar_lea.vmem (!%p187_p11), %s6650_s28, %s494_s18 }
  0x89   : > { %s7017_s23 = scalar_lea.vmem (!%p187_p11), %s6654_s3, %s494_s18 [#allocation2]  ;;  %s7021_s25 = sshrl.u32 (!%p187_p11), %s498_s21, 3 }
  0x8a   : > { %p5324_p7 = scmp.le.s32.totalorder (!%p187_p11), %s7021_s25, 0 }
  0x8e   : > { %5135 = sbr.rel (%p5324_p7) target bundleno = 206 (0xce), region = 351  ;;  %s10172_s24 = smov (!%p5324_p7), %s6654_s3 }
  0x8f   : > { %s10173_s26 = smov (!%p5324_p7), %s6650_s28  ;;  %s7030_s27 = smov (!%p5324_p7), 0  }
  0x90   : > { %s7032_s29 = smov (!%p5324_p7), 0  }
  0x95 LB: >> { %v511_v62 = vld [vmem:[%s6452_s26] sm:$0xff]  ;;  %v513_v63 = vld [vmem:[%s6452_s26 + $0x8] sm:$0xff]  ;;  %v515_v0 = vld [vmem:[%s6452_s26 + $0x10] sm:$0xff]  ;;  %s735_s7 = sadd.s32 1, %s6456_s27  ;;  %s505_s29 = sadd.s32 1, %s6460_s29   ;;  %s6460_s29 = sphi %s7032_s29, %s505_s29   ;;  %s6456_s27 = sphi %s7030_s27, %s10176_s27   ;;  %s6452_s26 = sphi %s10173_s26, %s10175_s26   ;;  %s6448_s24 = sphi %s10172_s24, %s10174_s24  }
  0x96   : >> { %512 = vst [vmem:[%s6448_s24] sm:$0xff] %v511_v62  ;;  %514 = vst [vmem:[%s6448_s24 + $0x8] sm:$0xff] %v513_v63  ;;  %v517_v1 = vld [vmem:[%s6452_s26 + $0x18] sm:$0xff]  ;;  %v519_v2 = vld [vmem:[%s6452_s26 + $0x20] sm:$0xff]  ;;  %p736_p8 = scmp.ge.s32.totalorder %s735_s7, %s7021_s25  ;;  %p504_p9 = scmp.ge.s32.totalorder %s505_s29, %s7021_s25 }
  0x97   : >> { %516 = vst [vmem:[%s6448_s24 + $0x10] sm:$0xff] %v515_v0  ;;  %v521_v3 = vld [vmem:[%s6452_s26 + $0x28] sm:$0xff]  ;;  %518 = vst [vmem:[%s6448_s24 + $0x18] sm:$0xff] %v517_v1  ;;  %v523_v4 = vld [vmem:[%s6452_s26 + $0x30] sm:$0xff] }
  0x98   : >> { %520 = vst [vmem:[%s6448_s24 + $0x20] sm:$0xff] %v519_v2  ;;  %522 = vst [vmem:[%s6448_s24 + $0x28] sm:$0xff] %v521_v3  ;;  %v525_v5 = vld [vmem:[%s6452_s26 + $0x38] sm:$0xff]  ;;  %v529_v7 = vld [vmem:[%s6452_s26 + $0x80] sm:$0xff]  ;;  %s10520_s7 = smov (%p736_p8, %s735_s7), 0 }
  0x99   : >> { %v527_v6 = vld [vmem:[%s6452_s26 + $0x78] sm:$0xff]  ;;  %524 = vst [vmem:[%s6448_s24 + $0x30] sm:$0xff] %v523_v4  ;;  %526 = vst [vmem:[%s6448_s24 + $0x38] sm:$0xff] %v525_v5  ;;  %v531_v8 = vld [vmem:[%s6452_s26 + $0x88] sm:$0xff]  ;;  %s5325_s8 = sshll.u32 %s10520_s7, 6  ;;  %s10176_s27 = smov %s10520_s7 }
  0x9a   : >> { %528 = vst [vmem:[%s6448_s24 + $0x40] sm:$0xff] %v527_v6  ;;  %v533_v9 = vld [vmem:[%s6452_s26 + $0x90] sm:$0xff]  ;;  %530 = vst [vmem:[%s6448_s24 + $0x48] sm:$0xff] %v529_v7  ;;  %v535_v10 = vld [vmem:[%s6452_s26 + $0x98] sm:$0xff]  ;;  %s7088_s15 = scalar_lea.vmem %s6650_s28, %s5325_s8   ;;  %s7091_s17 = scalar_lea.vmem %s6654_s3, %s5325_s8 [#allocation2]  }
  0x9b   : >> { %532 = vst [vmem:[%s6448_s24 + $0x50] sm:$0xff] %v531_v8  ;;  %534 = vst [vmem:[%s6448_s24 + $0x58] sm:$0xff] %v533_v9  ;;  %v537_v11 = vld [vmem:[%s6452_s26 + $0xa0] sm:$0xff]  ;;  %v539_v12 = vld [vmem:[%s6452_s26 + $0xa8] sm:$0xff] }
  0x9c   : >> { %536 = vst [vmem:[%s6448_s24 + $0x60] sm:$0xff] %v535_v10  ;;  %538 = vst [vmem:[%s6448_s24 + $0x68] sm:$0xff] %v537_v11  ;;  %v541_v13 = vld [vmem:[%s6452_s26 + $0xb0] sm:$0xff]  ;;  %v545_v15 = vld [vmem:[%s6452_s26 + $0xf8] sm:$0xff] }
  0x9d   : >> { %540 = vst [vmem:[%s6448_s24 + $0x70] sm:$0xff] %v539_v12  ;;  %v543_v14 = vld [vmem:[%s6452_s26 + $0xf0] sm:$0xff]  ;;  %542 = vst [vmem:[%s6448_s24 + $0x78] sm:$0xff] %v541_v13  ;;  %v547_v16 = vld [vmem:[%s6452_s26 + $0x100] sm:$0xff] }
  0x9e   : >> { %544 = vst [vmem:[%s6448_s24 + $0x80] sm:$0xff] %v543_v14  ;;  %546 = vst [vmem:[%s6448_s24 + $0x88] sm:$0xff] %v545_v15  ;;  %v549_v17 = vld [vmem:[%s6452_s26 + $0x108] sm:$0xff]  ;;  %v551_v18 = vld [vmem:[%s6452_s26 + $0x110] sm:$0xff] }
  0x9f   : >> { %548 = vst [vmem:[%s6448_s24 + $0x90] sm:$0xff] %v547_v16  ;;  %550 = vst [vmem:[%s6448_s24 + $0x98] sm:$0xff] %v549_v17  ;;  %v553_v19 = vld [vmem:[%s6452_s26 + $0x118] sm:$0xff]  ;;  %v555_v20 = vld [vmem:[%s6452_s26 + $0x120] sm:$0xff] }
  0xa0   : >> { %552 = vst [vmem:[%s6448_s24 + $0xa0] sm:$0xff] %v551_v18  ;;  %v557_v21 = vld [vmem:[%s6452_s26 + $0x128] sm:$0xff]  ;;  %554 = vst [vmem:[%s6448_s24 + $0xa8] sm:$0xff] %v553_v19  ;;  %v561_v23 = vld [vmem:[%s6452_s26 + $0x170] sm:$0xff] }
  0xa1   : >> { %556 = vst [vmem:[%s6448_s24 + $0xb0] sm:$0xff] %v555_v20  ;;  %558 = vst [vmem:[%s6448_s24 + $0xb8] sm:$0xff] %v557_v21  ;;  %v559_v22 = vld [vmem:[%s6452_s26 + $0x168] sm:$0xff]  ;;  %v563_v24 = vld [vmem:[%s6452_s26 + $0x178] sm:$0xff] }
  0xa2   : >> { %560 = vst [vmem:[%s6448_s24 + $0xc0] sm:$0xff] %v559_v22  ;;  %562 = vst [vmem:[%s6448_s24 + $0xc8] sm:$0xff] %v561_v23  ;;  %v565_v25 = vld [vmem:[%s6452_s26 + $0x180] sm:$0xff]  ;;  %v567_v26 = vld [vmem:[%s6452_s26 + $0x188] sm:$0xff] }
  0xa3   : >> { %564 = vst [vmem:[%s6448_s24 + $0xd0] sm:$0xff] %v563_v24  ;;  %v569_v27 = vld [vmem:[%s6452_s26 + $0x190] sm:$0xff]  ;;  %566 = vst [vmem:[%s6448_s24 + $0xd8] sm:$0xff] %v565_v25  ;;  %v571_v28 = vld [vmem:[%s6452_s26 + $0x198] sm:$0xff] }
  0xa4   : >> { %568 = vst [vmem:[%s6448_s24 + $0xe0] sm:$0xff] %v567_v26  ;;  %570 = vst [vmem:[%s6448_s24 + $0xe8] sm:$0xff] %v569_v27  ;;  %v573_v29 = vld [vmem:[%s6452_s26 + $0x1a0] sm:$0xff]  ;;  %v577_v31 = vld [vmem:[%s6452_s26 + $0x1e8] sm:$0xff] }
  0xa5   : >> { %v575_v30 = vld [vmem:[%s6452_s26 + $0x1e0] sm:$0xff]  ;;  %572 = vst [vmem:[%s6448_s24 + $0xf0] sm:$0xff] %v571_v28  ;;  %574 = vst [vmem:[%s6448_s24 + $0xf8] sm:$0xff] %v573_v29  ;;  %v579_v32 = vld [vmem:[%s6452_s26 + $0x1f0] sm:$0xff] }
  0xa6   : >> { %576 = vst [vmem:[%s6448_s24 + $0x100] sm:$0xff] %v575_v30  ;;  %v581_v33 = vld [vmem:[%s6452_s26 + $0x1f8] sm:$0xff]  ;;  %578 = vst [vmem:[%s6448_s24 + $0x108] sm:$0xff] %v577_v31  ;;  %v583_v34 = vld [vmem:[%s6452_s26 + $0x200] sm:$0xff] }
  0xa7   : >> { %580 = vst [vmem:[%s6448_s24 + $0x110] sm:$0xff] %v579_v32  ;;  %582 = vst [vmem:[%s6448_s24 + $0x118] sm:$0xff] %v581_v33  ;;  %v585_v35 = vld [vmem:[%s6452_s26 + $0x208] sm:$0xff]  ;;  %v587_v36 = vld [vmem:[%s6452_s26 + $0x210] sm:$0xff] }
  0xa8   : >> { %584 = vst [vmem:[%s6448_s24 + $0x120] sm:$0xff] %v583_v34  ;;  %586 = vst [vmem:[%s6448_s24 + $0x128] sm:$0xff] %v585_v35  ;;  %v589_v37 = vld [vmem:[%s6452_s26 + $0x218] sm:$0xff]  ;;  %v593_v39 = vld [vmem:[%s6452_s26 + $0x260] sm:$0xff] }
  0xa9   : >> { %588 = vst [vmem:[%s6448_s24 + $0x130] sm:$0xff] %v587_v36  ;;  %v591_v38 = vld [vmem:[%s6452_s26 + $0x258] sm:$0xff]  ;;  %590 = vst [vmem:[%s6448_s24 + $0x138] sm:$0xff] %v589_v37  ;;  %v595_v40 = vld [vmem:[%s6452_s26 + $0x268] sm:$0xff] }
  0xaa   : >> { %592 = vst [vmem:[%s6448_s24 + $0x140] sm:$0xff] %v591_v38  ;;  %594 = vst [vmem:[%s6448_s24 + $0x148] sm:$0xff] %v593_v39  ;;  %v597_v41 = vld [vmem:[%s6452_s26 + $0x270] sm:$0xff]  ;;  %v599_v42 = vld [vmem:[%s6452_s26 + $0x278] sm:$0xff] }
  0xab   : >> { %596 = vst [vmem:[%s6448_s24 + $0x150] sm:$0xff] %v595_v40  ;;  %598 = vst [vmem:[%s6448_s24 + $0x158] sm:$0xff] %v597_v41  ;;  %v601_v43 = vld [vmem:[%s6452_s26 + $0x280] sm:$0xff]  ;;  %v603_v44 = vld [vmem:[%s6452_s26 + $0x288] sm:$0xff] }
  0xac   : >> { %600 = vst [vmem:[%s6448_s24 + $0x160] sm:$0xff] %v599_v42  ;;  %v605_v45 = vld [vmem:[%s6452_s26 + $0x290] sm:$0xff]  ;;  %602 = vst [vmem:[%s6448_s24 + $0x168] sm:$0xff] %v601_v43  ;;  %v609_v47 = vld [vmem:[%s6452_s26 + $0x2d8] sm:$0xff] }
  0xad   : >> { %604 = vst [vmem:[%s6448_s24 + $0x170] sm:$0xff] %v603_v44  ;;  %606 = vst [vmem:[%s6448_s24 + $0x178] sm:$0xff] %v605_v45  ;;  %v607_v46 = vld [vmem:[%s6452_s26 + $0x2d0] sm:$0xff]  ;;  %v611_v48 = vld [vmem:[%s6452_s26 + $0x2e0] sm:$0xff] }
  0xae   : >> { %608 = vst [vmem:[%s6448_s24 + $0x180] sm:$0xff] %v607_v46  ;;  %610 = vst [vmem:[%s6448_s24 + $0x188] sm:$0xff] %v609_v47  ;;  %v613_v49 = vld [vmem:[%s6452_s26 + $0x2e8] sm:$0xff]  ;;  %v615_v50 = vld [vmem:[%s6452_s26 + $0x2f0] sm:$0xff] }
  0xaf   : >> { %612 = vst [vmem:[%s6448_s24 + $0x190] sm:$0xff] %v611_v48  ;;  %v617_v51 = vld [vmem:[%s6452_s26 + $0x2f8] sm:$0xff]  ;;  %614 = vst [vmem:[%s6448_s24 + $0x198] sm:$0xff] %v613_v49  ;;  %v619_v52 = vld [vmem:[%s6452_s26 + $0x300] sm:$0xff] }
  0xb0   : >> { %616 = vst [vmem:[%s6448_s24 + $0x1a0] sm:$0xff] %v615_v50  ;;  %618 = vst [vmem:[%s6448_s24 + $0x1a8] sm:$0xff] %v617_v51  ;;  %v621_v53 = vld [vmem:[%s6452_s26 + $0x308] sm:$0xff]  ;;  %v625_v55 = vld [vmem:[%s6452_s26 + $0x350] sm:$0xff] }
  0xb1   : >> { %v623_v54 = vld [vmem:[%s6452_s26 + $0x348] sm:$0xff]  ;;  %620 = vst [vmem:[%s6448_s24 + $0x1b0] sm:$0xff] %v619_v52  ;;  %622 = vst [vmem:[%s6448_s24 + $0x1b8] sm:$0xff] %v621_v53  ;;  %v627_v56 = vld [vmem:[%s6452_s26 + $0x358] sm:$0xff] }
  0xb2   : >> { %624 = vst [vmem:[%s6448_s24 + $0x1c0] sm:$0xff] %v623_v54  ;;  %v629_v57 = vld [vmem:[%s6452_s26 + $0x360] sm:$0xff]  ;;  %626 = vst [vmem:[%s6448_s24 + $0x1c8] sm:$0xff] %v625_v55  ;;  %v631_v58 = vld [vmem:[%s6452_s26 + $0x368] sm:$0xff] }
  0xb3   : >> { %628 = vst [vmem:[%s6448_s24 + $0x1d0] sm:$0xff] %v627_v56  ;;  %630 = vst [vmem:[%s6448_s24 + $0x1d8] sm:$0xff] %v629_v57  ;;  %v633_v59 = vld [vmem:[%s6452_s26 + $0x370] sm:$0xff]  ;;  %v635_v60 = vld [vmem:[%s6452_s26 + $0x378] sm:$0xff] }
  0xb4   : >> { %632 = vst [vmem:[%s6448_s24 + $0x1e0] sm:$0xff] %v631_v58  ;;  %634 = vst [vmem:[%s6448_s24 + $0x1e8] sm:$0xff] %v633_v59  ;;  %v637_v61 = vld [vmem:[%s6452_s26 + $0x380] sm:$0xff]  ;;  %v641_v63 = vld [vmem:[%s6452_s26 + $0x3c8] sm:$0xff] }
  0xb5   : >> { %636 = vst [vmem:[%s6448_s24 + $0x1f0] sm:$0xff] %v635_v60  ;;  %v639_v62 = vld [vmem:[%s6452_s26 + $0x3c0] sm:$0xff]  ;;  %638 = vst [vmem:[%s6448_s24 + $0x1f8] sm:$0xff] %v637_v61  ;;  %v643_v0 = vld [vmem:[%s6452_s26 + $0x3d0] sm:$0xff] }
  0xb6   : >> { %640 = vst [vmem:[%s6448_s24 + $0x200] sm:$0xff] %v639_v62  ;;  %642 = vst [vmem:[%s6448_s24 + $0x208] sm:$0xff] %v641_v63  ;;  %v645_v1 = vld [vmem:[%s6452_s26 + $0x3d8] sm:$0xff]  ;;  %v647_v2 = vld [vmem:[%s6452_s26 + $0x3e0] sm:$0xff] }
  0xb7   : >> { %644 = vst [vmem:[%s6448_s24 + $0x210] sm:$0xff] %v643_v0  ;;  %646 = vst [vmem:[%s6448_s24 + $0x218] sm:$0xff] %v645_v1  ;;  %v649_v3 = vld [vmem:[%s6452_s26 + $0x3e8] sm:$0xff]  ;;  %v651_v4 = vld [vmem:[%s6452_s26 + $0x3f0] sm:$0xff] }
  0xb8   : >> { %648 = vst [vmem:[%s6448_s24 + $0x220] sm:$0xff] %v647_v2  ;;  %v653_v5 = vld [vmem:[%s6452_s26 + $0x3f8] sm:$0xff]  ;;  %650 = vst [vmem:[%s6448_s24 + $0x228] sm:$0xff] %v649_v3  ;;  %v657_v7 = vld [vmem:[%s6452_s26 + $0x440] sm:$0xff] }
  0xb9   : >> { %652 = vst [vmem:[%s6448_s24 + $0x230] sm:$0xff] %v651_v4  ;;  %654 = vst [vmem:[%s6448_s24 + $0x238] sm:$0xff] %v653_v5  ;;  %v655_v6 = vld [vmem:[%s6452_s26 + $0x438] sm:$0xff]  ;;  %v659_v8 = vld [vmem:[%s6452_s26 + $0x448] sm:$0xff] }
  0xba   : >> { %656 = vst [vmem:[%s6448_s24 + $0x240] sm:$0xff] %v655_v6  ;;  %658 = vst [vmem:[%s6448_s24 + $0x248] sm:$0xff] %v657_v7  ;;  %v661_v9 = vld [vmem:[%s6452_s26 + $0x450] sm:$0xff]  ;;  %v663_v10 = vld [vmem:[%s6452_s26 + $0x458] sm:$0xff] }
  0xbb   : >> { %660 = vst [vmem:[%s6448_s24 + $0x250] sm:$0xff] %v659_v8  ;;  %v665_v11 = vld [vmem:[%s6452_s26 + $0x460] sm:$0xff]  ;;  %662 = vst [vmem:[%s6448_s24 + $0x258] sm:$0xff] %v661_v9  ;;  %v667_v12 = vld [vmem:[%s6452_s26 + $0x468] sm:$0xff] }
  0xbc   : >> { %664 = vst [vmem:[%s6448_s24 + $0x260] sm:$0xff] %v663_v10  ;;  %666 = vst [vmem:[%s6448_s24 + $0x268] sm:$0xff] %v665_v11  ;;  %v669_v13 = vld [vmem:[%s6452_s26 + $0x470] sm:$0xff]  ;;  %v673_v15 = vld [vmem:[%s6452_s26 + $0x4b8] sm:$0xff] }
  0xbd   : >> { %v671_v14 = vld [vmem:[%s6452_s26 + $0x4b0] sm:$0xff]  ;;  %668 = vst [vmem:[%s6448_s24 + $0x270] sm:$0xff] %v667_v12  ;;  %670 = vst [vmem:[%s6448_s24 + $0x278] sm:$0xff] %v669_v13  ;;  %v675_v16 = vld [vmem:[%s6452_s26 + $0x4c0] sm:$0xff] }
  0xbe   : >> { %672 = vst [vmem:[%s6448_s24 + $0x280] sm:$0xff] %v671_v14  ;;  %v677_v17 = vld [vmem:[%s6452_s26 + $0x4c8] sm:$0xff]  ;;  %674 = vst [vmem:[%s6448_s24 + $0x288] sm:$0xff] %v673_v15  ;;  %v679_v18 = vld [vmem:[%s6452_s26 + $0x4d0] sm:$0xff] }
  0xbf   : >> { %676 = vst [vmem:[%s6448_s24 + $0x290] sm:$0xff] %v675_v16  ;;  %678 = vst [vmem:[%s6448_s24 + $0x298] sm:$0xff] %v677_v17  ;;  %v681_v19 = vld [vmem:[%s6452_s26 + $0x4d8] sm:$0xff]  ;;  %v683_v20 = vld [vmem:[%s6452_s26 + $0x4e0] sm:$0xff] }
  0xc0   : >> { %680 = vst [vmem:[%s6448_s24 + $0x2a0] sm:$0xff] %v679_v18  ;;  %682 = vst [vmem:[%s6448_s24 + $0x2a8] sm:$0xff] %v681_v19  ;;  %v685_v21 = vld [vmem:[%s6452_s26 + $0x4e8] sm:$0xff]  ;;  %v689_v23 = vld [vmem:[%s6452_s26 + $0x530] sm:$0xff] }
  0xc1   : >> { %684 = vst [vmem:[%s6448_s24 + $0x2b0] sm:$0xff] %v683_v20  ;;  %v687_v22 = vld [vmem:[%s6452_s26 + $0x528] sm:$0xff]  ;;  %686 = vst [vmem:[%s6448_s24 + $0x2b8] sm:$0xff] %v685_v21  ;;  %v691_v24 = vld [vmem:[%s6452_s26 + $0x538] sm:$0xff] }
  0xc2   : >> { %688 = vst [vmem:[%s6448_s24 + $0x2c0] sm:$0xff] %v687_v22  ;;  %690 = vst [vmem:[%s6448_s24 + $0x2c8] sm:$0xff] %v689_v23  ;;  %v693_v25 = vld [vmem:[%s6452_s26 + $0x540] sm:$0xff]  ;;  %v695_v26 = vld [vmem:[%s6452_s26 + $0x548] sm:$0xff] }
  0xc3   : >> { %692 = vst [vmem:[%s6448_s24 + $0x2d0] sm:$0xff] %v691_v24  ;;  %694 = vst [vmem:[%s6448_s24 + $0x2d8] sm:$0xff] %v693_v25  ;;  %v697_v27 = vld [vmem:[%s6452_s26 + $0x550] sm:$0xff]  ;;  %v699_v28 = vld [vmem:[%s6452_s26 + $0x558] sm:$0xff] }
  0xc4   : >> { %696 = vst [vmem:[%s6448_s24 + $0x2e0] sm:$0xff] %v695_v26  ;;  %v701_v29 = vld [vmem:[%s6452_s26 + $0x560] sm:$0xff]  ;;  %698 = vst [vmem:[%s6448_s24 + $0x2e8] sm:$0xff] %v697_v27  ;;  %v705_v31 = vld [vmem:[%s6452_s26 + $0x5a8] sm:$0xff] }
  0xc5   : >> { %700 = vst [vmem:[%s6448_s24 + $0x2f0] sm:$0xff] %v699_v28  ;;  %702 = vst [vmem:[%s6448_s24 + $0x2f8] sm:$0xff] %v701_v29  ;;  %v703_v30 = vld [vmem:[%s6452_s26 + $0x5a0] sm:$0xff]  ;;  %v707_v32 = vld [vmem:[%s6452_s26 + $0x5b0] sm:$0xff] }
  0xc6   : >> { %704 = vst [vmem:[%s6448_s24 + $0x300] sm:$0xff] %v703_v30  ;;  %706 = vst [vmem:[%s6448_s24 + $0x308] sm:$0xff] %v705_v31  ;;  %v709_v33 = vld [vmem:[%s6452_s26 + $0x5b8] sm:$0xff]  ;;  %v711_v34 = vld [vmem:[%s6452_s26 + $0x5c0] sm:$0xff] }
  0xc7   : >> { %708 = vst [vmem:[%s6448_s24 + $0x310] sm:$0xff] %v707_v32  ;;  %v713_v35 = vld [vmem:[%s6452_s26 + $0x5c8] sm:$0xff]  ;;  %710 = vst [vmem:[%s6448_s24 + $0x318] sm:$0xff] %v709_v33  ;;  %v715_v36 = vld [vmem:[%s6452_s26 + $0x5d0] sm:$0xff]  ;;  %507 = sbr.rel (!%p504_p9) target bundleno = 149 (0x95), region = 357 }
  0xc8   : >> { %712 = vst [vmem:[%s6448_s24 + $0x320] sm:$0xff] %v711_v34  ;;  %714 = vst [vmem:[%s6448_s24 + $0x328] sm:$0xff] %v713_v35  ;;  %v717_v37 = vld [vmem:[%s6452_s26 + $0x5d8] sm:$0xff]  ;;  %v721_v39 = vld [vmem:[%s6452_s26 + $0x620] sm:$0xff] }
  0xc9   : >> { %v719_v38 = vld [vmem:[%s6452_s26 + $0x618] sm:$0xff]  ;;  %716 = vst [vmem:[%s6448_s24 + $0x330] sm:$0xff] %v715_v36  ;;  %718 = vst [vmem:[%s6448_s24 + $0x338] sm:$0xff] %v717_v37  ;;  %v723_v40 = vld [vmem:[%s6452_s26 + $0x628] sm:$0xff] }
  0xca   : >> { %720 = vst [vmem:[%s6448_s24 + $0x340] sm:$0xff] %v719_v38  ;;  %v725_v41 = vld [vmem:[%s6452_s26 + $0x630] sm:$0xff]  ;;  %722 = vst [vmem:[%s6448_s24 + $0x348] sm:$0xff] %v721_v39  ;;  %v727_v42 = vld [vmem:[%s6452_s26 + $0x638] sm:$0xff] }
  0xcb   : >> { %724 = vst [vmem:[%s6448_s24 + $0x350] sm:$0xff] %v723_v40  ;;  %726 = vst [vmem:[%s6448_s24 + $0x358] sm:$0xff] %v725_v41  ;;  %v729_v43 = vld [vmem:[%s6452_s26 + $0x640] sm:$0xff]  ;;  %v731_v44 = vld [vmem:[%s6452_s26 + $0x648] sm:$0xff] }
  0xcc   : >> { %728 = vst [vmem:[%s6448_s24 + $0x360] sm:$0xff] %v727_v42  ;;  %730 = vst [vmem:[%s6448_s24 + $0x368] sm:$0xff] %v729_v43  ;;  %v733_v45 = vld [vmem:[%s6452_s26 + $0x650] sm:$0xff]  ;;  %s10175_s26 = smov %s7088_s15 }
  0xcd   : >> { %732 = vst [vmem:[%s6448_s24 + $0x370] sm:$0xff] %v731_v44  ;;  %734 = vst [vmem:[%s6448_s24 + $0x378] sm:$0xff] %v733_v45  ;;  %s10174_s24 = smov %s7091_s17 }
  0xce PF: > { %s7293_s5 = sand.u32 7, %s498_s21   ;;  %s5715_s6 = sshll.u32 %s7021_s25, 10 }
  0xcf   : > { %s746_s18 = sshra.s32 %s5715_s6, 4  ;;  %p5330_p10 = scmp.le.s32.totalorder %s7293_s5, 0 }
  0xd0   : > { %s7297_s8 = scalar_lea.vmem %s6650_s28, %s746_s18   ;;  %s7300_s17 = scalar_lea.vmem %s6654_s3, %s746_s18 [#allocation2]  }
  0xd1   : > { %5149 = sbr.rel (%p5330_p10) target bundleno = 226 (0xe2), region = 362  ;;  %s10177_s24 = smov (!%p5330_p10), %s7300_s17 }
  0xd2   : > { %s10178_s26 = smov (!%p5330_p10), %s7297_s8  ;;  %s7309_s27 = smov (!%p5330_p10), 0  }
  0xd3   : > { %s7311_s29 = smov (!%p5330_p10), 0  }
  0xd8 LB: >> { %v762_v46 = vld [vmem:[%s6468_s26] sm:$0xff]  ;;  %v764_v47 = vld [vmem:[%s6468_s26 + $0x78] sm:$0xff]  ;;  %v766_v48 = vld [vmem:[%s6468_s26 + $0xf0] sm:$0xff]  ;;  %s790_s21 = sadd.s32 1, %s6472_s27  ;;  %s756_s29 = sadd.s32 1, %s6476_s29   ;;  %s6476_s29 = sphi %s7311_s29, %s756_s29   ;;  %s6472_s27 = sphi %s7309_s27, %s10179_s27   ;;  %s6468_s26 = sphi %s10178_s26, %s795_s26   ;;  %s6464_s24 = sphi %s10177_s24, %s796_s24  }
  0xd9   : >> { %763 = vst [vmem:[%s6464_s24] sm:$0xff] %v762_v46  ;;  %765 = vst [vmem:[%s6464_s24 + $0x40] sm:$0xff] %v764_v47  ;;  %v768_v49 = vld [vmem:[%s6468_s26 + $0x168] sm:$0xff]  ;;  %v770_v50 = vld [vmem:[%s6468_s26 + $0x1e0] sm:$0xff]  ;;  %p791_p11 = scmp.ge.s32.totalorder %s790_s21, %s7293_s5  ;;  %p755_p12 = scmp.ge.s32.totalorder %s756_s29, %s7293_s5 }
  0xda   : >> { %767 = vst [vmem:[%s6464_s24 + $0x80] sm:$0xff] %v766_v48  ;;  %v772_v51 = vld [vmem:[%s6468_s26 + $0x258] sm:$0xff]  ;;  %769 = vst [vmem:[%s6464_s24 + $0xc0] sm:$0xff] %v768_v49  ;;  %v774_v52 = vld [vmem:[%s6468_s26 + $0x2d0] sm:$0xff] }
  0xdb   : >> { %771 = vst [vmem:[%s6464_s24 + $0x100] sm:$0xff] %v770_v50  ;;  %773 = vst [vmem:[%s6464_s24 + $0x140] sm:$0xff] %v772_v51  ;;  %v776_v53 = vld [vmem:[%s6468_s26 + $0x348] sm:$0xff]  ;;  %v778_v54 = vld [vmem:[%s6468_s26 + $0x3c0] sm:$0xff]  ;;  %s10522_s21 = smov (%p791_p11, %s790_s21), 0  ;;  %758 = sbr.rel (!%p755_p12) target bundleno = 216 (0xd8), region = 368 }
  0xdc   : >> { %775 = vst [vmem:[%s6464_s24 + $0x180] sm:$0xff] %v774_v52  ;;  %777 = vst [vmem:[%s6464_s24 + $0x1c0] sm:$0xff] %v776_v53  ;;  %v780_v55 = vld [vmem:[%s6468_s26 + $0x438] sm:$0xff]  ;;  %v782_v56 = vld [vmem:[%s6468_s26 + $0x4b0] sm:$0xff]  ;;  %s5331_s25 = sshll.u32 %s10522_s21, 3  ;;  %s10179_s27 = smov %s10522_s21 }
  0xdd   : >> { %779 = vst [vmem:[%s6464_s24 + $0x200] sm:$0xff] %v778_v54  ;;  %v784_v57 = vld [vmem:[%s6468_s26 + $0x528] sm:$0xff]  ;;  %781 = vst [vmem:[%s6464_s24 + $0x240] sm:$0xff] %v780_v55  ;;  %v786_v58 = vld [vmem:[%s6468_s26 + $0x5a0] sm:$0xff] }
  0xde   : >> { %783 = vst [vmem:[%s6464_s24 + $0x280] sm:$0xff] %v782_v56  ;;  %785 = vst [vmem:[%s6464_s24 + $0x2c0] sm:$0xff] %v784_v57  ;;  %v788_v59 = vld [vmem:[%s6468_s26 + $0x618] sm:$0xff]  ;;  %s795_s26 = scalar_lea.vmem %s7297_s8, %s5331_s25  }
  0xdf   : >> { %787 = vst [vmem:[%s6464_s24 + $0x300] sm:$0xff] %v786_v58  ;;  %789 = vst [vmem:[%s6464_s24 + $0x340] sm:$0xff] %v788_v59  ;;  %s796_s24 = scalar_lea.vmem %s7300_s17, %s5331_s25 [#allocation2]  }
  0xe2 PF: > { %s6574_s7 = smov 0  }
  0xe3   : > { %s797_s15 = sshllo.u32 %s6574_s7, %s6658_s4 }
  0xe4   : > { %v806_v60 = vld [vmem:[%s7014_s22] sm:%s797_s15]  ;;  %v808_v61 = vld [vmem:[%s7014_s22 + $0x78] sm:%s797_s15] }
  0xe5   : > { %807 = vst [vmem:[%s7017_s23] sm:%s797_s15] %v806_v60  ;;  %809 = vst [vmem:[%s7017_s23 + $0x40] sm:%s797_s15] %v808_v61 }
  0xe6   : > { %v810_v62 = vld [vmem:[%s7014_s22 + $0xf0] sm:%s797_s15]  ;;  %v812_v63 = vld [vmem:[%s7014_s22 + $0x168] sm:%s797_s15] }
  0xe7   : > { %811 = vst [vmem:[%s7017_s23 + $0x80] sm:%s797_s15] %v810_v62  ;;  %813 = vst [vmem:[%s7017_s23 + $0xc0] sm:%s797_s15] %v812_v63 }
  0xe8   : > { %v814_v0 = vld [vmem:[%s7014_s22 + $0x1e0] sm:%s797_s15]  ;;  %v816_v1 = vld [vmem:[%s7014_s22 + $0x258] sm:%s797_s15] }
  0xe9   : > { %815 = vst [vmem:[%s7017_s23 + $0x100] sm:%s797_s15] %v814_v0  ;;  %817 = vst [vmem:[%s7017_s23 + $0x140] sm:%s797_s15] %v816_v1 }
  0xea   : > { %v818_v2 = vld [vmem:[%s7014_s22 + $0x2d0] sm:%s797_s15]  ;;  %v820_v3 = vld [vmem:[%s7014_s22 + $0x348] sm:%s797_s15] }
  0xeb   : > { %819 = vst [vmem:[%s7017_s23 + $0x180] sm:%s797_s15] %v818_v2  ;;  %821 = vst [vmem:[%s7017_s23 + $0x1c0] sm:%s797_s15] %v820_v3 }
  0xec   : > { %v822_v4 = vld [vmem:[%s7014_s22 + $0x3c0] sm:%s797_s15]  ;;  %v824_v5 = vld [vmem:[%s7014_s22 + $0x438] sm:%s797_s15] }
  0xed   : > { %823 = vst [vmem:[%s7017_s23 + $0x200] sm:%s797_s15] %v822_v4  ;;  %825 = vst [vmem:[%s7017_s23 + $0x240] sm:%s797_s15] %v824_v5 }
  0xee   : > { %v826_v6 = vld [vmem:[%s7014_s22 + $0x4b0] sm:%s797_s15]  ;;  %v828_v7 = vld [vmem:[%s7014_s22 + $0x528] sm:%s797_s15] }
  0xef   : > { %827 = vst [vmem:[%s7017_s23 + $0x280] sm:%s797_s15] %v826_v6  ;;  %829 = vst [vmem:[%s7017_s23 + $0x2c0] sm:%s797_s15] %v828_v7 }
  0xf0   : > { %v830_v8 = vld [vmem:[%s7014_s22 + $0x5a0] sm:%s797_s15]  ;;  %v832_v9 = vld [vmem:[%s7014_s22 + $0x618] sm:%s797_s15] }
  0xf1   : > { %831 = vst [vmem:[%s7017_s23 + $0x300] sm:%s797_s15] %v830_v8  ;;  %833 = vst [vmem:[%s7017_s23 + $0x340] sm:%s797_s15] %v832_v9 }
  0xf2 PF: > { %p5333_p13 = scmp.ge.u32.totalorder %s6652_s30, 8 }
  0xf3   : > { %s6575_s4 = smov (!%p5333_p13), 0  }
  0xf4   : > { %148 = sbr.rel (%p5333_p13) target bundleno = 259 (0x103), region = 32  ;;  %s149_s22 = sshllo.u32 (!%p5333_p13), %s6575_s4, %s6652_s30 }
  0xf5   : > { %v158_v10 = vld [vmem:[%s6650_s28] sm:%s149_s22] (!%p5333_p13)  ;;  %v160_v11 = vld [vmem:[%s6650_s28 + $0x78] sm:%s149_s22] (!%p5333_p13) }
  0xf6   : > { %159 = vst [vmem:[%s6654_s3] sm:%s149_s22] (!%p5333_p13), %v158_v10  ;;  %161 = vst [vmem:[%s6654_s3 + $0x40] sm:%s149_s22] (!%p5333_p13), %v160_v11 }
  0xf7   : > { %v162_v12 = vld [vmem:[%s6650_s28 + $0xf0] sm:%s149_s22] (!%p5333_p13)  ;;  %v164_v13 = vld [vmem:[%s6650_s28 + $0x168] sm:%s149_s22] (!%p5333_p13) }
  0xf8   : > { %163 = vst [vmem:[%s6654_s3 + $0x80] sm:%s149_s22] (!%p5333_p13), %v162_v12  ;;  %165 = vst [vmem:[%s6654_s3 + $0xc0] sm:%s149_s22] (!%p5333_p13), %v164_v13 }
  0xf9   : > { %v166_v14 = vld [vmem:[%s6650_s28 + $0x1e0] sm:%s149_s22] (!%p5333_p13)  ;;  %v168_v15 = vld [vmem:[%s6650_s28 + $0x258] sm:%s149_s22] (!%p5333_p13) }
  0xfa   : > { %167 = vst [vmem:[%s6654_s3 + $0x100] sm:%s149_s22] (!%p5333_p13), %v166_v14  ;;  %169 = vst [vmem:[%s6654_s3 + $0x140] sm:%s149_s22] (!%p5333_p13), %v168_v15 }
  0xfb   : > { %v170_v16 = vld [vmem:[%s6650_s28 + $0x2d0] sm:%s149_s22]  ;;  %v172_v17 = vld [vmem:[%s6650_s28 + $0x348] sm:%s149_s22] }
  0xfc   : > { %171 = vst [vmem:[%s6654_s3 + $0x180] sm:%s149_s22] %v170_v16  ;;  %173 = vst [vmem:[%s6654_s3 + $0x1c0] sm:%s149_s22] %v172_v17 }
  0xfd   : > { %v174_v18 = vld [vmem:[%s6650_s28 + $0x3c0] sm:%s149_s22]  ;;  %v176_v19 = vld [vmem:[%s6650_s28 + $0x438] sm:%s149_s22] }
  0xfe   : > { %175 = vst [vmem:[%s6654_s3 + $0x200] sm:%s149_s22] %v174_v18  ;;  %177 = vst [vmem:[%s6654_s3 + $0x240] sm:%s149_s22] %v176_v19 }
  0xff   : > { %v178_v20 = vld [vmem:[%s6650_s28 + $0x4b0] sm:%s149_s22]  ;;  %v180_v21 = vld [vmem:[%s6650_s28 + $0x528] sm:%s149_s22] }
 0x100   : > { %179 = vst [vmem:[%s6654_s3 + $0x280] sm:%s149_s22] %v178_v20  ;;  %181 = vst [vmem:[%s6654_s3 + $0x2c0] sm:%s149_s22] %v180_v21 }
 0x101   : > { %v182_v22 = vld [vmem:[%s6650_s28 + $0x5a0] sm:%s149_s22]  ;;  %v184_v23 = vld [vmem:[%s6650_s28 + $0x618] sm:%s149_s22] }
 0x102   : > { %183 = vst [vmem:[%s6654_s3 + $0x300] sm:%s149_s22] %v182_v22  ;;  %185 = vst [vmem:[%s6654_s3 + $0x340] sm:%s149_s22] %v184_v23 }
 0x103 PF: > { %837 = sbr.rel (!%p6627_p3) target bundleno = 345 (0x159), region = 86  ;;  %s839_s30 = sand.u32 (%p6627_p3), 1, %s6400_s10  }
 0x104   : > { %s5335_s23 = sshll.u32 (%p6627_p3), %s6408_s12, 3  ;;  %s5334_s5 = sshll.u32 (%p6627_p3), %s839_s30, 7 }
 0x105   : > { %s843_s6 = ssub.s32 (%p6627_p3), 15, %s5335_s23  ;;  %s5717_s18 = sshll.u32 (%p6627_p3), %s6408_s12, 6 }
 0x106   : > { %p844_p0 = scmp.lt.s32.totalorder (%p6627_p3), %s843_s6, 8  ;;  %s7431_s3 = scalar_lea.vmem (%p6627_p3), %s9947_s1, %s5717_s18  }
 0x107   : > { %s7435_s16 = scalar_lea.vmem (%p6627_p3), [#allocation3], %s5334_s5  }
 0x10a   : > { %s10524_s6 = smov (!%p844_p0, %s843_s6), 8 }
 0x10b   : > { %s5336_s17 = sshll.u32 %s10524_s6, 8  ;;  %s7433_s24 = sshll.u32 %s10524_s6, 3 }
 0x10c   : > { %p5340_p3 = scmp.eq.s32.totalorder %s5336_s17, 0 }
 0x10d   : > { %p854_p1 = scmp.lt.u32.totalorder (!%p5340_p3), %s7433_s24, 8 }
 0x10e   : > { %853 = sbr.rel (%p5340_p3) target bundleno = 345 (0x159), region = 90 }
 0x115   : > { %857 = sbr.rel (%p854_p1) target bundleno = 336 (0x150), region = 94  ;;  %s7439_s26 = sand.u32 (!%p854_p1), 7, %s7433_s24  }
 0x116   : > { %p875_p2 = scmp.eq.s32.totalorder (!%p854_p1), %s7439_s26, 0  ;;  %p5341_p4 = scmp.ne.s32.totalorder (!%p854_p1), %s7439_s26, 0 }
 0x11c   : > { %878 = sbr.rel (%p5341_p4) target bundleno = 308 (0x134), region = 109  ;;  %s879_s27 = sshrl.u32 (!%p5341_p4), %s7433_s24, 3 }
 0x11d   : > { %s880_s29 = sshrl.u32 (!%p5341_p4), %s879_s27, 5  ;;  %s7444_s21 = sand.u32 (!%p5341_p4), 31, %s879_s27  }
 0x11e   : > { %s5718_s25 = sshll.u32 (!%p5341_p4), %s880_s29, 12  ;;  %p5348_p5 = scmp.le.s32.totalorder (!%p5341_p4), %s7444_s21, 0 }
 0x11f   : > { %s1031_s7 = sshra.s32 (!%p5341_p4), %s5718_s25, 4 }
 0x120   : > { %s7447_s15 = scalar_lea.vmem (!%p5341_p4), %s7431_s3, %s1031_s7   ;;  %s1035_s4 = scalar_lea.vmem (!%p5341_p4), %s7435_s16, %s1031_s7 [#allocation3]  }
 0x123   : > { %5177 = sbr.rel (%p5348_p5) target bundleno = 308 (0x134), region = 384  ;;  %s6478_s22 = smov (!%p5348_p5), %s1035_s4  }
 0x124   : > { %s6482_s30 = smov (!%p5348_p5), %s7447_s15   ;;  %s6486_s23 = smov (!%p5348_p5), 0  }
 0x125   : > { %s6490_s5 = smov (!%p5348_p5), 0  }
 0x12a LB: >> { %v1047_v24 = vld [vmem:[%s6484_s30] sm:$0xff]  ;;  %v1049_v25 = vld [vmem:[%s6484_s30 + $0x78] sm:$0xff]  ;;  %s1051_s6 = sadd.s32 1, %s6488_s23  ;;  %s1041_s5 = sadd.s32 1, %s6492_s5   ;;  %s6492_s5 = sphi %s6490_s5, %s1041_s5   ;;  %s6488_s23 = sphi %s6486_s23, %s6487_s23   ;;  %s6484_s30 = sphi %s6482_s30, %s1056_s30   ;;  %s6480_s22 = sphi %s6478_s22, %s1057_s22  }
 0x12b   : >> { %1048 = vst [vmem:[%s6480_s22] sm:$0xff] %v1047_v24  ;;  %1050 = vst [vmem:[%s6480_s22 + $0x40] sm:$0xff] %v1049_v25  ;;  %p1052_p7 = scmp.ge.s32.totalorder %s1051_s6, %s7444_s21  ;;  %p1040_p8 = scmp.ge.s32.totalorder %s1041_s5, %s7444_s21 }
 0x12d   : >> { %s10526_s6 = smov (%p1052_p7, %s1051_s6), 0  ;;  %1043 = sbr.rel (!%p1040_p8) target bundleno = 298 (0x12a), region = 390 }
 0x12e   : >> { %s5349_s18 = sshll.u32 %s10526_s6, 3  ;;  %s6487_s23 = smov %s10526_s6  }
 0x12f   : >> { %s1056_s30 = scalar_lea.vmem %s7447_s15, %s5349_s18   ;;  %s1057_s22 = scalar_lea.vmem %s1035_s4, %s5349_s18 [#allocation3]  }
 0x134 PF: > { %1060 = sbr.rel (%p875_p2) target bundleno = 336 (0x150), region = 127  ;;  %s1062_s8 = ssub.s32 (!%p875_p2), %s7433_s24, %s7439_s26 }
 0x135   : > { %s1066_s28 = sshrl.u32 (!%p875_p2), %s7433_s24, 3  ;;  %s7461_s17 = scalar_lea.vmem (!%p875_p2), %s7431_s3, %s1062_s8 }
 0x136   : > { %s7464_s27 = scalar_lea.vmem (!%p875_p2), %s7435_s16, %s1062_s8 [#allocation3]  ;;  %s1067_s29 = sshrl.u32 (!%p875_p2), %s1066_s28, 5 }
 0x137   : > { %s7466_s25 = sand.u32 (!%p875_p2), 31, %s1066_s28   ;;  %s5720_s21 = sshll.u32 (!%p875_p2), %s1067_s29, 12 }
 0x138   : > { %s1218_s7 = sshra.s32 (!%p875_p2), %s5720_s21, 4  ;;  %p5357_p9 = scmp.le.s32.totalorder (!%p875_p2), %s7466_s25, 0 }
 0x139   : > { %s7469_s15 = scalar_lea.vmem (!%p875_p2), %s7431_s3, %s1218_s7   ;;  %s1222_s4 = scalar_lea.vmem (!%p875_p2), %s7435_s16, %s1218_s7 [#allocation3]  }
 0x13b   : > { %5205 = sbr.rel (%p5357_p9) target bundleno = 332 (0x14c), region = 406  ;;  %s6494_s22 = smov (!%p5357_p9), %s1222_s4  }
 0x13c   : > { %s6498_s30 = smov (!%p5357_p9), %s7469_s15   ;;  %s6502_s23 = smov (!%p5357_p9), 0  }
 0x13d   : > { %s6506_s5 = smov (!%p5357_p9), 0  }
 0x142 LB: >> { %v1234_v26 = vld [vmem:[%s6500_s30] sm:$0xff]  ;;  %v1236_v27 = vld [vmem:[%s6500_s30 + $0x78] sm:$0xff]  ;;  %s1238_s6 = sadd.s32 1, %s6504_s23  ;;  %s1228_s5 = sadd.s32 1, %s6508_s5   ;;  %s6508_s5 = sphi %s6506_s5, %s1228_s5   ;;  %s6504_s23 = sphi %s6502_s23, %s6503_s23   ;;  %s6500_s30 = sphi %s6498_s30, %s1243_s30   ;;  %s6496_s22 = sphi %s6494_s22, %s1244_s22  }
 0x143   : >> { %1235 = vst [vmem:[%s6496_s22] sm:$0xff] %v1234_v26  ;;  %1237 = vst [vmem:[%s6496_s22 + $0x40] sm:$0xff] %v1236_v27  ;;  %p1239_p10 = scmp.ge.s32.totalorder %s1238_s6, %s7466_s25  ;;  %p1227_p11 = scmp.ge.s32.totalorder %s1228_s5, %s7466_s25 }
 0x145   : >> { %s10528_s6 = smov (%p1239_p10, %s1238_s6), 0  ;;  %1230 = sbr.rel (!%p1227_p11) target bundleno = 322 (0x142), region = 412 }
 0x146   : >> { %s5358_s18 = sshll.u32 %s10528_s6, 3  ;;  %s6503_s23 = smov %s10528_s6  }
 0x147   : >> { %s1243_s30 = scalar_lea.vmem %s7469_s15, %s5358_s18   ;;  %s1244_s22 = scalar_lea.vmem %s1222_s4, %s5358_s18 [#allocation3]  }
 0x14c PF: > { %s6576_s8 = smov 0  }
 0x14d   : > { %s1245_s28 = sshllo.u32 %s6576_s8, %s7439_s26 }
 0x14e   : > { %v1254_v28 = vld [vmem:[%s7461_s17] sm:%s1245_s28]  ;;  %v1256_v29 = vld [vmem:[%s7461_s17 + $0x78] sm:%s1245_s28] }
 0x14f   : > { %1255 = vst [vmem:[%s7464_s27] sm:%s1245_s28] %v1254_v28  ;;  %1257 = vst [vmem:[%s7464_s27 + $0x40] sm:%s1245_s28] %v1256_v29 }
 0x150 PF: > { %p5360_p12 = scmp.ge.u32.totalorder %s7433_s24, 8 }
 0x151   : > { %s6577_s29 = smov (!%p5360_p12), 0  }
 0x152   : > { %860 = sbr.rel (%p5360_p12) target bundleno = 345 (0x159), region = 98  ;;  %s861_s25 = sshllo.u32 (!%p5360_p12), %s6577_s29, %s7433_s24 }
 0x153   : > { %v870_v30 = vld [vmem:[%s7431_s3] sm:%s861_s25] (!%p5360_p12)  ;;  %v872_v31 = vld [vmem:[%s7431_s3 + $0x78] sm:%s861_s25] (!%p5360_p12) }
 0x154   : > { %871 = vst [vmem:[%s7435_s16] sm:%s861_s25] (!%p5360_p12), %v870_v30  ;;  %873 = vst [vmem:[%s7435_s16 + $0x40] sm:%s861_s25] (!%p5360_p12), %v872_v31 }
 0x159 PF: > { %p5361_p13 = scmp.ge.s32.totalorder %s6412_s13, 1  ;;  %p1260_p0 = scmp.lt.s32.totalorder %s6412_s13, 3 }
 0x15b   : > { %p1261_p3 = pnand %p5361_p13, %p1260_p0 }
 0x15d   : > { %1264 = sbr.rel (%p1261_p3) target bundleno = 1020 (0x3fc), region = 152 }
 0x164   : > { %s7491_s26 = sand.u32 1, %s6396_s9   ;;  %v1345_v32 = vlaneseq  ;;  %vm1529_vm0 = vcmask 1045504   ;;  %s5691_s21 = sshll.u32 (%p6634_p6), %s6404_s11, 3 }
 0x165   : > { %s5724_s24 = smul.u32 896, %s7491_s26  ;;  %s5362_s3 = sshll.u32 %s7491_s26, 7 }
 0x166   : > { %v7495_v33 = vshrl.u32 %v1345_v32, 7  ;;  %s7497_s16 = scalar_lea.vmem [#allocation3], %s5362_s3  ;;  %s5725_s17 = smul.u32 448, %s7491_s26 }
 0x167   : > { %v7500_v34 = vld [vmem:[%s7497_s16 + $0x40] ss:$0 sm:$0xff]  ;;  %s7514_s9 = scalar_lea.vmem [#allocation2], %s5724_s24  ;;  %v7568_v61 = vld [vmem:[%s7497_s16 + $0x8] sm:$0xff]  ;;  %v7627_v31 = vld [vmem:[%s7497_s16 + $0x10] sm:$0xff]  ;;  %s5722_s7 = sshll.u32 (%p6634_p6), %s6404_s11, 6 }
 0x168   : > { %v7503_v35 = vld [vmem:[%s7497_s16] sm:$0xff]  ;;  %v7506_v36 = vsub.s32 3, %v7495_v33  ;;  %v7509_v37 = vsub.s32 4, %v7495_v33  ;;  %v7512_v38 = vsub.s32 5, %v7495_v33  ;;  %v7521_v41 = vsub.s32 6, %v7495_v33  ;;  %v7583_v6 = vld [vmem:[%s7514_s9 + $0x8] sm:$0xff]  ;;  %s9406_s30 = scalar_lea.vmem (%p6634_p6), %s9948_s2, %s5722_s7  }
 0x169   : > { %v7517_v39 = vld [vmem:[%s7514_s9 + $0x80] sm:$0xff]  ;;  %v7524_v42 = vsub.s32 7, %v7495_v33  ;;  %v7554_v52 = vsub.s32 2, %v7495_v33  ;;  %v7576_v1 = vld [vmem:[%s7497_s16 + $0x48] ss:$0 sm:$0xff]  ;;  %s7675_s27 = scalar_lea.vmem [#allocation4], %s5725_s17  }
 0x16a   : > { %v5371_v40 = vld [vmem:[%s7514_s9 + $0xc0] sm:$0x1]  ;;  %v7529_v44 = vrot.slane %v7503_v35, %v7506_v36  ;;  %v7533_v45 = vrot.slane %v7503_v35, %v7509_v37  ;;  %v1739_v46 = vmul.f32 %v7500_v34, %v7517_v39  ;;  %v7543_v49 = vrot.slane %v7503_v35, %v7512_v38  ;;  %v1338_v7 = vld [vmem:[%s7514_s9 + $0x48] sm:$0x1]  ;;  %s4430_s15 = ssub.s32 (%p6634_p6), 15, %s5691_s21 }
 0x16b   : > { %v1337_v43 = vld [vmem:[%s7514_s9 + $0x40] sm:$0x1]  ;;  %v1747_v47 = vmul.f32 %v7500_v34, %v5371_v40  ;;  %v7547_v50 = vrot.slane %v7503_v35, %v7521_v41  ;;  %v7551_v51 = vrot.slane %v7503_v35, %v7524_v42  ;;  %v7573_v0 = vrot.slane %v7503_v35, %v7554_v52  ;;  %v7597_v12 = vld [vmem:[%s7514_s9 + $0x88] sm:$0xff]  ;;  %p4431_p1 = scmp.lt.s32.totalorder (%p6634_p6), %s4430_s15, 8 }
 0x16c   : > { %v7539_v48 = vld [vmem:[%s7514_s9] sm:$0xff]  ;;  %10180 = vst [vmem:[#allocation5_spill] sm:$0xff] %v7543_v49  ;;  %v1771_v55 = vrot.slane %v1739_v46, 2  ;;  %v1505_v58 = vmul.f32 %v7543_v49, %v1337_v43  ;;  %v7580_v2 = vrot.slane %v7568_v61, %v7506_v36  ;;  %v7588_v8 = vrot.slane %v7568_v61, %v7509_v37  ;;  %v5372_v13 = vld [vmem:[%s7514_s9 + $0xc8] sm:$0x1] }
 0x16d   : > { %10181 = vst [vmem:[#allocation6_spill] sm:$0xff] %v7551_v51  ;;  %v1377_v53 = vmul.f32 %v7529_v44, %v7539_v48  ;;  %v1425_v54 = vmul.f32 %v7533_v45, %v7539_v48  ;;  %v1772_v56 = vrot.slane %v1747_v47, 2  ;;  %v1497_v57 = vmul.f32 %v7543_v49, %v7539_v48  ;;  %v1339_v46 = vld [vmem:[%s7514_s9 + $0x50] sm:$0x1] }
 0x16e   : > { %v1619_v59 = vmul.f32 %v7517_v39, %v7547_v50  ;;  %v1667_v60 = vmul.f32 %v7517_v39, %v7551_v51  ;;  %10182 = vst [vmem:[#allocation7_spill] sm:$0xff] %v7580_v2  ;;  %v1531_v4 = vrot.slane %v1505_v58, 2  ;;  %10183 = vst [vmem:[#allocation8_spill] sm:$0xff] %v7588_v8  ;;  %v1378_v10 = vmul.f32 %v7580_v2, %v7583_v6 }
 0x16f   : > { %v1441_v62 = vrot.slane %v1425_v54, 1  ;;  %v1773_v63 = vsel %vm1529_vm0, %v1771_v55, %v1772_v56  ;;  %v1530_v3 = vrot.slane %v1497_v57, 2  ;;  %v7594_v11 = vrot.slane %v7568_v61, %v7512_v38  ;;  %v7636_v55 = vld [vmem:[%s7497_s16 + $0x50] ss:$0 sm:$0xff] }
 0x170   : > { %v1683_v5 = vrot.slane %v1667_v60, 1  ;;  %v7602_v14 = vrot.slane %v7568_v61, %v7521_v41  ;;  %v1426_v16 = vmul.f32 %v7588_v8, %v7583_v6  ;;  %v7609_v17 = vrot.slane %v7568_v61, %v7524_v42  ;;  %v7639_v56 = vld [vmem:[%s7514_s9 + $0x10] sm:$0xff] }
 0x171   : > { %v1457_v9 = vadd.f32 %v1441_v62, %v1377_v53  ;;  %10184 = vst [vmem:[#allocation9_spill] sm:$0xff] %v7594_v11  ;;  %v1532_v15 = vsel %vm1529_vm0, %v1530_v3, %v1531_v4  ;;  %v1740_v18 = vmul.f32 %v7576_v1, %v7597_v12  ;;  %v1498_v20 = vmul.f32 %v7594_v11, %v7583_v6  ;;  %v5373_v3 = vld [vmem:[%s7514_s9 + $0xd0] sm:$0x1] }
 0x172   : > { %10185 = vst [vmem:[#allocation10_spill] sm:$0xff] %v7602_v14  ;;  %10186 = vst [vmem:[#allocation11_spill] sm:$0xff] %v7609_v17  ;;  %v1506_v21 = vmul.f32 %v7594_v11, %v1338_v7  ;;  %v1620_v22 = vmul.f32 %v7597_v12, %v7602_v14  ;;  %v1442_v23 = vrot.slane %v1426_v16, 1  ;;  %v1668_v24 = vmul.f32 %v7597_v12, %v7609_v17 }
 0x173   : > { %v1562_v19 = vadd.f32 %v1532_v15, %v1457_v9  ;;  %v1748_v25 = vmul.f32 %v7576_v1, %v5372_v13  ;;  %v1774_v26 = vrot.slane %v1740_v18, 2  ;;  %v1533_v28 = vrot.slane %v1498_v20, 2  ;;  %v7663_v13 = vld [vmem:[%s7514_s9 + $0x90] sm:$0xff] }
 0x174   : > { %v1534_v29 = vrot.slane %v1506_v21, 2  ;;  %v7624_v30 = vrot.slane %v7568_v61, %v7554_v52  ;;  %v1458_v32 = vadd.f32 %v1442_v23, %v1378_v10  ;;  %v1684_v40 = vrot.slane %v1668_v24, 1 }
 0x175   : > { %v1627_v27 = vadd.f32 %v1619_v59, %v1562_v19  ;;  %v1775_v43 = vrot.slane %v1748_v25, 2  ;;  %v7632_v47 = vrot.slane %v7627_v31, %v7506_v36  ;;  %v7643_v57 = vrot.slane %v7627_v31, %v7509_v37 }
 0x176   : > { %10187 = vst [vmem:[#allocation12_spill] sm:$0xff] %v7624_v30  ;;  %v1535_v54 = vsel %vm1529_vm0, %v1533_v28, %v1534_v29  ;;  %v7647_v58 = vrot.slane %v7627_v31, %v7512_v38  ;;  %v7655_v4 = vrot.slane %v7627_v31, %v7521_v41  ;;  %v7669_v18 = vrot.slane %v7627_v31, %v7524_v42 }
 0x177   : > { %10188 = vst [vmem:[#allocation13_spill] sm:$0xff] %v7632_v47  ;;  %v1699_v53 = vadd.f32 %v1683_v5, %v1627_v27  ;;  %10189 = vst [vmem:[#allocation14_spill] sm:$0xff] %v7643_v57  ;;  %v1563_v59 = vadd.f32 %v1535_v54, %v1458_v32  ;;  %v1776_v60 = vsel %vm1529_vm0, %v1774_v26, %v1775_v43  ;;  %v7686_v27 = vld [vmem:[%s7497_s16 + $0x18] sm:$0xff] }
 0x178   : > { %10190 = vst [vmem:[#allocation15_spill] sm:$0xff] %v7647_v58  ;;  %v1379_v62 = vmul.f32 %v7632_v47, %v7639_v56  ;;  %10191 = vst [vmem:[#allocation16_spill] sm:$0xff] %v7655_v4  ;;  %v1427_v7 = vmul.f32 %v7643_v57, %v7639_v56  ;;  %v1499_v9 = vmul.f32 %v7647_v58, %v7639_v56  ;;  %v1340_v43 = vld [vmem:[%s7514_s9 + $0x58] sm:$0x1] }
 0x179   : > { %v1803_v5 = vadd.f32 %v1773_v63, %v1699_v53  ;;  %v1507_v10 = vmul.f32 %v7647_v58, %v1339_v46  ;;  %v1628_v15 = vadd.f32 %v1620_v22, %v1563_v59  ;;  %v1621_v16 = vmul.f32 %v7663_v13, %v7655_v4  ;;  %10192 = vst [vmem:[#allocation17_spill] sm:$0xff] %v7669_v18  ;;  %v7695_v54 = vld [vmem:[%s7497_s16 + $0x58] ss:$0 sm:$0xff] }
 0x17a   : > { %v1741_v63 = vmul.f32 %v7636_v55, %v7663_v13  ;;  %v1443_v19 = vrot.slane %v1427_v7, 1  ;;  %v1536_v20 = vrot.slane %v1499_v9, 2  ;;  %v1749_v22 = vmul.f32 %v7636_v55, %v5373_v3  ;;  %10194 = vst [vmem:[#allocation19_spill] sm:$0xff] %v7686_v27  ;;  %10196 = vst [vmem:[#allocation21_spill] sm:$0xff] %v7695_v54  ;;  %v7698_v59 = vld [vmem:[%s7514_s9 + $0x18] sm:$0xff] }
 0x17b   : > { %1811 = vst [vmem:[%s7675_s27] sm:$0x7f] %v1803_v5  ;;  %v1537_v21 = vrot.slane %v1507_v10, 2  ;;  %v1700_v23 = vadd.f32 %v1684_v40, %v1628_v15  ;;  %v1669_v24 = vmul.f32 %v7663_v13, %v7669_v18  ;;  %v7683_v26 = vrot.slane %v7627_v31, %v7554_v52  ;;  %10197 = vst [vmem:[#allocation22_spill] sm:$0xff] %v7698_v59  ;;  %v5374_v5 = vld [vmem:[%s7514_s9 + $0xd8] sm:$0x1] }
 0x17c   : > { %v1777_v25 = vrot.slane %v1741_v63, 2  ;;  %v1459_v28 = vadd.f32 %v1443_v19, %v1379_v62  ;;  %v1778_v32 = vrot.slane %v1749_v22, 2  ;;  %v7692_v40 = vrot.slane %v7686_v27, %v7506_v36 }
 0x17d   : > { %10193 = vst [vmem:[#allocation18_spill] sm:$0xff] %v7683_v26  ;;  %v1538_v29 = vsel %vm1529_vm0, %v1536_v20, %v1537_v21  ;;  %v1804_v46 = vadd.f32 %v1776_v60, %v1700_v23  ;;  %v1685_v53 = vrot.slane %v1669_v24, 1  ;;  %v7702_v3 = vrot.slane %v7686_v27, %v7509_v37  ;;  %v7723_v20 = vld [vmem:[%s7514_s9 + $0x98] sm:$0xff] }
 0x17e   : > { %10195 = vst [vmem:[#allocation20_spill] sm:$0xff] %v7692_v40  ;;  %v7706_v62 = vrot.slane %v7686_v27, %v7512_v38  ;;  %v1564_v7 = vadd.f32 %v1538_v29, %v1459_v28  ;;  %v1779_v9 = vsel %vm1529_vm0, %v1777_v25, %v1778_v32  ;;  %v1380_v60 = vmul.f32 %v7692_v40, %v7698_v59 }
 0x17f   : > { %10198 = vst [vmem:[#allocation23_spill] sm:$0xff] %v7702_v3  ;;  %v7714_v10 = vrot.slane %v7686_v27, %v7521_v41  ;;  %1812 = vst [vmem:[%s7675_s27 + $0x8] sm:$0x7f] %v1804_v46  ;;  %v1428_v15 = vmul.f32 %v7702_v3, %v7698_v59  ;;  %v7727_v21 = vrot.slane %v7686_v27, %v7524_v42 }
 0x180   : > { %10199 = vst [vmem:[#allocation24_spill] sm:$0xff] %v7706_v62  ;;  %v1500_v63 = vmul.f32 %v7706_v62, %v7698_v59  ;;  %v1508_v19 = vmul.f32 %v7706_v62, %v1340_v43  ;;  %10201 = vst [vmem:[#allocation26_spill] sm:$0xff] %v7723_v20  ;;  %v1629_v22 = vadd.f32 %v1621_v16, %v1564_v7  ;;  %v7741_v62 = vld [vmem:[%s7497_s16 + $0x20] sm:$0xff] }
 0x181   : > { %10200 = vst [vmem:[#allocation25_spill] sm:$0xff] %v7714_v10  ;;  %10202 = vst [vmem:[#allocation27_spill] sm:$0xff] %v7727_v21  ;;  %v1622_v23 = vmul.f32 %v7723_v20, %v7714_v10  ;;  %v1742_v24 = vmul.f32 %v7695_v54, %v7723_v20  ;;  %v1750_v25 = vmul.f32 %v7695_v54, %v5374_v5  ;;  %v1444_v28 = vrot.slane %v1428_v15, 1 }
 0x182   : > { %v1539_v29 = vrot.slane %v1500_v63, 2  ;;  %v1540_v32 = vrot.slane %v1508_v19, 2  ;;  %v1670_v43 = vmul.f32 %v7723_v20, %v7727_v21  ;;  %v1701_v46 = vadd.f32 %v1685_v53, %v1629_v22  ;;  %10204 = vst [vmem:[#allocation29_spill] sm:$0xff] %v7741_v62  ;;  %v7745_v63 = vld [vmem:[%s7497_s16 + $0x60] ss:$0 sm:$0xff] }
 0x183   : > { %v1780_v16 = vrot.slane %v1742_v24, 2  ;;  %v1781_v7 = vrot.slane %v1750_v25, 2  ;;  %v7738_v10 = vrot.slane %v7686_v27, %v7554_v52  ;;  %v1460_v3 = vadd.f32 %v1444_v28, %v1380_v60  ;;  %10205 = vst [vmem:[#allocation30_spill] sm:$0xff] %v7745_v63  ;;  %v1341_v19 = vld [vmem:[%s7514_s9 + $0x60] sm:$0x1] }
 0x184   : > { %v1541_v5 = vsel %vm1529_vm0, %v1539_v29, %v1540_v32  ;;  %v1686_v15 = vrot.slane %v1670_v43, 1  ;;  %v7750_v53 = vrot.slane %v7741_v62, %v7506_v36  ;;  %v1805_v22 = vadd.f32 %v1779_v9, %v1701_v46  ;;  %v7754_v25 = vld [vmem:[%s7514_s9 + $0x20] sm:$0xff] }
 0x185   : > { %10203 = vst [vmem:[#allocation28_spill] sm:$0xff] %v7738_v10  ;;  %v1782_v24 = vsel %vm1529_vm0, %v1780_v16, %v1781_v7  ;;  %10207 = vst [vmem:[#allocation32_spill] sm:$0xff] %v7754_v25  ;;  %v7758_v54 = vrot.slane %v7741_v62, %v7509_v37  ;;  %v7762_v60 = vrot.slane %v7741_v62, %v7512_v38  ;;  %v5375_v28 = vld [vmem:[%s7514_s9 + $0xe0] sm:$0x1] }
 0x186   : > { %10206 = vst [vmem:[#allocation31_spill] sm:$0xff] %v7750_v53  ;;  %v1565_v29 = vadd.f32 %v1541_v5, %v1460_v3  ;;  %v1381_v32 = vmul.f32 %v7750_v53, %v7754_v25  ;;  %v7768_v43 = vld [vmem:[%s7514_s9 + $0xa0] sm:$0xff]  ;;  %v7772_v9 = vrot.slane %v7741_v62, %v7521_v41  ;;  %v7776_v46 = vrot.slane %v7741_v62, %v7524_v42 }
 0x187   : > { %10208 = vst [vmem:[#allocation33_spill] sm:$0xff] %v7758_v54  ;;  %10209 = vst [vmem:[#allocation34_spill] sm:$0xff] %v7762_v60  ;;  %v1429_v16 = vmul.f32 %v7758_v54, %v7754_v25  ;;  %v1501_v3 = vmul.f32 %v7762_v60, %v7754_v25  ;;  %v1509_v7 = vmul.f32 %v7762_v60, %v1341_v19 }
 0x188   : > { %10210 = vst [vmem:[#allocation35_spill] sm:$0xff] %v7768_v43  ;;  %10211 = vst [vmem:[#allocation36_spill] sm:$0xff] %v7772_v9  ;;  %v1743_v5 = vmul.f32 %v7745_v63, %v7768_v43  ;;  %v1630_v53 = vadd.f32 %v1622_v23, %v1565_v29  ;;  %v1623_v21 = vmul.f32 %v7768_v43, %v7772_v9  ;;  %v7796_v29 = vld [vmem:[%s7497_s16 + $0x28] sm:$0xff] }
 0x189   : > { %10212 = vst [vmem:[#allocation37_spill] sm:$0xff] %v7776_v46  ;;  %1813 = vst [vmem:[%s7675_s27 + $0x10] sm:$0x7f] %v1805_v22  ;;  %v1671_v22 = vmul.f32 %v7768_v43, %v7776_v46  ;;  %v1751_v54 = vmul.f32 %v7745_v63, %v5375_v28  ;;  %v1445_v20 = vrot.slane %v1429_v16, 1  ;;  %v1542_v40 = vrot.slane %v1501_v3, 2 }
 0x18a   : > { %v1543_v25 = vrot.slane %v1509_v7, 2  ;;  %v1783_v10 = vrot.slane %v1743_v5, 2  ;;  %v1702_v19 = vadd.f32 %v1686_v15, %v1630_v53  ;;  %v7793_v23 = vrot.slane %v7741_v62, %v7554_v52  ;;  %v7800_v28 = vld [vmem:[%s7497_s16 + $0x68] ss:$0 sm:$0xff] }
 0x18b   : > { %v1687_v60 = vrot.slane %v1671_v22, 1  ;;  %v1784_v59 = vrot.slane %v1751_v54, 2  ;;  %v1461_v9 = vadd.f32 %v1445_v20, %v1381_v32  ;;  %10214 = vst [vmem:[#allocation39_spill] sm:$0xff] %v7800_v28  ;;  %v1342_v16 = vld [vmem:[%s7514_s9 + $0x68] sm:$0x1]  ;;  %v7805_v3 = vrot.slane %v7796_v29, %v7506_v36 }
 0x18c   : > { %10213 = vst [vmem:[#allocation38_spill] sm:$0xff] %v7793_v23  ;;  %v1544_v46 = vsel %vm1529_vm0, %v1542_v40, %v1543_v25  ;;  %v7809_v54 = vrot.slane %v7796_v29, %v7509_v37  ;;  %v1806_v15 = vadd.f32 %v1782_v24, %v1702_v19  ;;  %v7813_v7 = vld [vmem:[%s7514_s9 + $0x28] sm:$0xff]  ;;  %v7817_v40 = vrot.slane %v7796_v29, %v7512_v38 }
 0x18d   : > { %10215 = vst [vmem:[#allocation40_spill] sm:$0xff] %v7805_v3  ;;  %v1785_v53 = vsel %vm1529_vm0, %v1783_v10, %v1784_v59  ;;  %10217 = vst [vmem:[#allocation42_spill] sm:$0xff] %v7813_v7  ;;  %v5376_v20 = vld [vmem:[%s7514_s9 + $0xe8] sm:$0x1]  ;;  %v7822_v25 = vrot.slane %v7796_v29, %v7521_v41  ;;  %v1566_v32 = vadd.f32 %v1544_v46, %v1461_v9 }
 0x18e   : > { %10216 = vst [vmem:[#allocation41_spill] sm:$0xff] %v7809_v54  ;;  %10218 = vst [vmem:[#allocation43_spill] sm:$0xff] %v7817_v40  ;;  %v1382_v5 = vmul.f32 %v7805_v3, %v7813_v7  ;;  %v1430_v24 = vmul.f32 %v7809_v54, %v7813_v7  ;;  %v7829_v22 = vld [vmem:[%s7514_s9 + $0xa8] sm:$0xff]  ;;  %v7833_v59 = vrot.slane %v7796_v29, %v7524_v42 }
 0x18f   : > { %10219 = vst [vmem:[#allocation44_spill] sm:$0xff] %v7822_v25  ;;  %1814 = vst [vmem:[%s7675_s27 + $0x18] sm:$0x7f] %v1806_v15  ;;  %v1502_v10 = vmul.f32 %v7817_v40, %v7813_v7  ;;  %v1510_v19 = vmul.f32 %v7817_v40, %v1342_v16  ;;  %v1624_v9 = vmul.f32 %v7829_v22, %v7822_v25 }
 0x190   : > { %10220 = vst [vmem:[#allocation45_spill] sm:$0xff] %v7833_v59  ;;  %v1744_v46 = vmul.f32 %v7800_v28, %v7829_v22  ;;  %v1631_v54 = vadd.f32 %v1623_v21, %v1566_v32  ;;  %v1446_v3 = vrot.slane %v1430_v24, 1  ;;  %v1672_v63 = vmul.f32 %v7829_v22, %v7833_v59  ;;  %v7851_v21 = vld [vmem:[%s7497_s16 + $0x30] sm:$0xff] }
 0x191   : > { %v1752_v15 = vmul.f32 %v7800_v28, %v5376_v20  ;;  %v1545_v43 = vrot.slane %v1502_v10, 2  ;;  %v1546_v7 = vrot.slane %v1510_v19, 2  ;;  %v7848_v16 = vrot.slane %v7796_v29, %v7554_v52  ;;  %v1343_v32 = vld [vmem:[%s7514_s9 + $0x70] sm:$0x1] }
 0x192   : > { %v1786_v23 = vrot.slane %v1744_v46, 2  ;;  %v1703_v25 = vadd.f32 %v1687_v60, %v1631_v54  ;;  %v1462_v40 = vadd.f32 %v1446_v3, %v1382_v5  ;;  %v1688_v62 = vrot.slane %v1672_v63, 1  ;;  %v7856_v20 = vld [vmem:[%s7497_s16 + $0x70] ss:$0 sm:$0xff] }
 0x193   : > { %10221 = vst [vmem:[#allocation46_spill] sm:$0xff] %v7848_v16  ;;  %v1787_v27 = vrot.slane %v1752_v15, 2  ;;  %v1547_v24 = vsel %vm1529_vm0, %v1545_v43, %v1546_v7  ;;  %10222 = vst [vmem:[#allocation47_spill] sm:$0xff] %v7856_v20  ;;  %v7860_v10 = vrot.slane %v7851_v21, %v7506_v36  ;;  %v7864_v19 = vrot.slane %v7851_v21, %v7509_v37  ;;  %v7872_v43 = vld [vmem:[%s7514_s9 + $0x30] sm:$0xff] }
 0x194   : > { %v7868_v63 = vrot.slane %v7851_v21, %v7512_v38  ;;  %v1807_v60 = vadd.f32 %v1785_v53, %v1703_v25  ;;  %v1567_v3 = vadd.f32 %v1547_v24, %v1462_v40  ;;  %10226 = vst [vmem:[#allocation51_spill] sm:$0xff] %v7872_v43  ;;  %v5377_v7 = vld [vmem:[%s7514_s9 + $0xf0] sm:$0x1]  ;;  %v7877_v5 = vrot.slane %v7851_v21, %v7521_v41 }
 0x195   : > { %10223 = vst [vmem:[#allocation48_spill] sm:$0xff] %v7860_v10  ;;  %10224 = vst [vmem:[#allocation49_spill] sm:$0xff] %v7864_v19  ;;  %v1788_v54 = vsel %vm1529_vm0, %v1786_v23, %v1787_v27  ;;  %v1383_v46 = vmul.f32 %v7860_v10, %v7872_v43  ;;  %v1431_v15 = vmul.f32 %v7864_v19, %v7872_v43  ;;  %v7887_v27 = vld [vmem:[%s7514_s9 + $0xb0] sm:$0xff] }
 0x196   : > { %10225 = vst [vmem:[#allocation50_spill] sm:$0xff] %v7868_v63  ;;  %10227 = vst [vmem:[#allocation52_spill] sm:$0xff] %v7877_v5  ;;  %v1503_v28 = vmul.f32 %v7868_v63, %v7872_v43  ;;  %v1511_v53 = vmul.f32 %v7868_v63, %v1343_v32  ;;  %v1632_v23 = vadd.f32 %v1624_v9, %v1567_v3  ;;  %v7906_v43 = vld [vmem:[%s7497_s16 + $0x38] sm:$0xff] }
 0x197   : > { %1815 = vst [vmem:[%s7675_s27 + $0x20] sm:$0x7f] %v1807_v60  ;;  %v1625_v40 = vmul.f32 %v7887_v27, %v7877_v5  ;;  %v7894_v25 = vrot.slane %v7851_v21, %v7524_v42  ;;  %v1745_v24 = vmul.f32 %v7856_v20, %v7887_v27  ;;  %v1447_v19 = vrot.slane %v1431_v15, 1 }
 0x198   : > { %v1548_v10 = vrot.slane %v1503_v28, 2  ;;  %v1549_v32 = vrot.slane %v1511_v53, 2  ;;  %v1753_v63 = vmul.f32 %v7856_v20, %v5377_v7  ;;  %v1704_v60 = vadd.f32 %v1688_v62, %v1632_v23  ;;  %v1344_v53 = vld [vmem:[%s7514_s9 + $0x78] sm:$0x1] }
 0x199   : > { %10228 = vst [vmem:[#allocation53_spill] sm:$0xff] %v7894_v25  ;;  %v1673_v9 = vmul.f32 %v7887_v27, %v7894_v25  ;;  %v1789_v3 = vrot.slane %v1745_v24, 2  ;;  %v7903_v5 = vrot.slane %v7851_v21, %v7554_v52  ;;  %v1463_v59 = vadd.f32 %v1447_v19, %v1383_v46  ;;  %v7915_v24 = vld [vmem:[%s7497_s16 + $0x78] ss:$0 sm:$0xff] }
 0x19a   : > { %v1550_v28 = vsel %vm1529_vm0, %v1548_v10, %v1549_v32  ;;  %v1790_v15 = vrot.slane %v1753_v63, 2  ;;  %v7912_v62 = vrot.slane %v7906_v43, %v7506_v36  ;;  %v1808_v7 = vadd.f32 %v1788_v54, %v1704_v60  ;;  %v7918_v20 = vld [vmem:[%s7514_s9 + $0x38] sm:$0xff] }
 0x19b   : > { %v1689_v23 = vrot.slane %v1673_v9, 1  ;;  %10230 = vst [vmem:[#allocation55_spill] sm:$0xff] %v7918_v20  ;;  %v7922_v25 = vrot.slane %v7906_v43, %v7509_v37  ;;  %v7926_v10 = vrot.slane %v7906_v43, %v7512_v38  ;;  %v5378_v19 = vld [vmem:[%s7514_s9 + $0xf8] sm:$0x1]  ;;  %v1568_v63 = vadd.f32 %v1550_v28, %v1463_v59 }
 0x19c   : > { %10229 = vst [vmem:[#allocation54_spill] sm:$0xff] %v7912_v62  ;;  %v1791_v36 = vsel %vm1529_vm0, %v1789_v3, %v1790_v15  ;;  %v1384_v54 = vmul.f32 %v7912_v62, %v7918_v20  ;;  %v7934_v46 = vrot.slane %v7906_v43, %v7521_v41  ;;  %1816 = vst [vmem:[%s7675_s27 + $0x28] sm:$0x7f] %v1808_v7  ;;  %v7943_v59 = vld [vmem:[%s7514_s9 + $0xb8] sm:$0xff] }
 0x19d   : > { %10231 = vst [vmem:[#allocation56_spill] sm:$0xff] %v7922_v25  ;;  %10232 = vst [vmem:[#allocation57_spill] sm:$0xff] %v7926_v10  ;;  %v1432_v37 = vmul.f32 %v7922_v25, %v7918_v20  ;;  %v1504_v32 = vmul.f32 %v7926_v10, %v7918_v20  ;;  %v1512_v38 = vmul.f32 %v7926_v10, %v1344_v53 }
 0x19e   : > { %10233 = vst [vmem:[#allocation58_spill] sm:$0xff] %v7934_v46  ;;  %v7947_v60 = vrot.slane %v7906_v43, %v7524_v42  ;;  %v1633_v9 = vadd.f32 %v1625_v40, %v1568_v63  ;;  %v1626_v41 = vmul.f32 %v7943_v59, %v7934_v46  ;;  %v1746_v3 = vmul.f32 %v7915_v24, %v7943_v59  ;;  %v1827_v63 = vld [vmem:[%s7514_s9 + $0x40] sm:$0x1] }
 0x19f   : > { %v1754_v28 = vmul.f32 %v7915_v24, %v5378_v19  ;;  %v1448_v15 = vrot.slane %v1432_v37, 1  ;;  %v1551_v7 = vrot.slane %v1504_v32, 2  ;;  %v1552_v25 = vrot.slane %v1512_v38, 2 }
 0x1a0   : > { %10234 = vst [vmem:[#allocation59_spill] sm:$0xff] %v7947_v60  ;;  %v1674_v53 = vmul.f32 %v7943_v59, %v7947_v60  ;;  %v1705_v10 = vadd.f32 %v1689_v23, %v1633_v9  ;;  %v1792_v62 = vrot.slane %v1746_v3, 2  ;;  %v7958_v40 = vrot.slane %v7906_v43, %v7554_v52  ;;  %v5395_v52 = vld [vmem:[%s7514_s9 + $0xc0] sm:$0x1] }
 0x1a1   : > { %v1793_v42 = vrot.slane %v1754_v28, 2  ;;  %v1464_v46 = vadd.f32 %v1448_v15, %v1384_v54  ;;  %v1553_v20 = vsel %vm1529_vm0, %v1551_v7, %v1552_v25  ;;  %v7963_v37 = vsub.s32 0, %v7495_v33 }
 0x1a2   : > { %v1690_v19 = vrot.slane %v1674_v53, 1  ;;  %v1809_v32 = vadd.f32 %v1791_v36, %v1705_v10  ;;  %v7967_v23 = vsub.s32 1, %v7495_v33  ;;  %v1987_v9 = vmul.f32 %v7573_v0, %v7539_v48  ;;  %v7992_v53 = vld [vmem:[%s7514_s9 + $0x100] sm:$0xff] }
 0x1a3   : > { %v1794_v38 = vsel %vm1529_vm0, %v1792_v62, %v1793_v42  ;;  %v1569_v3 = vadd.f32 %v1553_v20, %v1464_v46  ;;  %v7974_v25 = vrot.slane %v7503_v35, %v7963_v37  ;;  %v1995_v54 = vmul.f32 %v7573_v0, %v1827_v63  ;;  %v5411_v42 = vld [vmem:[%s7514_s9 + $0x140] sm:$0x1] }
 0x1a4   : > { %v2075_v10 = vmul.f32 %v7517_v39, %v7529_v44  ;;  %1817 = vst [vmem:[%s7675_s27 + $0x30] sm:$0x7f] %v1809_v32  ;;  %v7982_v33 = vrot.slane %v7503_v35, %v7967_v23  ;;  %v2019_v62 = vrot.slane %v1987_v9, 2  ;;  %v2091_v36 = vmul.f32 %v7517_v39, %v7533_v45 }
 0x1a5   : > { %v2131_v20 = vmul.f32 %v7517_v39, %v7543_v49  ;;  %v1634_v46 = vadd.f32 %v1626_v41, %v1569_v3  ;;  %v1867_v28 = vmul.f32 %v7974_v25, %v7539_v48  ;;  %v2020_v15 = vrot.slane %v1995_v54, 2 }
 0x1a6   : > { %v2139_v7 = vmul.f32 %v5395_v52, %v7543_v49  ;;  %v1915_v35 = vmul.f32 %v7982_v33, %v7539_v48  ;;  %v2107_v63 = vrot.slane %v2091_v36, 1  ;;  %v2220_v9 = vmul.f32 %v7992_v53, %v7547_v50  ;;  %v1828_v36 = vld [vmem:[%s7514_s9 + $0x48] sm:$0x1] }
 0x1a7   : > { %v2163_v32 = vrot.slane %v2131_v20, 2  ;;  %v1706_v39 = vadd.f32 %v1690_v19, %v1634_v46  ;;  %v2021_v41 = vsel %vm1529_vm0, %v2019_v62, %v2020_v15  ;;  %v8002_v52 = vmul.f32 %v7992_v53, %v7551_v51 }
 0x1a8   : > { %v2164_v3 = vrot.slane %v2139_v7, 2  ;;  %v1931_v54 = vrot.slane %v1915_v35, 1  ;;  %v2276_v49 = vmul.f32 %v7992_v53, %v7500_v34  ;;  %v2284_v48 = vmul.f32 %v5411_v42, %v7500_v34  ;;  %v5396_v42 = vld [vmem:[%s7514_s9 + $0xc8] sm:$0x1] }
 0x1a9   : > { %v8010_v20 = vrot.slane %v7568_v61, %v7963_v37  ;;  %v1810_v19 = vadd.f32 %v1794_v38, %v1706_v39  ;;  %v2252_v46 = vrot.slane %v8002_v52, 1  ;;  %v8016_v15 = vrot.slane %v7568_v61, %v7967_v23 }
 0x1aa   : > { %v2165_v62 = vsel %vm1529_vm0, %v2163_v32, %v2164_v3  ;;  %v1947_v7 = vadd.f32 %v1931_v54, %v1867_v28  ;;  %v2308_v35 = vrot.slane %v2276_v49, 2  ;;  %v2309_v51 = vrot.slane %v2284_v48, 2 }
 0x1ab   : > { %10235 = vst [vmem:[#allocation60_spill] sm:$0xff] %v8016_v15  ;;  %v1868_v34 = vmul.f32 %v8010_v20, %v7583_v6  ;;  %1818 = vst [vmem:[%s7675_s27 + $0x38] sm:$0x7f] %v1810_v19  ;;  %v1916_v38 = vmul.f32 %v8016_v15, %v7583_v6  ;;  %v1988_v32 = vmul.f32 %v7624_v30, %v7583_v6  ;;  %v8036_v15 = vld [vmem:[%s7514_s9 + $0x108] sm:$0xff] }
 0x1ac   : > { %v1996_v39 = vmul.f32 %v7624_v30, %v1828_v36  ;;  %v2076_v61 = vmul.f32 %v7597_v12, %v7580_v2  ;;  %v2051_v49 = vadd.f32 %v2021_v41, %v1947_v7  ;;  %v2310_v28 = vsel %vm1529_vm0, %v2308_v35, %v2309_v51  ;;  %v5412_v36 = vld [vmem:[%s7514_s9 + $0x148] sm:$0x1] }
 0x1ad   : > { %v2092_v3 = vmul.f32 %v7597_v12, %v7588_v8  ;;  %v2132_v52 = vmul.f32 %v7597_v12, %v7594_v11  ;;  %v1932_v54 = vrot.slane %v1916_v38, 1  ;;  %v2022_v48 = vrot.slane %v1988_v32, 2 }
 0x1ae   : > { %v2023_v19 = vrot.slane %v1996_v39, 2  ;;  %v2140_v6 = vmul.f32 %v5396_v42, %v7594_v11  ;;  %v2083_v30 = vadd.f32 %v2075_v10, %v2051_v49  ;;  %v2221_v51 = vmul.f32 %v8036_v15, %v7602_v14  ;;  %v1829_v10 = vld [vmem:[%s7514_s9 + $0x50] sm:$0x1] }
 0x1af   : > { %v2108_v2 = vrot.slane %v2092_v3, 1  ;;  %v2166_v41 = vrot.slane %v2132_v52, 2  ;;  %v1948_v7 = vadd.f32 %v1932_v54, %v1868_v34  ;;  %v2237_v12 = vmul.f32 %v8036_v15, %v7609_v17 }
 0x1b0   : > { %v2024_v35 = vsel %vm1529_vm0, %v2022_v48, %v2023_v19  ;;  %v2167_v8 = vrot.slane %v2140_v6, 2  ;;  %v2123_v38 = vadd.f32 %v2107_v63, %v2083_v30  ;;  %v2277_v42 = vmul.f32 %v8036_v15, %v7576_v1 }
 0x1b1   : > { %v2285_v32 = vmul.f32 %v5412_v36, %v7576_v1  ;;  %v8050_v39 = vrot.slane %v7627_v31, %v7963_v37  ;;  %v2052_v49 = vadd.f32 %v2024_v35, %v1948_v7  ;;  %v2253_v3 = vrot.slane %v2237_v12, 1  ;;  %v5397_v36 = vld [vmem:[%s7514_s9 + $0xd0] sm:$0x1] }
 0x1b2   : > { %v2168_v34 = vsel %vm1529_vm0, %v2166_v41, %v2167_v8  ;;  %v8055_v52 = vrot.slane %v7627_v31, %v7967_v23  ;;  %v2195_v30 = vadd.f32 %v2165_v62, %v2123_v38  ;;  %v2311_v63 = vrot.slane %v2277_v42, 2 }
 0x1b3   : > { %10236 = vst [vmem:[#allocation61_spill] sm:$0xff] %v8050_v39  ;;  %v2312_v54 = vrot.slane %v2285_v32, 2  ;;  %v1869_v48 = vmul.f32 %v8050_v39, %v7639_v56  ;;  %v2084_v1 = vadd.f32 %v2076_v61, %v2052_v49  ;;  %v1989_v6 = vmul.f32 %v7683_v26, %v7639_v56  ;;  %v5413_v49 = vld [vmem:[%s7514_s9 + $0x150] sm:$0x1] }
 0x1b4   : > { %v1917_v19 = vmul.f32 %v8055_v52, %v7639_v56  ;;  %v1997_v8 = vmul.f32 %v7683_v26, %v1829_v10  ;;  %v2228_v31 = vadd.f32 %v2220_v9, %v2195_v30  ;;  %v2077_v41 = vmul.f32 %v7663_v13, %v7632_v47  ;;  %v8074_v10 = vld [vmem:[%s7514_s9 + $0x110] sm:$0xff] }
 0x1b5   : > { %v2313_v62 = vsel %vm1529_vm0, %v2311_v63, %v2312_v54  ;;  %v2093_v61 = vmul.f32 %v7663_v13, %v7643_v57  ;;  %v2124_v7 = vadd.f32 %v2108_v2, %v2084_v1  ;;  %v2025_v12 = vrot.slane %v1989_v6, 2 }
 0x1b6   : > { %v1933_v35 = vrot.slane %v1917_v19, 1  ;;  %v2026_v38 = vrot.slane %v1997_v8, 2  ;;  %v2268_v42 = vadd.f32 %v2252_v46, %v2228_v31  ;;  %v2133_v56 = vmul.f32 %v7663_v13, %v7647_v58 }
 0x1b7   : > { %v2109_v32 = vrot.slane %v2093_v61, 1  ;;  %v2141_v9 = vmul.f32 %v5397_v36, %v7647_v58  ;;  %v2196_v30 = vadd.f32 %v2168_v34, %v2124_v7  ;;  %v2222_v2 = vmul.f32 %v8074_v10, %v7655_v4 }
 0x1b8   : > { %v1949_v63 = vadd.f32 %v1933_v35, %v1869_v48  ;;  %v2027_v54 = vsel %vm1529_vm0, %v2025_v12, %v2026_v38  ;;  %v2340_v1 = vadd.f32 %v2310_v28, %v2268_v42  ;;  %v2169_v46 = vrot.slane %v2133_v56, 2  ;;  %v1830_v48 = vld [vmem:[%s7514_s9 + $0x58] sm:$0x1]  ;;  %v10237_v28 = vld [vmem:[#allocation19_spill] sm:$0xff] }
 0x1b9   : > { %v2170_v19 = vrot.slane %v2141_v9, 2  ;;  %v2238_v13 = vmul.f32 %v8074_v10, %v7669_v18  ;;  %v2229_v6 = vadd.f32 %v2221_v51, %v2196_v30  ;;  %v2278_v36 = vmul.f32 %v8074_v10, %v7636_v55 }
 0x1ba   : > { %v2053_v8 = vadd.f32 %v2027_v54, %v1949_v63  ;;  %v2286_v34 = vmul.f32 %v5413_v49, %v7636_v55  ;;  %5419 = vst [vmem:[%s7675_s27 + $0x40] sm:$0x7f] %v2340_v1  ;;  %v8090_v7 = vrot.slane %v10237_v28, %v7963_v37  ;;  %v8094_v35 = vrot.slane %v10237_v28, %v7967_v23  ;;  %v10240_v55 = vld [vmem:[#allocation22_spill] sm:$0xff]  ;;  %v10241_v49 = vld [vmem:[#allocation28_spill] sm:$0xff] }
 0x1bb   : > { %v2171_v31 = vsel %vm1529_vm0, %v2169_v46, %v2170_v19  ;;  %v2254_v61 = vrot.slane %v2238_v13, 1  ;;  %v2269_v51 = vadd.f32 %v2253_v3, %v2229_v6  ;;  %v2314_v38 = vrot.slane %v2278_v36, 2  ;;  %v5398_v54 = vld [vmem:[%s7514_s9 + $0xd8] sm:$0x1]  ;;  %v10243_v19 = vld [vmem:[#allocation26_spill] sm:$0xff] }
 0x1bc   : > { %10238 = vst [vmem:[#allocation19_spill] sm:$0xff] %v8090_v7  ;;  %10239 = vst [vmem:[#allocation62_spill] sm:$0xff] %v8094_v35  ;;  %v2085_v12 = vadd.f32 %v2077_v41, %v2053_v8  ;;  %v2315_v42 = vrot.slane %v2286_v34, 2  ;;  %v1870_v56 = vmul.f32 %v8090_v7, %v10240_v55  ;;  %v1918_v9 = vmul.f32 %v8094_v35, %v10240_v55  ;;  %v10242_v46 = vld [vmem:[#allocation20_spill] sm:$0xff]  ;;  %v10244_v34 = vld [vmem:[#allocation23_spill] sm:$0xff] }
 0x1bd   : > { %v1990_v30 = vmul.f32 %v10241_v49, %v10240_v55  ;;  %v1998_v63 = vmul.f32 %v10241_v49, %v1830_v48  ;;  %v2341_v1 = vadd.f32 %v2313_v62, %v2269_v51  ;;  %v2078_v13 = vmul.f32 %v10243_v19, %v10242_v46  ;;  %v8110_v35 = vld [vmem:[%s7514_s9 + $0x118] sm:$0xff]  ;;  %v10247_v51 = vld [vmem:[#allocation25_spill] sm:$0xff] }
 0x1be   : > { %v2125_v3 = vadd.f32 %v2109_v32, %v2085_v12  ;;  %v2316_v41 = vsel %vm1529_vm0, %v2314_v38, %v2315_v42  ;;  %v1934_v6 = vrot.slane %v1918_v9, 1  ;;  %v2094_v28 = vmul.f32 %v10243_v19, %v10244_v34  ;;  %10245 = vst [vmem:[#allocation22_spill] sm:$0xff] %v8110_v35  ;;  %v10246_v7 = vld [vmem:[#allocation24_spill] sm:$0xff]  ;;  %v1831_v49 = vld [vmem:[%s7514_s9 + $0x60] sm:$0x1] }
 0x1bf   : > { %v2028_v8 = vrot.slane %v1990_v30, 2  ;;  %v2029_v36 = vrot.slane %v1998_v63, 2  ;;  %5420 = vst [vmem:[%s7675_s27 + $0x48] sm:$0x7f] %v2341_v1  ;;  %v2134_v62 = vmul.f32 %v10243_v19, %v10246_v7  ;;  %v2142_v32 = vmul.f32 %v5398_v54, %v10246_v7  ;;  %v5414_v48 = vld [vmem:[%s7514_s9 + $0x158] sm:$0x1] }
 0x1c0   : > { %v2197_v55 = vadd.f32 %v2171_v31, %v2125_v3  ;;  %v2223_v12 = vmul.f32 %v8110_v35, %v10247_v51  ;;  %v1950_v38 = vadd.f32 %v1934_v6, %v1870_v56  ;;  %v2110_v9 = vrot.slane %v2094_v28, 1  ;;  %v10248_v30 = vld [vmem:[#allocation27_spill] sm:$0xff]  ;;  %v10249_v3 = vld [vmem:[#allocation21_spill] sm:$0xff] }
 0x1c1   : > { %v2030_v42 = vsel %vm1529_vm0, %v2028_v8, %v2029_v36  ;;  %v2239_v63 = vmul.f32 %v8110_v35, %v10248_v30  ;;  %v2172_v1 = vrot.slane %v2134_v62, 2  ;;  %v2173_v31 = vrot.slane %v2142_v32, 2  ;;  %v10250_v56 = vld [vmem:[#allocation29_spill] sm:$0xff]  ;;  %v10253_v32 = vld [vmem:[#allocation32_spill] sm:$0xff] }
 0x1c2   : > { %v2230_v34 = vadd.f32 %v2222_v2, %v2197_v55  ;;  %v2279_v19 = vmul.f32 %v8110_v35, %v10249_v3  ;;  %v2054_v46 = vadd.f32 %v2030_v42, %v1950_v38  ;;  %v2287_v7 = vmul.f32 %v5414_v48, %v10249_v3  ;;  %v10254_v48 = vld [vmem:[#allocation38_spill] sm:$0xff]  ;;  %v10256_v3 = vld [vmem:[#allocation35_spill] sm:$0xff] }
 0x1c3   : > { %v2255_v54 = vrot.slane %v2239_v63, 1  ;;  %v8128_v6 = vrot.slane %v10250_v56, %v7963_v37  ;;  %v2174_v36 = vsel %vm1529_vm0, %v2172_v1, %v2173_v31  ;;  %v8133_v28 = vrot.slane %v10250_v56, %v7967_v23  ;;  %v5399_v63 = vld [vmem:[%s7514_s9 + $0xe0] sm:$0x1]  ;;  %v10255_v31 = vld [vmem:[#allocation31_spill] sm:$0xff]  ;;  %v10258_v35 = vld [vmem:[#allocation34_spill] sm:$0xff] }
 0x1c4   : > { %v2270_v8 = vadd.f32 %v2254_v61, %v2230_v34  ;;  %v2317_v2 = vrot.slane %v2279_v19, 2  ;;  %v2086_v55 = vadd.f32 %v2078_v13, %v2054_v46  ;;  %v2318_v62 = vrot.slane %v2287_v7, 2  ;;  %v10257_v56 = vld [vmem:[#allocation33_spill] sm:$0xff] }
 0x1c5   : > { %10251 = vst [vmem:[#allocation26_spill] sm:$0xff] %v8128_v6  ;;  %10252 = vst [vmem:[#allocation21_spill] sm:$0xff] %v8133_v28  ;;  %v1871_v38 = vmul.f32 %v8128_v6, %v10253_v32  ;;  %v1991_v42 = vmul.f32 %v10254_v48, %v10253_v32  ;;  %v1919_v34 = vmul.f32 %v8133_v28, %v10253_v32  ;;  %v5415_v32 = vld [vmem:[%s7514_s9 + $0x160] sm:$0x1]  ;;  %v10261_v28 = vld [vmem:[#allocation30_spill] sm:$0xff] }
 0x1c6   : > { %v2342_v61 = vadd.f32 %v2316_v41, %v2270_v8  ;;  %v1999_v1 = vmul.f32 %v10254_v48, %v1831_v49  ;;  %v2079_v19 = vmul.f32 %v10256_v3, %v10255_v31  ;;  %v2126_v46 = vadd.f32 %v2110_v9, %v2086_v55  ;;  %v8153_v49 = vld [vmem:[%s7514_s9 + $0x120] sm:$0xff]  ;;  %v10259_v55 = vld [vmem:[#allocation36_spill] sm:$0xff] }
 0x1c7   : > { %v2319_v7 = vsel %vm1529_vm0, %v2317_v2, %v2318_v62  ;;  %v2031_v13 = vrot.slane %v1991_v42, 2  ;;  %v2095_v6 = vmul.f32 %v10256_v3, %v10257_v56  ;;  %v1935_v30 = vrot.slane %v1919_v34, 1  ;;  %v10260_v62 = vld [vmem:[#allocation37_spill] sm:$0xff] }
 0x1c8   : > { %5421 = vst [vmem:[%s7675_s27 + $0x50] sm:$0x7f] %v2342_v61  ;;  %v2032_v51 = vrot.slane %v1999_v1, 2  ;;  %v2135_v41 = vmul.f32 %v10256_v3, %v10258_v35  ;;  %v2143_v8 = vmul.f32 %v5399_v63, %v10258_v35  ;;  %v2198_v31 = vadd.f32 %v2174_v36, %v2126_v46 }
 0x1c9   : > { %v2111_v9 = vrot.slane %v2095_v6, 1  ;;  %v2224_v2 = vmul.f32 %v8153_v49, %v10259_v55  ;;  %v2240_v42 = vmul.f32 %v8153_v49, %v10260_v62  ;;  %v1951_v61 = vadd.f32 %v1935_v30, %v1871_v38  ;;  %v1832_v6 = vld [vmem:[%s7514_s9 + $0x68] sm:$0x1] }
 0x1ca   : > { %v2033_v34 = vsel %vm1529_vm0, %v2031_v13, %v2032_v51  ;;  %v2175_v1 = vrot.slane %v2135_v41, 2  ;;  %v2176_v56 = vrot.slane %v2143_v8, 2  ;;  %v2231_v3 = vadd.f32 %v2223_v12, %v2198_v31  ;;  %v10264_v31 = vld [vmem:[#allocation42_spill] sm:$0xff] }
 0x1cb   : > { %v2256_v48 = vrot.slane %v2240_v42, 1  ;;  %v2280_v63 = vmul.f32 %v8153_v49, %v10261_v28  ;;  %v2288_v36 = vmul.f32 %v5415_v32, %v10261_v28  ;;  %v2055_v46 = vadd.f32 %v2033_v34, %v1951_v61  ;;  %v10265_v61 = vld [vmem:[#allocation40_spill] sm:$0xff] }
 0x1cc   : > { %v2177_v55 = vsel %vm1529_vm0, %v2175_v1, %v2176_v56  ;;  %v8168_v62 = vrot.slane %v7796_v29, %v7963_v37  ;;  %v8172_v51 = vrot.slane %v7796_v29, %v7967_v23  ;;  %v2271_v12 = vadd.f32 %v2255_v54, %v2231_v3  ;;  %v5400_v29 = vld [vmem:[%s7514_s9 + $0xe8] sm:$0x1] }
 0x1cd   : > { %v2320_v30 = vrot.slane %v2280_v63, 2  ;;  %v2321_v38 = vrot.slane %v2288_v36, 2  ;;  %v1992_v28 = vmul.f32 %v7848_v16, %v10264_v31  ;;  %v2087_v13 = vadd.f32 %v2079_v19, %v2055_v46  ;;  %v10266_v63 = vld [vmem:[#allocation41_spill] sm:$0xff]  ;;  %v8188_v46 = vld [vmem:[%s7514_s9 + $0x128] sm:$0xff] }
 0x1ce   : > { %10262 = vst [vmem:[#allocation29_spill] sm:$0xff] %v8168_v62  ;;  %10263 = vst [vmem:[#allocation32_spill] sm:$0xff] %v8172_v51  ;;  %v1872_v56 = vmul.f32 %v8168_v62, %v10264_v31  ;;  %v1920_v41 = vmul.f32 %v8172_v51, %v10264_v31  ;;  %v2000_v8 = vmul.f32 %v7848_v16, %v1832_v6  ;;  %v10267_v31 = vld [vmem:[#allocation43_spill] sm:$0xff] }
 0x1cf   : > { %v2343_v32 = vadd.f32 %v2319_v7, %v2271_v12  ;;  %v2322_v54 = vsel %vm1529_vm0, %v2320_v30, %v2321_v38  ;;  %v2034_v42 = vrot.slane %v1992_v28, 2  ;;  %v2080_v34 = vmul.f32 %v7829_v22, %v10265_v61  ;;  %v5416_v12 = vld [vmem:[%s7514_s9 + $0x168] sm:$0x1]  ;;  %v10268_v30 = vld [vmem:[#allocation44_spill] sm:$0xff]  ;;  %v10269_v28 = vld [vmem:[#allocation45_spill] sm:$0xff] }
 0x1d0   : > { %v2127_v1 = vadd.f32 %v2111_v9, %v2087_v13  ;;  %v1936_v3 = vrot.slane %v1920_v41, 1  ;;  %v2035_v19 = vrot.slane %v2000_v8, 2  ;;  %v2096_v36 = vmul.f32 %v7829_v22, %v10266_v63 }
 0x1d1   : > { %5422 = vst [vmem:[%s7675_s27 + $0x58] sm:$0x7f] %v2343_v32  ;;  %v2136_v6 = vmul.f32 %v7829_v22, %v10267_v31  ;;  %v2144_v7 = vmul.f32 %v5400_v29, %v10267_v31  ;;  %v2225_v38 = vmul.f32 %v8188_v46, %v10268_v30  ;;  %v2241_v9 = vmul.f32 %v8188_v46, %v10269_v28  ;;  %v10270_v22 = vld [vmem:[#allocation39_spill] sm:$0xff] }
 0x1d2   : > { %v2199_v13 = vadd.f32 %v2177_v55, %v2127_v1  ;;  %v1952_v41 = vadd.f32 %v1936_v3, %v1872_v56  ;;  %v2036_v8 = vsel %vm1529_vm0, %v2034_v42, %v2035_v19  ;;  %v2112_v63 = vrot.slane %v2096_v36, 1  ;;  %v1833_v30 = vld [vmem:[%s7514_s9 + $0x70] sm:$0x1] }
 0x1d3   : > { %v2178_v61 = vrot.slane %v2136_v6, 2  ;;  %v2179_v32 = vrot.slane %v2144_v7, 2  ;;  %v2257_v16 = vrot.slane %v2241_v9, 1  ;;  %v2281_v51 = vmul.f32 %v8188_v46, %v10270_v22  ;;  %v10272_v1 = vld [vmem:[#allocation51_spill] sm:$0xff] }
 0x1d4   : > { %v2232_v29 = vadd.f32 %v2224_v2, %v2199_v13  ;;  %v2056_v31 = vadd.f32 %v2036_v8, %v1952_v41  ;;  %v2289_v62 = vmul.f32 %v5416_v12, %v10270_v22  ;;  %v8206_v28 = vrot.slane %v7851_v21, %v7963_v37  ;;  %v5401_v7 = vld [vmem:[%s7514_s9 + $0xf0] sm:$0x1]  ;;  %v10273_v12 = vld [vmem:[#allocation48_spill] sm:$0xff] }
 0x1d5   : > { %v2180_v55 = vsel %vm1529_vm0, %v2178_v61, %v2179_v32  ;;  %v2323_v56 = vrot.slane %v2281_v51, 2  ;;  %v8211_v42 = vrot.slane %v7851_v21, %v7967_v23  ;;  %v1993_v3 = vmul.f32 %v7903_v5, %v10272_v1  ;;  %v10275_v32 = vld [vmem:[#allocation50_spill] sm:$0xff] }
 0x1d6   : > { %10271 = vst [vmem:[#allocation35_spill] sm:$0xff] %v8206_v28  ;;  %v2272_v19 = vadd.f32 %v2256_v48, %v2232_v29  ;;  %v2088_v2 = vadd.f32 %v2080_v34, %v2056_v31  ;;  %v2324_v36 = vrot.slane %v2289_v62, 2  ;;  %v1873_v6 = vmul.f32 %v8206_v28, %v10272_v1  ;;  %v10274_v62 = vld [vmem:[#allocation49_spill] sm:$0xff] }
 0x1d7   : > { %v1921_v51 = vmul.f32 %v8211_v42, %v10272_v1  ;;  %v2001_v61 = vmul.f32 %v7903_v5, %v1833_v30  ;;  %v2037_v21 = vrot.slane %v1993_v3, 2  ;;  %v2081_v9 = vmul.f32 %v7887_v27, %v10273_v12  ;;  %v8230_v30 = vld [vmem:[%s7514_s9 + $0x130] sm:$0xff] }
 0x1d8   : > { %v2344_v13 = vadd.f32 %v2322_v54, %v2272_v19  ;;  %v2128_v48 = vadd.f32 %v2112_v63, %v2088_v2  ;;  %v2325_v34 = vsel %vm1529_vm0, %v2323_v56, %v2324_v36  ;;  %v2097_v31 = vmul.f32 %v7887_v27, %v10274_v62  ;;  %v5417_v1 = vld [vmem:[%s7514_s9 + $0x170] sm:$0x1]  ;;  %v10276_v63 = vld [vmem:[#allocation52_spill] sm:$0xff]  ;;  %v10277_v19 = vld [vmem:[#allocation53_spill] sm:$0xff] }
 0x1d9   : > { %v1937_v41 = vrot.slane %v1921_v51, 1  ;;  %v2038_v8 = vrot.slane %v2001_v61, 2  ;;  %v2137_v22 = vmul.f32 %v7887_v27, %v10275_v32  ;;  %v2145_v29 = vmul.f32 %v5401_v7, %v10275_v32  ;;  %v10278_v32 = vld [vmem:[#allocation47_spill] sm:$0xff] }
 0x1da   : > { %5423 = vst [vmem:[%s7675_s27 + $0x60] sm:$0x7f] %v2344_v13  ;;  %v2200_v3 = vadd.f32 %v2180_v55, %v2128_v48  ;;  %v2113_v54 = vrot.slane %v2097_v31, 1  ;;  %v2226_v56 = vmul.f32 %v8230_v30, %v10276_v63  ;;  %v2242_v2 = vmul.f32 %v8230_v30, %v10277_v19  ;;  %v1834_v13 = vld [vmem:[%s7514_s9 + $0x78] sm:$0x1] }
 0x1db   : > { %v1953_v36 = vadd.f32 %v1937_v41, %v1873_v6  ;;  %v2039_v51 = vsel %vm1529_vm0, %v2037_v21, %v2038_v8  ;;  %v2181_v61 = vrot.slane %v2137_v22, 2  ;;  %v2182_v27 = vrot.slane %v2145_v29, 2  ;;  %v10280_v8 = vld [vmem:[#allocation55_spill] sm:$0xff] }
 0x1dc   : > { %v2233_v62 = vadd.f32 %v2225_v38, %v2200_v3  ;;  %v2258_v7 = vrot.slane %v2242_v2, 1  ;;  %v2282_v12 = vmul.f32 %v8230_v30, %v10278_v32  ;;  %v2290_v55 = vmul.f32 %v5417_v1, %v10278_v32 }
 0x1dd   : > { %v2057_v48 = vadd.f32 %v2039_v51, %v1953_v36  ;;  %v2183_v31 = vsel %vm1529_vm0, %v2181_v61, %v2182_v27  ;;  %v8246_v19 = vrot.slane %v7906_v43, %v7963_v37  ;;  %v8250_v6 = vrot.slane %v7906_v43, %v7967_v23  ;;  %v5402_v43 = vld [vmem:[%s7514_s9 + $0xf8] sm:$0x1] }
 0x1de   : > { %v2273_v38 = vadd.f32 %v2257_v16, %v2233_v62  ;;  %v2326_v21 = vrot.slane %v2282_v12, 2  ;;  %v2327_v41 = vrot.slane %v2290_v55, 2  ;;  %v1994_v32 = vmul.f32 %v7958_v40, %v10280_v8  ;;  %v10281_v62 = vld [vmem:[#allocation54_spill] sm:$0xff]  ;;  %v10282_v51 = vld [vmem:[#allocation56_spill] sm:$0xff]  ;;  %v10283_v55 = vld [vmem:[#allocation57_spill] sm:$0xff] }
 0x1df   : > { %10279 = vst [vmem:[#allocation30_spill] sm:$0xff] %v8246_v19  ;;  %v2089_v22 = vadd.f32 %v2081_v9, %v2057_v48  ;;  %v1874_v29 = vmul.f32 %v8246_v19, %v10280_v8  ;;  %v1922_v37 = vmul.f32 %v8250_v6, %v10280_v8  ;;  %v2002_v1 = vmul.f32 %v7958_v40, %v1834_v13  ;;  %v8266_v27 = vld [vmem:[%s7514_s9 + $0x138] sm:$0xff] }
 0x1e0   : > { %v2345_v23 = vadd.f32 %v2325_v34, %v2273_v38  ;;  %v2328_v16 = vsel %vm1529_vm0, %v2326_v21, %v2327_v41  ;;  %v2040_v12 = vrot.slane %v1994_v32, 2  ;;  %v2082_v3 = vmul.f32 %v7943_v59, %v10281_v62  ;;  %v5418_v48 = vld [vmem:[%s7514_s9 + $0x178] sm:$0x1]  ;;  %v10284_v38 = vld [vmem:[#allocation58_spill] sm:$0xff] }
 0x1e1   : > { %v2129_v2 = vadd.f32 %v2113_v54, %v2089_v22  ;;  %v1938_v9 = vrot.slane %v1922_v37, 1  ;;  %v2041_v36 = vrot.slane %v2002_v1, 2  ;;  %v2098_v61 = vmul.f32 %v7943_v59, %v10282_v51  ;;  %v5427_v37 = vld [vmem:[%s7514_s9 + $0x80] sm:$0xff] }
 0x1e2   : > { %5424 = vst [vmem:[%s7675_s27 + $0x68] sm:$0x7f] %v2345_v23  ;;  %v2138_v34 = vmul.f32 %v7943_v59, %v10283_v55  ;;  %v2146_v13 = vmul.f32 %v5402_v43, %v10283_v55  ;;  %v2227_v21 = vmul.f32 %v8266_v27, %v10284_v38  ;;  %v2243_v54 = vmul.f32 %v8266_v27, %v7947_v60  ;;  %v5435_v43 = vld [vmem:[%s7514_s9 + $0xc0] sm:$0x1] }
 0x1e3   : > { %v2201_v41 = vadd.f32 %v2183_v31, %v2129_v2  ;;  %v1954_v8 = vadd.f32 %v1938_v9, %v1874_v29  ;;  %v2042_v32 = vsel %vm1529_vm0, %v2040_v12, %v2041_v36  ;;  %v2114_v22 = vrot.slane %v2098_v61, 1 }
 0x1e4   : > { %v2184_v1 = vrot.slane %v2138_v34, 2  ;;  %v2185_v23 = vrot.slane %v2146_v13, 2  ;;  %v2259_v51 = vrot.slane %v2243_v54, 1  ;;  %v2283_v59 = vmul.f32 %v8266_v27, %v7915_v24 }
 0x1e5   : > { %v2234_v55 = vadd.f32 %v2226_v56, %v2201_v41  ;;  %v2058_v62 = vadd.f32 %v2042_v32, %v1954_v8  ;;  %v2291_v38 = vmul.f32 %v5418_v48, %v7915_v24  ;;  %v2373_v60 = vmul.f32 %v5427_v37, %v7974_v25  ;;  %v5451_v56 = vld [vmem:[%s7514_s9 + $0x140] sm:$0x1] }
 0x1e6   : > { %v2186_v31 = vsel %vm1529_vm0, %v2184_v1, %v2185_v23  ;;  %v2329_v29 = vrot.slane %v2283_v59, 2  ;;  %v2389_v12 = vmul.f32 %v5427_v37, %v7982_v33  ;;  %v2429_v2 = vmul.f32 %v5427_v37, %v7573_v0  ;;  %v8298_v1 = vld [vmem:[%s7514_s9 + $0x180] sm:$0xff] }
 0x1e7   : > { %v2274_v9 = vadd.f32 %v2258_v7, %v2234_v55  ;;  %v2090_v36 = vadd.f32 %v2082_v3, %v2058_v62  ;;  %v2330_v61 = vrot.slane %v2291_v38, 2  ;;  %v2437_v34 = vmul.f32 %v5435_v43, %v7573_v0  ;;  %v10285_v38 = vld [vmem:[#allocation5_spill] sm:$0xff]  ;;  %v10286_v43 = vld [vmem:[#allocation6_spill] sm:$0xff] }
 0x1e8   : > { %v2405_v13 = vrot.slane %v2389_v12, 1  ;;  %v2461_v24 = vrot.slane %v2429_v2, 2  ;;  %v2517_v48 = vmul.f32 %v7992_v53, %v7529_v44  ;;  %v2533_v54 = vmul.f32 %v7992_v53, %v7533_v45  ;;  %v5467_v23 = vld [vmem:[%s7514_s9 + $0x1c0] sm:$0x1] }
 0x1e9   : > { %v2346_v41 = vadd.f32 %v2328_v16, %v2274_v9  ;;  %v2130_v8 = vadd.f32 %v2114_v22, %v2090_v36  ;;  %v2331_v7 = vsel %vm1529_vm0, %v2329_v29, %v2330_v61  ;;  %v2462_v62 = vrot.slane %v2437_v34, 2  ;;  %v5428_v29 = vld [vmem:[%s7514_s9 + $0x88] sm:$0xff] }
 0x1ea   : > { %v2421_v3 = vadd.f32 %v2405_v13, %v2373_v60  ;;  %v2549_v55 = vrot.slane %v2533_v54, 1  ;;  %v2573_v32 = vmul.f32 %v7992_v53, %v10285_v38  ;;  %v2581_v37 = vmul.f32 %v5451_v56, %v10285_v38  ;;  %v8309_v53 = vld [vmem:[%s7497_s16 + $0x40] ss:$0 sm:$0xff]  ;;  %v5436_v61 = vld [vmem:[%s7514_s9 + $0xc8] sm:$0x1] }
 0x1eb   : > { %5425 = vst [vmem:[%s7675_s27 + $0x70] sm:$0x7f] %v2346_v41  ;;  %v2202_v59 = vadd.f32 %v2186_v31, %v2130_v8  ;;  %v2463_v16 = vsel %vm1529_vm0, %v2461_v24, %v2462_v62  ;;  %v2662_v22 = vmul.f32 %v8298_v1, %v7547_v50  ;;  %v2678_v60 = vmul.f32 %v8298_v1, %v10286_v43  ;;  %v10287_v8 = vld [vmem:[#allocation60_spill] sm:$0xff] }
 0x1ec   : > { %v2493_v12 = vadd.f32 %v2463_v16, %v2421_v3  ;;  %v2605_v2 = vrot.slane %v2573_v32, 2  ;;  %v2606_v9 = vrot.slane %v2581_v37, 2  ;;  %v2718_v36 = vmul.f32 %v8309_v53, %v8298_v1  ;;  %v10288_v37 = vld [vmem:[#allocation12_spill] sm:$0xff] }
 0x1ed   : > { %v2235_v31 = vadd.f32 %v2227_v21, %v2202_v59  ;;  %v2694_v34 = vrot.slane %v2678_v60, 1  ;;  %v2726_v56 = vmul.f32 %v8309_v53, %v5467_v23  ;;  %v2374_v13 = vmul.f32 %v5428_v29, %v8010_v20  ;;  %v5452_v23 = vld [vmem:[%s7514_s9 + $0x148] sm:$0x1]  ;;  %v10289_v60 = vld [vmem:[#allocation7_spill] sm:$0xff] }
 0x1ee   : > { %v2525_v24 = vadd.f32 %v2517_v48, %v2493_v12  ;;  %v2607_v54 = vsel %vm1529_vm0, %v2605_v2, %v2606_v9  ;;  %v2750_v41 = vrot.slane %v2718_v36, 2  ;;  %v2390_v62 = vmul.f32 %v5428_v29, %v10287_v8  ;;  %v10290_v12 = vld [vmem:[#allocation8_spill] sm:$0xff] }
 0x1ef   : > { %v2275_v3 = vadd.f32 %v2259_v51, %v2235_v31  ;;  %v2751_v32 = vrot.slane %v2726_v56, 2  ;;  %v2430_v16 = vmul.f32 %v5428_v29, %v10288_v37  ;;  %v2438_v43 = vmul.f32 %v5436_v61, %v10288_v37 }
 0x1f0   : > { %v2565_v21 = vadd.f32 %v2549_v55, %v2525_v24  ;;  %v2406_v59 = vrot.slane %v2390_v62, 1  ;;  %v2518_v48 = vmul.f32 %v8036_v15, %v10289_v60  ;;  %v2534_v2 = vmul.f32 %v8036_v15, %v10290_v12  ;;  %v8329_v24 = vld [vmem:[%s7514_s9 + $0x188] sm:$0xff] }
 0x1f1   : > { %v2347_v9 = vadd.f32 %v2331_v7, %v2275_v3  ;;  %v2752_v51 = vsel %vm1529_vm0, %v2750_v41, %v2751_v32  ;;  %v2464_v36 = vrot.slane %v2430_v16, 2  ;;  %v2465_v31 = vrot.slane %v2438_v43, 2  ;;  %v5468_v62 = vld [vmem:[%s7514_s9 + $0x1c8] sm:$0x1] }
 0x1f2   : > { %v2637_v29 = vadd.f32 %v2607_v54, %v2565_v21  ;;  %v2422_v56 = vadd.f32 %v2406_v59, %v2374_v13  ;;  %v2550_v61 = vrot.slane %v2534_v2, 1  ;;  %v2574_v55 = vmul.f32 %v8036_v15, %v7594_v11  ;;  %v5429_v13 = vld [vmem:[%s7514_s9 + $0x90] sm:$0xff]  ;;  %v8341_v15 = vld [vmem:[%s7497_s16 + $0x48] ss:$0 sm:$0xff] }
 0x1f3   : > { %5426 = vst [vmem:[%s7675_s27 + $0x78] sm:$0x7f] %v2347_v9  ;;  %v2466_v12 = vsel %vm1529_vm0, %v2464_v36, %v2465_v31  ;;  %v2582_v7 = vmul.f32 %v5452_v23, %v7594_v11  ;;  %v2663_v41 = vmul.f32 %v8329_v24, %v7602_v14  ;;  %v2679_v43 = vmul.f32 %v8329_v24, %v7609_v17  ;;  %v5437_v21 = vld [vmem:[%s7514_s9 + $0xd0] sm:$0x1] }
 0x1f4   : > { %v2670_v54 = vadd.f32 %v2662_v22, %v2637_v29  ;;  %v2494_v3 = vadd.f32 %v2466_v12, %v2422_v56  ;;  %v2608_v32 = vrot.slane %v2574_v55, 2  ;;  %10291 = vst [vmem:[#allocation42_spill] sm:$0xff] %v8341_v15  ;;  %v2719_v16 = vmul.f32 %v8341_v15, %v8329_v24 }
 0x1f5   : > { %v2609_v59 = vrot.slane %v2582_v7, 2  ;;  %v2695_v2 = vrot.slane %v2679_v43, 1  ;;  %v2727_v23 = vmul.f32 %v8341_v15, %v5468_v62  ;;  %v2375_v9 = vmul.f32 %v5429_v13, %v8050_v39  ;;  %v5453_v7 = vld [vmem:[%s7514_s9 + $0x150] sm:$0x1] }
 0x1f6   : > { %v2710_v36 = vadd.f32 %v2694_v34, %v2670_v54  ;;  %v2526_v31 = vadd.f32 %v2518_v48, %v2494_v3  ;;  %v2753_v17 = vrot.slane %v2719_v16, 2  ;;  %v2391_v22 = vmul.f32 %v5429_v13, %v8055_v52 }
 0x1f7   : > { %v2610_v12 = vsel %vm1529_vm0, %v2608_v32, %v2609_v59  ;;  %v2754_v29 = vrot.slane %v2727_v23, 2  ;;  %v2431_v56 = vmul.f32 %v5429_v13, %v7683_v26  ;;  %v2439_v55 = vmul.f32 %v5437_v21, %v7683_v26  ;;  %v8363_v21 = vld [vmem:[%s7514_s9 + $0x190] sm:$0xff] }
 0x1f8   : > { %v2782_v43 = vadd.f32 %v2752_v51, %v2710_v36  ;;  %v2566_v62 = vadd.f32 %v2550_v61, %v2526_v31  ;;  %v2407_v15 = vrot.slane %v2391_v22, 1  ;;  %v2519_v34 = vmul.f32 %v8074_v10, %v7632_v47  ;;  %v5469_v59 = vld [vmem:[%s7514_s9 + $0x1d0] sm:$0x1]  ;;  %v5430_v22 = vld [vmem:[%s7514_s9 + $0x98] sm:$0xff] }
 0x1f9   : > { %v2755_v48 = vsel %vm1529_vm0, %v2753_v17, %v2754_v29  ;;  %v2467_v54 = vrot.slane %v2431_v56, 2  ;;  %v2468_v3 = vrot.slane %v2439_v55, 2  ;;  %v2535_v32 = vmul.f32 %v8074_v10, %v7643_v57  ;;  %v5438_v29 = vld [vmem:[%s7514_s9 + $0xd8] sm:$0x1]  ;;  %v8374_v55 = vld [vmem:[%s7497_s16 + $0x50] ss:$0 sm:$0xff] }
 0x1fa   : > { %5475 = vst [vmem:[%s7675_s27 + $0x80] sm:$0x7f] %v2782_v43  ;;  %v2638_v13 = vadd.f32 %v2610_v12, %v2566_v62  ;;  %v2423_v16 = vadd.f32 %v2407_v15, %v2375_v9  ;;  %v2575_v51 = vmul.f32 %v8074_v10, %v7647_v58  ;;  %v2583_v61 = vmul.f32 %v5453_v7, %v7647_v58  ;;  %v10293_v62 = vld [vmem:[#allocation19_spill] sm:$0xff] }
 0x1fb   : > { %v2469_v17 = vsel %vm1529_vm0, %v2467_v54, %v2468_v3  ;;  %v2551_v23 = vrot.slane %v2535_v32, 1  ;;  %v2664_v36 = vmul.f32 %v8363_v21, %v7655_v4  ;;  %v2680_v31 = vmul.f32 %v8363_v21, %v7669_v18  ;;  %10292 = vst [vmem:[#allocation39_spill] sm:$0xff] %v8374_v55  ;;  %v5454_v4 = vld [vmem:[%s7514_s9 + $0x158] sm:$0x1] }
 0x1fc   : > { %v2671_v15 = vadd.f32 %v2663_v41, %v2638_v13  ;;  %v2495_v9 = vadd.f32 %v2469_v17, %v2423_v16  ;;  %v2611_v12 = vrot.slane %v2575_v51, 2  ;;  %v2612_v10 = vrot.slane %v2583_v61, 2  ;;  %v10294_v13 = vld [vmem:[#allocation62_spill] sm:$0xff]  ;;  %v10295_v17 = vld [vmem:[#allocation28_spill] sm:$0xff] }
 0x1fd   : > { %v2696_v56 = vrot.slane %v2680_v31, 1  ;;  %v2720_v7 = vmul.f32 %v8374_v55, %v8363_v21  ;;  %v2728_v43 = vmul.f32 %v8374_v55, %v5469_v59  ;;  %v2376_v54 = vmul.f32 %v5430_v22, %v10293_v62  ;;  %v10296_v62 = vld [vmem:[#allocation20_spill] sm:$0xff] }
 0x1fe   : > { %v2711_v3 = vadd.f32 %v2695_v2, %v2671_v15  ;;  %v2527_v32 = vadd.f32 %v2519_v34, %v2495_v9  ;;  %v2613_v41 = vsel %vm1529_vm0, %v2611_v12, %v2612_v10  ;;  %v2392_v16 = vmul.f32 %v5430_v22, %v10294_v13  ;;  %v10297_v2 = vld [vmem:[#allocation22_spill] sm:$0xff]  ;;  %v10298_v10 = vld [vmem:[#allocation23_spill] sm:$0xff] }
 0x1ff   : > { %v2756_v51 = vrot.slane %v2720_v7, 2  ;;  %v2757_v61 = vrot.slane %v2728_v43, 2  ;;  %v2432_v31 = vmul.f32 %v5430_v22, %v10295_v17  ;;  %v2440_v18 = vmul.f32 %v5438_v29, %v10295_v17  ;;  %v10299_v43 = vld [vmem:[#allocation24_spill] sm:$0xff] }
 0x200   : > { %v2783_v58 = vadd.f32 %v2755_v48, %v2711_v3  ;;  %v2567_v59 = vadd.f32 %v2551_v23, %v2527_v32  ;;  %v2408_v55 = vrot.slane %v2392_v16, 1  ;;  %v2520_v34 = vmul.f32 %v10297_v2, %v10296_v62  ;;  %v8395_v3 = vld [vmem:[%s7514_s9 + $0x198] sm:$0xff] }
 0x201   : > { %v2758_v15 = vsel %vm1529_vm0, %v2756_v51, %v2757_v61  ;;  %v2470_v9 = vrot.slane %v2432_v31, 2  ;;  %v2471_v12 = vrot.slane %v2440_v18, 2  ;;  %v2536_v7 = vmul.f32 %v10297_v2, %v10298_v10  ;;  %10300 = vst [vmem:[#allocation51_spill] sm:$0xff] %v8395_v3  ;;  %v5470_v32 = vld [vmem:[%s7514_s9 + $0x1d8] sm:$0x1]  ;;  %v10301_v18 = vld [vmem:[#allocation25_spill] sm:$0xff] }
 0x202   : > { %5476 = vst [vmem:[%s7675_s27 + $0x88] sm:$0x7f] %v2783_v58  ;;  %v2639_v22 = vadd.f32 %v2613_v41, %v2567_v59  ;;  %v2424_v29 = vadd.f32 %v2408_v55, %v2376_v54  ;;  %v2576_v48 = vmul.f32 %v10297_v2, %v10299_v43  ;;  %v2584_v23 = vmul.f32 %v5454_v4, %v10299_v43  ;;  %v10302_v31 = vld [vmem:[#allocation27_spill] sm:$0xff]  ;;  %v5431_v41 = vld [vmem:[%s7514_s9 + $0xa0] sm:$0xff]  ;;  %v8406_v43 = vld [vmem:[%s7497_s16 + $0x58] ss:$0 sm:$0xff] }
 0x203   : > { %v2472_v16 = vsel %vm1529_vm0, %v2470_v9, %v2471_v12  ;;  %v2552_v51 = vrot.slane %v2536_v7, 1  ;;  %v2665_v61 = vmul.f32 %v8395_v3, %v10301_v18  ;;  %v2681_v58 = vmul.f32 %v8395_v3, %v10302_v31  ;;  %v5439_v10 = vld [vmem:[%s7514_s9 + $0xe0] sm:$0x1]  ;;  %10303 = vst [vmem:[#allocation47_spill] sm:$0xff] %v8406_v43  ;;  %v10304_v7 = vld [vmem:[#allocation26_spill] sm:$0xff] }
 0x204   : > { %v2672_v55 = vadd.f32 %v2664_v36, %v2639_v22  ;;  %v2496_v54 = vadd.f32 %v2472_v16, %v2424_v29  ;;  %v2614_v59 = vrot.slane %v2576_v48, 2  ;;  %v2615_v2 = vrot.slane %v2584_v23, 2  ;;  %v10305_v22 = vld [vmem:[#allocation21_spill] sm:$0xff]  ;;  %v10306_v16 = vld [vmem:[#allocation38_spill] sm:$0xff] }
 0x205   : > { %v2697_v4 = vrot.slane %v2681_v58, 1  ;;  %v2721_v9 = vmul.f32 %v8406_v43, %v8395_v3  ;;  %v2729_v12 = vmul.f32 %v8406_v43, %v5470_v32  ;;  %v2377_v18 = vmul.f32 %v5431_v41, %v10304_v7  ;;  %v5455_v3 = vld [vmem:[%s7514_s9 + $0x160] sm:$0x1]  ;;  %v10307_v7 = vld [vmem:[#allocation31_spill] sm:$0xff] }
 0x206   : > { %v2712_v62 = vadd.f32 %v2696_v56, %v2672_v55  ;;  %v2528_v17 = vadd.f32 %v2520_v34, %v2496_v54  ;;  %v2616_v36 = vsel %vm1529_vm0, %v2614_v59, %v2615_v2  ;;  %v2393_v29 = vmul.f32 %v5431_v41, %v10305_v22  ;;  %v10308_v59 = vld [vmem:[#allocation33_spill] sm:$0xff] }
 0x207   : > { %v2759_v48 = vrot.slane %v2721_v9, 2  ;;  %v2760_v23 = vrot.slane %v2729_v12, 2  ;;  %v2433_v58 = vmul.f32 %v5431_v41, %v10306_v16  ;;  %v2441_v31 = vmul.f32 %v5439_v10, %v10306_v16 }
 0x208   : > { %v2784_v13 = vadd.f32 %v2758_v15, %v2712_v62  ;;  %v2568_v32 = vadd.f32 %v2552_v51, %v2528_v17  ;;  %v2409_v43 = vrot.slane %v2393_v29, 1  ;;  %v2521_v56 = vmul.f32 %v8153_v49, %v10307_v7  ;;  %v8427_v15 = vld [vmem:[%s7514_s9 + $0x1a0] sm:$0xff] }
 0x209   : > { %v2761_v34 = vsel %vm1529_vm0, %v2759_v48, %v2760_v23  ;;  %v2473_v55 = vrot.slane %v2433_v58, 2  ;;  %v2474_v54 = vrot.slane %v2441_v31, 2  ;;  %v2537_v2 = vmul.f32 %v8153_v49, %v10308_v59  ;;  %10309 = vst [vmem:[#allocation55_spill] sm:$0xff] %v8427_v15  ;;  %v5471_v51 = vld [vmem:[%s7514_s9 + $0x1e0] sm:$0x1]  ;;  %v10310_v31 = vld [vmem:[#allocation36_spill] sm:$0xff] }
 0x20a   : > { %5477 = vst [vmem:[%s7675_s27 + $0x90] sm:$0x7f] %v2784_v13  ;;  %v2640_v41 = vadd.f32 %v2616_v36, %v2568_v32  ;;  %v2425_v10 = vadd.f32 %v2409_v43, %v2377_v18  ;;  %v2577_v62 = vmul.f32 %v8153_v49, %v10258_v35  ;;  %v2585_v17 = vmul.f32 %v5455_v3, %v10258_v35  ;;  %v10311_v48 = vld [vmem:[#allocation37_spill] sm:$0xff]  ;;  %v5432_v36 = vld [vmem:[%s7514_s9 + $0xa8] sm:$0xff] }
 0x20b   : > { %v2475_v9 = vsel %vm1529_vm0, %v2473_v55, %v2474_v54  ;;  %v2553_v12 = vrot.slane %v2537_v2, 1  ;;  %v2666_v29 = vmul.f32 %v8427_v15, %v10310_v31  ;;  %v2682_v13 = vmul.f32 %v8427_v15, %v10311_v48  ;;  %v5440_v58 = vld [vmem:[%s7514_s9 + $0xe8] sm:$0x1]  ;;  %v8438_v32 = vld [vmem:[%s7497_s16 + $0x60] ss:$0 sm:$0xff] }
 0x20c   : > { %v2673_v43 = vadd.f32 %v2665_v61, %v2640_v41  ;;  %v2497_v18 = vadd.f32 %v2475_v9, %v2425_v10  ;;  %v2617_v23 = vrot.slane %v2577_v62, 2  ;;  %v2618_v49 = vrot.slane %v2585_v17, 2  ;;  %10312 = vst [vmem:[#allocation5_spill] sm:$0xff] %v8438_v32  ;;  %v10313_v2 = vld [vmem:[#allocation29_spill] sm:$0xff]  ;;  %v10314_v41 = vld [vmem:[#allocation32_spill] sm:$0xff]  ;;  %v10315_v9 = vld [vmem:[#allocation46_spill] sm:$0xff] }
 0x20d   : > { %v2698_v3 = vrot.slane %v2682_v13, 1  ;;  %v2722_v55 = vmul.f32 %v8438_v32, %v8427_v15  ;;  %v2730_v54 = vmul.f32 %v8438_v32, %v5471_v51  ;;  %v2378_v31 = vmul.f32 %v5432_v36, %v10313_v2  ;;  %v5456_v15 = vld [vmem:[%s7514_s9 + $0x168] sm:$0x1]  ;;  %v10316_v2 = vld [vmem:[#allocation40_spill] sm:$0xff] }
 0x20e   : > { %v2713_v35 = vadd.f32 %v2697_v4, %v2673_v43  ;;  %v2529_v59 = vadd.f32 %v2521_v56, %v2497_v18  ;;  %v2619_v61 = vsel %vm1529_vm0, %v2617_v23, %v2618_v49  ;;  %v2394_v10 = vmul.f32 %v5432_v36, %v10314_v41  ;;  %v10317_v23 = vld [vmem:[#allocation41_spill] sm:$0xff] }
 0x20f   : > { %v2762_v62 = vrot.slane %v2722_v55, 2  ;;  %v2763_v17 = vrot.slane %v2730_v54, 2  ;;  %v2434_v13 = vmul.f32 %v5432_v36, %v10315_v9  ;;  %v2442_v48 = vmul.f32 %v5440_v58, %v10315_v9  ;;  %v10318_v55 = vld [vmem:[#allocation43_spill] sm:$0xff] }
 0x210   : > { %v2785_v7 = vadd.f32 %v2761_v34, %v2713_v35  ;;  %v2569_v51 = vadd.f32 %v2553_v12, %v2529_v59  ;;  %v2410_v32 = vrot.slane %v2394_v10, 1  ;;  %v2522_v4 = vmul.f32 %v8188_v46, %v10316_v2  ;;  %v8459_v59 = vld [vmem:[%s7514_s9 + $0x1a8] sm:$0xff] }
 0x211   : > { %v2764_v56 = vsel %vm1529_vm0, %v2762_v62, %v2763_v17  ;;  %v2476_v43 = vrot.slane %v2434_v13, 2  ;;  %v2477_v18 = vrot.slane %v2442_v48, 2  ;;  %v2538_v49 = vmul.f32 %v8188_v46, %v10317_v23  ;;  %v5472_v12 = vld [vmem:[%s7514_s9 + $0x1e8] sm:$0x1]  ;;  %v10319_v48 = vld [vmem:[#allocation44_spill] sm:$0xff]  ;;  %v10320_v17 = vld [vmem:[#allocation45_spill] sm:$0xff] }
 0x212   : > { %5478 = vst [vmem:[%s7675_s27 + $0x98] sm:$0x7f] %v2785_v7  ;;  %v2641_v36 = vadd.f32 %v2619_v61, %v2569_v51  ;;  %v2426_v58 = vadd.f32 %v2410_v32, %v2378_v31  ;;  %v2578_v35 = vmul.f32 %v8188_v46, %v10318_v55  ;;  %v2586_v34 = vmul.f32 %v5456_v15, %v10318_v55  ;;  %v5433_v61 = vld [vmem:[%s7514_s9 + $0xb0] sm:$0xff]  ;;  %v8470_v55 = vld [vmem:[%s7497_s16 + $0x68] ss:$0 sm:$0xff] }
 0x213   : > { %v2478_v54 = vsel %vm1529_vm0, %v2476_v43, %v2477_v18  ;;  %v2554_v10 = vrot.slane %v2538_v49, 1  ;;  %v2667_v62 = vmul.f32 %v8459_v59, %v10319_v48  ;;  %v2683_v7 = vmul.f32 %v8459_v59, %v10320_v17  ;;  %v5441_v51 = vld [vmem:[%s7514_s9 + $0xf0] sm:$0x1]  ;;  %10321 = vst [vmem:[#allocation60_spill] sm:$0xff] %v8470_v55 }
 0x214   : > { %v2674_v31 = vadd.f32 %v2666_v29, %v2641_v36  ;;  %v2498_v32 = vadd.f32 %v2478_v54, %v2426_v58  ;;  %v2620_v13 = vrot.slane %v2578_v35, 2  ;;  %v2621_v46 = vrot.slane %v2586_v34, 2 }
 0x215   : > { %v2699_v15 = vrot.slane %v2683_v7, 1  ;;  %v2723_v43 = vmul.f32 %v8470_v55, %v8459_v59  ;;  %v2731_v18 = vmul.f32 %v8470_v55, %v5472_v12  ;;  %v2379_v49 = vmul.f32 %v5433_v61, %v8206_v28  ;;  %v5457_v7 = vld [vmem:[%s7514_s9 + $0x170] sm:$0x1]  ;;  %v10322_v28 = vld [vmem:[#allocation48_spill] sm:$0xff] }
 0x216   : > { %v2714_v48 = vadd.f32 %v2698_v3, %v2674_v31  ;;  %v2530_v23 = vadd.f32 %v2522_v4, %v2498_v32  ;;  %v2622_v29 = vsel %vm1529_vm0, %v2620_v13, %v2621_v46  ;;  %v2395_v36 = vmul.f32 %v5433_v61, %v8211_v42  ;;  %v10323_v13 = vld [vmem:[#allocation49_spill] sm:$0xff] }
 0x217   : > { %v2765_v58 = vrot.slane %v2723_v43, 2  ;;  %v2766_v35 = vrot.slane %v2731_v18, 2  ;;  %v2435_v34 = vmul.f32 %v5433_v61, %v7903_v5  ;;  %v2443_v54 = vmul.f32 %v5441_v51, %v7903_v5  ;;  %v10324_v43 = vld [vmem:[#allocation50_spill] sm:$0xff] }
 0x218   : > { %v2786_v17 = vadd.f32 %v2764_v56, %v2714_v48  ;;  %v2570_v12 = vadd.f32 %v2554_v10, %v2530_v23  ;;  %v2411_v55 = vrot.slane %v2395_v36, 1  ;;  %v2523_v3 = vmul.f32 %v8230_v30, %v10322_v28  ;;  %v8491_v10 = vld [vmem:[%s7514_s9 + $0x1b0] sm:$0xff] }
 0x219   : > { %v2767_v4 = vsel %vm1529_vm0, %v2765_v58, %v2766_v35  ;;  %v2479_v31 = vrot.slane %v2435_v34, 2  ;;  %v2480_v32 = vrot.slane %v2443_v54, 2  ;;  %v2539_v46 = vmul.f32 %v8230_v30, %v10323_v13  ;;  %v5473_v48 = vld [vmem:[%s7514_s9 + $0x1f0] sm:$0x1]  ;;  %v10325_v35 = vld [vmem:[#allocation53_spill] sm:$0xff] }
 0x21a   : > { %5479 = vst [vmem:[%s7675_s27 + $0xa0] sm:$0x7f] %v2786_v17  ;;  %v2642_v61 = vadd.f32 %v2622_v29, %v2570_v12  ;;  %v2427_v51 = vadd.f32 %v2411_v55, %v2379_v49  ;;  %v2579_v56 = vmul.f32 %v8230_v30, %v10324_v43  ;;  %v2587_v23 = vmul.f32 %v5457_v7, %v10324_v43  ;;  %v5434_v29 = vld [vmem:[%s7514_s9 + $0xb8] sm:$0xff]  ;;  %v8502_v12 = vld [vmem:[%s7497_s16 + $0x70] ss:$0 sm:$0xff] }
 0x21b   : > { %v2481_v18 = vsel %vm1529_vm0, %v2479_v31, %v2480_v32  ;;  %v2555_v36 = vrot.slane %v2539_v46, 1  ;;  %v2668_v58 = vmul.f32 %v8491_v10, %v10276_v63  ;;  %v2684_v17 = vmul.f32 %v8491_v10, %v10325_v35  ;;  %v5442_v54 = vld [vmem:[%s7514_s9 + $0xf8] sm:$0x1]  ;;  %10326 = vst [vmem:[#allocation12_spill] sm:$0xff] %v8502_v12 }
 0x21c   : > { %v2675_v55 = vadd.f32 %v2667_v62, %v2642_v61  ;;  %v2499_v49 = vadd.f32 %v2481_v18, %v2427_v51  ;;  %v2623_v34 = vrot.slane %v2579_v56, 2  ;;  %v2624_v30 = vrot.slane %v2587_v23, 2 }
 0x21d   : > { %v2700_v7 = vrot.slane %v2684_v17, 1  ;;  %v2724_v31 = vmul.f32 %v8502_v12, %v8491_v10  ;;  %v2732_v32 = vmul.f32 %v8502_v12, %v5473_v48  ;;  %v2380_v46 = vmul.f32 %v5434_v29, %v8246_v19  ;;  %v5458_v17 = vld [vmem:[%s7514_s9 + $0x178] sm:$0x1]  ;;  %v10327_v19 = vld [vmem:[#allocation54_spill] sm:$0xff] }
 0x21e   : > { %v2715_v63 = vadd.f32 %v2699_v15, %v2675_v55  ;;  %v2531_v43 = vadd.f32 %v2523_v3, %v2499_v49  ;;  %v2625_v62 = vsel %vm1529_vm0, %v2623_v34, %v2624_v30  ;;  %v2396_v61 = vmul.f32 %v5434_v29, %v8250_v6  ;;  %v10328_v34 = vld [vmem:[#allocation56_spill] sm:$0xff] }
 0x21f   : > { %v2768_v51 = vrot.slane %v2724_v31, 2  ;;  %v2769_v56 = vrot.slane %v2732_v32, 2  ;;  %v2436_v23 = vmul.f32 %v5434_v29, %v7958_v40  ;;  %v2444_v18 = vmul.f32 %v5442_v54, %v7958_v40  ;;  %v10329_v31 = vld [vmem:[#allocation57_spill] sm:$0xff] }
 0x220   : > { %v2787_v35 = vadd.f32 %v2767_v4, %v2715_v63  ;;  %v2571_v48 = vadd.f32 %v2555_v36, %v2531_v43  ;;  %v2412_v12 = vrot.slane %v2396_v61, 1  ;;  %v2524_v15 = vmul.f32 %v8266_v27, %v10327_v19  ;;  %v8523_v43 = vld [vmem:[%s7514_s9 + $0x1b8] sm:$0xff] }
 0x221   : > { %v2770_v3 = vsel %vm1529_vm0, %v2768_v51, %v2769_v56  ;;  %v2482_v55 = vrot.slane %v2436_v23, 2  ;;  %v2483_v49 = vrot.slane %v2444_v18, 2  ;;  %v2540_v30 = vmul.f32 %v8266_v27, %v10328_v34  ;;  %v5474_v36 = vld [vmem:[%s7514_s9 + $0x1f8] sm:$0x1]  ;;  %v10330_v51 = vld [vmem:[#allocation58_spill] sm:$0xff]  ;;  %v10331_v23 = vld [vmem:[#allocation59_spill] sm:$0xff] }
 0x222   : > { %5480 = vst [vmem:[%s7675_s27 + $0xa8] sm:$0x7f] %v2787_v35  ;;  %v2643_v29 = vadd.f32 %v2625_v62, %v2571_v48  ;;  %v2428_v54 = vadd.f32 %v2412_v12, %v2380_v46  ;;  %v2580_v63 = vmul.f32 %v8266_v27, %v10329_v31  ;;  %v2588_v4 = vmul.f32 %v5458_v17, %v10329_v31  ;;  %v5483_v62 = vld [vmem:[%s7514_s9 + $0x100] sm:$0xff]  ;;  %v8534_v31 = vld [vmem:[%s7497_s16 + $0x78] ss:$0 sm:$0xff] }
 0x223   : > { %v2484_v32 = vsel %vm1529_vm0, %v2482_v55, %v2483_v49  ;;  %v2556_v61 = vrot.slane %v2540_v30, 1  ;;  %v2669_v56 = vmul.f32 %v8523_v43, %v10330_v51  ;;  %v2685_v35 = vmul.f32 %v8523_v43, %v10331_v23  ;;  %v5491_v48 = vld [vmem:[%s7514_s9 + $0x140] sm:$0x1]  ;;  %10332 = vst [vmem:[#allocation7_spill] sm:$0xff] %v8534_v31 }
 0x224   : > { %v2676_v12 = vadd.f32 %v2668_v58, %v2643_v29  ;;  %v2500_v46 = vadd.f32 %v2484_v32, %v2428_v54  ;;  %v2626_v18 = vrot.slane %v2580_v63, 2  ;;  %v2627_v27 = vrot.slane %v2588_v4, 2 }
 0x225   : > { %v2701_v17 = vrot.slane %v2685_v35, 1  ;;  %v2725_v55 = vmul.f32 %v8534_v31, %v8523_v43  ;;  %v2733_v49 = vmul.f32 %v8534_v31, %v5474_v36  ;;  %v2815_v30 = vmul.f32 %v5483_v62, %v7974_v25  ;;  %v5507_v35 = vld [vmem:[%s7514_s9 + $0x1c0] sm:$0x1] }
 0x226   : > { %v2716_v51 = vadd.f32 %v2700_v7, %v2676_v12  ;;  %v2532_v34 = vadd.f32 %v2524_v15, %v2500_v46  ;;  %v2628_v58 = vsel %vm1529_vm0, %v2626_v18, %v2627_v27  ;;  %v2831_v29 = vmul.f32 %v5483_v62, %v7982_v33 }
 0x227   : > { %v2771_v54 = vrot.slane %v2725_v55, 2  ;;  %v2772_v63 = vrot.slane %v2733_v49, 2  ;;  %v2871_v4 = vmul.f32 %v5483_v62, %v7573_v0  ;;  %v2879_v32 = vmul.f32 %v5491_v48, %v7573_v0 }
 0x228   : > { %v2788_v23 = vadd.f32 %v2770_v3, %v2716_v51  ;;  %v2572_v36 = vadd.f32 %v2556_v61, %v2532_v34  ;;  %v2847_v31 = vrot.slane %v2831_v29, 1  ;;  %v2959_v7 = vmul.f32 %v8298_v1, %v7529_v44  ;;  %v8555_v61 = vld [vmem:[%s7514_s9 + $0x200] sm:$0xff]  ;;  %v10333_v29 = vld [vmem:[#allocation6_spill] sm:$0xff] }
 0x229   : > { %v2773_v15 = vsel %vm1529_vm0, %v2771_v54, %v2772_v63  ;;  %v2903_v12 = vrot.slane %v2871_v4, 2  ;;  %v2904_v46 = vrot.slane %v2879_v32, 2  ;;  %v2975_v18 = vmul.f32 %v8298_v1, %v7533_v45  ;;  %v5523_v51 = vld [vmem:[%s7514_s9 + $0x240] sm:$0x1]  ;;  %v5484_v54 = vld [vmem:[%s7514_s9 + $0x108] sm:$0xff] }
 0x22a   : > { %5481 = vst [vmem:[%s7675_s27 + $0xb0] sm:$0x7f] %v2788_v23  ;;  %v2644_v62 = vadd.f32 %v2628_v58, %v2572_v36  ;;  %v2863_v27 = vadd.f32 %v2847_v31, %v2815_v30  ;;  %v3015_v3 = vmul.f32 %v8298_v1, %v10285_v38  ;;  %v3023_v34 = vmul.f32 %v5507_v35, %v10285_v38  ;;  %v5492_v63 = vld [vmem:[%s7514_s9 + $0x148] sm:$0x1] }
 0x22b   : > { %v2905_v48 = vsel %vm1529_vm0, %v2903_v12, %v2904_v46  ;;  %v2991_v55 = vrot.slane %v2975_v18, 1  ;;  %v3104_v49 = vmul.f32 %v8555_v61, %v7547_v50  ;;  %v3120_v23 = vmul.f32 %v8555_v61, %v10333_v29 }
 0x22c   : > { %v2677_v58 = vadd.f32 %v2669_v56, %v2644_v62  ;;  %v2935_v31 = vadd.f32 %v2905_v48, %v2863_v27  ;;  %v3047_v30 = vrot.slane %v3015_v3, 2  ;;  %v3048_v1 = vrot.slane %v3023_v34, 2  ;;  %v5508_v48 = vld [vmem:[%s7514_s9 + $0x1c8] sm:$0x1] }
 0x22d   : > { %v3136_v4 = vrot.slane %v3120_v23, 1  ;;  %v3160_v32 = vmul.f32 %v8309_v53, %v8555_v61  ;;  %v3168_v35 = vmul.f32 %v8309_v53, %v5523_v51  ;;  %v2816_v36 = vmul.f32 %v5484_v54, %v8010_v20 }
 0x22e   : > { %v2717_v12 = vadd.f32 %v2701_v17, %v2677_v58  ;;  %v2967_v46 = vadd.f32 %v2959_v7, %v2935_v31  ;;  %v3049_v18 = vsel %vm1529_vm0, %v3047_v30, %v3048_v1  ;;  %v2832_v56 = vmul.f32 %v5484_v54, %v10287_v8  ;;  %v10334_v30 = vld [vmem:[#allocation8_spill] sm:$0xff] }
 0x22f   : > { %v3192_v62 = vrot.slane %v3160_v32, 2  ;;  %v3193_v27 = vrot.slane %v3168_v35, 2  ;;  %v2872_v3 = vmul.f32 %v5484_v54, %v10288_v37  ;;  %v2880_v34 = vmul.f32 %v5492_v63, %v10288_v37  ;;  %v8584_v32 = vld [vmem:[%s7514_s9 + $0x208] sm:$0xff] }
 0x230   : > { %v2789_v23 = vadd.f32 %v2773_v15, %v2717_v12  ;;  %v3007_v53 = vadd.f32 %v2991_v55, %v2967_v46  ;;  %v2848_v51 = vrot.slane %v2832_v56, 1  ;;  %v2960_v17 = vmul.f32 %v8329_v24, %v10289_v60  ;;  %v5524_v35 = vld [vmem:[%s7514_s9 + $0x248] sm:$0x1] }
 0x231   : > { %v3194_v7 = vsel %vm1529_vm0, %v3192_v62, %v3193_v27  ;;  %v2906_v58 = vrot.slane %v2872_v3, 2  ;;  %v2907_v31 = vrot.slane %v2880_v34, 2  ;;  %v2976_v1 = vmul.f32 %v8329_v24, %v10334_v30  ;;  %v10335_v62 = vld [vmem:[#allocation11_spill] sm:$0xff] }
 0x232   : > { %5482 = vst [vmem:[%s7675_s27 + $0xb8] sm:$0x7f] %v2789_v23  ;;  %v3079_v54 = vadd.f32 %v3049_v18, %v3007_v53  ;;  %v2864_v63 = vadd.f32 %v2848_v51, %v2816_v36  ;;  %v3016_v15 = vmul.f32 %v8329_v24, %v7594_v11  ;;  %v3024_v55 = vmul.f32 %v5508_v48, %v7594_v11  ;;  %v5485_v3 = vld [vmem:[%s7514_s9 + $0x110] sm:$0xff]  ;;  %v10336_v53 = vld [vmem:[#allocation42_spill] sm:$0xff] }
 0x233   : > { %v2908_v12 = vsel %vm1529_vm0, %v2906_v58, %v2907_v31  ;;  %v2992_v46 = vrot.slane %v2976_v1, 1  ;;  %v3105_v56 = vmul.f32 %v8584_v32, %v7602_v14  ;;  %v3121_v27 = vmul.f32 %v8584_v32, %v10335_v62  ;;  %v5493_v23 = vld [vmem:[%s7514_s9 + $0x150] sm:$0x1] }
 0x234   : > { %v3112_v18 = vadd.f32 %v3104_v49, %v3079_v54  ;;  %v2936_v36 = vadd.f32 %v2908_v12, %v2864_v63  ;;  %v3050_v34 = vrot.slane %v3016_v15, 2  ;;  %v3051_v24 = vrot.slane %v3024_v55, 2  ;;  %v5509_v12 = vld [vmem:[%s7514_s9 + $0x1d0] sm:$0x1] }
 0x235   : > { %v3137_v48 = vrot.slane %v3121_v27, 1  ;;  %v3161_v51 = vmul.f32 %v10336_v53, %v8584_v32  ;;  %v3169_v58 = vmul.f32 %v10336_v53, %v5524_v35  ;;  %v2817_v31 = vmul.f32 %v5485_v3, %v8050_v39 }
 0x236   : > { %v3152_v1 = vadd.f32 %v3136_v4, %v3112_v18  ;;  %v2968_v14 = vadd.f32 %v2960_v17, %v2936_v36  ;;  %v3052_v62 = vsel %vm1529_vm0, %v3050_v34, %v3051_v24  ;;  %v2833_v49 = vmul.f32 %v5485_v3, %v8055_v52 }
 0x237   : > { %v3195_v54 = vrot.slane %v3161_v51, 2  ;;  %v3196_v63 = vrot.slane %v3169_v58, 2  ;;  %v2873_v15 = vmul.f32 %v5485_v3, %v7683_v26  ;;  %v2881_v55 = vmul.f32 %v5493_v23, %v7683_v26  ;;  %v10337_v23 = vld [vmem:[#allocation15_spill] sm:$0xff] }
 0x238   : > { %v3224_v27 = vadd.f32 %v3194_v7, %v3152_v1  ;;  %v3008_v35 = vadd.f32 %v2992_v46, %v2968_v14  ;;  %v2849_v53 = vrot.slane %v2833_v49, 1  ;;  %v2961_v4 = vmul.f32 %v8363_v21, %v7632_v47  ;;  %v8613_v46 = vld [vmem:[%s7514_s9 + $0x210] sm:$0xff]  ;;  %v10339_v49 = vld [vmem:[#allocation16_spill] sm:$0xff]  ;;  %v10343_v47 = vld [vmem:[#allocation62_spill] sm:$0xff] }
 0x239   : > { %v3197_v17 = vsel %vm1529_vm0, %v3195_v54, %v3196_v63  ;;  %v2909_v18 = vrot.slane %v2873_v15, 2  ;;  %v2910_v36 = vrot.slane %v2881_v55, 2  ;;  %v2977_v34 = vmul.f32 %v8363_v21, %v7643_v57  ;;  %10338 = vst [vmem:[#allocation22_spill] sm:$0xff] %v8613_v46  ;;  %v5525_v51 = vld [vmem:[%s7514_s9 + $0x250] sm:$0x1]  ;;  %v10340_v63 = vld [vmem:[#allocation17_spill] sm:$0xff] }
 0x23a   : > { %5531 = vst [vmem:[%s7675_s27 + $0xc0] sm:$0x7f] %v3224_v27  ;;  %v3080_v3 = vadd.f32 %v3052_v62, %v3008_v35  ;;  %v2865_v24 = vadd.f32 %v2849_v53, %v2817_v31  ;;  %v3017_v7 = vmul.f32 %v8363_v21, %v10337_v23  ;;  %v3025_v14 = vmul.f32 %v5509_v12, %v10337_v23  ;;  %v5486_v55 = vld [vmem:[%s7514_s9 + $0x118] sm:$0xff]  ;;  %v10341_v53 = vld [vmem:[#allocation39_spill] sm:$0xff] }
 0x23b   : > { %v2911_v58 = vsel %vm1529_vm0, %v2909_v18, %v2910_v36  ;;  %v2993_v1 = vrot.slane %v2977_v34, 1  ;;  %v3106_v54 = vmul.f32 %v8613_v46, %v10339_v49  ;;  %v3122_v15 = vmul.f32 %v8613_v46, %v10340_v63  ;;  %v5494_v35 = vld [vmem:[%s7514_s9 + $0x158] sm:$0x1]  ;;  %v10342_v36 = vld [vmem:[#allocation19_spill] sm:$0xff] }
 0x23c   : > { %v3113_v62 = vadd.f32 %v3105_v56, %v3080_v3  ;;  %v2937_v31 = vadd.f32 %v2911_v58, %v2865_v24  ;;  %v3053_v27 = vrot.slane %v3017_v7, 2  ;;  %v3054_v21 = vrot.slane %v3025_v14, 2  ;;  %v10344_v7 = vld [vmem:[#allocation28_spill] sm:$0xff] }
 0x23d   : > { %v3138_v12 = vrot.slane %v3122_v15, 1  ;;  %v3162_v23 = vmul.f32 %v10341_v53, %v8613_v46  ;;  %v3170_v18 = vmul.f32 %v10341_v53, %v5525_v51  ;;  %v2818_v34 = vmul.f32 %v5486_v55, %v10342_v36  ;;  %v5510_v15 = vld [vmem:[%s7514_s9 + $0x1d8] sm:$0x1] }
 0x23e   : > { %v3153_v57 = vadd.f32 %v3137_v48, %v3113_v62  ;;  %v2969_v49 = vadd.f32 %v2961_v4, %v2937_v31  ;;  %v3055_v63 = vsel %vm1529_vm0, %v3053_v27, %v3054_v21  ;;  %v2834_v56 = vmul.f32 %v5486_v55, %v10343_v47  ;;  %v10345_v36 = vld [vmem:[#allocation20_spill] sm:$0xff]  ;;  %v10346_v48 = vld [vmem:[#allocation51_spill] sm:$0xff] }
 0x23f   : > { %v3198_v3 = vrot.slane %v3162_v23, 2  ;;  %v3199_v24 = vrot.slane %v3170_v18, 2  ;;  %v2874_v14 = vmul.f32 %v5486_v55, %v10344_v7  ;;  %v2882_v58 = vmul.f32 %v5494_v35, %v10344_v7  ;;  %v10347_v23 = vld [vmem:[#allocation23_spill] sm:$0xff]  ;;  %v10348_v18 = vld [vmem:[#allocation24_spill] sm:$0xff] }
 0x240   : > { %v3225_v46 = vadd.f32 %v3197_v17, %v3153_v57  ;;  %v3009_v51 = vadd.f32 %v2993_v1, %v2969_v49  ;;  %v2850_v53 = vrot.slane %v2834_v56, 1  ;;  %v2962_v4 = vmul.f32 %v10346_v48, %v10345_v36  ;;  %v8642_v1 = vld [vmem:[%s7514_s9 + $0x218] sm:$0xff] }
 0x241   : > { %v3200_v62 = vsel %vm1529_vm0, %v3198_v3, %v3199_v24  ;;  %v2912_v31 = vrot.slane %v2874_v14, 2  ;;  %v2913_v27 = vrot.slane %v2882_v58, 2  ;;  %v2978_v21 = vmul.f32 %v10346_v48, %v10347_v23  ;;  %v5526_v49 = vld [vmem:[%s7514_s9 + $0x258] sm:$0x1]  ;;  %v10349_v24 = vld [vmem:[#allocation25_spill] sm:$0xff]  ;;  %v10350_v58 = vld [vmem:[#allocation27_spill] sm:$0xff] }
 0x242   : > { %5532 = vst [vmem:[%s7675_s27 + $0xc8] sm:$0x7f] %v3225_v46  ;;  %v3081_v55 = vadd.f32 %v3055_v63, %v3009_v51  ;;  %v2866_v35 = vadd.f32 %v2850_v53, %v2818_v34  ;;  %v3018_v57 = vmul.f32 %v10346_v48, %v10348_v18  ;;  %v3026_v17 = vmul.f32 %v5510_v15, %v10348_v18  ;;  %v5487_v23 = vld [vmem:[%s7514_s9 + $0x120] sm:$0xff]  ;;  %v10351_v18 = vld [vmem:[#allocation47_spill] sm:$0xff] }
 0x243   : > { %v2914_v56 = vsel %vm1529_vm0, %v2912_v31, %v2913_v27  ;;  %v2994_v3 = vrot.slane %v2978_v21, 1  ;;  %v3107_v14 = vmul.f32 %v8642_v1, %v10349_v24  ;;  %v3123_v46 = vmul.f32 %v8642_v1, %v10350_v58  ;;  %v5495_v48 = vld [vmem:[%s7514_s9 + $0x160] sm:$0x1]  ;;  %v10352_v27 = vld [vmem:[#allocation26_spill] sm:$0xff] }
 0x244   : > { %v3114_v63 = vadd.f32 %v3106_v54, %v3081_v55  ;;  %v2938_v34 = vadd.f32 %v2914_v56, %v2866_v35  ;;  %v3056_v51 = vrot.slane %v3018_v57, 2  ;;  %v3057_v53 = vrot.slane %v3026_v17, 2  ;;  %v5511_v56 = vld [vmem:[%s7514_s9 + $0x1e0] sm:$0x1] }
 0x245   : > { %v3139_v15 = vrot.slane %v3123_v46, 1  ;;  %v3163_v36 = vmul.f32 %v10351_v18, %v8642_v1  ;;  %v3171_v31 = vmul.f32 %v10351_v18, %v5526_v49  ;;  %v2819_v21 = vmul.f32 %v5487_v23, %v10352_v27  ;;  %v10353_v27 = vld [vmem:[#allocation31_spill] sm:$0xff] }
 0x246   : > { %v3154_v7 = vadd.f32 %v3138_v12, %v3114_v63  ;;  %v2970_v24 = vadd.f32 %v2962_v4, %v2938_v34  ;;  %v3058_v58 = vsel %vm1529_vm0, %v3056_v51, %v3057_v53  ;;  %v2835_v54 = vmul.f32 %v5487_v23, %v10305_v22  ;;  %v10354_v12 = vld [vmem:[#allocation55_spill] sm:$0xff] }
 0x247   : > { %v3201_v55 = vrot.slane %v3163_v36, 2  ;;  %v3202_v35 = vrot.slane %v3171_v31, 2  ;;  %v2875_v57 = vmul.f32 %v5487_v23, %v10306_v16  ;;  %v2883_v17 = vmul.f32 %v5495_v48, %v10306_v16  ;;  %v10355_v36 = vld [vmem:[#allocation33_spill] sm:$0xff]  ;;  %v10356_v31 = vld [vmem:[#allocation34_spill] sm:$0xff] }
 0x248   : > { %v3226_v46 = vadd.f32 %v3200_v62, %v3154_v7  ;;  %v3010_v18 = vadd.f32 %v2994_v3, %v2970_v24  ;;  %v2851_v49 = vrot.slane %v2835_v54, 1  ;;  %v2963_v4 = vmul.f32 %v10354_v12, %v10353_v27  ;;  %v8671_v3 = vld [vmem:[%s7514_s9 + $0x220] sm:$0xff] }
 0x249   : > { %v3203_v63 = vsel %vm1529_vm0, %v3201_v55, %v3202_v35  ;;  %v2915_v34 = vrot.slane %v2875_v57, 2  ;;  %v2916_v51 = vrot.slane %v2883_v17, 2  ;;  %v2979_v53 = vmul.f32 %v10354_v12, %v10355_v36  ;;  %v5527_v24 = vld [vmem:[%s7514_s9 + $0x260] sm:$0x1]  ;;  %v10357_v35 = vld [vmem:[#allocation36_spill] sm:$0xff]  ;;  %v5488_v36 = vld [vmem:[%s7514_s9 + $0x128] sm:$0xff] }
 0x24a   : > { %5533 = vst [vmem:[%s7675_s27 + $0xd0] sm:$0x7f] %v3226_v46  ;;  %v3082_v23 = vadd.f32 %v3058_v58, %v3010_v18  ;;  %v2867_v48 = vadd.f32 %v2851_v49, %v2819_v21  ;;  %v3019_v7 = vmul.f32 %v10354_v12, %v10356_v31  ;;  %v3027_v62 = vmul.f32 %v5511_v56, %v10356_v31  ;;  %v10358_v17 = vld [vmem:[#allocation37_spill] sm:$0xff]  ;;  %v5496_v12 = vld [vmem:[%s7514_s9 + $0x168] sm:$0x1] }
 0x24b   : > { %v2917_v54 = vsel %vm1529_vm0, %v2915_v34, %v2916_v51  ;;  %v2995_v55 = vrot.slane %v2979_v53, 1  ;;  %v3108_v57 = vmul.f32 %v8671_v3, %v10357_v35  ;;  %v3124_v46 = vmul.f32 %v8671_v3, %v10358_v17  ;;  %v10359_v31 = vld [vmem:[#allocation5_spill] sm:$0xff] }
 0x24c   : > { %v3115_v58 = vadd.f32 %v3107_v14, %v3082_v23  ;;  %v2939_v21 = vadd.f32 %v2917_v54, %v2867_v48  ;;  %v3059_v18 = vrot.slane %v3019_v7, 2  ;;  %v3060_v49 = vrot.slane %v3027_v62, 2  ;;  %v10360_v51 = vld [vmem:[#allocation29_spill] sm:$0xff]  ;;  %v5512_v54 = vld [vmem:[%s7514_s9 + $0x1e8] sm:$0x1] }
 0x24d   : > { %v3140_v56 = vrot.slane %v3124_v46, 1  ;;  %v3164_v27 = vmul.f32 %v10359_v31, %v8671_v3  ;;  %v3172_v34 = vmul.f32 %v10359_v31, %v5527_v24  ;;  %v2820_v53 = vmul.f32 %v5488_v36, %v10360_v51 }
 0x24e   : > { %v3155_v16 = vadd.f32 %v3139_v15, %v3115_v58  ;;  %v2971_v35 = vadd.f32 %v2963_v4, %v2939_v21  ;;  %v3061_v17 = vsel %vm1529_vm0, %v3059_v18, %v3060_v49  ;;  %v2836_v14 = vmul.f32 %v5488_v36, %v10314_v41 }
 0x24f   : > { %v3204_v23 = vrot.slane %v3164_v27, 2  ;;  %v3205_v48 = vrot.slane %v3172_v34, 2  ;;  %v2876_v7 = vmul.f32 %v5488_v36, %v10315_v9  ;;  %v2884_v62 = vmul.f32 %v5496_v12, %v10315_v9  ;;  %v10361_v27 = vld [vmem:[#allocation41_spill] sm:$0xff]  ;;  %v10362_v12 = vld [vmem:[#allocation43_spill] sm:$0xff] }
 0x250   : > { %v3227_v46 = vadd.f32 %v3203_v63, %v3155_v16  ;;  %v3011_v31 = vadd.f32 %v2995_v55, %v2971_v35  ;;  %v2852_v24 = vrot.slane %v2836_v14, 1  ;;  %v2964_v15 = vmul.f32 %v8459_v59, %v10316_v2  ;;  %v8700_v55 = vld [vmem:[%s7514_s9 + $0x228] sm:$0xff] }
 0x251   : > { %v3206_v4 = vsel %vm1529_vm0, %v3204_v23, %v3205_v48  ;;  %v2918_v58 = vrot.slane %v2876_v7, 2  ;;  %v2919_v21 = vrot.slane %v2884_v62, 2  ;;  %v2980_v18 = vmul.f32 %v8459_v59, %v10361_v27  ;;  %v5528_v35 = vld [vmem:[%s7514_s9 + $0x268] sm:$0x1]  ;;  %v10363_v23 = vld [vmem:[#allocation44_spill] sm:$0xff]  ;;  %v10364_v7 = vld [vmem:[#allocation45_spill] sm:$0xff] }
 0x252   : > { %5534 = vst [vmem:[%s7675_s27 + $0xd8] sm:$0x7f] %v3227_v46  ;;  %v3083_v36 = vadd.f32 %v3061_v17, %v3011_v31  ;;  %v2868_v49 = vadd.f32 %v2852_v24, %v2820_v53  ;;  %v3020_v16 = vmul.f32 %v8459_v59, %v10362_v12  ;;  %v3028_v63 = vmul.f32 %v5512_v54, %v10362_v12  ;;  %v5489_v46 = vld [vmem:[%s7514_s9 + $0x130] sm:$0xff]  ;;  %v10365_v12 = vld [vmem:[#allocation60_spill] sm:$0xff] }
 0x253   : > { %v2920_v34 = vsel %vm1529_vm0, %v2918_v58, %v2919_v21  ;;  %v2996_v14 = vrot.slane %v2980_v18, 1  ;;  %v3109_v48 = vmul.f32 %v8700_v55, %v10363_v23  ;;  %v3125_v62 = vmul.f32 %v8700_v55, %v10364_v7  ;;  %v5497_v24 = vld [vmem:[%s7514_s9 + $0x170] sm:$0x1] }
 0x254   : > { %v3116_v17 = vadd.f32 %v3108_v57, %v3083_v36  ;;  %v2940_v53 = vadd.f32 %v2920_v34, %v2868_v49  ;;  %v3062_v31 = vrot.slane %v3020_v16, 2  ;;  %v3063_v59 = vrot.slane %v3028_v63, 2  ;;  %v10366_v21 = vld [vmem:[#allocation35_spill] sm:$0xff] }
 0x255   : > { %v3141_v54 = vrot.slane %v3125_v62, 1  ;;  %v3165_v27 = vmul.f32 %v10365_v12, %v8700_v55  ;;  %v3173_v58 = vmul.f32 %v10365_v12, %v5528_v35  ;;  %v2821_v18 = vmul.f32 %v5489_v46, %v10366_v21  ;;  %v5513_v34 = vld [vmem:[%s7514_s9 + $0x1f0] sm:$0x1] }
 0x256   : > { %v3156_v2 = vadd.f32 %v3140_v56, %v3116_v17  ;;  %v2972_v23 = vadd.f32 %v2964_v15, %v2940_v53  ;;  %v3064_v7 = vsel %vm1529_vm0, %v3062_v31, %v3063_v59  ;;  %v2837_v57 = vmul.f32 %v5489_v46, %v8211_v42  ;;  %v10367_v59 = vld [vmem:[#allocation50_spill] sm:$0xff] }
 0x257   : > { %v3207_v36 = vrot.slane %v3165_v27, 2  ;;  %v3208_v49 = vrot.slane %v3173_v58, 2  ;;  %v2877_v16 = vmul.f32 %v5489_v46, %v7903_v5  ;;  %v2885_v63 = vmul.f32 %v5497_v24, %v7903_v5 }
 0x258   : > { %v3228_v62 = vadd.f32 %v3206_v4, %v3156_v2  ;;  %v3012_v12 = vadd.f32 %v2996_v14, %v2972_v23  ;;  %v2853_v35 = vrot.slane %v2837_v57, 1  ;;  %v2965_v56 = vmul.f32 %v8491_v10, %v10322_v28  ;;  %v8729_v14 = vld [vmem:[%s7514_s9 + $0x230] sm:$0xff]  ;;  %v10368_v57 = vld [vmem:[#allocation52_spill] sm:$0xff] }
 0x259   : > { %v3209_v15 = vsel %vm1529_vm0, %v3207_v36, %v3208_v49  ;;  %v2921_v17 = vrot.slane %v2877_v16, 2  ;;  %v2922_v53 = vrot.slane %v2885_v63, 2  ;;  %v2981_v27 = vmul.f32 %v8491_v10, %v10323_v13  ;;  %v5529_v23 = vld [vmem:[%s7514_s9 + $0x270] sm:$0x1]  ;;  %v10369_v49 = vld [vmem:[#allocation53_spill] sm:$0xff]  ;;  %v5490_v63 = vld [vmem:[%s7514_s9 + $0x138] sm:$0xff] }
 0x25a   : > { %5535 = vst [vmem:[%s7675_s27 + $0xe0] sm:$0x7f] %v3228_v62  ;;  %v3084_v46 = vadd.f32 %v3064_v7, %v3012_v12  ;;  %v2869_v31 = vadd.f32 %v2853_v35, %v2821_v18  ;;  %v3021_v2 = vmul.f32 %v8491_v10, %v10367_v59  ;;  %v3029_v4 = vmul.f32 %v5513_v34, %v10367_v59  ;;  %v5498_v12 = vld [vmem:[%s7514_s9 + $0x178] sm:$0x1] }
 0x25b   : > { %v2923_v24 = vsel %vm1529_vm0, %v2921_v17, %v2922_v53  ;;  %v2997_v58 = vrot.slane %v2981_v27, 1  ;;  %v3110_v36 = vmul.f32 %v8729_v14, %v10368_v57  ;;  %v3126_v16 = vmul.f32 %v8729_v14, %v10369_v49  ;;  %v10370_v35 = vld [vmem:[#allocation12_spill] sm:$0xff]  ;;  %v10371_v53 = vld [vmem:[#allocation30_spill] sm:$0xff] }
 0x25c   : > { %v3117_v7 = vadd.f32 %v3109_v48, %v3084_v46  ;;  %v2941_v18 = vadd.f32 %v2923_v24, %v2869_v31  ;;  %v3065_v62 = vrot.slane %v3021_v2, 2  ;;  %v3066_v10 = vrot.slane %v3029_v4, 2  ;;  %v5514_v24 = vld [vmem:[%s7514_s9 + $0x1f8] sm:$0x1] }
 0x25d   : > { %v3142_v34 = vrot.slane %v3126_v16, 1  ;;  %v3166_v59 = vmul.f32 %v10370_v35, %v8729_v14  ;;  %v3174_v17 = vmul.f32 %v10370_v35, %v5529_v23  ;;  %v2822_v27 = vmul.f32 %v5490_v63, %v10371_v53 }
 0x25e   : > { %v3157_v13 = vadd.f32 %v3141_v54, %v3117_v7  ;;  %v2973_v57 = vadd.f32 %v2965_v56, %v2941_v18  ;;  %v3067_v49 = vsel %vm1529_vm0, %v3065_v62, %v3066_v10  ;;  %v2838_v48 = vmul.f32 %v5490_v63, %v8250_v6 }
 0x25f   : > { %v3210_v46 = vrot.slane %v3166_v59, 2  ;;  %v3211_v31 = vrot.slane %v3174_v17, 2  ;;  %v2878_v2 = vmul.f32 %v5490_v63, %v7958_v40  ;;  %v2886_v4 = vmul.f32 %v5498_v12, %v7958_v40  ;;  %v10372_v59 = vld [vmem:[#allocation56_spill] sm:$0xff]  ;;  %v10373_v12 = vld [vmem:[#allocation57_spill] sm:$0xff] }
 0x260   : > { %v3229_v16 = vadd.f32 %v3209_v15, %v3157_v13  ;;  %v3013_v23 = vadd.f32 %v2997_v58, %v2973_v57  ;;  %v2854_v35 = vrot.slane %v2838_v48, 1  ;;  %v2966_v54 = vmul.f32 %v8523_v43, %v10327_v19  ;;  %v8758_v58 = vld [vmem:[%s7514_s9 + $0x238] sm:$0xff] }
 0x261   : > { %v3212_v56 = vsel %vm1529_vm0, %v3210_v46, %v3211_v31  ;;  %v2924_v7 = vrot.slane %v2878_v2, 2  ;;  %v2925_v18 = vrot.slane %v2886_v4, 2  ;;  %v2982_v62 = vmul.f32 %v8523_v43, %v10372_v59  ;;  %v5530_v57 = vld [vmem:[%s7514_s9 + $0x278] sm:$0x1]  ;;  %v10374_v46 = vld [vmem:[#allocation58_spill] sm:$0xff]  ;;  %v10375_v2 = vld [vmem:[#allocation59_spill] sm:$0xff] }
 0x262   : > { %5536 = vst [vmem:[%s7675_s27 + $0xe8] sm:$0x7f] %v3229_v16  ;;  %v3085_v63 = vadd.f32 %v3067_v49, %v3013_v23  ;;  %v2870_v10 = vadd.f32 %v2854_v35, %v2822_v27  ;;  %v3022_v13 = vmul.f32 %v8523_v43, %v10373_v12  ;;  %v3030_v15 = vmul.f32 %v5514_v24, %v10373_v12  ;;  %v5539_v16 = vld [vmem:[%s7514_s9 + $0x180] sm:$0xff]  ;;  %v10376_v12 = vld [vmem:[#allocation7_spill] sm:$0xff] }
 0x263   : > { %v2926_v17 = vsel %vm1529_vm0, %v2924_v7, %v2925_v18  ;;  %v2998_v48 = vrot.slane %v2982_v62, 1  ;;  %v3111_v31 = vmul.f32 %v8758_v58, %v10374_v46  ;;  %v3127_v4 = vmul.f32 %v8758_v58, %v10375_v2  ;;  %v5547_v35 = vld [vmem:[%s7514_s9 + $0x1c0] sm:$0x1] }
 0x264   : > { %v3118_v49 = vadd.f32 %v3110_v36, %v3085_v63  ;;  %v2942_v27 = vadd.f32 %v2926_v17, %v2870_v10  ;;  %v3068_v23 = vrot.slane %v3022_v13, 2  ;;  %v3069_v43 = vrot.slane %v3030_v15, 2  ;;  %v5563_v17 = vld [vmem:[%s7514_s9 + $0x240] sm:$0x1] }
 0x265   : > { %v3143_v24 = vrot.slane %v3127_v4, 1  ;;  %v3167_v59 = vmul.f32 %v10376_v12, %v8758_v58  ;;  %v3175_v7 = vmul.f32 %v10376_v12, %v5530_v57  ;;  %v3257_v18 = vmul.f32 %v5539_v16, %v7974_v25 }
 0x266   : > { %v3158_v62 = vadd.f32 %v3142_v34, %v3118_v49  ;;  %v2974_v46 = vadd.f32 %v2966_v54, %v2942_v27  ;;  %v3070_v2 = vsel %vm1529_vm0, %v3068_v23, %v3069_v43  ;;  %v3273_v36 = vmul.f32 %v5539_v16, %v7982_v33  ;;  %v5579_v43 = vld [vmem:[%s7514_s9 + $0x2c0] sm:$0x1] }
 0x267   : > { %v3213_v63 = vrot.slane %v3167_v59, 2  ;;  %v3214_v10 = vrot.slane %v3175_v7, 2  ;;  %v3313_v13 = vmul.f32 %v5539_v16, %v7573_v0  ;;  %v3321_v15 = vmul.f32 %v5547_v35, %v7573_v0 }
 0x268   : > { %v3230_v4 = vadd.f32 %v3212_v56, %v3158_v62  ;;  %v3014_v12 = vadd.f32 %v2998_v48, %v2974_v46  ;;  %v3289_v57 = vrot.slane %v3273_v36, 1  ;;  %v3401_v34 = vmul.f32 %v8555_v61, %v7529_v44  ;;  %v8787_v46 = vld [vmem:[%s7514_s9 + $0x280] sm:$0xff] }
 0x269   : > { %v3215_v54 = vsel %vm1529_vm0, %v3213_v63, %v3214_v10  ;;  %v3345_v49 = vrot.slane %v3313_v13, 2  ;;  %v3346_v27 = vrot.slane %v3321_v15, 2  ;;  %v3417_v59 = vmul.f32 %v8555_v61, %v7533_v45  ;;  %v5548_v13 = vld [vmem:[%s7514_s9 + $0x1c8] sm:$0x1] }
 0x26a   : > { %5537 = vst [vmem:[%s7675_s27 + $0xf0] sm:$0x7f] %v3230_v4  ;;  %v3086_v16 = vadd.f32 %v3070_v2, %v3014_v12  ;;  %v3305_v23 = vadd.f32 %v3289_v57, %v3257_v18  ;;  %v3457_v56 = vmul.f32 %v8555_v61, %v10285_v38  ;;  %v3465_v48 = vmul.f32 %v5563_v17, %v10285_v38  ;;  %v5540_v2 = vld [vmem:[%s7514_s9 + $0x188] sm:$0xff]  ;;  %v8798_v17 = vld [vmem:[%s7497_s16 + $0x40] ss:$0 sm:$0xff] }
 0x26b   : > { %v3347_v35 = vsel %vm1529_vm0, %v3345_v49, %v3346_v27  ;;  %v3433_v7 = vrot.slane %v3417_v59, 1  ;;  %v3546_v62 = vmul.f32 %v8787_v46, %v7547_v50  ;;  %v3562_v36 = vmul.f32 %v8787_v46, %v10333_v29  ;;  %10377 = vst [vmem:[#allocation21_spill] sm:$0xff] %v8798_v17 }
 0x26c   : > { %v3119_v18 = vadd.f32 %v3111_v31, %v3086_v16  ;;  %v3377_v63 = vadd.f32 %v3347_v35, %v3305_v23  ;;  %v3489_v10 = vrot.slane %v3457_v56, 2  ;;  %v3490_v61 = vrot.slane %v3465_v48, 2  ;;  %v5564_v35 = vld [vmem:[%s7514_s9 + $0x248] sm:$0x1] }
 0x26d   : > { %v3578_v15 = vrot.slane %v3562_v36, 1  ;;  %v3602_v4 = vmul.f32 %v8798_v17, %v8787_v46  ;;  %v3610_v12 = vmul.f32 %v8798_v17, %v5579_v43  ;;  %v3258_v57 = vmul.f32 %v5540_v2, %v8010_v20 }
 0x26e   : > { %v3159_v49 = vadd.f32 %v3143_v24, %v3119_v18  ;;  %v3409_v27 = vadd.f32 %v3401_v34, %v3377_v63  ;;  %v3491_v31 = vsel %vm1529_vm0, %v3489_v10, %v3490_v61  ;;  %v3274_v59 = vmul.f32 %v5540_v2, %v10287_v8 }
 0x26f   : > { %v3634_v16 = vrot.slane %v3602_v4, 2  ;;  %v3635_v23 = vrot.slane %v3610_v12, 2  ;;  %v3314_v56 = vmul.f32 %v5540_v2, %v10288_v37  ;;  %v3322_v48 = vmul.f32 %v5548_v13, %v10288_v37  ;;  %v8819_v13 = vld [vmem:[%s7514_s9 + $0x288] sm:$0xff] }
 0x270   : > { %v3231_v36 = vadd.f32 %v3215_v54, %v3159_v49  ;;  %v3449_v43 = vadd.f32 %v3433_v7, %v3409_v27  ;;  %v3290_v17 = vrot.slane %v3274_v59, 1  ;;  %v3402_v24 = vmul.f32 %v8584_v32, %v10289_v60  ;;  %v5580_v4 = vld [vmem:[%s7514_s9 + $0x2c8] sm:$0x1] }
 0x271   : > { %v3636_v34 = vsel %vm1529_vm0, %v3634_v16, %v3635_v23  ;;  %v3348_v18 = vrot.slane %v3314_v56, 2  ;;  %v3349_v63 = vrot.slane %v3322_v48, 2  ;;  %v3418_v10 = vmul.f32 %v8584_v32, %v10334_v30  ;;  %v10378_v27 = vld [vmem:[#allocation10_spill] sm:$0xff]  ;;  %v10379_v16 = vld [vmem:[#allocation11_spill] sm:$0xff] }
 0x272   : > { %5538 = vst [vmem:[%s7675_s27 + $0xf8] sm:$0x7f] %v3231_v36  ;;  %v3521_v2 = vadd.f32 %v3491_v31, %v3449_v43  ;;  %v3306_v61 = vadd.f32 %v3290_v17, %v3258_v57  ;;  %v3458_v54 = vmul.f32 %v8584_v32, %v7594_v11  ;;  %v3466_v7 = vmul.f32 %v5564_v35, %v7594_v11  ;;  %v5541_v31 = vld [vmem:[%s7514_s9 + $0x190] sm:$0xff]  ;;  %v8830_v36 = vld [vmem:[%s7497_s16 + $0x48] ss:$0 sm:$0xff] }
 0x273   : > { %v3350_v12 = vsel %vm1529_vm0, %v3348_v18, %v3349_v63  ;;  %v3434_v49 = vrot.slane %v3418_v10, 1  ;;  %v3547_v59 = vmul.f32 %v8819_v13, %v10378_v27  ;;  %v3563_v23 = vmul.f32 %v8819_v13, %v10379_v16  ;;  %v5549_v48 = vld [vmem:[%s7514_s9 + $0x1d0] sm:$0x1]  ;;  %10380 = vst [vmem:[#allocation32_spill] sm:$0xff] %v8830_v36 }
 0x274   : > { %v3554_v17 = vadd.f32 %v3546_v62, %v3521_v2  ;;  %v3378_v57 = vadd.f32 %v3350_v12, %v3306_v61  ;;  %v3492_v56 = vrot.slane %v3458_v54, 2  ;;  %v3493_v32 = vrot.slane %v3466_v7, 2 }
 0x275   : > { %v3579_v35 = vrot.slane %v3563_v23, 1  ;;  %v3603_v43 = vmul.f32 %v8830_v36, %v8819_v13  ;;  %v3611_v18 = vmul.f32 %v8830_v36, %v5580_v4  ;;  %v3259_v63 = vmul.f32 %v5541_v31, %v8050_v39  ;;  %v5565_v23 = vld [vmem:[%s7514_s9 + $0x250] sm:$0x1]  ;;  %v10381_v39 = vld [vmem:[#allocation13_spill] sm:$0xff] }
 0x276   : > { %v3594_v10 = vadd.f32 %v3578_v15, %v3554_v17  ;;  %v3410_v27 = vadd.f32 %v3402_v24, %v3378_v57  ;;  %v3494_v62 = vsel %vm1529_vm0, %v3492_v56, %v3493_v32  ;;  %v3275_v2 = vmul.f32 %v5541_v31, %v8055_v52  ;;  %v10382_v15 = vld [vmem:[#allocation22_spill] sm:$0xff] }
 0x277   : > { %v3637_v61 = vrot.slane %v3603_v43, 2  ;;  %v3638_v54 = vrot.slane %v3611_v18, 2  ;;  %v3315_v7 = vmul.f32 %v5541_v31, %v7683_v26  ;;  %v3323_v12 = vmul.f32 %v5549_v48, %v7683_v26  ;;  %v10383_v32 = vld [vmem:[#allocation14_spill] sm:$0xff]  ;;  %v10384_v18 = vld [vmem:[#allocation15_spill] sm:$0xff] }
 0x278   : > { %v3666_v16 = vadd.f32 %v3636_v34, %v3594_v10  ;;  %v3450_v4 = vadd.f32 %v3434_v49, %v3410_v27  ;;  %v3291_v36 = vrot.slane %v3275_v2, 1  ;;  %v3403_v24 = vmul.f32 %v10382_v15, %v10381_v39  ;;  %v8851_v27 = vld [vmem:[%s7514_s9 + $0x290] sm:$0xff] }
 0x279   : > { %v3639_v17 = vsel %vm1529_vm0, %v3637_v61, %v3638_v54  ;;  %v3351_v57 = vrot.slane %v3315_v7, 2  ;;  %v3352_v56 = vrot.slane %v3323_v12, 2  ;;  %v3419_v43 = vmul.f32 %v10382_v15, %v10383_v32  ;;  %10385 = vst [vmem:[#allocation46_spill] sm:$0xff] %v8851_v27  ;;  %v5581_v10 = vld [vmem:[%s7514_s9 + $0x2d0] sm:$0x1]  ;;  %v10386_v54 = vld [vmem:[#allocation16_spill] sm:$0xff] }
 0x27a   : > { %5587 = vst [vmem:[%s7675_s27 + $0x100] sm:$0x7f] %v3666_v16  ;;  %v3522_v31 = vadd.f32 %v3494_v62, %v3450_v4  ;;  %v3307_v48 = vadd.f32 %v3291_v36, %v3259_v63  ;;  %v3459_v34 = vmul.f32 %v10382_v15, %v10384_v18  ;;  %v3467_v49 = vmul.f32 %v5565_v23, %v10384_v18  ;;  %v10387_v12 = vld [vmem:[#allocation17_spill] sm:$0xff]  ;;  %v5542_v62 = vld [vmem:[%s7514_s9 + $0x198] sm:$0xff]  ;;  %v8862_v18 = vld [vmem:[%s7497_s16 + $0x50] ss:$0 sm:$0xff] }
 0x27b   : > { %v3353_v2 = vsel %vm1529_vm0, %v3351_v57, %v3352_v56  ;;  %v3435_v61 = vrot.slane %v3419_v43, 1  ;;  %v3548_v7 = vmul.f32 %v8851_v27, %v10386_v54  ;;  %v3564_v16 = vmul.f32 %v8851_v27, %v10387_v12  ;;  %v5550_v32 = vld [vmem:[%s7514_s9 + $0x1d8] sm:$0x1]  ;;  %10388 = vst [vmem:[#allocation48_spill] sm:$0xff] %v8862_v18  ;;  %v10389_v43 = vld [vmem:[#allocation19_spill] sm:$0xff] }
 0x27c   : > { %v3555_v36 = vadd.f32 %v3547_v59, %v3522_v31  ;;  %v3379_v63 = vadd.f32 %v3353_v2, %v3307_v48  ;;  %v3495_v4 = vrot.slane %v3459_v34, 2  ;;  %v3496_v15 = vrot.slane %v3467_v49, 2  ;;  %v10390_v49 = vld [vmem:[#allocation28_spill] sm:$0xff] }
 0x27d   : > { %v3580_v23 = vrot.slane %v3564_v16, 1  ;;  %v3604_v57 = vmul.f32 %v8862_v18, %v8851_v27  ;;  %v3612_v56 = vmul.f32 %v8862_v18, %v5581_v10  ;;  %v3260_v54 = vmul.f32 %v5542_v62, %v10389_v43  ;;  %v5566_v12 = vld [vmem:[%s7514_s9 + $0x258] sm:$0x1] }
 0x27e   : > { %v3595_v39 = vadd.f32 %v3579_v35, %v3555_v36  ;;  %v3411_v26 = vadd.f32 %v3403_v24, %v3379_v63  ;;  %v3497_v59 = vsel %vm1529_vm0, %v3495_v4, %v3496_v15  ;;  %v3276_v31 = vmul.f32 %v5542_v62, %v10343_v47  ;;  %v10391_v43 = vld [vmem:[#allocation20_spill] sm:$0xff]  ;;  %v10392_v4 = vld [vmem:[#allocation23_spill] sm:$0xff] }
 0x27f   : > { %v3640_v48 = vrot.slane %v3604_v57, 2  ;;  %v3641_v34 = vrot.slane %v3612_v56, 2  ;;  %v3316_v2 = vmul.f32 %v5542_v62, %v10390_v49  ;;  %v3324_v16 = vmul.f32 %v5550_v32, %v10390_v49  ;;  %v10393_v57 = vld [vmem:[#allocation24_spill] sm:$0xff] }
 0x280   : > { %v3667_v27 = vadd.f32 %v3639_v17, %v3595_v39  ;;  %v3451_v10 = vadd.f32 %v3435_v61, %v3411_v26  ;;  %v3292_v18 = vrot.slane %v3276_v31, 1  ;;  %v3404_v35 = vmul.f32 %v8642_v1, %v10391_v43  ;;  %v8883_v17 = vld [vmem:[%s7514_s9 + $0x298] sm:$0xff] }
 0x281   : > { %v3642_v24 = vsel %vm1529_vm0, %v3640_v48, %v3641_v34  ;;  %v3354_v36 = vrot.slane %v3316_v2, 2  ;;  %v3355_v63 = vrot.slane %v3324_v16, 2  ;;  %v3420_v15 = vmul.f32 %v8642_v1, %v10392_v4  ;;  %10394 = vst [vmem:[#allocation6_spill] sm:$0xff] %v8883_v17  ;;  %v5582_v61 = vld [vmem:[%s7514_s9 + $0x2d8] sm:$0x1]  ;;  %v10395_v48 = vld [vmem:[#allocation25_spill] sm:$0xff] }
 0x282   : > { %5588 = vst [vmem:[%s7675_s27 + $0x108] sm:$0x7f] %v3667_v27  ;;  %v3523_v62 = vadd.f32 %v3497_v59, %v3451_v10  ;;  %v3308_v32 = vadd.f32 %v3292_v18, %v3260_v54  ;;  %v3460_v26 = vmul.f32 %v8642_v1, %v10393_v57  ;;  %v3468_v39 = vmul.f32 %v5566_v12, %v10393_v57  ;;  %v10396_v2 = vld [vmem:[#allocation27_spill] sm:$0xff]  ;;  %v5543_v59 = vld [vmem:[%s7514_s9 + $0x1a0] sm:$0xff]  ;;  %v8894_v57 = vld [vmem:[%s7497_s16 + $0x58] ss:$0 sm:$0xff] }
 0x283   : > { %v3356_v56 = vsel %vm1529_vm0, %v3354_v36, %v3355_v63  ;;  %v3436_v31 = vrot.slane %v3420_v15, 1  ;;  %v3549_v34 = vmul.f32 %v8883_v17, %v10395_v48  ;;  %v3565_v27 = vmul.f32 %v8883_v17, %v10396_v2  ;;  %v5551_v10 = vld [vmem:[%s7514_s9 + $0x1e0] sm:$0x1]  ;;  %10397 = vst [vmem:[#allocation8_spill] sm:$0xff] %v8894_v57  ;;  %v10398_v15 = vld [vmem:[#allocation26_spill] sm:$0xff] }
 0x284   : > { %v3556_v18 = vadd.f32 %v3548_v7, %v3523_v62  ;;  %v3380_v54 = vadd.f32 %v3356_v56, %v3308_v32  ;;  %v3498_v16 = vrot.slane %v3460_v26, 2  ;;  %v3499_v1 = vrot.slane %v3468_v39, 2  ;;  %v10399_v39 = vld [vmem:[#allocation38_spill] sm:$0xff]  ;;  %v5567_v2 = vld [vmem:[%s7514_s9 + $0x260] sm:$0x1] }
 0x285   : > { %v3581_v12 = vrot.slane %v3565_v27, 1  ;;  %v3605_v36 = vmul.f32 %v8894_v57, %v8883_v17  ;;  %v3613_v63 = vmul.f32 %v8894_v57, %v5582_v61  ;;  %v3261_v48 = vmul.f32 %v5543_v59, %v10398_v15  ;;  %v10400_v15 = vld [vmem:[#allocation31_spill] sm:$0xff] }
 0x286   : > { %v3596_v4 = vadd.f32 %v3580_v23, %v3556_v18  ;;  %v3412_v43 = vadd.f32 %v3404_v35, %v3380_v54  ;;  %v3500_v7 = vsel %vm1529_vm0, %v3498_v16, %v3499_v1  ;;  %v3277_v62 = vmul.f32 %v5543_v59, %v10305_v22  ;;  %v10401_v16 = vld [vmem:[#allocation33_spill] sm:$0xff] }
 0x287   : > { %v3643_v32 = vrot.slane %v3605_v36, 2  ;;  %v3644_v26 = vrot.slane %v3613_v63, 2  ;;  %v3317_v56 = vmul.f32 %v5543_v59, %v10399_v39  ;;  %v3325_v27 = vmul.f32 %v5551_v10, %v10399_v39  ;;  %v10402_v36 = vld [vmem:[#allocation34_spill] sm:$0xff] }
 0x288   : > { %v3668_v17 = vadd.f32 %v3642_v24, %v3596_v4  ;;  %v3452_v61 = vadd.f32 %v3436_v31, %v3412_v43  ;;  %v3293_v57 = vrot.slane %v3277_v62, 1  ;;  %v3405_v23 = vmul.f32 %v8671_v3, %v10400_v15  ;;  %v8915_v4 = vld [vmem:[%s7514_s9 + $0x2a0] sm:$0xff] }
 0x289   : > { %v3645_v35 = vsel %vm1529_vm0, %v3643_v32, %v3644_v26  ;;  %v3357_v18 = vrot.slane %v3317_v56, 2  ;;  %v3358_v54 = vrot.slane %v3325_v27, 2  ;;  %v3421_v1 = vmul.f32 %v8671_v3, %v10401_v16  ;;  %v5583_v31 = vld [vmem:[%s7514_s9 + $0x2e0] sm:$0x1]  ;;  %v10403_v32 = vld [vmem:[#allocation36_spill] sm:$0xff] }
 0x28a   : > { %5589 = vst [vmem:[%s7675_s27 + $0x110] sm:$0x7f] %v3668_v17  ;;  %v3524_v59 = vadd.f32 %v3500_v7, %v3452_v61  ;;  %v3309_v10 = vadd.f32 %v3293_v57, %v3261_v48  ;;  %v3461_v43 = vmul.f32 %v8671_v3, %v10402_v36  ;;  %v3469_v24 = vmul.f32 %v5567_v2, %v10402_v36  ;;  %v10404_v56 = vld [vmem:[#allocation37_spill] sm:$0xff]  ;;  %v5544_v7 = vld [vmem:[%s7514_s9 + $0x1a8] sm:$0xff] }
 0x28b   : > { %v3359_v63 = vsel %vm1529_vm0, %v3357_v18, %v3358_v54  ;;  %v3437_v62 = vrot.slane %v3421_v1, 1  ;;  %v3550_v26 = vmul.f32 %v8915_v4, %v10403_v32  ;;  %v3566_v17 = vmul.f32 %v8915_v4, %v10404_v56  ;;  %v5552_v61 = vld [vmem:[%s7514_s9 + $0x1e8] sm:$0x1]  ;;  %v8926_v36 = vld [vmem:[%s7497_s16 + $0x60] ss:$0 sm:$0xff] }
 0x28c   : > { %v3557_v57 = vadd.f32 %v3549_v34, %v3524_v59  ;;  %v3381_v48 = vadd.f32 %v3359_v63, %v3309_v10  ;;  %v3501_v27 = vrot.slane %v3461_v43, 2  ;;  %v3502_v3 = vrot.slane %v3469_v24, 2  ;;  %10405 = vst [vmem:[#allocation42_spill] sm:$0xff] %v8926_v36 }
 0x28d   : > { %v3582_v2 = vrot.slane %v3566_v17, 1  ;;  %v3606_v18 = vmul.f32 %v8926_v36, %v8915_v4  ;;  %v3614_v54 = vmul.f32 %v8926_v36, %v5583_v31  ;;  %v3262_v1 = vmul.f32 %v5544_v7, %v10360_v51  ;;  %v5568_v17 = vld [vmem:[%s7514_s9 + $0x268] sm:$0x1]  ;;  %v10406_v51 = vld [vmem:[#allocation40_spill] sm:$0xff] }
 0x28e   : > { %v3597_v32 = vadd.f32 %v3581_v12, %v3557_v57  ;;  %v3413_v16 = vadd.f32 %v3405_v23, %v3381_v48  ;;  %v3503_v34 = vsel %vm1529_vm0, %v3501_v27, %v3502_v3  ;;  %v3278_v59 = vmul.f32 %v5544_v7, %v10314_v41  ;;  %v10407_v27 = vld [vmem:[#allocation41_spill] sm:$0xff] }
 0x28f   : > { %v3646_v10 = vrot.slane %v3606_v18, 2  ;;  %v3647_v43 = vrot.slane %v3614_v54, 2  ;;  %v3318_v24 = vmul.f32 %v5544_v7, %v10315_v9  ;;  %v3326_v63 = vmul.f32 %v5552_v61, %v10315_v9  ;;  %v10408_v18 = vld [vmem:[#allocation43_spill] sm:$0xff] }
 0x290   : > { %v3669_v56 = vadd.f32 %v3645_v35, %v3597_v32  ;;  %v3453_v31 = vadd.f32 %v3437_v62, %v3413_v16  ;;  %v3294_v36 = vrot.slane %v3278_v59, 1  ;;  %v3406_v12 = vmul.f32 %v8700_v55, %v10406_v51  ;;  %v8947_v62 = vld [vmem:[%s7514_s9 + $0x2a8] sm:$0xff] }
 0x291   : > { %v3648_v23 = vsel %vm1529_vm0, %v3646_v10, %v3647_v43  ;;  %v3360_v57 = vrot.slane %v3318_v24, 2  ;;  %v3361_v48 = vrot.slane %v3326_v63, 2  ;;  %v3422_v3 = vmul.f32 %v8700_v55, %v10407_v27  ;;  %v5584_v32 = vld [vmem:[%s7514_s9 + $0x2e8] sm:$0x1]  ;;  %v10409_v10 = vld [vmem:[#allocation44_spill] sm:$0xff]  ;;  %v10410_v24 = vld [vmem:[#allocation45_spill] sm:$0xff] }
 0x292   : > { %5590 = vst [vmem:[%s7675_s27 + $0x118] sm:$0x7f] %v3669_v56  ;;  %v3525_v7 = vadd.f32 %v3503_v34, %v3453_v31  ;;  %v3310_v61 = vadd.f32 %v3294_v36, %v3262_v1  ;;  %v3462_v35 = vmul.f32 %v8700_v55, %v10408_v18  ;;  %v3470_v16 = vmul.f32 %v5568_v17, %v10408_v18  ;;  %v5545_v34 = vld [vmem:[%s7514_s9 + $0x1b0] sm:$0xff]  ;;  %v8958_v18 = vld [vmem:[%s7497_s16 + $0x68] ss:$0 sm:$0xff] }
 0x293   : > { %v3362_v54 = vsel %vm1529_vm0, %v3360_v57, %v3361_v48  ;;  %v3438_v59 = vrot.slane %v3422_v3, 1  ;;  %v3551_v43 = vmul.f32 %v8947_v62, %v10409_v10  ;;  %v3567_v56 = vmul.f32 %v8947_v62, %v10410_v24  ;;  %v5553_v31 = vld [vmem:[%s7514_s9 + $0x1f0] sm:$0x1]  ;;  %10411 = vst [vmem:[#allocation39_spill] sm:$0xff] %v8958_v18 }
 0x294   : > { %v3558_v36 = vadd.f32 %v3550_v26, %v3525_v7  ;;  %v3382_v1 = vadd.f32 %v3362_v54, %v3310_v61  ;;  %v3504_v63 = vrot.slane %v3462_v35, 2  ;;  %v3505_v55 = vrot.slane %v3470_v16, 2 }
 0x295   : > { %v3583_v17 = vrot.slane %v3567_v56, 1  ;;  %v3607_v57 = vmul.f32 %v8958_v18, %v8947_v62  ;;  %v3615_v48 = vmul.f32 %v8958_v18, %v5584_v32  ;;  %v3263_v3 = vmul.f32 %v5545_v34, %v10366_v21  ;;  %v5569_v56 = vld [vmem:[%s7514_s9 + $0x270] sm:$0x1] }
 0x296   : > { %v3598_v10 = vadd.f32 %v3582_v2, %v3558_v36  ;;  %v3414_v27 = vadd.f32 %v3406_v12, %v3382_v1  ;;  %v3506_v26 = vsel %vm1529_vm0, %v3504_v63, %v3505_v55  ;;  %v3279_v7 = vmul.f32 %v5545_v34, %v8211_v42  ;;  %v10412_v63 = vld [vmem:[#allocation49_spill] sm:$0xff] }
 0x297   : > { %v3649_v61 = vrot.slane %v3607_v57, 2  ;;  %v3650_v35 = vrot.slane %v3615_v48, 2  ;;  %v3319_v16 = vmul.f32 %v5545_v34, %v7903_v5  ;;  %v3327_v54 = vmul.f32 %v5553_v31, %v7903_v5  ;;  %v10413_v57 = vld [vmem:[#allocation50_spill] sm:$0xff] }
 0x298   : > { %v3670_v24 = vadd.f32 %v3648_v23, %v3598_v10  ;;  %v3454_v32 = vadd.f32 %v3438_v59, %v3414_v27  ;;  %v3295_v18 = vrot.slane %v3279_v7, 1  ;;  %v3407_v2 = vmul.f32 %v8729_v14, %v10322_v28  ;;  %v8979_v59 = vld [vmem:[%s7514_s9 + $0x2b0] sm:$0xff] }
 0x299   : > { %v3651_v12 = vsel %vm1529_vm0, %v3649_v61, %v3650_v35  ;;  %v3363_v36 = vrot.slane %v3319_v16, 2  ;;  %v3364_v1 = vrot.slane %v3327_v54, 2  ;;  %v3423_v55 = vmul.f32 %v8729_v14, %v10412_v63  ;;  %v5585_v10 = vld [vmem:[%s7514_s9 + $0x2f0] sm:$0x1]  ;;  %v10414_v61 = vld [vmem:[#allocation52_spill] sm:$0xff]  ;;  %v10415_v16 = vld [vmem:[#allocation53_spill] sm:$0xff] }
 0x29a   : > { %5591 = vst [vmem:[%s7675_s27 + $0x120] sm:$0x7f] %v3670_v24  ;;  %v3526_v34 = vadd.f32 %v3506_v26, %v3454_v32  ;;  %v3311_v31 = vadd.f32 %v3295_v18, %v3263_v3  ;;  %v3463_v23 = vmul.f32 %v8729_v14, %v10413_v57  ;;  %v3471_v27 = vmul.f32 %v5569_v56, %v10413_v57  ;;  %v5546_v26 = vld [vmem:[%s7514_s9 + $0x1b8] sm:$0xff]  ;;  %v8990_v57 = vld [vmem:[%s7497_s16 + $0x70] ss:$0 sm:$0xff] }
 0x29b   : > { %v3365_v48 = vsel %vm1529_vm0, %v3363_v36, %v3364_v1  ;;  %v3439_v7 = vrot.slane %v3423_v55, 1  ;;  %v3552_v35 = vmul.f32 %v8979_v59, %v10414_v61  ;;  %v3568_v24 = vmul.f32 %v8979_v59, %v10415_v16  ;;  %v5554_v32 = vld [vmem:[%s7514_s9 + $0x1f8] sm:$0x1]  ;;  %10416 = vst [vmem:[#allocation62_spill] sm:$0xff] %v8990_v57 }
 0x29c   : > { %v3559_v18 = vadd.f32 %v3551_v43, %v3526_v34  ;;  %v3383_v3 = vadd.f32 %v3365_v48, %v3311_v31  ;;  %v3507_v54 = vrot.slane %v3463_v23, 2  ;;  %v3508_v14 = vrot.slane %v3471_v27, 2 }
 0x29d   : > { %v3584_v56 = vrot.slane %v3568_v24, 1  ;;  %v3608_v36 = vmul.f32 %v8990_v57, %v8979_v59  ;;  %v3616_v1 = vmul.f32 %v8990_v57, %v5585_v10  ;;  %v3264_v55 = vmul.f32 %v5546_v26, %v10371_v53  ;;  %v5570_v24 = vld [vmem:[%s7514_s9 + $0x278] sm:$0x1] }
 0x29e   : > { %v3599_v61 = vadd.f32 %v3583_v17, %v3559_v18  ;;  %v3415_v63 = vadd.f32 %v3407_v2, %v3383_v3  ;;  %v3509_v43 = vsel %vm1529_vm0, %v3507_v54, %v3508_v14  ;;  %v3280_v34 = vmul.f32 %v5546_v26, %v8250_v6  ;;  %v10417_v54 = vld [vmem:[#allocation56_spill] sm:$0xff] }
 0x29f   : > { %v3652_v31 = vrot.slane %v3608_v36, 2  ;;  %v3653_v23 = vrot.slane %v3616_v1, 2  ;;  %v3320_v27 = vmul.f32 %v5546_v26, %v7958_v40  ;;  %v3328_v48 = vmul.f32 %v5554_v32, %v7958_v40  ;;  %v10418_v36 = vld [vmem:[#allocation57_spill] sm:$0xff] }
 0x2a0   : > { %v3671_v16 = vadd.f32 %v3651_v12, %v3599_v61  ;;  %v3455_v10 = vadd.f32 %v3439_v7, %v3415_v63  ;;  %v3296_v57 = vrot.slane %v3280_v34, 1  ;;  %v3408_v17 = vmul.f32 %v8758_v58, %v10327_v19  ;;  %v9011_v7 = vld [vmem:[%s7514_s9 + $0x2b8] sm:$0xff] }
 0x2a1   : > { %v3654_v2 = vsel %vm1529_vm0, %v3652_v31, %v3653_v23  ;;  %v3366_v18 = vrot.slane %v3320_v27, 2  ;;  %v3367_v3 = vrot.slane %v3328_v48, 2  ;;  %v3424_v14 = vmul.f32 %v8758_v58, %v10417_v54  ;;  %10419 = vst [vmem:[#allocation51_spill] sm:$0xff] %v9011_v7  ;;  %v5586_v61 = vld [vmem:[%s7514_s9 + $0x2f8] sm:$0x1]  ;;  %v10420_v31 = vld [vmem:[#allocation58_spill] sm:$0xff] }
 0x2a2   : > { %5592 = vst [vmem:[%s7675_s27 + $0x128] sm:$0x7f] %v3671_v16  ;;  %v3527_v26 = vadd.f32 %v3509_v43, %v3455_v10  ;;  %v3312_v32 = vadd.f32 %v3296_v57, %v3264_v55  ;;  %v3464_v12 = vmul.f32 %v8758_v58, %v10418_v36  ;;  %v3472_v63 = vmul.f32 %v5570_v24, %v10418_v36  ;;  %v10421_v27 = vld [vmem:[#allocation59_spill] sm:$0xff]  ;;  %v5595_v43 = vld [vmem:[%s7514_s9 + $0x200] sm:$0xff]  ;;  %v9022_v36 = vld [vmem:[%s7497_s16 + $0x78] ss:$0 sm:$0xff] }
 0x2a3   : > { %v3368_v1 = vsel %vm1529_vm0, %v3366_v18, %v3367_v3  ;;  %v3440_v34 = vrot.slane %v3424_v14, 1  ;;  %v3553_v23 = vmul.f32 %v9011_v7, %v10420_v31  ;;  %v3569_v16 = vmul.f32 %v9011_v7, %v10421_v27  ;;  %v5603_v10 = vld [vmem:[%s7514_s9 + $0x240] sm:$0x1] }
 0x2a4   : > { %v3560_v57 = vadd.f32 %v3552_v35, %v3527_v26  ;;  %v3384_v55 = vadd.f32 %v3368_v1, %v3312_v32  ;;  %v3510_v48 = vrot.slane %v3464_v12, 2  ;;  %v3511_v58 = vrot.slane %v3472_v63, 2 }
 0x2a5   : > { %v3585_v24 = vrot.slane %v3569_v16, 1  ;;  %v3609_v18 = vmul.f32 %v9022_v36, %v9011_v7  ;;  %v3617_v3 = vmul.f32 %v9022_v36, %v5586_v61  ;;  %v3699_v14 = vmul.f32 %v5595_v43, %v7974_v25  ;;  %v5619_v16 = vld [vmem:[%s7514_s9 + $0x2c0] sm:$0x1] }
 0x2a6   : > { %v3600_v31 = vadd.f32 %v3584_v56, %v3560_v57  ;;  %v3416_v27 = vadd.f32 %v3408_v17, %v3384_v55  ;;  %v3512_v35 = vsel %vm1529_vm0, %v3510_v48, %v3511_v58  ;;  %v3715_v26 = vmul.f32 %v5595_v43, %v7982_v33  ;;  %v9036_v17 = vld [vmem:[%s7514_s9 + $0x300] sm:$0xff] }
 0x2a7   : > { %v3655_v32 = vrot.slane %v3609_v18, 2  ;;  %v3656_v12 = vrot.slane %v3617_v3, 2  ;;  %v3755_v63 = vmul.f32 %v5595_v43, %v7573_v0  ;;  %v3763_v1 = vmul.f32 %v5603_v10, %v7573_v0 }
 0x2a8   : > { %v3672_v54 = vadd.f32 %v3654_v2, %v3600_v31  ;;  %v3456_v7 = vadd.f32 %v3440_v34, %v3416_v27  ;;  %v3731_v61 = vrot.slane %v3715_v26, 1  ;;  %v3843_v56 = vmul.f32 %v8787_v46, %v7529_v44  ;;  %v5635_v31 = vld [vmem:[%s7514_s9 + $0x340] sm:$0x1] }
 0x2a9   : > { %v3657_v57 = vsel %vm1529_vm0, %v3655_v32, %v3656_v12  ;;  %v3787_v55 = vrot.slane %v3755_v63, 2  ;;  %v3788_v48 = vrot.slane %v3763_v1, 2  ;;  %v3859_v43 = vmul.f32 %v8787_v46, %v7533_v45  ;;  %v5596_v32 = vld [vmem:[%s7514_s9 + $0x208] sm:$0xff]  ;;  %v10422_v63 = vld [vmem:[#allocation21_spill] sm:$0xff] }
 0x2aa   : > { %5593 = vst [vmem:[%s7675_s27 + $0x130] sm:$0x7f] %v3672_v54  ;;  %v3528_v58 = vadd.f32 %v3512_v35, %v3456_v7  ;;  %v3747_v10 = vadd.f32 %v3731_v61, %v3699_v14  ;;  %v3899_v2 = vmul.f32 %v8787_v46, %v10285_v38  ;;  %v3907_v34 = vmul.f32 %v5619_v16, %v10285_v38  ;;  %v5604_v35 = vld [vmem:[%s7514_s9 + $0x248] sm:$0x1] }
 0x2ab   : > { %v3789_v27 = vsel %vm1529_vm0, %v3787_v55, %v3788_v48  ;;  %v3875_v18 = vrot.slane %v3859_v43, 1  ;;  %v3988_v3 = vmul.f32 %v9036_v17, %v7547_v50  ;;  %v4004_v26 = vmul.f32 %v9036_v17, %v10333_v29 }
 0x2ac   : > { %v3561_v12 = vadd.f32 %v3553_v23, %v3528_v58  ;;  %v3819_v54 = vadd.f32 %v3789_v27, %v3747_v10  ;;  %v3931_v7 = vrot.slane %v3899_v2, 2  ;;  %v3932_v14 = vrot.slane %v3907_v34, 2  ;;  %v5620_v2 = vld [vmem:[%s7514_s9 + $0x2c8] sm:$0x1] }
 0x2ad   : > { %v4020_v46 = vrot.slane %v4004_v26, 1  ;;  %v4044_v1 = vmul.f32 %v10422_v63, %v9036_v17  ;;  %v4052_v16 = vmul.f32 %v10422_v63, %v5635_v31  ;;  %v3700_v61 = vmul.f32 %v5596_v32, %v8010_v20 }
 0x2ae   : > { %v3601_v50 = vadd.f32 %v3585_v24, %v3561_v12  ;;  %v3851_v55 = vadd.f32 %v3843_v56, %v3819_v54  ;;  %v3933_v29 = vsel %vm1529_vm0, %v3931_v7, %v3932_v14  ;;  %v3716_v23 = vmul.f32 %v5596_v32, %v10287_v8  ;;  %v9065_v56 = vld [vmem:[%s7514_s9 + $0x308] sm:$0xff] }
 0x2af   : > { %v4076_v48 = vrot.slane %v4044_v1, 2  ;;  %v4077_v43 = vrot.slane %v4052_v16, 2  ;;  %v3756_v58 = vmul.f32 %v5596_v32, %v10288_v37  ;;  %v3764_v10 = vmul.f32 %v5604_v35, %v10288_v37  ;;  %v5636_v35 = vld [vmem:[%s7514_s9 + $0x348] sm:$0x1] }
 0x2b0   : > { %v3673_v34 = vadd.f32 %v3657_v57, %v3601_v50  ;;  %v3891_v27 = vadd.f32 %v3875_v18, %v3851_v55  ;;  %v3732_v31 = vrot.slane %v3716_v23, 1  ;;  %v3844_v24 = vmul.f32 %v8819_v13, %v10289_v60  ;;  %v10423_v16 = vld [vmem:[#allocation10_spill] sm:$0xff]  ;;  %v10424_v55 = vld [vmem:[#allocation11_spill] sm:$0xff] }
 0x2b1   : > { %v4078_v26 = vsel %vm1529_vm0, %v4076_v48, %v4077_v43  ;;  %v3790_v12 = vrot.slane %v3756_v58, 2  ;;  %v3791_v54 = vrot.slane %v3764_v10, 2  ;;  %v3860_v32 = vmul.f32 %v8819_v13, %v10334_v30  ;;  %v5597_v48 = vld [vmem:[%s7514_s9 + $0x210] sm:$0xff] }
 0x2b2   : > { %5594 = vst [vmem:[%s7675_s27 + $0x138] sm:$0x7f] %v3673_v34  ;;  %v3963_v7 = vadd.f32 %v3933_v29, %v3891_v27  ;;  %v3748_v14 = vadd.f32 %v3732_v31, %v3700_v61  ;;  %v3900_v57 = vmul.f32 %v8819_v13, %v7594_v11  ;;  %v3908_v18 = vmul.f32 %v5620_v2, %v7594_v11  ;;  %v5605_v10 = vld [vmem:[%s7514_s9 + $0x250] sm:$0x1]  ;;  %v10425_v2 = vld [vmem:[#allocation32_spill] sm:$0xff]  ;;  %v10426_v31 = vld [vmem:[#allocation61_spill] sm:$0xff] }
 0x2b3   : > { %v3792_v63 = vsel %vm1529_vm0, %v3790_v12, %v3791_v54  ;;  %v3876_v1 = vrot.slane %v3860_v32, 1  ;;  %v3989_v50 = vmul.f32 %v9065_v56, %v10423_v16  ;;  %v4005_v23 = vmul.f32 %v9065_v56, %v10424_v55  ;;  %v5621_v55 = vld [vmem:[%s7514_s9 + $0x2d0] sm:$0x1] }
 0x2b4   : > { %v3996_v43 = vadd.f32 %v3988_v3, %v3963_v7  ;;  %v3820_v58 = vadd.f32 %v3792_v63, %v3748_v14  ;;  %v3934_v61 = vrot.slane %v3900_v57, 2  ;;  %v3935_v29 = vrot.slane %v3908_v18, 2  ;;  %v10427_v57 = vld [vmem:[#allocation18_spill] sm:$0xff] }
 0x2b5   : > { %v4021_v13 = vrot.slane %v4005_v23, 1  ;;  %v4045_v34 = vmul.f32 %v10425_v2, %v9065_v56  ;;  %v4053_v27 = vmul.f32 %v10425_v2, %v5636_v35  ;;  %v3701_v12 = vmul.f32 %v5597_v48, %v10426_v31  ;;  %v10428_v2 = vld [vmem:[#allocation13_spill] sm:$0xff]  ;;  %v10429_v31 = vld [vmem:[#allocation46_spill] sm:$0xff] }
 0x2b6   : > { %v4036_v54 = vadd.f32 %v4020_v46, %v3996_v43  ;;  %v3852_v32 = vadd.f32 %v3844_v24, %v3820_v58  ;;  %v3936_v16 = vsel %vm1529_vm0, %v3934_v61, %v3935_v29  ;;  %v3717_v3 = vmul.f32 %v5597_v48, %v8055_v52  ;;  %v9094_v24 = vld [vmem:[%s7514_s9 + $0x310] sm:$0xff]  ;;  %v10431_v29 = vld [vmem:[#allocation14_spill] sm:$0xff] }
 0x2b7   : > { %v4079_v7 = vrot.slane %v4045_v34, 2  ;;  %v4080_v14 = vrot.slane %v4053_v27, 2  ;;  %v3757_v18 = vmul.f32 %v5597_v48, %v10427_v57  ;;  %v3765_v63 = vmul.f32 %v5605_v10, %v10427_v57  ;;  %10430 = vst [vmem:[#allocation47_spill] sm:$0xff] %v9094_v24 }
 0x2b8   : > { %v4108_v23 = vadd.f32 %v4078_v26, %v4036_v54  ;;  %v3892_v11 = vadd.f32 %v3876_v1, %v3852_v32  ;;  %v3733_v35 = vrot.slane %v3717_v3, 1  ;;  %v3845_v46 = vmul.f32 %v10429_v31, %v10428_v2  ;;  %v10432_v26 = vld [vmem:[#allocation15_spill] sm:$0xff]  ;;  %v10433_v2 = vld [vmem:[#allocation16_spill] sm:$0xff] }
 0x2b9   : > { %v4081_v43 = vsel %vm1529_vm0, %v4079_v7, %v4080_v14  ;;  %v3793_v58 = vrot.slane %v3757_v18, 2  ;;  %v3794_v61 = vrot.slane %v3765_v63, 2  ;;  %v3861_v48 = vmul.f32 %v10429_v31, %v10431_v29  ;;  %v5637_v54 = vld [vmem:[%s7514_s9 + $0x350] sm:$0x1]  ;;  %v10434_v14 = vld [vmem:[#allocation17_spill] sm:$0xff]  ;;  %v5598_v63 = vld [vmem:[%s7514_s9 + $0x218] sm:$0xff] }
 0x2ba   : > { %5643 = vst [vmem:[%s7675_s27 + $0x140] sm:$0x7f] %v4108_v23  ;;  %v3964_v10 = vadd.f32 %v3936_v16, %v3892_v11  ;;  %v3749_v34 = vadd.f32 %v3733_v35, %v3701_v12  ;;  %v3901_v1 = vmul.f32 %v10429_v31, %v10432_v26  ;;  %v3909_v27 = vmul.f32 %v5621_v55, %v10432_v26  ;;  %v5606_v16 = vld [vmem:[%s7514_s9 + $0x258] sm:$0x1] }
 0x2bb   : > { %v3795_v32 = vsel %vm1529_vm0, %v3793_v58, %v3794_v61  ;;  %v3877_v3 = vrot.slane %v3861_v48, 1  ;;  %v3990_v7 = vmul.f32 %v9094_v24, %v10433_v2  ;;  %v4006_v18 = vmul.f32 %v9094_v24, %v10434_v14  ;;  %v10435_v55 = vld [vmem:[#allocation48_spill] sm:$0xff]  ;;  %v10436_v61 = vld [vmem:[#allocation19_spill] sm:$0xff] }
 0x2bc   : > { %v3997_v29 = vadd.f32 %v3989_v50, %v3964_v10  ;;  %v3821_v23 = vadd.f32 %v3795_v32, %v3749_v34  ;;  %v3937_v11 = vrot.slane %v3901_v1, 2  ;;  %v3938_v12 = vrot.slane %v3909_v27, 2  ;;  %v5622_v32 = vld [vmem:[%s7514_s9 + $0x2d8] sm:$0x1] }
 0x2bd   : > { %v4022_v31 = vrot.slane %v4006_v18, 1  ;;  %v4046_v35 = vmul.f32 %v10435_v55, %v9094_v24  ;;  %v4054_v58 = vmul.f32 %v10435_v55, %v5637_v54  ;;  %v3702_v48 = vmul.f32 %v5598_v63, %v10436_v61  ;;  %v10437_v55 = vld [vmem:[#allocation20_spill] sm:$0xff]  ;;  %v10438_v61 = vld [vmem:[#allocation6_spill] sm:$0xff] }
 0x2be   : > { %v4037_v2 = vadd.f32 %v4021_v13, %v3997_v29  ;;  %v3853_v26 = vadd.f32 %v3845_v46, %v3821_v23  ;;  %v3939_v14 = vsel %vm1529_vm0, %v3937_v11, %v3938_v12  ;;  %v3718_v50 = vmul.f32 %v5598_v63, %v10343_v47  ;;  %v9123_v46 = vld [vmem:[%s7514_s9 + $0x318] sm:$0xff]  ;;  %v10440_v12 = vld [vmem:[#allocation23_spill] sm:$0xff] }
 0x2bf   : > { %v4082_v10 = vrot.slane %v4046_v35, 2  ;;  %v4083_v34 = vrot.slane %v4054_v58, 2  ;;  %v3758_v1 = vmul.f32 %v5598_v63, %v10390_v49  ;;  %v3766_v27 = vmul.f32 %v5606_v16, %v10390_v49  ;;  %10439 = vst [vmem:[#allocation55_spill] sm:$0xff] %v9123_v46  ;;  %v5638_v58 = vld [vmem:[%s7514_s9 + $0x358] sm:$0x1] }
 0x2c0   : > { %v4109_v18 = vadd.f32 %v4081_v43, %v4037_v2  ;;  %v3893_v24 = vadd.f32 %v3877_v3, %v3853_v26  ;;  %v3734_v54 = vrot.slane %v3718_v50, 1  ;;  %v3846_v13 = vmul.f32 %v10438_v61, %v10437_v55  ;;  %v10441_v43 = vld [vmem:[#allocation24_spill] sm:$0xff]  ;;  %v10442_v55 = vld [vmem:[#allocation25_spill] sm:$0xff] }
 0x2c1   : > { %v4084_v29 = vsel %vm1529_vm0, %v4082_v10, %v4083_v34  ;;  %v3796_v23 = vrot.slane %v3758_v1, 2  ;;  %v3797_v11 = vrot.slane %v3766_v27, 2  ;;  %v3862_v63 = vmul.f32 %v10438_v61, %v10440_v12  ;;  %v10443_v34 = vld [vmem:[#allocation27_spill] sm:$0xff]  ;;  %v5599_v27 = vld [vmem:[%s7514_s9 + $0x220] sm:$0xff] }
 0x2c2   : > { %5644 = vst [vmem:[%s7675_s27 + $0x148] sm:$0x7f] %v4109_v18  ;;  %v3965_v16 = vadd.f32 %v3939_v14, %v3893_v24  ;;  %v3750_v35 = vadd.f32 %v3734_v54, %v3702_v48  ;;  %v3902_v26 = vmul.f32 %v10438_v61, %v10441_v43  ;;  %v3910_v3 = vmul.f32 %v5622_v32, %v10441_v43  ;;  %v5607_v14 = vld [vmem:[%s7514_s9 + $0x260] sm:$0x1]  ;;  %v10444_v32 = vld [vmem:[#allocation8_spill] sm:$0xff] }
 0x2c3   : > { %v3798_v2 = vsel %vm1529_vm0, %v3796_v23, %v3797_v11  ;;  %v3878_v50 = vrot.slane %v3862_v63, 1  ;;  %v3991_v10 = vmul.f32 %v9123_v46, %v10442_v55  ;;  %v4007_v1 = vmul.f32 %v9123_v46, %v10443_v34  ;;  %v10445_v11 = vld [vmem:[#allocation26_spill] sm:$0xff] }
 0x2c4   : > { %v3998_v12 = vadd.f32 %v3990_v7, %v3965_v16  ;;  %v3822_v18 = vadd.f32 %v3798_v2, %v3750_v35  ;;  %v3940_v24 = vrot.slane %v3902_v26, 2  ;;  %v3941_v48 = vrot.slane %v3910_v3, 2  ;;  %v5623_v2 = vld [vmem:[%s7514_s9 + $0x2e0] sm:$0x1] }
 0x2c5   : > { %v4023_v61 = vrot.slane %v4007_v1, 1  ;;  %v4047_v54 = vmul.f32 %v10444_v32, %v9123_v46  ;;  %v4055_v23 = vmul.f32 %v10444_v32, %v5638_v58  ;;  %v3703_v63 = vmul.f32 %v5599_v27, %v10445_v11 }
 0x2c6   : > { %v4038_v55 = vadd.f32 %v4022_v31, %v3998_v12  ;;  %v3854_v43 = vadd.f32 %v3846_v13, %v3822_v18  ;;  %v3942_v34 = vsel %vm1529_vm0, %v3940_v24, %v3941_v48  ;;  %v3719_v7 = vmul.f32 %v5599_v27, %v10305_v22  ;;  %v9152_v13 = vld [vmem:[%s7514_s9 + $0x320] sm:$0xff] }
 0x2c7   : > { %v4085_v16 = vrot.slane %v4047_v54, 2  ;;  %v4086_v35 = vrot.slane %v4055_v23, 2  ;;  %v3759_v26 = vmul.f32 %v5599_v27, %v10399_v39  ;;  %v3767_v3 = vmul.f32 %v5607_v14, %v10399_v39  ;;  %10446 = vst [vmem:[#allocation5_spill] sm:$0xff] %v9152_v13  ;;  %v10447_v48 = vld [vmem:[#allocation33_spill] sm:$0xff] }
 0x2c8   : > { %v4110_v1 = vadd.f32 %v4084_v29, %v4038_v55  ;;  %v3894_v46 = vadd.f32 %v3878_v50, %v3854_v43  ;;  %v3735_v58 = vrot.slane %v3719_v7, 1  ;;  %v3847_v31 = vmul.f32 %v8915_v4, %v10400_v15  ;;  %v10448_v29 = vld [vmem:[#allocation34_spill] sm:$0xff]  ;;  %v5639_v54 = vld [vmem:[%s7514_s9 + $0x360] sm:$0x1]  ;;  %v10449_v7 = vld [vmem:[#allocation36_spill] sm:$0xff] }
 0x2c9   : > { %v4087_v12 = vsel %vm1529_vm0, %v4085_v16, %v4086_v35  ;;  %v3799_v18 = vrot.slane %v3759_v26, 2  ;;  %v3800_v24 = vrot.slane %v3767_v3, 2  ;;  %v3863_v27 = vmul.f32 %v8915_v4, %v10447_v48  ;;  %v10450_v35 = vld [vmem:[#allocation37_spill] sm:$0xff]  ;;  %v5600_v3 = vld [vmem:[%s7514_s9 + $0x228] sm:$0xff] }
 0x2ca   : > { %5645 = vst [vmem:[%s7675_s27 + $0x150] sm:$0x7f] %v4110_v1  ;;  %v3966_v14 = vadd.f32 %v3942_v34, %v3894_v46  ;;  %v3751_v32 = vadd.f32 %v3735_v58, %v3703_v63  ;;  %v3903_v43 = vmul.f32 %v8915_v4, %v10448_v29  ;;  %v3911_v50 = vmul.f32 %v5623_v2, %v10448_v29  ;;  %v5608_v34 = vld [vmem:[%s7514_s9 + $0x268] sm:$0x1] }
 0x2cb   : > { %v3801_v23 = vsel %vm1529_vm0, %v3799_v18, %v3800_v24  ;;  %v3879_v55 = vrot.slane %v3863_v27, 1  ;;  %v3992_v16 = vmul.f32 %v9152_v13, %v10449_v7  ;;  %v4008_v26 = vmul.f32 %v9152_v13, %v10450_v35  ;;  %v10451_v2 = vld [vmem:[#allocation42_spill] sm:$0xff]  ;;  %v10452_v24 = vld [vmem:[#allocation29_spill] sm:$0xff] }
 0x2cc   : > { %v3999_v48 = vadd.f32 %v3991_v10, %v3966_v14  ;;  %v3823_v1 = vadd.f32 %v3801_v23, %v3751_v32  ;;  %v3943_v46 = vrot.slane %v3903_v43, 2  ;;  %v3944_v63 = vrot.slane %v3911_v50, 2  ;;  %v5624_v23 = vld [vmem:[%s7514_s9 + $0x2e8] sm:$0x1] }
 0x2cd   : > { %v4024_v4 = vrot.slane %v4008_v26, 1  ;;  %v4048_v58 = vmul.f32 %v10451_v2, %v9152_v13  ;;  %v4056_v18 = vmul.f32 %v10451_v2, %v5639_v54  ;;  %v3704_v27 = vmul.f32 %v5600_v3, %v10452_v24 }
 0x2ce   : > { %v4039_v7 = vadd.f32 %v4023_v61, %v3999_v48  ;;  %v3855_v29 = vadd.f32 %v3847_v31, %v3823_v1  ;;  %v3945_v35 = vsel %vm1529_vm0, %v3943_v46, %v3944_v63  ;;  %v3720_v10 = vmul.f32 %v5600_v3, %v10314_v41  ;;  %v9181_v31 = vld [vmem:[%s7514_s9 + $0x328] sm:$0xff]  ;;  %v10453_v63 = vld [vmem:[#allocation41_spill] sm:$0xff] }
 0x2cf   : > { %v4088_v14 = vrot.slane %v4048_v58, 2  ;;  %v4089_v32 = vrot.slane %v4056_v18, 2  ;;  %v3760_v43 = vmul.f32 %v5600_v3, %v10315_v9  ;;  %v3768_v50 = vmul.f32 %v5608_v34, %v10315_v9  ;;  %v5640_v58 = vld [vmem:[%s7514_s9 + $0x368] sm:$0x1] }
 0x2d0   : > { %v4111_v26 = vadd.f32 %v4087_v12, %v4039_v7  ;;  %v3895_v13 = vadd.f32 %v3879_v55, %v3855_v29  ;;  %v3736_v54 = vrot.slane %v3720_v10, 1  ;;  %v3848_v61 = vmul.f32 %v8947_v62, %v10406_v51  ;;  %v10454_v12 = vld [vmem:[#allocation43_spill] sm:$0xff]  ;;  %v10455_v10 = vld [vmem:[#allocation44_spill] sm:$0xff] }
 0x2d1   : > { %v4090_v48 = vsel %vm1529_vm0, %v4088_v14, %v4089_v32  ;;  %v3802_v1 = vrot.slane %v3760_v43, 2  ;;  %v3803_v46 = vrot.slane %v3768_v50, 2  ;;  %v3864_v3 = vmul.f32 %v8947_v62, %v10453_v63  ;;  %v10456_v32 = vld [vmem:[#allocation45_spill] sm:$0xff]  ;;  %v5601_v50 = vld [vmem:[%s7514_s9 + $0x230] sm:$0xff] }
 0x2d2   : > { %5646 = vst [vmem:[%s7675_s27 + $0x158] sm:$0x7f] %v4111_v26  ;;  %v3967_v34 = vadd.f32 %v3945_v35, %v3895_v13  ;;  %v3752_v2 = vadd.f32 %v3736_v54, %v3704_v27  ;;  %v3904_v29 = vmul.f32 %v8947_v62, %v10454_v12  ;;  %v3912_v55 = vmul.f32 %v5624_v23, %v10454_v12  ;;  %v5609_v35 = vld [vmem:[%s7514_s9 + $0x270] sm:$0x1] }
 0x2d3   : > { %v3804_v18 = vsel %vm1529_vm0, %v3802_v1, %v3803_v46  ;;  %v3880_v7 = vrot.slane %v3864_v3, 1  ;;  %v3993_v14 = vmul.f32 %v9181_v31, %v10455_v10  ;;  %v4009_v43 = vmul.f32 %v9181_v31, %v10456_v32  ;;  %v10457_v23 = vld [vmem:[#allocation39_spill] sm:$0xff] }
 0x2d4   : > { %v4000_v63 = vadd.f32 %v3992_v16, %v3967_v34  ;;  %v3824_v26 = vadd.f32 %v3804_v18, %v3752_v2  ;;  %v3946_v13 = vrot.slane %v3904_v29, 2  ;;  %v3947_v27 = vrot.slane %v3912_v55, 2  ;;  %v5625_v18 = vld [vmem:[%s7514_s9 + $0x2f0] sm:$0x1] }
 0x2d5   : > { %v4025_v62 = vrot.slane %v4009_v43, 1  ;;  %v4049_v54 = vmul.f32 %v10457_v23, %v9181_v31  ;;  %v4057_v1 = vmul.f32 %v10457_v23, %v5640_v58  ;;  %v3705_v46 = vmul.f32 %v5601_v50, %v10366_v21 }
 0x2d6   : > { %v4040_v3 = vadd.f32 %v4024_v4, %v4000_v63  ;;  %v3856_v10 = vadd.f32 %v3848_v61, %v3824_v26  ;;  %v3948_v32 = vsel %vm1529_vm0, %v3946_v13, %v3947_v27  ;;  %v3721_v16 = vmul.f32 %v5601_v50, %v8211_v42  ;;  %v9210_v61 = vld [vmem:[%s7514_s9 + $0x330] sm:$0xff]  ;;  %v10458_v27 = vld [vmem:[#allocation49_spill] sm:$0xff] }
 0x2d7   : > { %v4091_v34 = vrot.slane %v4049_v54, 2  ;;  %v4092_v2 = vrot.slane %v4057_v1, 2  ;;  %v3761_v29 = vmul.f32 %v5601_v50, %v7903_v5  ;;  %v3769_v55 = vmul.f32 %v5609_v35, %v7903_v5  ;;  %v5641_v1 = vld [vmem:[%s7514_s9 + $0x370] sm:$0x1] }
 0x2d8   : > { %v4112_v43 = vadd.f32 %v4090_v48, %v4040_v3  ;;  %v3896_v12 = vadd.f32 %v3880_v7, %v3856_v10  ;;  %v3737_v58 = vrot.slane %v3721_v16, 1  ;;  %v3849_v4 = vmul.f32 %v8979_v59, %v10322_v28  ;;  %v10459_v48 = vld [vmem:[#allocation50_spill] sm:$0xff]  ;;  %v10460_v16 = vld [vmem:[#allocation52_spill] sm:$0xff] }
 0x2d9   : > { %v4093_v63 = vsel %vm1529_vm0, %v4091_v34, %v4092_v2  ;;  %v3805_v26 = vrot.slane %v3761_v29, 2  ;;  %v3806_v13 = vrot.slane %v3769_v55, 2  ;;  %v3865_v50 = vmul.f32 %v8979_v59, %v10458_v27  ;;  %v10461_v2 = vld [vmem:[#allocation53_spill] sm:$0xff]  ;;  %v5602_v55 = vld [vmem:[%s7514_s9 + $0x238] sm:$0xff] }
 0x2da   : > { %5647 = vst [vmem:[%s7675_s27 + $0x160] sm:$0x7f] %v4112_v43  ;;  %v3968_v35 = vadd.f32 %v3948_v32, %v3896_v12  ;;  %v3753_v23 = vadd.f32 %v3737_v58, %v3705_v46  ;;  %v3905_v7 = vmul.f32 %v8979_v59, %v10459_v48  ;;  %v3913_v54 = vmul.f32 %v5625_v18, %v10459_v48  ;;  %v5610_v32 = vld [vmem:[%s7514_s9 + $0x278] sm:$0x1]  ;;  %v10462_v18 = vld [vmem:[#allocation62_spill] sm:$0xff] }
 0x2db   : > { %v3807_v3 = vsel %vm1529_vm0, %v3805_v26, %v3806_v13  ;;  %v3881_v10 = vrot.slane %v3865_v50, 1  ;;  %v3994_v34 = vmul.f32 %v9210_v61, %v10460_v16  ;;  %v4010_v29 = vmul.f32 %v9210_v61, %v10461_v2 }
 0x2dc   : > { %v4001_v27 = vadd.f32 %v3993_v14, %v3968_v35  ;;  %v3825_v43 = vadd.f32 %v3807_v3, %v3753_v23  ;;  %v3949_v12 = vrot.slane %v3905_v7, 2  ;;  %v3950_v46 = vrot.slane %v3913_v54, 2  ;;  %v5626_v3 = vld [vmem:[%s7514_s9 + $0x2f8] sm:$0x1] }
 0x2dd   : > { %v4026_v59 = vrot.slane %v4010_v29, 1  ;;  %v4050_v58 = vmul.f32 %v10462_v18, %v9210_v61  ;;  %v4058_v26 = vmul.f32 %v10462_v18, %v5641_v1  ;;  %v3706_v13 = vmul.f32 %v5602_v55, %v10371_v53  ;;  %v10463_v18 = vld [vmem:[#allocation51_spill] sm:$0xff] }
 0x2de   : > { %v4041_v50 = vadd.f32 %v4025_v62, %v4001_v27  ;;  %v3857_v16 = vadd.f32 %v3849_v4, %v3825_v43  ;;  %v3951_v2 = vsel %vm1529_vm0, %v3949_v12, %v3950_v46  ;;  %v3722_v14 = vmul.f32 %v5602_v55, %v8250_v6  ;;  %v9239_v4 = vld [vmem:[%s7514_s9 + $0x338] sm:$0xff] }
 0x2df   : > { %v4094_v35 = vrot.slane %v4050_v58, 2  ;;  %v4095_v23 = vrot.slane %v4058_v26, 2  ;;  %v3762_v7 = vmul.f32 %v5602_v55, %v7958_v40  ;;  %v3770_v54 = vmul.f32 %v5610_v32, %v7958_v40  ;;  %v10464_v46 = vld [vmem:[#allocation56_spill] sm:$0xff] }
 0x2e0   : > { %v4113_v29 = vadd.f32 %v4093_v63, %v4041_v50  ;;  %v3897_v48 = vadd.f32 %v3881_v10, %v3857_v16  ;;  %v3738_v1 = vrot.slane %v3722_v14, 1  ;;  %v3850_v62 = vmul.f32 %v10463_v18, %v10327_v19  ;;  %v10465_v63 = vld [vmem:[#allocation57_spill] sm:$0xff]  ;;  %v5642_v50 = vld [vmem:[%s7514_s9 + $0x378] sm:$0x1]  ;;  %v10466_v19 = vld [vmem:[#allocation58_spill] sm:$0xff] }
 0x2e1   : > { %v4096_v27 = vsel %vm1529_vm0, %v4094_v35, %v4095_v23  ;;  %v3808_v43 = vrot.slane %v3762_v7, 2  ;;  %v3809_v12 = vrot.slane %v3770_v54, 2  ;;  %v3866_v55 = vmul.f32 %v10463_v18, %v10464_v46  ;;  %v10467_v23 = vld [vmem:[#allocation59_spill] sm:$0xff]  ;;  %v5651_v54 = vld [vmem:[%s7514_s9 + $0x280] sm:$0xff] }
 0x2e2   : > { %5648 = vst [vmem:[%s7675_s27 + $0x168] sm:$0x7f] %v4113_v29  ;;  %v3969_v32 = vadd.f32 %v3951_v2, %v3897_v48  ;;  %v3754_v58 = vadd.f32 %v3738_v1, %v3706_v13  ;;  %v3906_v10 = vmul.f32 %v10463_v18, %v10465_v63  ;;  %v3914_v26 = vmul.f32 %v5626_v3, %v10465_v63  ;;  %v5659_v2 = vld [vmem:[%s7514_s9 + $0x2c0] sm:$0x1] }
 0x2e3   : > { %v3810_v16 = vsel %vm1529_vm0, %v3808_v43, %v3809_v12  ;;  %v3882_v14 = vrot.slane %v3866_v55, 1  ;;  %v3995_v35 = vmul.f32 %v9239_v4, %v10466_v19  ;;  %v4011_v7 = vmul.f32 %v9239_v4, %v10467_v23 }
 0x2e4   : > { %v4002_v46 = vadd.f32 %v3994_v34, %v3969_v32  ;;  %v3826_v29 = vadd.f32 %v3810_v16, %v3754_v58  ;;  %v3952_v48 = vrot.slane %v3906_v10, 2  ;;  %v3953_v13 = vrot.slane %v3914_v26, 2  ;;  %v5675_v16 = vld [vmem:[%s7514_s9 + $0x340] sm:$0x1] }
 0x2e5   : > { %v4027_v1 = vrot.slane %v4011_v7, 1  ;;  %v4051_v3 = vmul.f32 %v9022_v36, %v9239_v4  ;;  %v4059_v43 = vmul.f32 %v9022_v36, %v5642_v50  ;;  %v4141_v12 = vmul.f32 %v5651_v54, %v7974_v25 }
 0x2e6   : > { %v4042_v19 = vadd.f32 %v4026_v59, %v4002_v46  ;;  %v3858_v55 = vadd.f32 %v3850_v62, %v3826_v29  ;;  %v3954_v23 = vsel %vm1529_vm0, %v3952_v48, %v3953_v13  ;;  %v4157_v34 = vmul.f32 %v5651_v54, %v7982_v33  ;;  %v5652_v59 = vld [vmem:[%s7514_s9 + $0x288] sm:$0xff] }
 0x2e7   : > { %v4097_v32 = vrot.slane %v4051_v3, 2  ;;  %v4098_v58 = vrot.slane %v4059_v43, 2  ;;  %v4197_v10 = vmul.f32 %v5651_v54, %v7573_v0  ;;  %v4205_v26 = vmul.f32 %v5659_v2, %v7573_v0  ;;  %v5660_v29 = vld [vmem:[%s7514_s9 + $0x2c8] sm:$0x1] }
 0x2e8   : > { %v4114_v7 = vadd.f32 %v4096_v27, %v4042_v19  ;;  %v3898_v63 = vadd.f32 %v3882_v14, %v3858_v55  ;;  %v4173_v36 = vrot.slane %v4157_v34, 1  ;;  %v4285_v25 = vmul.f32 %v9036_v17, %v7529_v44 }
 0x2e9   : > { %v4099_v62 = vsel %vm1529_vm0, %v4097_v32, %v4098_v58  ;;  %v4229_v46 = vrot.slane %v4197_v10, 2  ;;  %v4230_v50 = vrot.slane %v4205_v26, 2  ;;  %v4301_v33 = vmul.f32 %v9036_v17, %v7533_v45  ;;  %v10468_v26 = vld [vmem:[#allocation9_spill] sm:$0xff] }
 0x2ea   : > { %5649 = vst [vmem:[%s7675_s27 + $0x170] sm:$0x7f] %v4114_v7  ;;  %v3970_v54 = vadd.f32 %v3954_v23, %v3898_v63  ;;  %v4189_v0 = vadd.f32 %v4173_v36, %v4141_v12  ;;  %v4341_v27 = vmul.f32 %v9036_v17, %v10285_v38  ;;  %v4349_v14 = vmul.f32 %v5675_v16, %v10285_v38  ;;  %v5676_v38 = vld [vmem:[%s7514_s9 + $0x348] sm:$0x1] }
 0x2eb   : > { %v4231_v44 = vsel %vm1529_vm0, %v4229_v46, %v4230_v50  ;;  %v4317_v48 = vrot.slane %v4301_v33, 1  ;;  %v4142_v13 = vmul.f32 %v5652_v59, %v8010_v20  ;;  %v4158_v2 = vmul.f32 %v5652_v59, %v10287_v8 }
 0x2ec   : > { %v4003_v3 = vadd.f32 %v3995_v35, %v3970_v54  ;;  %v4261_v45 = vadd.f32 %v4231_v44, %v4189_v0  ;;  %v4373_v43 = vrot.slane %v4341_v27, 2  ;;  %v4374_v63 = vrot.slane %v4349_v14, 2  ;;  %v5653_v35 = vld [vmem:[%s7514_s9 + $0x290] sm:$0xff] }
 0x2ed   : > { %v4174_v19 = vrot.slane %v4158_v2, 1  ;;  %v4198_v12 = vmul.f32 %v5652_v59, %v10288_v37  ;;  %v4206_v17 = vmul.f32 %v5660_v29, %v10288_v37  ;;  %v4286_v55 = vmul.f32 %v9065_v56, %v10289_v60  ;;  %v5677_v0 = vld [vmem:[%s7514_s9 + $0x350] sm:$0x1]  ;;  %v10470_v29 = vld [vmem:[#allocation13_spill] sm:$0xff] }
 0x2ee   : > { %v4043_v23 = vadd.f32 %v4027_v1, %v4003_v3  ;;  %v4293_v34 = vadd.f32 %v4285_v25, %v4261_v45  ;;  %v4375_v20 = vsel %vm1529_vm0, %v4373_v43, %v4374_v63  ;;  %v4302_v8 = vmul.f32 %v9065_v56, %v10334_v30  ;;  %v5661_v1 = vld [vmem:[%s7514_s9 + $0x2d0] sm:$0x1]  ;;  %v10469_v30 = vld [vmem:[#allocation61_spill] sm:$0xff]  ;;  %v5654_v3 = vld [vmem:[%s7514_s9 + $0x298] sm:$0xff] }
 0x2ef   : > { %v4190_v32 = vadd.f32 %v4174_v19, %v4142_v13  ;;  %v4232_v58 = vrot.slane %v4198_v12, 2  ;;  %v4233_v10 = vrot.slane %v4206_v17, 2  ;;  %v4342_v37 = vmul.f32 %v9065_v56, %v10468_v26  ;;  %v10471_v44 = vld [vmem:[#allocation47_spill] sm:$0xff]  ;;  %v10472_v13 = vld [vmem:[#allocation14_spill] sm:$0xff]  ;;  %v5662_v12 = vld [vmem:[%s7514_s9 + $0x2d8] sm:$0x1] }
 0x2f0   : > { %v4115_v16 = vadd.f32 %v4099_v62, %v4043_v23  ;;  %v4333_v7 = vadd.f32 %v4317_v48, %v4293_v34  ;;  %v4318_v36 = vrot.slane %v4302_v8, 1  ;;  %v4350_v60 = vmul.f32 %v5676_v38, %v10468_v26  ;;  %v10473_v63 = vld [vmem:[#allocation15_spill] sm:$0xff] }
 0x2f1   : > { %v4234_v25 = vsel %vm1529_vm0, %v4232_v58, %v4233_v10  ;;  %v4376_v59 = vrot.slane %v4342_v37, 2  ;;  %v4143_v46 = vmul.f32 %v5653_v35, %v10469_v30  ;;  %v4159_v50 = vmul.f32 %v5653_v35, %v8055_v52  ;;  %v10474_v8 = vld [vmem:[#allocation19_spill] sm:$0xff]  ;;  %v5678_v37 = vld [vmem:[%s7514_s9 + $0x358] sm:$0x1] }
 0x2f2   : > { %5650 = vst [vmem:[%s7675_s27 + $0x178] sm:$0x7f] %v4115_v16  ;;  %v4405_v33 = vadd.f32 %v4375_v20, %v4333_v7  ;;  %v4262_v54 = vadd.f32 %v4234_v25, %v4190_v32  ;;  %v4377_v56 = vrot.slane %v4350_v60, 2  ;;  %v4199_v62 = vmul.f32 %v5653_v35, %v10427_v57 }
 0x2f3   : > { %v4175_v27 = vrot.slane %v4159_v50, 1  ;;  %v4207_v14 = vmul.f32 %v5661_v1, %v10427_v57  ;;  %v4287_v48 = vmul.f32 %v10471_v44, %v10470_v29  ;;  %v4303_v2 = vmul.f32 %v10471_v44, %v10472_v13  ;;  %v10475_v1 = vld [vmem:[#allocation20_spill] sm:$0xff]  ;;  %v10477_v50 = vld [vmem:[#allocation23_spill] sm:$0xff] }
 0x2f4   : > { %5683 = vst [vmem:[%s7675_s27 + $0x180] sm:$0x7f] %v4405_v33  ;;  %v4294_v52 = vadd.f32 %v4286_v55, %v4262_v54  ;;  %v4378_v45 = vsel %vm1529_vm0, %v4376_v59, %v4377_v56  ;;  %v4235_v43 = vrot.slane %v4199_v62, 2  ;;  %v4343_v19 = vmul.f32 %v10471_v44, %v10473_v63  ;;  %v5655_v59 = vld [vmem:[%s7514_s9 + $0x2a0] sm:$0xff]  ;;  %v10478_v56 = vld [vmem:[#allocation24_spill] sm:$0xff] }
 0x2f5   : > { %v4191_v17 = vadd.f32 %v4175_v27, %v4143_v46  ;;  %v4236_v38 = vrot.slane %v4207_v14, 2  ;;  %v4319_v57 = vrot.slane %v4303_v2, 1  ;;  %v4351_v23 = vmul.f32 %v5677_v0, %v10473_v63  ;;  %v5663_v27 = vld [vmem:[%s7514_s9 + $0x2e0] sm:$0x1] }
 0x2f6   : > { %v4334_v34 = vadd.f32 %v4318_v36, %v4294_v52  ;;  %v4379_v20 = vrot.slane %v4343_v19, 2  ;;  %v4144_v35 = vmul.f32 %v5654_v3, %v10474_v8  ;;  %v4160_v55 = vmul.f32 %v5654_v3, %v10343_v47  ;;  %v10476_v36 = vld [vmem:[#allocation55_spill] sm:$0xff]  ;;  %v5679_v19 = vld [vmem:[%s7514_s9 + $0x360] sm:$0x1] }
 0x2f7   : > { %v4237_v32 = vsel %vm1529_vm0, %v4235_v43, %v4236_v38  ;;  %v4380_v58 = vrot.slane %v4351_v23, 2  ;;  %v4200_v10 = vmul.f32 %v5654_v3, %v10390_v49  ;;  %v4208_v26 = vmul.f32 %v5662_v12, %v10390_v49  ;;  %v10479_v12 = vld [vmem:[#allocation5_spill] sm:$0xff] }
 0x2f8   : > { %v4406_v16 = vadd.f32 %v4378_v45, %v4334_v34  ;;  %v4263_v7 = vadd.f32 %v4237_v32, %v4191_v17  ;;  %v4176_v60 = vrot.slane %v4160_v55, 1  ;;  %v4288_v25 = vmul.f32 %v10476_v36, %v10475_v1  ;;  %v5656_v34 = vld [vmem:[%s7514_s9 + $0x2a8] sm:$0xff] }
 0x2f9   : > { %v4381_v30 = vsel %vm1529_vm0, %v4379_v20, %v4380_v58  ;;  %v4238_v46 = vrot.slane %v4200_v10, 2  ;;  %v4239_v47 = vrot.slane %v4208_v26, 2  ;;  %v4304_v33 = vmul.f32 %v10476_v36, %v10477_v50  ;;  %v10481_v55 = vld [vmem:[#allocation34_spill] sm:$0xff] }
 0x2fa   : > { %5684 = vst [vmem:[%s7675_s27 + $0x188] sm:$0x7f] %v4406_v16  ;;  %v4295_v54 = vadd.f32 %v4287_v48, %v4263_v7  ;;  %v4192_v49 = vadd.f32 %v4176_v60, %v4144_v35  ;;  %v4344_v62 = vmul.f32 %v10476_v36, %v10478_v56  ;;  %v4352_v0 = vmul.f32 %v5678_v37, %v10478_v56 }
 0x2fb   : > { %v4240_v14 = vsel %vm1529_vm0, %v4238_v46, %v4239_v47  ;;  %v4320_v29 = vrot.slane %v4304_v33, 1  ;;  %v4145_v44 = vmul.f32 %v5655_v59, %v10445_v11  ;;  %v4161_v13 = vmul.f32 %v5655_v59, %v10305_v22  ;;  %v10480_v22 = vld [vmem:[#allocation33_spill] sm:$0xff] }
 0x2fc   : > { %v4335_v2 = vadd.f32 %v4319_v57, %v4295_v54  ;;  %v4264_v3 = vadd.f32 %v4240_v14, %v4192_v49  ;;  %v4382_v52 = vrot.slane %v4344_v62, 2  ;;  %v4383_v48 = vrot.slane %v4352_v0, 2  ;;  %v5657_v54 = vld [vmem:[%s7514_s9 + $0x2b0] sm:$0xff] }
 0x2fd   : > { %v4177_v45 = vrot.slane %v4161_v13, 1  ;;  %v4201_v43 = vmul.f32 %v5655_v59, %v10399_v39  ;;  %v4209_v63 = vmul.f32 %v5663_v27, %v10399_v39  ;;  %v4289_v17 = vmul.f32 %v10479_v12, %v10400_v15  ;;  %v5664_v39 = vld [vmem:[%s7514_s9 + $0x2e8] sm:$0x1]  ;;  %v10483_v62 = vld [vmem:[#allocation43_spill] sm:$0xff] }
 0x2fe   : > { %v4407_v38 = vadd.f32 %v4381_v30, %v4335_v2  ;;  %v4296_v23 = vadd.f32 %v4288_v25, %v4264_v3  ;;  %v4384_v11 = vsel %vm1529_vm0, %v4382_v52, %v4383_v48  ;;  %v4305_v57 = vmul.f32 %v10479_v12, %v10480_v22  ;;  %v5680_v30 = vld [vmem:[%s7514_s9 + $0x368] sm:$0x1] }
 0x2ff   : > { %v4193_v20 = vadd.f32 %v4177_v45, %v4145_v44  ;;  %v4241_v8 = vrot.slane %v4201_v43, 2  ;;  %v4242_v35 = vrot.slane %v4209_v63, 2  ;;  %v4345_v32 = vmul.f32 %v10479_v12, %v10481_v55  ;;  %v5681_v43 = vld [vmem:[%s7514_s9 + $0x370] sm:$0x1]  ;;  %v10484_v12 = vld [vmem:[#allocation49_spill] sm:$0xff] }
 0x300   : > { %5685 = vst [vmem:[%s7675_s27 + $0x190] sm:$0x7f] %v4407_v38  ;;  %v4336_v58 = vadd.f32 %v4320_v29, %v4296_v23  ;;  %v4321_v10 = vrot.slane %v4305_v57, 1  ;;  %v4353_v15 = vmul.f32 %v5679_v19, %v10481_v55  ;;  %v4146_v26 = vmul.f32 %v5656_v34, %v10452_v24  ;;  %v10482_v24 = vld [vmem:[#allocation41_spill] sm:$0xff] }
 0x301   : > { %v4243_v37 = vsel %vm1529_vm0, %v4241_v8, %v4242_v35  ;;  %v4385_v16 = vrot.slane %v4345_v32, 2  ;;  %v4162_v7 = vmul.f32 %v5656_v34, %v10314_v41  ;;  %v4202_v60 = vmul.f32 %v5656_v34, %v10315_v9  ;;  %v10485_v34 = vld [vmem:[#allocation50_spill] sm:$0xff]  ;;  %v5666_v8 = vld [vmem:[%s7514_s9 + $0x2f8] sm:$0x1] }
 0x302   : > { %v4408_v1 = vadd.f32 %v4384_v11, %v4336_v58  ;;  %v4265_v36 = vadd.f32 %v4243_v37, %v4193_v20  ;;  %v4386_v25 = vrot.slane %v4353_v15, 2  ;;  %v4210_v59 = vmul.f32 %v5664_v39, %v10315_v9  ;;  %v5665_v9 = vld [vmem:[%s7514_s9 + $0x2f0] sm:$0x1] }
 0x303   : > { %v4178_v46 = vrot.slane %v4162_v7, 1  ;;  %v4244_v47 = vrot.slane %v4202_v60, 2  ;;  %v4290_v50 = vmul.f32 %v9181_v31, %v10406_v51  ;;  %v4306_v33 = vmul.f32 %v9181_v31, %v10482_v24 }
 0x304   : > { %5686 = vst [vmem:[%s7675_s27 + $0x198] sm:$0x7f] %v4408_v1  ;;  %v4297_v41 = vadd.f32 %v4289_v17, %v4265_v36  ;;  %v4387_v49 = vsel %vm1529_vm0, %v4385_v16, %v4386_v25  ;;  %v4245_v56 = vrot.slane %v4210_v59, 2  ;;  %v4346_v0 = vmul.f32 %v9181_v31, %v10483_v62  ;;  %v10487_v59 = vld [vmem:[#allocation57_spill] sm:$0xff] }
 0x305   : > { %v4194_v27 = vadd.f32 %v4178_v46, %v4146_v26  ;;  %v4322_v14 = vrot.slane %v4306_v33, 1  ;;  %v4354_v29 = vmul.f32 %v5680_v30, %v10483_v62  ;;  %v4147_v51 = vmul.f32 %v5657_v54, %v10366_v21 }
 0x306   : > { %v4337_v44 = vadd.f32 %v4321_v10, %v4297_v41  ;;  %v4246_v13 = vsel %vm1529_vm0, %v4244_v47, %v4245_v56  ;;  %v4388_v2 = vrot.slane %v4346_v0, 2  ;;  %v4163_v3 = vmul.f32 %v5657_v54, %v8211_v42  ;;  %v10488_v47 = vld [vmem:[#allocation54_spill] sm:$0xff] }
 0x307   : > { %v4266_v52 = vadd.f32 %v4246_v13, %v4194_v27  ;;  %v4389_v48 = vrot.slane %v4354_v29, 2  ;;  %v4203_v45 = vmul.f32 %v5657_v54, %v7903_v5  ;;  %v4211_v31 = vmul.f32 %v5665_v9, %v7903_v5 }
 0x308   : > { %v4409_v63 = vadd.f32 %v4387_v49, %v4337_v44  ;;  %v4179_v19 = vrot.slane %v4163_v3, 1  ;;  %v4291_v21 = vmul.f32 %v9210_v61, %v10322_v28  ;;  %v4307_v17 = vmul.f32 %v9210_v61, %v10484_v12 }
 0x309   : > { %v4298_v38 = vadd.f32 %v4290_v50, %v4266_v52  ;;  %v4390_v23 = vsel %vm1529_vm0, %v4388_v2, %v4389_v48  ;;  %v4247_v42 = vrot.slane %v4203_v45, 2  ;;  %v4248_v11 = vrot.slane %v4211_v31, 2 }
 0x30a   : > { %5687 = vst [vmem:[%s7675_s27 + $0x1a0] sm:$0x7f] %v4409_v63  ;;  %v4195_v22 = vadd.f32 %v4179_v19, %v4147_v51  ;;  %v4323_v57 = vrot.slane %v4307_v17, 1  ;;  %v4347_v5 = vmul.f32 %v9210_v61, %v10485_v34  ;;  %v4355_v20 = vmul.f32 %v5681_v43, %v10485_v34  ;;  %v5682_v61 = vld [vmem:[%s7514_s9 + $0x378] sm:$0x1] }
 0x30b   : > { %v4338_v35 = vadd.f32 %v4322_v14, %v4298_v38  ;;  %v4249_v28 = vsel %vm1529_vm0, %v4247_v42, %v4248_v11  ;;  %v4148_v55 = vmul.f32 %v10463_v18, %v10371_v53  ;;  %v4164_v32 = vmul.f32 %v10463_v18, %v8250_v6  ;;  %v10486_v53 = vld [vmem:[#allocation56_spill] sm:$0xff] }
 0x30c   : > { %v4267_v39 = vadd.f32 %v4249_v28, %v4195_v22  ;;  %v4391_v58 = vrot.slane %v4347_v5, 2  ;;  %v4392_v10 = vrot.slane %v4355_v20, 2  ;;  %v4204_v15 = vmul.f32 %v10463_v18, %v7958_v40 }
 0x30d   : > { %v4410_v26 = vadd.f32 %v4390_v23, %v4338_v35  ;;  %v4180_v37 = vrot.slane %v4164_v32, 1  ;;  %v4212_v16 = vmul.f32 %v5666_v8, %v7958_v40  ;;  %v4308_v36 = vmul.f32 %v9239_v4, %v10486_v53 }
 0x30e   : > { %v4299_v7 = vadd.f32 %v4291_v21, %v4267_v39  ;;  %v4393_v60 = vsel %vm1529_vm0, %v4391_v58, %v4392_v10  ;;  %v4250_v1 = vrot.slane %v4204_v15, 2  ;;  %v4348_v18 = vmul.f32 %v9239_v4, %v10487_v59 }
 0x30f   : > { %5688 = vst [vmem:[%s7675_s27 + $0x1a8] sm:$0x7f] %v4410_v26  ;;  %v4196_v6 = vadd.f32 %v4180_v37, %v4148_v55  ;;  %v4251_v25 = vrot.slane %v4212_v16, 2  ;;  %v4356_v30 = vmul.f32 %v5682_v61, %v10487_v59  ;;  %v4292_v40 = vmul.f32 %v9239_v4, %v10488_v47 }
 0x310   : > { %v4339_v46 = vadd.f32 %v4323_v57, %v4299_v7  ;;  %v4394_v24 = vrot.slane %v4348_v18, 2  ;;  %v4324_v49 = vrot.slane %v4308_v36, 1 }
 0x311   : > { %v4252_v50 = vsel %vm1529_vm0, %v4250_v1, %v4251_v25  ;;  %v4395_v33 = vrot.slane %v4356_v30, 2 }
 0x312   : > { %v4411_v54 = vadd.f32 %v4393_v60, %v4339_v46  ;;  %v4268_v41 = vadd.f32 %v4252_v50, %v4196_v6 }
 0x313   : > { %v4396_v62 = vsel %vm1529_vm0, %v4394_v24, %v4395_v33 }
 0x314   : > { %5689 = vst [vmem:[%s7675_s27 + $0x1b0] sm:$0x7f] %v4411_v54  ;;  %v4300_v56 = vadd.f32 %v4292_v40, %v4268_v41  ;;  %4428 = sbr.rel (!%p6634_p6) target bundleno = 1020 (0x3fc), region = 164 }
 0x316   : > { %v4340_v0 = vadd.f32 %v4324_v49, %v4300_v56 }
 0x318   : > { %v4412_v9 = vadd.f32 %v4396_v62, %v4340_v0 }
 0x31a   : > { %5690 = vst [vmem:[%s7675_s27 + $0x1b8] sm:$0x7f] %v4412_v9 }
 0x31b   : > { %s10530_s15 = smov (!%p4431_p1, %s4430_s15), 8 }
 0x31c   : > { %s4433_s23 = smul.u32 896, %s10530_s15  ;;  %s9408_s5 = sshll.u32 %s10530_s15, 3 }
 0x31e   : > { %p5695_p2 = scmp.eq.s32.totalorder %s4433_s23, 0 }
 0x31f   : > { %p4443_p4 = scmp.lt.u32.totalorder (!%p5695_p2), %s9408_s5, 8 }
 0x320   : > { %4442 = sbr.rel (%p5695_p2) target bundleno = 1020 (0x3fc), region = 168 }
 0x327   : > { %4446 = sbr.rel (%p4443_p4) target bundleno = 1009 (0x3f1), region = 172  ;;  %s9412_s19 = sand.u32 (!%p4443_p4), 7, %s9408_s5  }
 0x328   : > { %p4474_p6 = scmp.eq.s32.totalorder (!%p4443_p4), %s9412_s19, 0  ;;  %p5696_p5 = scmp.ne.s32.totalorder (!%p4443_p4), %s9412_s19, 0 }
 0x32e   : > { %4477 = sbr.rel (%p5696_p5) target bundleno = 906 (0x38a), region = 187  ;;  %s4478_s11 = sshrl.u32 (!%p5696_p5), %s9408_s5, 3 }
 0x32f   : > { %6174 = sdivrem.u32 (!%p5696_p5), %s4478_s11, 12 }
 0x338   : > { %s9419_s6 = spop.drf %6174 }
 0x339   : > { %p5697_p7 = scmp.le.s32.totalorder %s9419_s6, 0 }
 0x33a   : > { %s10489_s18 = smov (!%p5697_p7), %s9406_s30  ;;  %s10490_s8 = smov (!%p5697_p7), %s7675_s27 }
 0x33b   : > { %5219 = sbr.rel (%p5697_p7) target bundleno = 877 (0x36d), region = 417  ;;  %s9428_s28 = smov (!%p5697_p7), 0  }
 0x33c   : > { %s9430_s29 = smov (!%p5697_p7), 0  }
 0x342 LB: >> { %v4492_v4 = vld [vmem:[%s6516_s8] sm:$0xff]  ;;  %v4494_v27 = vld [vmem:[%s6516_s8 + $0x8] sm:$0xff]  ;;  %v4496_v14 = vld [vmem:[%s6516_s8 + $0x10] sm:$0xff]  ;;  %s4660_s25 = sadd.s32 1, %s6520_s28  ;;  %s4486_s29 = sadd.s32 1, %s6524_s29   ;;  %s6524_s29 = sphi %s9430_s29, %s4486_s29   ;;  %s6520_s28 = sphi %s9428_s28, %s10494_s28   ;;  %s6516_s8 = sphi %s10490_s8, %s10493_s8   ;;  %s6512_s18 = sphi %s10489_s18, %s10492_s18  }
 0x343   : >> { %4493 = vst [vmem:[%s6512_s18] sm:$0xff] %v4492_v4  ;;  %4495 = vst [vmem:[%s6512_s18 + $0x8] sm:$0xff] %v4494_v27  ;;  %v4498_v29 = vld [vmem:[%s6516_s8 + $0x18] sm:$0xff]  ;;  %v4500_v51 = vld [vmem:[%s6516_s8 + $0x20] sm:$0xff]  ;;  %p9452_p8 = scmp.ge.s32.totalorder %s4660_s25, %s9419_s6  ;;  %p4485_p9 = scmp.ge.s32.totalorder %s4486_s29, %s9419_s6 }
 0x344   : >> { %4497 = vst [vmem:[%s6512_s18 + $0x10] sm:$0xff] %v4496_v14  ;;  %v4502_v44 = vld [vmem:[%s6516_s8 + $0x28] sm:$0xff]  ;;  %4499 = vst [vmem:[%s6512_s18 + $0x18] sm:$0xff] %v4498_v29  ;;  %v4504_v13 = vld [vmem:[%s6516_s8 + $0x30] sm:$0xff] }
 0x345   : >> { %4501 = vst [vmem:[%s6512_s18 + $0x20] sm:$0xff] %v4500_v51  ;;  %4503 = vst [vmem:[%s6512_s18 + $0x28] sm:$0xff] %v4502_v44  ;;  %v4506_v2 = vld [vmem:[%s6516_s8 + $0x38] sm:$0xff]  ;;  %v4508_v3 = vld [vmem:[%s6516_s8 + $0x40] sm:$0xff]  ;;  %s10532_s25 = smov (%p9452_p8, %s4660_s25), 0 }
 0x346   : >> { %4505 = vst [vmem:[%s6512_s18 + $0x30] sm:$0xff] %v4504_v13  ;;  %4507 = vst [vmem:[%s6512_s18 + $0x38] sm:$0xff] %v4506_v2  ;;  %v4510_v52 = vld [vmem:[%s6516_s8 + $0x48] sm:$0xff]  ;;  %v4512_v48 = vld [vmem:[%s6516_s8 + $0x50] sm:$0xff]  ;;  %s4663_s24 = smul.u32 96, %s10532_s25  ;;  %s10494_s28 = smov %s10532_s25 }
 0x347   : >> { %4509 = vst [vmem:[%s6512_s18 + $0x40] sm:$0xff] %v4508_v3  ;;  %v4514_v45 = vld [vmem:[%s6516_s8 + $0x58] sm:$0xff]  ;;  %4517 = vst [vmem:[%s6512_s18 + $0x78] sm:$0xff] %v4508_v3  ;;  %v4524_v31 = vld [vmem:[%s6516_s8 + $0x60] sm:$0xff] }
 0x348   : >> { %4511 = vst [vmem:[%s6512_s18 + $0x48] sm:$0xff] %v4510_v52  ;;  %4513 = vst [vmem:[%s6512_s18 + $0x50] sm:$0xff] %v4512_v48  ;;  %v4526_v43 = vld [vmem:[%s6516_s8 + $0x68] sm:$0xff]  ;;  %v4528_v63 = vld [vmem:[%s6516_s8 + $0x70] sm:$0xff]  ;;  %s9506_s3 = scalar_lea.vmem %s7675_s27, %s4663_s24 [#allocation4]   ;;  %s9509_s16 = scalar_lea.vmem %s9406_s30, %s4663_s24  }
 0x349   : >> { %4515 = vst [vmem:[%s6512_s18 + $0x58] sm:$0xff] %v4514_v45  ;;  %4519 = vst [vmem:[%s6512_s18 + $0x80] sm:$0xff] %v4510_v52  ;;  %v4530_v19 = vld [vmem:[%s6516_s8 + $0x78] sm:$0xff]  ;;  %v4532_v21 = vld [vmem:[%s6516_s8 + $0x80] sm:$0xff] }
 0x34a   : >> { %4521 = vst [vmem:[%s6512_s18 + $0x88] sm:$0xff] %v4512_v48  ;;  %4523 = vst [vmem:[%s6512_s18 + $0x90] sm:$0xff] %v4514_v45  ;;  %v4534_v12 = vld [vmem:[%s6516_s8 + $0x88] sm:$0xff]  ;;  %v4536_v17 = vld [vmem:[%s6516_s8 + $0x90] sm:$0xff] }
 0x34b   : >> { %4525 = vst [vmem:[%s6512_s18 + $0x98] sm:$0xff] %v4524_v31  ;;  %4527 = vst [vmem:[%s6512_s18 + $0xa0] sm:$0xff] %v4526_v43  ;;  %v4538_v38 = vld [vmem:[%s6516_s8 + $0x98] sm:$0xff]  ;;  %v4548_v23 = vld [vmem:[%s6516_s8 + $0xa0] sm:$0xff] }
 0x34c   : >> { %4529 = vst [vmem:[%s6512_s18 + $0xa8] sm:$0xff] %v4528_v63  ;;  %4531 = vst [vmem:[%s6512_s18 + $0xb0] sm:$0xff] %v4530_v19  ;;  %v4550_v42 = vld [vmem:[%s6516_s8 + $0xa8] sm:$0xff]  ;;  %v4552_v11 = vld [vmem:[%s6516_s8 + $0xb0] sm:$0xff] }
 0x34d   : >> { %4533 = vst [vmem:[%s6512_s18 + $0xb8] sm:$0xff] %v4532_v21  ;;  %4535 = vst [vmem:[%s6512_s18 + $0xc0] sm:$0xff] %v4534_v12  ;;  %v4554_v22 = vld [vmem:[%s6516_s8 + $0xb8] sm:$0xff]  ;;  %v4556_v57 = vld [vmem:[%s6516_s8 + $0xc0] sm:$0xff] }
 0x34e   : >> { %4541 = vst [vmem:[%s6512_s18 + $0xf0] sm:$0xff] %v4532_v21  ;;  %4543 = vst [vmem:[%s6512_s18 + $0xf8] sm:$0xff] %v4534_v12  ;;  %v4558_v34 = vld [vmem:[%s6516_s8 + $0xc8] sm:$0xff]  ;;  %v4560_v5 = vld [vmem:[%s6516_s8 + $0xd0] sm:$0xff] }
 0x34f   : >> { %4537 = vst [vmem:[%s6512_s18 + $0xc8] sm:$0xff] %v4536_v17  ;;  %4539 = vst [vmem:[%s6512_s18 + $0xd0] sm:$0xff] %v4538_v38  ;;  %v4562_v20 = vld [vmem:[%s6516_s8 + $0xd8] sm:$0xff]  ;;  %v4572_v8 = vld [vmem:[%s6516_s8 + $0xe0] sm:$0xff] }
 0x350   : >> { %4545 = vst [vmem:[%s6512_s18 + $0x100] sm:$0xff] %v4536_v17  ;;  %4547 = vst [vmem:[%s6512_s18 + $0x108] sm:$0xff] %v4538_v38  ;;  %v4574_v35 = vld [vmem:[%s6516_s8 + $0xe8] sm:$0xff]  ;;  %v4576_v28 = vld [vmem:[%s6516_s8 + $0xf0] sm:$0xff] }
 0x351   : >> { %4549 = vst [vmem:[%s6512_s18 + $0x110] sm:$0xff] %v4548_v23  ;;  %4551 = vst [vmem:[%s6512_s18 + $0x118] sm:$0xff] %v4550_v42  ;;  %v4578_v55 = vld [vmem:[%s6516_s8 + $0xf8] sm:$0xff]  ;;  %v4580_v32 = vld [vmem:[%s6516_s8 + $0x100] sm:$0xff] }
 0x352   : >> { %4553 = vst [vmem:[%s6512_s18 + $0x120] sm:$0xff] %v4552_v11  ;;  %4555 = vst [vmem:[%s6512_s18 + $0x128] sm:$0xff] %v4554_v22  ;;  %v4582_v39 = vld [vmem:[%s6516_s8 + $0x108] sm:$0xff]  ;;  %v4584_v58 = vld [vmem:[%s6516_s8 + $0x110] sm:$0xff] }
 0x353   : >> { %4557 = vst [vmem:[%s6512_s18 + $0x130] sm:$0xff] %v4556_v57  ;;  %4559 = vst [vmem:[%s6512_s18 + $0x138] sm:$0xff] %v4558_v34  ;;  %v4586_v10 = vld [vmem:[%s6516_s8 + $0x118] sm:$0xff]  ;;  %v4596_v15 = vld [vmem:[%s6516_s8 + $0x120] sm:$0xff] }
 0x354   : >> { %4561 = vst [vmem:[%s6512_s18 + $0x140] sm:$0xff] %v4560_v5  ;;  %4565 = vst [vmem:[%s6512_s18 + $0x168] sm:$0xff] %v4556_v57  ;;  %v4598_v61 = vld [vmem:[%s6516_s8 + $0x128] sm:$0xff]  ;;  %v4600_v26 = vld [vmem:[%s6516_s8 + $0x130] sm:$0xff] }
 0x355   : >> { %4567 = vst [vmem:[%s6512_s18 + $0x170] sm:$0xff] %v4558_v34  ;;  %4569 = vst [vmem:[%s6512_s18 + $0x178] sm:$0xff] %v4560_v5  ;;  %v4602_v37 = vld [vmem:[%s6516_s8 + $0x138] sm:$0xff]  ;;  %v4604_v16 = vld [vmem:[%s6516_s8 + $0x140] sm:$0xff] }
 0x356   : >> { %4563 = vst [vmem:[%s6512_s18 + $0x148] sm:$0xff] %v4562_v20  ;;  %4571 = vst [vmem:[%s6512_s18 + $0x180] sm:$0xff] %v4562_v20  ;;  %v4606_v7 = vld [vmem:[%s6516_s8 + $0x148] sm:$0xff]  ;;  %v4608_v60 = vld [vmem:[%s6516_s8 + $0x150] sm:$0xff] }
 0x357   : >> { %4573 = vst [vmem:[%s6512_s18 + $0x188] sm:$0xff] %v4572_v8  ;;  %4575 = vst [vmem:[%s6512_s18 + $0x190] sm:$0xff] %v4574_v35  ;;  %v4610_v1 = vld [vmem:[%s6516_s8 + $0x158] sm:$0xff]  ;;  %v4620_v53 = vld [vmem:[%s6516_s8 + $0x160] sm:$0xff] }
 0x358   : >> { %4577 = vst [vmem:[%s6512_s18 + $0x198] sm:$0xff] %v4576_v28  ;;  %4579 = vst [vmem:[%s6512_s18 + $0x1a0] sm:$0xff] %v4578_v55  ;;  %v4622_v36 = vld [vmem:[%s6516_s8 + $0x168] sm:$0xff]  ;;  %v4624_v6 = vld [vmem:[%s6516_s8 + $0x170] sm:$0xff] }
 0x359   : >> { %4581 = vst [vmem:[%s6512_s18 + $0x1a8] sm:$0xff] %v4580_v32  ;;  %4589 = vst [vmem:[%s6512_s18 + $0x1e0] sm:$0xff] %v4580_v32  ;;  %v4626_v25 = vld [vmem:[%s6516_s8 + $0x178] sm:$0xff]  ;;  %v4628_v59 = vld [vmem:[%s6516_s8 + $0x180] sm:$0xff] }
 0x35a   : >> { %4583 = vst [vmem:[%s6512_s18 + $0x1b0] sm:$0xff] %v4582_v39  ;;  %4585 = vst [vmem:[%s6512_s18 + $0x1b8] sm:$0xff] %v4584_v58  ;;  %v4630_v18 = vld [vmem:[%s6516_s8 + $0x188] sm:$0xff]  ;;  %v4632_v30 = vld [vmem:[%s6516_s8 + $0x190] sm:$0xff] }
 0x35b   : >> { %4587 = vst [vmem:[%s6512_s18 + $0x1c0] sm:$0xff] %v4586_v10  ;;  %4591 = vst [vmem:[%s6512_s18 + $0x1e8] sm:$0xff] %v4582_v39  ;;  %v4634_v46 = vld [vmem:[%s6516_s8 + $0x198] sm:$0xff]  ;;  %v4644_v47 = vld [vmem:[%s6516_s8 + $0x1a0] sm:$0xff] }
 0x35c   : >> { %4593 = vst [vmem:[%s6512_s18 + $0x1f0] sm:$0xff] %v4584_v58  ;;  %4595 = vst [vmem:[%s6512_s18 + $0x1f8] sm:$0xff] %v4586_v10  ;;  %v4646_v40 = vld [vmem:[%s6516_s8 + $0x1a8] sm:$0xff]  ;;  %v4648_v50 = vld [vmem:[%s6516_s8 + $0x1b0] sm:$0xff] }
 0x35d   : >> { %4597 = vst [vmem:[%s6512_s18 + $0x200] sm:$0xff] %v4596_v15  ;;  %4599 = vst [vmem:[%s6512_s18 + $0x208] sm:$0xff] %v4598_v61  ;;  %v4650_v24 = vld [vmem:[%s6516_s8 + $0x1b8] sm:$0xff]  ;;  %v4652_v33 = vld [vmem:[%s6516_s8 + $0x1c0] sm:$0xff] }
 0x35e   : >> { %4601 = vst [vmem:[%s6512_s18 + $0x210] sm:$0xff] %v4600_v26  ;;  %4603 = vst [vmem:[%s6512_s18 + $0x218] sm:$0xff] %v4602_v37  ;;  %v4654_v54 = vld [vmem:[%s6516_s8 + $0x1c8] sm:$0xff]  ;;  %v4656_v41 = vld [vmem:[%s6516_s8 + $0x1d0] sm:$0xff] }
 0x35f   : >> { %4605 = vst [vmem:[%s6512_s18 + $0x220] sm:$0xff] %v4604_v16  ;;  %4607 = vst [vmem:[%s6512_s18 + $0x228] sm:$0xff] %v4606_v7  ;;  %v4658_v49 = vld [vmem:[%s6516_s8 + $0x1d8] sm:$0xff]  ;;  %s10493_s8 = smov %s9506_s3 }
 0x360   : >> { %4613 = vst [vmem:[%s6512_s18 + $0x258] sm:$0xff] %v4604_v16  ;;  %4615 = vst [vmem:[%s6512_s18 + $0x260] sm:$0xff] %v4606_v7 }
 0x361   : >> { %4609 = vst [vmem:[%s6512_s18 + $0x230] sm:$0xff] %v4608_v60  ;;  %4611 = vst [vmem:[%s6512_s18 + $0x238] sm:$0xff] %v4610_v1 }
 0x362   : >> { %4617 = vst [vmem:[%s6512_s18 + $0x268] sm:$0xff] %v4608_v60  ;;  %4619 = vst [vmem:[%s6512_s18 + $0x270] sm:$0xff] %v4610_v1 }
 0x363   : >> { %4621 = vst [vmem:[%s6512_s18 + $0x278] sm:$0xff] %v4620_v53  ;;  %4623 = vst [vmem:[%s6512_s18 + $0x280] sm:$0xff] %v4622_v36 }
 0x364   : >> { %4625 = vst [vmem:[%s6512_s18 + $0x288] sm:$0xff] %v4624_v6  ;;  %4627 = vst [vmem:[%s6512_s18 + $0x290] sm:$0xff] %v4626_v25 }
 0x365   : >> { %4629 = vst [vmem:[%s6512_s18 + $0x298] sm:$0xff] %v4628_v59  ;;  %4631 = vst [vmem:[%s6512_s18 + $0x2a0] sm:$0xff] %v4630_v18 }
 0x366   : >> { %4633 = vst [vmem:[%s6512_s18 + $0x2a8] sm:$0xff] %v4632_v30  ;;  %4637 = vst [vmem:[%s6512_s18 + $0x2d0] sm:$0xff] %v4628_v59  ;;  %4488 = sbr.rel (!%p4485_p9) target bundleno = 834 (0x342), region = 423 }
 0x367   : >> { %4639 = vst [vmem:[%s6512_s18 + $0x2d8] sm:$0xff] %v4630_v18  ;;  %4641 = vst [vmem:[%s6512_s18 + $0x2e0] sm:$0xff] %v4632_v30 }
 0x368   : >> { %4635 = vst [vmem:[%s6512_s18 + $0x2b0] sm:$0xff] %v4634_v46  ;;  %4643 = vst [vmem:[%s6512_s18 + $0x2e8] sm:$0xff] %v4634_v46 }
 0x369   : >> { %4645 = vst [vmem:[%s6512_s18 + $0x2f0] sm:$0xff] %v4644_v47  ;;  %4647 = vst [vmem:[%s6512_s18 + $0x2f8] sm:$0xff] %v4646_v40 }
 0x36a   : >> { %4649 = vst [vmem:[%s6512_s18 + $0x300] sm:$0xff] %v4648_v50  ;;  %4651 = vst [vmem:[%s6512_s18 + $0x308] sm:$0xff] %v4650_v24 }
 0x36b   : >> { %4653 = vst [vmem:[%s6512_s18 + $0x310] sm:$0xff] %v4652_v33  ;;  %4655 = vst [vmem:[%s6512_s18 + $0x318] sm:$0xff] %v4654_v54 }
 0x36c   : >> { %4657 = vst [vmem:[%s6512_s18 + $0x320] sm:$0xff] %v4656_v41  ;;  %4659 = vst [vmem:[%s6512_s18 + $0x328] sm:$0xff] %v4658_v49  ;;  %s10492_s18 = smov %s9509_s16 }
 0x36d PF: > { %6176 = sdivrem.u32 %s4478_s11, 12 }
 0x36e   : > { %s5698_s9 = smul.u32 1536, %s9419_s6 }
 0x370   : > { %s4671_s17 = sshra.s32 %s5698_s9, 4 }
 0x371   : > { %s9619_s21 = scalar_lea.vmem %s7675_s27, %s4671_s17 [#allocation4]   ;;  %s9622_s7 = scalar_lea.vmem %s9406_s30, %s4671_s17  }
 0x376   : > { %s9624_s15 = spop.drf %6176 }
 0x377   : > { %p5700_p10 = scmp.le.s32.totalorder %s9624_s15, 0 }
 0x378   : > { %s10495_s4 = smov (!%p5700_p10), %s9622_s7  ;;  %s10496_s22 = smov (!%p5700_p10), %s9619_s21 }
 0x379   : > { %5233 = sbr.rel (%p5700_p10) target bundleno = 906 (0x38a), region = 428  ;;  %s9633_s23 = smov (!%p5700_p10), 0  }
 0x37a   : > { %s9635_s11 = smov (!%p5700_p10), 0  }
 0x380 LB: >> { %v4687_v56 = vld [vmem:[%s6532_s22] sm:$0xff]  ;;  %s4701_s6 = sadd.s32 1, %s6536_s23  ;;  %s4681_s11 = sadd.s32 1, %s6540_s11   ;;  %s6540_s11 = sphi %s9635_s11, %s4681_s11   ;;  %s6536_s23 = sphi %s9633_s23, %s10497_s23   ;;  %s6532_s22 = sphi %s10496_s22, %s4706_s22   ;;  %s6528_s4 = sphi %s10495_s4, %s4707_s4  }
 0x381   : >> { %v4689_v62 = vld [vmem:[%s6532_s22 + $0x40] sm:$0xff]  ;;  %4688 = vst [vmem:[%s6528_s4] sm:$0xff] %v4687_v56  ;;  %p4702_p11 = scmp.ge.s32.totalorder %s4701_s6, %s9624_s15  ;;  %p4680_p12 = scmp.ge.s32.totalorder %s4681_s11, %s9624_s15 }
 0x382   : >> { %v4691_v0 = vld [vmem:[%s6532_s22 + $0x80] sm:$0xff]  ;;  %4690 = vst [vmem:[%s6528_s4 + $0x78] sm:$0xff] %v4689_v62 }
 0x383   : >> { %4692 = vst [vmem:[%s6528_s4 + $0xf0] sm:$0xff] %v4691_v0  ;;  %v4693_v9 = vld [vmem:[%s6532_s22 + $0xc0] sm:$0xff]  ;;  %s10534_s6 = smov (%p4702_p11, %s4701_s6), 0  ;;  %4683 = sbr.rel (!%p4680_p12) target bundleno = 896 (0x380), region = 434 }
 0x384   : >> { %v4695_v4 = vld [vmem:[%s6532_s22 + $0x100] sm:$0xff]  ;;  %4694 = vst [vmem:[%s6528_s4 + $0x168] sm:$0xff] %v4693_v9  ;;  %s5701_s18 = sshll.u32 %s10534_s6, 3  ;;  %s10497_s23 = smov %s10534_s6 }
 0x385   : >> { %v4697_v27 = vld [vmem:[%s6532_s22 + $0x140] sm:$0xff]  ;;  %4696 = vst [vmem:[%s6528_s4 + $0x1e0] sm:$0xff] %v4695_v4 }
 0x386   : >> { %4698 = vst [vmem:[%s6528_s4 + $0x258] sm:$0xff] %v4697_v27  ;;  %v4699_v14 = vld [vmem:[%s6532_s22 + $0x180] sm:$0xff]  ;;  %s4706_s22 = scalar_lea.vmem %s9619_s21, %s5701_s18 [#allocation4]  }
 0x387   : >> { %4700 = vst [vmem:[%s6528_s4 + $0x2d0] sm:$0xff] %v4699_v14  ;;  %s4707_s4 = scalar_lea.vmem %s9622_s7, %s5701_s18  }
 0x38a PF: > { %4710 = sbr.rel (%p4474_p6) target bundleno = 1009 (0x3f1), region = 205  ;;  %s4712_s8 = ssub.s32 (!%p4474_p6), %s9408_s5, %s9412_s19 }
 0x38b   : > { %s4716_s28 = sshrl.u32 (!%p4474_p6), %s9408_s5, 3  ;;  %s9659_s29 = scalar_lea.vmem (!%p4474_p6), %s7675_s27, %s4712_s8 [#allocation4] }
 0x38c   : > { %s9662_s25 = scalar_lea.vmem (!%p4474_p6), %s9406_s30, %s4712_s8  ;;  %6178 = sdivrem.u32 (!%p4474_p6), %s4716_s28, 12 }
 0x395   : > { %s9666_s26 = spop.drf %6178 }
 0x396   : > { %p5703_p13 = scmp.le.s32.totalorder %s9666_s26, 0 }
 0x397   : > { %s10498_s24 = smov (!%p5703_p13), %s9406_s30  ;;  %s10499_s3 = smov (!%p5703_p13), %s7675_s27 }
 0x398   : > { %5247 = sbr.rel (%p5703_p13) target bundleno = 970 (0x3ca), region = 439  ;;  %s9675_s16 = smov (!%p5703_p13), 0  }
 0x399   : > { %s9677_s9 = smov (!%p5703_p13), 0  }
 0x39f LB: >> { %v4730_v29 = vld [vmem:[%s6548_s3] sm:$0xff]  ;;  %v4732_v51 = vld [vmem:[%s6548_s3 + $0x8] sm:$0xff]  ;;  %v4734_v44 = vld [vmem:[%s6548_s3 + $0x10] sm:$0xff]  ;;  %s4898_s17 = sadd.s32 1, %s6552_s16  ;;  %s4724_s9 = sadd.s32 1, %s6556_s9   ;;  %s6556_s9 = sphi %s9677_s9, %s4724_s9   ;;  %s6552_s16 = sphi %s9675_s16, %s10503_s16   ;;  %s6548_s3 = sphi %s10499_s3, %s10502_s3   ;;  %s6544_s24 = sphi %s10498_s24, %s10501_s24  }
 0x3a0   : >> { %4731 = vst [vmem:[%s6544_s24] sm:$0xff] %v4730_v29  ;;  %4733 = vst [vmem:[%s6544_s24 + $0x8] sm:$0xff] %v4732_v51  ;;  %v4736_v13 = vld [vmem:[%s6548_s3 + $0x18] sm:$0xff]  ;;  %v4738_v2 = vld [vmem:[%s6548_s3 + $0x20] sm:$0xff]  ;;  %p9699_p0 = scmp.ge.s32.totalorder %s4898_s17, %s9666_s26  ;;  %p4723_p3 = scmp.ge.s32.totalorder %s4724_s9, %s9666_s26 }
 0x3a1   : >> { %4735 = vst [vmem:[%s6544_s24 + $0x10] sm:$0xff] %v4734_v44  ;;  %v4740_v3 = vld [vmem:[%s6548_s3 + $0x28] sm:$0xff]  ;;  %4737 = vst [vmem:[%s6544_s24 + $0x18] sm:$0xff] %v4736_v13  ;;  %v4742_v52 = vld [vmem:[%s6548_s3 + $0x30] sm:$0xff] }
 0x3a2   : >> { %4739 = vst [vmem:[%s6544_s24 + $0x20] sm:$0xff] %v4738_v2  ;;  %4741 = vst [vmem:[%s6544_s24 + $0x28] sm:$0xff] %v4740_v3  ;;  %v4744_v48 = vld [vmem:[%s6548_s3 + $0x38] sm:$0xff]  ;;  %v4746_v45 = vld [vmem:[%s6548_s3 + $0x40] sm:$0xff]  ;;  %s10536_s17 = smov (%p9699_p0, %s4898_s17), 0 }
 0x3a3   : >> { %4743 = vst [vmem:[%s6544_s24 + $0x30] sm:$0xff] %v4742_v52  ;;  %4745 = vst [vmem:[%s6544_s24 + $0x38] sm:$0xff] %v4744_v48  ;;  %v4748_v31 = vld [vmem:[%s6548_s3 + $0x48] sm:$0xff]  ;;  %v4750_v43 = vld [vmem:[%s6548_s3 + $0x50] sm:$0xff]  ;;  %s4901_s7 = smul.u32 96, %s10536_s17  ;;  %s10503_s16 = smov %s10536_s17 }
 0x3a4   : >> { %4747 = vst [vmem:[%s6544_s24 + $0x40] sm:$0xff] %v4746_v45  ;;  %v4752_v63 = vld [vmem:[%s6548_s3 + $0x58] sm:$0xff]  ;;  %4755 = vst [vmem:[%s6544_s24 + $0x78] sm:$0xff] %v4746_v45  ;;  %v4762_v19 = vld [vmem:[%s6548_s3 + $0x60] sm:$0xff] }
 0x3a5   : >> { %4749 = vst [vmem:[%s6544_s24 + $0x48] sm:$0xff] %v4748_v31  ;;  %4751 = vst [vmem:[%s6544_s24 + $0x50] sm:$0xff] %v4750_v43  ;;  %v4764_v21 = vld [vmem:[%s6548_s3 + $0x68] sm:$0xff]  ;;  %v4766_v12 = vld [vmem:[%s6548_s3 + $0x70] sm:$0xff]  ;;  %s9753_s15 = scalar_lea.vmem %s7675_s27, %s4901_s7 [#allocation4]   ;;  %s9756_s4 = scalar_lea.vmem %s9406_s30, %s4901_s7  }
 0x3a6   : >> { %4753 = vst [vmem:[%s6544_s24 + $0x58] sm:$0xff] %v4752_v63  ;;  %4757 = vst [vmem:[%s6544_s24 + $0x80] sm:$0xff] %v4748_v31  ;;  %v4768_v17 = vld [vmem:[%s6548_s3 + $0x78] sm:$0xff]  ;;  %v4770_v38 = vld [vmem:[%s6548_s3 + $0x80] sm:$0xff] }
 0x3a7   : >> { %4759 = vst [vmem:[%s6544_s24 + $0x88] sm:$0xff] %v4750_v43  ;;  %4761 = vst [vmem:[%s6544_s24 + $0x90] sm:$0xff] %v4752_v63  ;;  %v4772_v23 = vld [vmem:[%s6548_s3 + $0x88] sm:$0xff]  ;;  %v4774_v42 = vld [vmem:[%s6548_s3 + $0x90] sm:$0xff] }
 0x3a8   : >> { %4763 = vst [vmem:[%s6544_s24 + $0x98] sm:$0xff] %v4762_v19  ;;  %4765 = vst [vmem:[%s6544_s24 + $0xa0] sm:$0xff] %v4764_v21  ;;  %v4776_v11 = vld [vmem:[%s6548_s3 + $0x98] sm:$0xff]  ;;  %v4786_v22 = vld [vmem:[%s6548_s3 + $0xa0] sm:$0xff] }
 0x3a9   : >> { %4767 = vst [vmem:[%s6544_s24 + $0xa8] sm:$0xff] %v4766_v12  ;;  %4769 = vst [vmem:[%s6544_s24 + $0xb0] sm:$0xff] %v4768_v17  ;;  %v4788_v57 = vld [vmem:[%s6548_s3 + $0xa8] sm:$0xff]  ;;  %v4790_v34 = vld [vmem:[%s6548_s3 + $0xb0] sm:$0xff] }
 0x3aa   : >> { %4771 = vst [vmem:[%s6544_s24 + $0xb8] sm:$0xff] %v4770_v38  ;;  %4773 = vst [vmem:[%s6544_s24 + $0xc0] sm:$0xff] %v4772_v23  ;;  %v4792_v5 = vld [vmem:[%s6548_s3 + $0xb8] sm:$0xff]  ;;  %v4794_v20 = vld [vmem:[%s6548_s3 + $0xc0] sm:$0xff] }
 0x3ab   : >> { %4779 = vst [vmem:[%s6544_s24 + $0xf0] sm:$0xff] %v4770_v38  ;;  %4781 = vst [vmem:[%s6544_s24 + $0xf8] sm:$0xff] %v4772_v23  ;;  %v4796_v8 = vld [vmem:[%s6548_s3 + $0xc8] sm:$0xff]  ;;  %v4798_v35 = vld [vmem:[%s6548_s3 + $0xd0] sm:$0xff] }
 0x3ac   : >> { %4775 = vst [vmem:[%s6544_s24 + $0xc8] sm:$0xff] %v4774_v42  ;;  %4777 = vst [vmem:[%s6544_s24 + $0xd0] sm:$0xff] %v4776_v11  ;;  %v4800_v28 = vld [vmem:[%s6548_s3 + $0xd8] sm:$0xff]  ;;  %v4810_v55 = vld [vmem:[%s6548_s3 + $0xe0] sm:$0xff] }
 0x3ad   : >> { %4783 = vst [vmem:[%s6544_s24 + $0x100] sm:$0xff] %v4774_v42  ;;  %4785 = vst [vmem:[%s6544_s24 + $0x108] sm:$0xff] %v4776_v11  ;;  %v4812_v32 = vld [vmem:[%s6548_s3 + $0xe8] sm:$0xff]  ;;  %v4814_v39 = vld [vmem:[%s6548_s3 + $0xf0] sm:$0xff] }
 0x3ae   : >> { %4787 = vst [vmem:[%s6544_s24 + $0x110] sm:$0xff] %v4786_v22  ;;  %4789 = vst [vmem:[%s6544_s24 + $0x118] sm:$0xff] %v4788_v57  ;;  %v4816_v58 = vld [vmem:[%s6548_s3 + $0xf8] sm:$0xff]  ;;  %v4818_v10 = vld [vmem:[%s6548_s3 + $0x100] sm:$0xff] }
 0x3af   : >> { %4791 = vst [vmem:[%s6544_s24 + $0x120] sm:$0xff] %v4790_v34  ;;  %4793 = vst [vmem:[%s6544_s24 + $0x128] sm:$0xff] %v4792_v5  ;;  %v4820_v15 = vld [vmem:[%s6548_s3 + $0x108] sm:$0xff]  ;;  %v4822_v61 = vld [vmem:[%s6548_s3 + $0x110] sm:$0xff] }
 0x3b0   : >> { %4795 = vst [vmem:[%s6544_s24 + $0x130] sm:$0xff] %v4794_v20  ;;  %4797 = vst [vmem:[%s6544_s24 + $0x138] sm:$0xff] %v4796_v8  ;;  %v4824_v26 = vld [vmem:[%s6548_s3 + $0x118] sm:$0xff]  ;;  %v4834_v37 = vld [vmem:[%s6548_s3 + $0x120] sm:$0xff] }
 0x3b1   : >> { %4799 = vst [vmem:[%s6544_s24 + $0x140] sm:$0xff] %v4798_v35  ;;  %4803 = vst [vmem:[%s6544_s24 + $0x168] sm:$0xff] %v4794_v20  ;;  %v4836_v16 = vld [vmem:[%s6548_s3 + $0x128] sm:$0xff]  ;;  %v4838_v7 = vld [vmem:[%s6548_s3 + $0x130] sm:$0xff] }
 0x3b2   : >> { %4805 = vst [vmem:[%s6544_s24 + $0x170] sm:$0xff] %v4796_v8  ;;  %4807 = vst [vmem:[%s6544_s24 + $0x178] sm:$0xff] %v4798_v35  ;;  %v4840_v60 = vld [vmem:[%s6548_s3 + $0x138] sm:$0xff]  ;;  %v4842_v1 = vld [vmem:[%s6548_s3 + $0x140] sm:$0xff] }
 0x3b3   : >> { %4801 = vst [vmem:[%s6544_s24 + $0x148] sm:$0xff] %v4800_v28  ;;  %4809 = vst [vmem:[%s6544_s24 + $0x180] sm:$0xff] %v4800_v28  ;;  %v4844_v53 = vld [vmem:[%s6548_s3 + $0x148] sm:$0xff]  ;;  %v4846_v36 = vld [vmem:[%s6548_s3 + $0x150] sm:$0xff] }
 0x3b4   : >> { %4811 = vst [vmem:[%s6544_s24 + $0x188] sm:$0xff] %v4810_v55  ;;  %4813 = vst [vmem:[%s6544_s24 + $0x190] sm:$0xff] %v4812_v32  ;;  %v4848_v6 = vld [vmem:[%s6548_s3 + $0x158] sm:$0xff]  ;;  %v4858_v25 = vld [vmem:[%s6548_s3 + $0x160] sm:$0xff] }
 0x3b5   : >> { %4815 = vst [vmem:[%s6544_s24 + $0x198] sm:$0xff] %v4814_v39  ;;  %4817 = vst [vmem:[%s6544_s24 + $0x1a0] sm:$0xff] %v4816_v58  ;;  %v4860_v59 = vld [vmem:[%s6548_s3 + $0x168] sm:$0xff]  ;;  %v4862_v18 = vld [vmem:[%s6548_s3 + $0x170] sm:$0xff] }
 0x3b6   : >> { %4819 = vst [vmem:[%s6544_s24 + $0x1a8] sm:$0xff] %v4818_v10  ;;  %4827 = vst [vmem:[%s6544_s24 + $0x1e0] sm:$0xff] %v4818_v10  ;;  %v4864_v30 = vld [vmem:[%s6548_s3 + $0x178] sm:$0xff]  ;;  %v4866_v46 = vld [vmem:[%s6548_s3 + $0x180] sm:$0xff] }
 0x3b7   : >> { %4821 = vst [vmem:[%s6544_s24 + $0x1b0] sm:$0xff] %v4820_v15  ;;  %4823 = vst [vmem:[%s6544_s24 + $0x1b8] sm:$0xff] %v4822_v61  ;;  %v4868_v47 = vld [vmem:[%s6548_s3 + $0x188] sm:$0xff]  ;;  %v4870_v40 = vld [vmem:[%s6548_s3 + $0x190] sm:$0xff] }
 0x3b8   : >> { %4825 = vst [vmem:[%s6544_s24 + $0x1c0] sm:$0xff] %v4824_v26  ;;  %4829 = vst [vmem:[%s6544_s24 + $0x1e8] sm:$0xff] %v4820_v15  ;;  %v4872_v50 = vld [vmem:[%s6548_s3 + $0x198] sm:$0xff]  ;;  %v4882_v24 = vld [vmem:[%s6548_s3 + $0x1a0] sm:$0xff] }
 0x3b9   : >> { %4831 = vst [vmem:[%s6544_s24 + $0x1f0] sm:$0xff] %v4822_v61  ;;  %4833 = vst [vmem:[%s6544_s24 + $0x1f8] sm:$0xff] %v4824_v26  ;;  %v4884_v33 = vld [vmem:[%s6548_s3 + $0x1a8] sm:$0xff]  ;;  %v4886_v54 = vld [vmem:[%s6548_s3 + $0x1b0] sm:$0xff] }
 0x3ba   : >> { %4835 = vst [vmem:[%s6544_s24 + $0x200] sm:$0xff] %v4834_v37  ;;  %4837 = vst [vmem:[%s6544_s24 + $0x208] sm:$0xff] %v4836_v16  ;;  %v4888_v41 = vld [vmem:[%s6548_s3 + $0x1b8] sm:$0xff]  ;;  %v4890_v49 = vld [vmem:[%s6548_s3 + $0x1c0] sm:$0xff] }
 0x3bb   : >> { %4839 = vst [vmem:[%s6544_s24 + $0x210] sm:$0xff] %v4838_v7  ;;  %4841 = vst [vmem:[%s6544_s24 + $0x218] sm:$0xff] %v4840_v60  ;;  %v4892_v56 = vld [vmem:[%s6548_s3 + $0x1c8] sm:$0xff]  ;;  %v4894_v62 = vld [vmem:[%s6548_s3 + $0x1d0] sm:$0xff] }
 0x3bc   : >> { %4843 = vst [vmem:[%s6544_s24 + $0x220] sm:$0xff] %v4842_v1  ;;  %4845 = vst [vmem:[%s6544_s24 + $0x228] sm:$0xff] %v4844_v53  ;;  %v4896_v0 = vld [vmem:[%s6548_s3 + $0x1d8] sm:$0xff]  ;;  %s10502_s3 = smov %s9753_s15 }
 0x3bd   : >> { %4851 = vst [vmem:[%s6544_s24 + $0x258] sm:$0xff] %v4842_v1  ;;  %4853 = vst [vmem:[%s6544_s24 + $0x260] sm:$0xff] %v4844_v53 }
 0x3be   : >> { %4847 = vst [vmem:[%s6544_s24 + $0x230] sm:$0xff] %v4846_v36  ;;  %4849 = vst [vmem:[%s6544_s24 + $0x238] sm:$0xff] %v4848_v6 }
 0x3bf   : >> { %4855 = vst [vmem:[%s6544_s24 + $0x268] sm:$0xff] %v4846_v36  ;;  %4857 = vst [vmem:[%s6544_s24 + $0x270] sm:$0xff] %v4848_v6 }
 0x3c0   : >> { %4859 = vst [vmem:[%s6544_s24 + $0x278] sm:$0xff] %v4858_v25  ;;  %4861 = vst [vmem:[%s6544_s24 + $0x280] sm:$0xff] %v4860_v59 }
 0x3c1   : >> { %4863 = vst [vmem:[%s6544_s24 + $0x288] sm:$0xff] %v4862_v18  ;;  %4865 = vst [vmem:[%s6544_s24 + $0x290] sm:$0xff] %v4864_v30 }
 0x3c2   : >> { %4867 = vst [vmem:[%s6544_s24 + $0x298] sm:$0xff] %v4866_v46  ;;  %4869 = vst [vmem:[%s6544_s24 + $0x2a0] sm:$0xff] %v4868_v47 }
 0x3c3   : >> { %4871 = vst [vmem:[%s6544_s24 + $0x2a8] sm:$0xff] %v4870_v40  ;;  %4875 = vst [vmem:[%s6544_s24 + $0x2d0] sm:$0xff] %v4866_v46  ;;  %4726 = sbr.rel (!%p4723_p3) target bundleno = 927 (0x39f), region = 445 }
 0x3c4   : >> { %4877 = vst [vmem:[%s6544_s24 + $0x2d8] sm:$0xff] %v4868_v47  ;;  %4879 = vst [vmem:[%s6544_s24 + $0x2e0] sm:$0xff] %v4870_v40 }
 0x3c5   : >> { %4873 = vst [vmem:[%s6544_s24 + $0x2b0] sm:$0xff] %v4872_v50  ;;  %4881 = vst [vmem:[%s6544_s24 + $0x2e8] sm:$0xff] %v4872_v50 }
 0x3c6   : >> { %4883 = vst [vmem:[%s6544_s24 + $0x2f0] sm:$0xff] %v4882_v24  ;;  %4885 = vst [vmem:[%s6544_s24 + $0x2f8] sm:$0xff] %v4884_v33 }
 0x3c7   : >> { %4887 = vst [vmem:[%s6544_s24 + $0x300] sm:$0xff] %v4886_v54  ;;  %4889 = vst [vmem:[%s6544_s24 + $0x308] sm:$0xff] %v4888_v41 }
 0x3c8   : >> { %4891 = vst [vmem:[%s6544_s24 + $0x310] sm:$0xff] %v4890_v49  ;;  %4893 = vst [vmem:[%s6544_s24 + $0x318] sm:$0xff] %v4892_v56 }
 0x3c9   : >> { %4895 = vst [vmem:[%s6544_s24 + $0x320] sm:$0xff] %v4894_v62  ;;  %4897 = vst [vmem:[%s6544_s24 + $0x328] sm:$0xff] %v4896_v0  ;;  %s10501_s24 = smov %s9756_s4 }
 0x3ca PF: > { %6180 = sdivrem.u32 %s4716_s28, 12 }
 0x3cb   : > { %s5704_s22 = smul.u32 1536, %s9666_s26 }
 0x3cd   : > { %s4909_s23 = sshra.s32 %s5704_s22, 4 }
 0x3ce   : > { %s9866_s11 = scalar_lea.vmem %s7675_s27, %s4909_s23 [#allocation4]   ;;  %s9869_s6 = scalar_lea.vmem %s9406_s30, %s4909_s23  }
 0x3d3   : > { %s9871_s18 = spop.drf %6180 }
 0x3d4   : > { %p5706_p1 = scmp.le.s32.totalorder %s9871_s18, 0 }
 0x3d5   : > { %s10504_s8 = smov (!%p5706_p1), %s9869_s6  ;;  %s10505_s24 = smov (!%p5706_p1), %s9866_s11 }
 0x3d6   : > { %5261 = sbr.rel (%p5706_p1) target bundleno = 999 (0x3e7), region = 450  ;;  %s9880_s3 = smov (!%p5706_p1), 0  }
 0x3d7   : > { %s9882_s28 = smov (!%p5706_p1), 0  }
 0x3dd LB: >> { %v4925_v9 = vld [vmem:[%s6564_s24] sm:$0xff]  ;;  %s4939_s26 = sadd.s32 1, %s6568_s3  ;;  %s4919_s28 = sadd.s32 1, %s6572_s28   ;;  %s6572_s28 = sphi %s9882_s28, %s4919_s28   ;;  %s6568_s3 = sphi %s9880_s3, %s10506_s3   ;;  %s6564_s24 = sphi %s10505_s24, %s4944_s24   ;;  %s6560_s8 = sphi %s10504_s8, %s4945_s8  }
 0x3de   : >> { %v4927_v4 = vld [vmem:[%s6564_s24 + $0x40] sm:$0xff]  ;;  %4926 = vst [vmem:[%s6560_s8] sm:$0xff] %v4925_v9  ;;  %p4940_p2 = scmp.ge.s32.totalorder %s4939_s26, %s9871_s18  ;;  %p4918_p4 = scmp.ge.s32.totalorder %s4919_s28, %s9871_s18 }
 0x3df   : >> { %v4929_v27 = vld [vmem:[%s6564_s24 + $0x80] sm:$0xff]  ;;  %4928 = vst [vmem:[%s6560_s8 + $0x78] sm:$0xff] %v4927_v4 }
 0x3e0   : >> { %4930 = vst [vmem:[%s6560_s8 + $0xf0] sm:$0xff] %v4929_v27  ;;  %v4931_v14 = vld [vmem:[%s6564_s24 + $0xc0] sm:$0xff]  ;;  %s10538_s26 = smov (%p4940_p2, %s4939_s26), 0  ;;  %4921 = sbr.rel (!%p4918_p4) target bundleno = 989 (0x3dd), region = 456 }
 0x3e1   : >> { %v4933_v29 = vld [vmem:[%s6564_s24 + $0x100] sm:$0xff]  ;;  %4932 = vst [vmem:[%s6560_s8 + $0x168] sm:$0xff] %v4931_v14  ;;  %s5707_s16 = sshll.u32 %s10538_s26, 3  ;;  %s10506_s3 = smov %s10538_s26 }
 0x3e2   : >> { %v4935_v51 = vld [vmem:[%s6564_s24 + $0x140] sm:$0xff]  ;;  %4934 = vst [vmem:[%s6560_s8 + $0x1e0] sm:$0xff] %v4933_v29 }
 0x3e3   : >> { %4936 = vst [vmem:[%s6560_s8 + $0x258] sm:$0xff] %v4935_v51  ;;  %v4937_v44 = vld [vmem:[%s6564_s24 + $0x180] sm:$0xff]  ;;  %s4944_s24 = scalar_lea.vmem %s9866_s11, %s5707_s16 [#allocation4]  }
 0x3e4   : >> { %4938 = vst [vmem:[%s6560_s8 + $0x2d0] sm:$0xff] %v4937_v44  ;;  %s4945_s8 = scalar_lea.vmem %s9869_s6, %s5707_s16  }
 0x3e7 PF: > { %s6578_s9 = smov 0  }
 0x3e8   : > { %s4946_s17 = sshllo.u32 %s6578_s9, %s9412_s19 }
 0x3e9   : > { %v4955_v13 = vld [vmem:[%s9659_s29] sm:%s4946_s17] }
 0x3ea   : > { %v4957_v2 = vld [vmem:[%s9659_s29 + $0x40] sm:%s4946_s17]  ;;  %4956 = vst [vmem:[%s9662_s25] sm:%s4946_s17] %v4955_v13 }
 0x3eb   : > { %4958 = vst [vmem:[%s9662_s25 + $0x78] sm:%s4946_s17] %v4957_v2  ;;  %v4959_v3 = vld [vmem:[%s9659_s29 + $0x80] sm:%s4946_s17] }
 0x3ec   : > { %v4961_v52 = vld [vmem:[%s9659_s29 + $0xc0] sm:%s4946_s17]  ;;  %4960 = vst [vmem:[%s9662_s25 + $0xf0] sm:%s4946_s17] %v4959_v3 }
 0x3ed   : > { %4962 = vst [vmem:[%s9662_s25 + $0x168] sm:%s4946_s17] %v4961_v52  ;;  %v4963_v48 = vld [vmem:[%s9659_s29 + $0x100] sm:%s4946_s17] }
 0x3ee   : > { %v4965_v45 = vld [vmem:[%s9659_s29 + $0x140] sm:%s4946_s17]  ;;  %4964 = vst [vmem:[%s9662_s25 + $0x1e0] sm:%s4946_s17] %v4963_v48 }
 0x3ef   : > { %4966 = vst [vmem:[%s9662_s25 + $0x258] sm:%s4946_s17] %v4965_v45  ;;  %v4967_v31 = vld [vmem:[%s9659_s29 + $0x180] sm:%s4946_s17] }
 0x3f0   : > { %4968 = vst [vmem:[%s9662_s25 + $0x2d0] sm:%s4946_s17] %v4967_v31 }
 0x3f1 PF: > { %p5709_p6 = scmp.ge.u32.totalorder %s9408_s5, 8 }
 0x3f2   : > { %s6579_s19 = smov (!%p5709_p6), 0  }
 0x3f3   : > { %4449 = sbr.rel (%p5709_p6) target bundleno = 1020 (0x3fc), region = 176  ;;  %s4450_s29 = sshllo.u32 (!%p5709_p6), %s6579_s19, %s9408_s5 }
 0x3f4   : > { %v4459_v43 = vld [vmem:[%s7675_s27] sm:%s4450_s29] (!%p5709_p6) }
 0x3f5   : > { %v4461_v63 = vld [vmem:[%s7675_s27 + $0x40] sm:%s4450_s29] (!%p5709_p6)  ;;  %4460 = vst [vmem:[%s9406_s30] sm:%s4450_s29] (!%p5709_p6), %v4459_v43 }
 0x3f6   : > { %4462 = vst [vmem:[%s9406_s30 + $0x78] sm:%s4450_s29] (!%p5709_p6), %v4461_v63  ;;  %v4463_v19 = vld [vmem:[%s7675_s27 + $0x80] sm:%s4450_s29] (!%p5709_p6) }
 0x3f7   : > { %v4465_v21 = vld [vmem:[%s7675_s27 + $0xc0] sm:%s4450_s29] (!%p5709_p6)  ;;  %4464 = vst [vmem:[%s9406_s30 + $0xf0] sm:%s4450_s29] (!%p5709_p6), %v4463_v19 }
 0x3f8   : > { %4466 = vst [vmem:[%s9406_s30 + $0x168] sm:%s4450_s29] (!%p5709_p6), %v4465_v21  ;;  %v4467_v12 = vld [vmem:[%s7675_s27 + $0x100] sm:%s4450_s29] (!%p5709_p6) }
 0x3f9   : > { %v4469_v17 = vld [vmem:[%s7675_s27 + $0x140] sm:%s4450_s29] (!%p5709_p6)  ;;  %4468 = vst [vmem:[%s9406_s30 + $0x1e0] sm:%s4450_s29] (!%p5709_p6), %v4467_v12 }
 0x3fa   : > { %4470 = vst [vmem:[%s9406_s30 + $0x258] sm:%s4450_s29] %v4469_v17  ;;  %v4471_v38 = vld [vmem:[%s7675_s27 + $0x180] sm:%s4450_s29] }
 0x3fb   : > { %4472 = vst [vmem:[%s9406_s30 + $0x2d0] sm:%s4450_s29] %v4471_v38 }
 0x3fc PF: > { %s12_s13 = sadd.s32 1, %s6412_s13   ;;  %s10507_s9 = smov %s6400_s10 }
 0x3fd   : > { %p9_p5 = scmp.ge.s32.totalorder %s12_s13, 4   ;;  %s10508_s10 = smov %s6639_s20 }
 0x3fe   : > { %s10509_s11 = smov %s6408_s12  ;;  %s10510_s12 = smov %s10512_s14 }
 0x3ff   :  { %11 = sbr.rel (!%p9_p5) target bundleno = 3 (0x3), region = 467 }

</bundles_post_ra>
